<compile_context>
chip_gen: v6e
topology: v6e:2x2x1
jax: 0.10.0
libtpu: 0.0.40
codegen_flags: <defaults>
</compile_context>

<pallas_src>
import functools

import jax
import jax.numpy as jnp
from jax import lax
from jax.experimental import pallas as pl
from jax.experimental.pallas import tpu as pltpu


def _round_up(x, m):
    return (x + m - 1) // m * m


def _pick_vmem_limit(working_set_bytes):
    """Per-generation VMEM limit derived from actual block+scratch bytes."""
    phys = 128 * 1024 * 1024                 # v5e/v6e physical (conservative)
    try:
        phys = int(pltpu.get_tpu_info().vmem_capacity_bytes)   # 64 MiB on v7x
    except Exception:
        pass
    ceiling = phys - (12 << 20)              # headroom for Mosaic internals
    want = int(1.5 * working_set_bytes) + (8 << 20)
    return int(max(16 << 20, min(want, ceiling)))


# ----------------------------------------------------------------------------
# Fused kernel: runs all L conv3x3+bias+ReLU chunks for one image.
#
#   x_ref  : (1, R, Cp)   bf16  zero-padded, spatially-flattened input image
#   w_ref  : (L*9, Cp, Cp) bf16 per-chunk, per-tap weight matrices
#   b_ref  : (L, 1, Cp)   f32   per-chunk bias (channel-padded)
#   o_ref  : (1, HWq, Cp) f32   flat, lane-dense output of the last chunk
#   act_ref: (R, Cp) bf16 VMEM  padded activation carried across chunks
#
# Flat layout: padded image P has shape (H+2, W+2, Cp); flat row r = i*Wp + j.
# Output position q = h*Wp + w needs rows q + kh*Wp + kw, i.e. each of the 9
# taps is a contiguous row window, consumed directly by an accumulating MXU
# matmul (no im2col staging).  Positions with w >= W are wrap-around garbage;
# they are masked to zero so the padded border of the next chunk's input stays
# exactly zero, and they are sliced off outside the kernel.
# ----------------------------------------------------------------------------
def _fused_conv_chunks_kernel(x_ref, w_ref, b_ref, o_ref, act_ref, *, H, W, L):
    Wp = W + 2
    HWq = H * Wp
    Cp = o_ref.shape[-1]
    R = act_ref.shape[0]

    # (HWq, 1) validity mask over flattened positions (hoisted out of chunks).
    col = lax.broadcasted_iota(jnp.int32, (HWq, 1), 0) % Wp
    valid = col < W

    def conv_chunk(window, l):
        """One Conv3x3 + bias + ReLU chunk: 9 accumulating tap matmuls."""
        acc = None
        for kh in range(3):
            for kw in range(3):
                d = kh * Wp + kw                      # contiguous row window
                p = jnp.dot(window(d), w_ref[l * 9 + kh * 3 + kw],
                            preferred_element_type=jnp.float32)
                acc = p if acc is None else acc + p
        # bias + ReLU + zero the wrap-around columns, fused in one VPU pass.
        return jnp.where(valid, jnp.maximum(acc + b_ref[l], 0.0), 0.0)

    x_window = lambda d: x_ref[0, d:d + HWq, :]
    act_window = lambda d: act_ref[d:d + HWq, :]

    if L == 1:
        o_ref[0] = conv_chunk(x_window, 0).astype(o_ref.dtype)
        return

    # Halo rows of the carried activation that the interior write-back below
    # never touches: they implement the conv zero padding for chunks 1..L-1.
    act_ref[0:Wp + 1, :] = jnp.zeros((Wp + 1, Cp), act_ref.dtype)
    act_ref[(H + 1) * Wp + 1:R, :] = jnp.zeros((R - (H + 1) * Wp - 1, Cp),
                                               act_ref.dtype)

    # Chunk 0: tap windows read straight from the pipelined input block; the
    # result lands at the padded-interior offset of the carried activation.
    act_ref[Wp + 1:Wp + 1 + HWq, :] = (
        conv_chunk(x_window, 0).astype(act_ref.dtype))

    # Chunks 1..L-2: VMEM-resident; fori_loop keeps one chunk's values live.
    def body(l, carry):
        act_ref[Wp + 1:Wp + 1 + HWq, :] = (
            conv_chunk(act_window, l).astype(act_ref.dtype))
        return carry

    lax.fori_loop(1, L - 1, body, 0)

    # Last chunk: lane-dense contiguous store of the flat f32 result.
    o_ref[0] = conv_chunk(act_window, L - 1).astype(o_ref.dtype)


def fused_conv_relu_chain(x_nchw, w_all_hwio, b_all):
    """Apply L stacked Conv2d(C->C, 3x3, pad=1)+ReLU chunks in one pallas_call.

    x_nchw:     (N, C, H, W) float32
    w_all_hwio: (L, 3, 3, C, C) float32
    b_all:      (L, C) float32
    returns     (N, C, H, W) float32
    """
    N, C, H, W = x_nchw.shape
    L = w_all_hwio.shape[0]
    Cp = _round_up(max(C, 128), 128)     # lane-dense channels
    Hp, Wp = H + 2, W + 2
    HWq = H * Wp                         # flat compute rows per image
    R = _round_up(Hp * Wp + 2, 8)        # activation rows + tap-slice slack

    # ---- one-time layout plumbing in XLA (input side only; no per-chunk pad)
    x = jnp.transpose(x_nchw, (0, 2, 3, 1)).astype(jnp.bfloat16)   # NHWC bf16
    x = jnp.pad(x, ((0, 0), (1, 1), (1, 1), (0, Cp - C)))          # halo+lanes
    x = x.reshape(N, Hp * Wp, Cp)
    x = jnp.pad(x, ((0, 0), (0, R - Hp * Wp), (0, 0)))             # slack rows

    w = jnp.pad(w_all_hwio,
                ((0, 0), (0, 0), (0, 0), (0, Cp - C), (0, Cp - C)))
    w = w.reshape(L * 9, Cp, Cp).astype(jnp.bfloat16)              # tap-major
    b = jnp.pad(b_all, ((0, 0), (0, Cp - C))).reshape(L, 1, Cp)    # f32 bias

    # VMEM working set: double-buffered pipelined operands + carried act +
    # the f32 accumulator / epilogue temporaries of one chunk.
    working_set = (2 * (R * Cp * 2 + L * 9 * Cp * Cp * 2 + L * Cp * 4
                        + HWq * Cp * 4)
                   + R * Cp * 2 + 2 * HWq * Cp * 4)

    flops = 2 * N * L * HWq * 9 * Cp * Cp
    bytes_accessed = x.size * 2 + w.size * 2 + b.size * 4 + N * HWq * Cp * 4

    kernel = functools.partial(_fused_conv_chunks_kernel, H=H, W=W, L=L)

    out_flat = pl.pallas_call(
        kernel,
        out_shape=jax.ShapeDtypeStruct((N, HWq, Cp), jnp.float32),
        grid_spec=pltpu.PrefetchScalarGridSpec(
            num_scalar_prefetch=0,
            grid=(N,),
            in_specs=[
                pl.BlockSpec((1, R, Cp), lambda i: (i, 0, 0)),
                # Grid-invariant weights/bias: constant index_map, so the
                # pipeline does not re-DMA them across grid steps.
                pl.BlockSpec((L * 9, Cp, Cp), lambda i: (0, 0, 0)),
                pl.BlockSpec((L, 1, Cp), lambda i: (0, 0, 0)),
            ],
            out_specs=pl.BlockSpec((1, HWq, Cp), lambda i: (i, 0, 0)),
            scratch_shapes=[
                pltpu.VMEM((R, Cp), jnp.bfloat16),   # carried activation
            ],
        ),
        compiler_params=pltpu.CompilerParams(
            dimension_semantics=("parallel",),
            vmem_limit_bytes=_pick_vmem_limit(working_set),
        ),
        cost_estimate=pl.CostEstimate(
            flops=flops, transcendentals=0, bytes_accessed=bytes_accessed),
    )(x, w, b)

    # ---- un-flatten / un-pad / back to NCHW (cheap XLA layout plumbing)
    out = out_flat.reshape(N, H, Wp, Cp)[:, :, :W, :C]
    return jnp.transpose(out, (0, 3, 1, 2))


# ----------------------------------------------------------------------------
# ModelParallel equivalent.  The device / dtype shuffling of ModelParallel.c()
# is identity on a single TPU backend; the chunk pipeline is fused into one
# pallas_call so intermediate activations never leave VMEM.
# ----------------------------------------------------------------------------
class ModelParallelPallas:
    def __init__(self, chunks, device_list):
        # chunks: list of (weight_hwio (3,3,C,C), bias (C,)) conv+ReLU blocks
        self.device_list = device_list     # interface parity; no-op on one TPU
        self.w_all = jnp.stack([w for w, _ in chunks])   # (L, 3, 3, C, C)
        self.b_all = jnp.stack([b for _, b in chunks])   # (L, C)
        self._fwd = jax.jit(fused_conv_relu_chain)

    def __call__(self, x_nchw):
        return self._fwd(x_nchw, self.w_all, self.b_all)


def make_chunks(key, num_chunks, channels):
    chunks = []
    for i in range(num_chunks):
        kw, kb = jax.random.split(jax.random.fold_in(key, i))
        w = 0.1 * jax.random.normal(kw, (3, 3, channels, channels), jnp.float32)
        b = 0.1 * jax.random.normal(kb, (channels,), jnp.float32)
        chunks.append((w, b))
    return chunks


if __name__ == "__main__":
    key = jax.random.PRNGKey(0)
    kx, kp = jax.random.split(key)

    N, C, H, W = 2, 4, 16, 16
    x = jax.random.normal(kx, (N, C, H, W), jnp.float32)   # NCHW, like torch

    chunks = make_chunks(kp, num_chunks=2, channels=C)
    model = ModelParallelPallas(chunks, device_list=["tpu:0", "tpu:0"])

    out = jax.block_until_ready(model(x))
    assert out.shape == (N, C, H, W), out.shape

    # Reference: plain-XLA f32 conv+ReLU chain (same semantics as the torch
    # chunks).  The kernel runs bf16 operands with f32 accumulation, so the
    # tolerance covers bf16 operand rounding across the 2-chunk chain; real
    # layout/indexing bugs would produce O(0.1-1) errors.
    ref = jnp.transpose(x, (0, 2, 3, 1))
    for w, b in chunks:
        ref = jax.lax.conv_general_dilated(
            ref, w, window_strides=(1, 1), padding="SAME",
            dimension_numbers=("NHWC", "HWIO", "NHWC"))
        ref = jnp.maximum(ref + b[None, None, None, :], 0.0)
    ref = jnp.transpose(ref, (0, 3, 1, 2))
    assert jnp.allclose(out, ref, atol=5e-2, rtol=5e-2), \
        float(jnp.max(jnp.abs(out - ref)))

    print("KERNEL_OK")
</pallas_src>

<mosaic_0001>
module attributes {stable_mosaic.version = 11 : i64} {
  func.func @_fused_conv_chunks_kernel(%arg0: i32, %arg1: memref<1x328x128xbf16, #tpu.memory_space<vmem>>, %arg2: memref<18x128x128xbf16, #tpu.memory_space<vmem>>, %arg3: memref<2x1x128xf32, #tpu.memory_space<vmem>>, %arg4: memref<1x288x128xf32, #tpu.memory_space<vmem>>, %arg5: memref<328x128xbf16, #tpu.memory_space<vmem>>) attributes {dimension_semantics = [#tpu.dimension_semantics<parallel>], iteration_bounds = array<i64: 2>, scalar_prefetch = 0 : i64, scratch_operands = 1 : i64, tpu.core_type = #tpu.core_type<tc>, window_params = [{transform_indices = @transform_0, window_bounds = array<i64: 1, 328, 128>}, {pipeline_mode = #tpu.pipeline_mode<synchronous>, transform_indices = @transform_1, window_bounds = array<i64: 18, 128, 128>}, {pipeline_mode = #tpu.pipeline_mode<synchronous>, transform_indices = @transform_2, window_bounds = array<i64: 2, 1, 128>}, {transform_indices = @transform_3, window_bounds = array<i64: 1, 288, 128>}]} {
    %0 = tpu.iota {dimensions = array<i32: 0>} : vector<288x1xi32>
    %c18_i32 = arith.constant 18 : i32
    %c0_i32 = arith.constant 0 : i32
    %1 = arith.cmpi eq, %c18_i32, %c0_i32 : i32
    %c1_i32 = arith.constant 1 : i32
    %2 = arith.select %1, %c1_i32, %c18_i32 : i32
    %3 = vector.broadcast %2 : i32 to vector<288x1xi32>
    %4 = arith.remsi %0, %3 : vector<288x1xi32>
    %c0_i32_0 = arith.constant 0 : i32
    %5 = vector.broadcast %c0_i32_0 : i32 to vector<288x1xi32>
    %6 = arith.cmpi ne, %4, %5 : vector<288x1xi32>
    %c0_i32_1 = arith.constant 0 : i32
    %7 = vector.broadcast %c0_i32_1 : i32 to vector<288x1xi32>
    %8 = arith.cmpi slt, %4, %7 : vector<288x1xi32>
    %c0_i32_2 = arith.constant 0 : i32
    %9 = arith.cmpi slt, %2, %c0_i32_2 : i32
    %10 = vector.broadcast %9 : i1 to vector<288x1xi1>
    %11 = vector.broadcast %10 : vector<288x1xi1> to vector<288x1xi1>
    %12 = arith.xori %8, %11 : vector<288x1xi1>
    %13 = arith.andi %12, %6 : vector<288x1xi1>
    %14 = vector.broadcast %2 : i32 to vector<288x1xi32>
    %15 = arith.addi %4, %14 : vector<288x1xi32>
    %16 = arith.select %13, %15, %4 : vector<288x1xi1>, vector<288x1xi32>
    %c16_i32 = arith.constant 16 : i32
    %17 = vector.broadcast %c16_i32 : i32 to vector<288x1xi32>
    %18 = arith.cmpi slt, %16, %17 : vector<288x1xi32>
    %cst = arith.constant 0.000000e+00 : bf16
    %19 = vector.broadcast %cst : bf16 to vector<19x128xbf16>
    %c0 = arith.constant 0 : index
    %c0_3 = arith.constant 0 : index
    %20 = vector.load %arg5[%c0, %c0_3] : memref<328x128xbf16, #tpu.memory_space<vmem>>, vector<19x128xbf16>
    tpu.vector_store %arg5[%c0, %c0_3], %19 {strides = array<i32>} : memref<328x128xbf16, #tpu.memory_space<vmem>>, vector<19x128xbf16>,
    %cst_4 = arith.constant 0.000000e+00 : bf16
    %21 = vector.broadcast %cst_4 : bf16 to vector<21x128xbf16>
    %c307 = arith.constant 307 : index
    %c0_5 = arith.constant 0 : index
    %22 = vector.load %arg5[%c307, %c0_5] : memref<328x128xbf16, #tpu.memory_space<vmem>>, vector<21x128xbf16>
    tpu.vector_store %arg5[%c307, %c0_5], %21 {strides = array<i32>} : memref<328x128xbf16, #tpu.memory_space<vmem>>, vector<21x128xbf16>,
    %c0_6 = arith.constant 0 : index
    %c0_7 = arith.constant 0 : index
    %c0_8 = arith.constant 0 : index
    %23 = vector.load %arg1[%c0_6, %c0_7, %c0_8] : memref<1x328x128xbf16, #tpu.memory_space<vmem>>, vector<1x288x128xbf16>
    %24 = vector.shape_cast %23 : vector<1x288x128xbf16> to vector<288x128xbf16>
    %c0_9 = arith.constant 0 : index
    %c0_10 = arith.constant 0 : index
    %c0_11 = arith.constant 0 : index
    %25 = vector.load %arg2[%c0_9, %c0_10, %c0_11] : memref<18x128x128xbf16, #tpu.memory_space<vmem>>, vector<1x128x128xbf16>
    %26 = vector.shape_cast %25 : vector<1x128x128xbf16> to vector<128x128xbf16>
    %cst_12 = arith.constant dense<0.000000e+00> : vector<288x128xf32>
    %27 = tpu.matmul %24, %26, %cst_12 {dimension_numbers = #tpu.dot_dimension_numbers<[1], [0], [0], [1], [0, 0, 1, 1], [], []>} : vector<288x128xbf16>, vector<128x128xbf16>, vector<288x128xf32> -> vector<288x128xf32>
    %c0_13 = arith.constant 0 : index
    %c1 = arith.constant 1 : index
    %c0_14 = arith.constant 0 : index
    %28 = vector.load %arg1[%c0_13, %c1, %c0_14] : memref<1x328x128xbf16, #tpu.memory_space<vmem>>, vector<1x288x128xbf16>
    %29 = vector.shape_cast %28 : vector<1x288x128xbf16> to vector<288x128xbf16>
    %c1_15 = arith.constant 1 : index
    %c0_16 = arith.constant 0 : index
    %c0_17 = arith.constant 0 : index
    %30 = vector.load %arg2[%c1_15, %c0_16, %c0_17] : memref<18x128x128xbf16, #tpu.memory_space<vmem>>, vector<1x128x128xbf16>
    %31 = vector.shape_cast %30 : vector<1x128x128xbf16> to vector<128x128xbf16>
    %cst_18 = arith.constant dense<0.000000e+00> : vector<288x128xf32>
    %32 = tpu.matmul %29, %31, %cst_18 {dimension_numbers = #tpu.dot_dimension_numbers<[1], [0], [0], [1], [0, 0, 1, 1], [], []>} : vector<288x128xbf16>, vector<128x128xbf16>, vector<288x128xf32> -> vector<288x128xf32>
    %33 = arith.addf %27, %32 : vector<288x128xf32>
    %c0_19 = arith.constant 0 : index
    %c2 = arith.constant 2 : index
    %c0_20 = arith.constant 0 : index
    %34 = vector.load %arg1[%c0_19, %c2, %c0_20] : memref<1x328x128xbf16, #tpu.memory_space<vmem>>, vector<1x288x128xbf16>
    %35 = vector.shape_cast %34 : vector<1x288x128xbf16> to vector<288x128xbf16>
    %c2_21 = arith.constant 2 : index
    %c0_22 = arith.constant 0 : index
    %c0_23 = arith.constant 0 : index
    %36 = vector.load %arg2[%c2_21, %c0_22, %c0_23] : memref<18x128x128xbf16, #tpu.memory_space<vmem>>, vector<1x128x128xbf16>
    %37 = vector.shape_cast %36 : vector<1x128x128xbf16> to vector<128x128xbf16>
    %cst_24 = arith.constant dense<0.000000e+00> : vector<288x128xf32>
    %38 = tpu.matmul %35, %37, %cst_24 {dimension_numbers = #tpu.dot_dimension_numbers<[1], [0], [0], [1], [0, 0, 1, 1], [], []>} : vector<288x128xbf16>, vector<128x128xbf16>, vector<288x128xf32> -> vector<288x128xf32>
    %39 = arith.addf %33, %38 : vector<288x128xf32>
    %c0_25 = arith.constant 0 : index
    %c18 = arith.constant 18 : index
    %c0_26 = arith.constant 0 : index
    %40 = vector.load %arg1[%c0_25, %c18, %c0_26] : memref<1x328x128xbf16, #tpu.memory_space<vmem>>, vector<1x288x128xbf16>
    %41 = vector.shape_cast %40 : vector<1x288x128xbf16> to vector<288x128xbf16>
    %c3 = arith.constant 3 : index
    %c0_27 = arith.constant 0 : index
    %c0_28 = arith.constant 0 : index
    %42 = vector.load %arg2[%c3, %c0_27, %c0_28] : memref<18x128x128xbf16, #tpu.memory_space<vmem>>, vector<1x128x128xbf16>
    %43 = vector.shape_cast %42 : vector<1x128x128xbf16> to vector<128x128xbf16>
    %cst_29 = arith.constant dense<0.000000e+00> : vector<288x128xf32>
    %44 = tpu.matmul %41, %43, %cst_29 {dimension_numbers = #tpu.dot_dimension_numbers<[1], [0], [0], [1], [0, 0, 1, 1], [], []>} : vector<288x128xbf16>, vector<128x128xbf16>, vector<288x128xf32> -> vector<288x128xf32>
    %45 = arith.addf %39, %44 : vector<288x128xf32>
    %c0_30 = arith.constant 0 : index
    %c19 = arith.constant 19 : index
    %c0_31 = arith.constant 0 : index
    %46 = vector.load %arg1[%c0_30, %c19, %c0_31] : memref<1x328x128xbf16, #tpu.memory_space<vmem>>, vector<1x288x128xbf16>
    %47 = vector.shape_cast %46 : vector<1x288x128xbf16> to vector<288x128xbf16>
    %c4 = arith.constant 4 : index
    %c0_32 = arith.constant 0 : index
    %c0_33 = arith.constant 0 : index
    %48 = vector.load %arg2[%c4, %c0_32, %c0_33] : memref<18x128x128xbf16, #tpu.memory_space<vmem>>, vector<1x128x128xbf16>
    %49 = vector.shape_cast %48 : vector<1x128x128xbf16> to vector<128x128xbf16>
    %cst_34 = arith.constant dense<0.000000e+00> : vector<288x128xf32>
    %50 = tpu.matmul %47, %49, %cst_34 {dimension_numbers = #tpu.dot_dimension_numbers<[1], [0], [0], [1], [0, 0, 1, 1], [], []>} : vector<288x128xbf16>, vector<128x128xbf16>, vector<288x128xf32> -> vector<288x128xf32>
    %51 = arith.addf %45, %50 : vector<288x128xf32>
    %c0_35 = arith.constant 0 : index
    %c20 = arith.constant 20 : index
    %c0_36 = arith.constant 0 : index
    %52 = vector.load %arg1[%c0_35, %c20, %c0_36] : memref<1x328x128xbf16, #tpu.memory_space<vmem>>, vector<1x288x128xbf16>
    %53 = vector.shape_cast %52 : vector<1x288x128xbf16> to vector<288x128xbf16>
    %c5 = arith.constant 5 : index
    %c0_37 = arith.constant 0 : index
    %c0_38 = arith.constant 0 : index
    %54 = vector.load %arg2[%c5, %c0_37, %c0_38] : memref<18x128x128xbf16, #tpu.memory_space<vmem>>, vector<1x128x128xbf16>
    %55 = vector.shape_cast %54 : vector<1x128x128xbf16> to vector<128x128xbf16>
    %cst_39 = arith.constant dense<0.000000e+00> : vector<288x128xf32>
    %56 = tpu.matmul %53, %55, %cst_39 {dimension_numbers = #tpu.dot_dimension_numbers<[1], [0], [0], [1], [0, 0, 1, 1], [], []>} : vector<288x128xbf16>, vector<128x128xbf16>, vector<288x128xf32> -> vector<288x128xf32>
    %57 = arith.addf %51, %56 : vector<288x128xf32>
    %c0_40 = arith.constant 0 : index
    %c36 = arith.constant 36 : index
    %c0_41 = arith.constant 0 : index
    %58 = vector.load %arg1[%c0_40, %c36, %c0_41] : memref<1x328x128xbf16, #tpu.memory_space<vmem>>, vector<1x288x128xbf16>
    %59 = vector.shape_cast %58 : vector<1x288x128xbf16> to vector<288x128xbf16>
    %c6 = arith.constant 6 : index
    %c0_42 = arith.constant 0 : index
    %c0_43 = arith.constant 0 : index
    %60 = vector.load %arg2[%c6, %c0_42, %c0_43] : memref<18x128x128xbf16, #tpu.memory_space<vmem>>, vector<1x128x128xbf16>
    %61 = vector.shape_cast %60 : vector<1x128x128xbf16> to vector<128x128xbf16>
    %cst_44 = arith.constant dense<0.000000e+00> : vector<288x128xf32>
    %62 = tpu.matmul %59, %61, %cst_44 {dimension_numbers = #tpu.dot_dimension_numbers<[1], [0], [0], [1], [0, 0, 1, 1], [], []>} : vector<288x128xbf16>, vector<128x128xbf16>, vector<288x128xf32> -> vector<288x128xf32>
    %63 = arith.addf %57, %62 : vector<288x128xf32>
    %c0_45 = arith.constant 0 : index
    %c37 = arith.constant 37 : index
    %c0_46 = arith.constant 0 : index
    %64 = vector.load %arg1[%c0_45, %c37, %c0_46] : memref<1x328x128xbf16, #tpu.memory_space<vmem>>, vector<1x288x128xbf16>
    %65 = vector.shape_cast %64 : vector<1x288x128xbf16> to vector<288x128xbf16>
    %c7 = arith.constant 7 : index
    %c0_47 = arith.constant 0 : index
    %c0_48 = arith.constant 0 : index
    %66 = vector.load %arg2[%c7, %c0_47, %c0_48] : memref<18x128x128xbf16, #tpu.memory_space<vmem>>, vector<1x128x128xbf16>
    %67 = vector.shape_cast %66 : vector<1x128x128xbf16> to vector<128x128xbf16>
    %cst_49 = arith.constant dense<0.000000e+00> : vector<288x128xf32>
    %68 = tpu.matmul %65, %67, %cst_49 {dimension_numbers = #tpu.dot_dimension_numbers<[1], [0], [0], [1], [0, 0, 1, 1], [], []>} : vector<288x128xbf16>, vector<128x128xbf16>, vector<288x128xf32> -> vector<288x128xf32>
    %69 = arith.addf %63, %68 : vector<288x128xf32>
    %c0_50 = arith.constant 0 : index
    %c38 = arith.constant 38 : index
    %c0_51 = arith.constant 0 : index
    %70 = vector.load %arg1[%c0_50, %c38, %c0_51] : memref<1x328x128xbf16, #tpu.memory_space<vmem>>, vector<1x288x128xbf16>
    %71 = vector.shape_cast %70 : vector<1x288x128xbf16> to vector<288x128xbf16>
    %c8 = arith.constant 8 : index
    %c0_52 = arith.constant 0 : index
    %c0_53 = arith.constant 0 : index
    %72 = vector.load %arg2[%c8, %c0_52, %c0_53] : memref<18x128x128xbf16, #tpu.memory_space<vmem>>, vector<1x128x128xbf16>
    %73 = vector.shape_cast %72 : vector<1x128x128xbf16> to vector<128x128xbf16>
    %cst_54 = arith.constant dense<0.000000e+00> : vector<288x128xf32>
    %74 = tpu.matmul %71, %73, %cst_54 {dimension_numbers = #tpu.dot_dimension_numbers<[1], [0], [0], [1], [0, 0, 1, 1], [], []>} : vector<288x128xbf16>, vector<128x128xbf16>, vector<288x128xf32> -> vector<288x128xf32>
    %75 = arith.addf %69, %74 : vector<288x128xf32>
    %c0_55 = arith.constant 0 : index
    %c0_56 = arith.constant 0 : index
    %c0_57 = arith.constant 0 : index
    %76 = vector.load %arg3[%c0_55, %c0_56, %c0_57] : memref<2x1x128xf32, #tpu.memory_space<vmem>>, vector<1x1x128xf32>
    %77 = vector.shape_cast %76 : vector<1x1x128xf32> to vector<1x128xf32>
    %78 = vector.broadcast %77 : vector<1x128xf32> to vector<288x128xf32>
    %79 = arith.addf %75, %78 : vector<288x128xf32>
    %cst_58 = arith.constant 0.000000e+00 : f32
    %80 = vector.broadcast %cst_58 : f32 to vector<288x128xf32>
    %81 = arith.maximumf %79, %80 : vector<288x128xf32>
    %cst_59 = arith.constant 0.000000e+00 : f32
    %82 = vector.shape_cast %18 : vector<288x1xi1> to vector<288x1xi1>
    %83 = vector.broadcast %82 : vector<288x1xi1> to vector<288x128xi1>
    %84 = vector.broadcast %cst_59 : f32 to vector<288x128xf32>
    %85 = arith.select %83, %81, %84 : vector<288x128xi1>, vector<288x128xf32>
    %86 = arith.truncf %85 : vector<288x128xf32> to vector<288x128xbf16>
    %c19_60 = arith.constant 19 : index
    %c0_61 = arith.constant 0 : index
    %87 = vector.load %arg5[%c19_60, %c0_61] : memref<328x128xbf16, #tpu.memory_space<vmem>>, vector<288x128xbf16>
    tpu.vector_store %arg5[%c19_60, %c0_61], %86 {strides = array<i32>} : memref<328x128xbf16, #tpu.memory_space<vmem>>, vector<288x128xbf16>,
    %c1_i32_62 = arith.constant 1 : i32
    %c0_i32_63 = arith.constant 0 : i32
    %88 = arith.addi %c1_i32_62, %c0_i32_63 : i32
    %c1_i32_64 = arith.constant 1 : i32
    scf.for %arg6 = %c1_i32_62 to %88 step %c1_i32_64  : i32 {
      %c0_119 = arith.constant 0 : index
      %c0_120 = arith.constant 0 : index
      %146 = vector.load %arg5[%c0_119, %c0_120] : memref<328x128xbf16, #tpu.memory_space<vmem>>, vector<288x128xbf16>
      %c9_i32 = arith.constant 9 : i32
      %147 = arith.muli %arg6, %c9_i32 : i32
      %c0_i32_121 = arith.constant 0 : i32
      %148 = arith.addi %147, %c0_i32_121 : i32
      %c0_i32_122 = arith.constant 0 : i32
      %149 = arith.addi %148, %c0_i32_122 : i32
      %150 = arith.index_cast %149 : i32 to index
      %c0_123 = arith.constant 0 : index
      %c0_124 = arith.constant 0 : index
      %151 = vector.load %arg2[%150, %c0_123, %c0_124] : memref<18x128x128xbf16, #tpu.memory_space<vmem>>, vector<1x128x128xbf16>
      %152 = vector.shape_cast %151 : vector<1x128x128xbf16> to vector<128x128xbf16>
      %cst_125 = arith.constant dense<0.000000e+00> : vector<288x128xf32>
      %153 = tpu.matmul %146, %152, %cst_125 {dimension_numbers = #tpu.dot_dimension_numbers<[1], [0], [0], [1], [0, 0, 1, 1], [], []>} : vector<288x128xbf16>, vector<128x128xbf16>, vector<288x128xf32> -> vector<288x128xf32>
      %c1_126 = arith.constant 1 : index
      %c0_127 = arith.constant 0 : index
      %154 = vector.load %arg5[%c1_126, %c0_127] : memref<328x128xbf16, #tpu.memory_space<vmem>>, vector<288x128xbf16>
      %c9_i32_128 = arith.constant 9 : i32
      %155 = arith.muli %arg6, %c9_i32_128 : i32
      %c0_i32_129 = arith.constant 0 : i32
      %156 = arith.addi %155, %c0_i32_129 : i32
      %c1_i32_130 = arith.constant 1 : i32
      %157 = arith.addi %156, %c1_i32_130 : i32
      %158 = arith.index_cast %157 : i32 to index
      %c0_131 = arith.constant 0 : index
      %c0_132 = arith.constant 0 : index
      %159 = vector.load %arg2[%158, %c0_131, %c0_132] : memref<18x128x128xbf16, #tpu.memory_space<vmem>>, vector<1x128x128xbf16>
      %160 = vector.shape_cast %159 : vector<1x128x128xbf16> to vector<128x128xbf16>
      %cst_133 = arith.constant dense<0.000000e+00> : vector<288x128xf32>
      %161 = tpu.matmul %154, %160, %cst_133 {dimension_numbers = #tpu.dot_dimension_numbers<[1], [0], [0], [1], [0, 0, 1, 1], [], []>} : vector<288x128xbf16>, vector<128x128xbf16>, vector<288x128xf32> -> vector<288x128xf32>
      %162 = arith.addf %153, %161 : vector<288x128xf32>
      %c2_134 = arith.constant 2 : index
      %c0_135 = arith.constant 0 : index
      %163 = vector.load %arg5[%c2_134, %c0_135] : memref<328x128xbf16, #tpu.memory_space<vmem>>, vector<288x128xbf16>
      %c9_i32_136 = arith.constant 9 : i32
      %164 = arith.muli %arg6, %c9_i32_136 : i32
      %c0_i32_137 = arith.constant 0 : i32
      %165 = arith.addi %164, %c0_i32_137 : i32
      %c2_i32 = arith.constant 2 : i32
      %166 = arith.addi %165, %c2_i32 : i32
      %167 = arith.index_cast %166 : i32 to index
      %c0_138 = arith.constant 0 : index
      %c0_139 = arith.constant 0 : index
      %168 = vector.load %arg2[%167, %c0_138, %c0_139] : memref<18x128x128xbf16, #tpu.memory_space<vmem>>, vector<1x128x128xbf16>
      %169 = vector.shape_cast %168 : vector<1x128x128xbf16> to vector<128x128xbf16>
      %cst_140 = arith.constant dense<0.000000e+00> : vector<288x128xf32>
      %170 = tpu.matmul %163, %169, %cst_140 {dimension_numbers = #tpu.dot_dimension_numbers<[1], [0], [0], [1], [0, 0, 1, 1], [], []>} : vector<288x128xbf16>, vector<128x128xbf16>, vector<288x128xf32> -> vector<288x128xf32>
      %171 = arith.addf %162, %170 : vector<288x128xf32>
      %c18_141 = arith.constant 18 : index
      %c0_142 = arith.constant 0 : index
      %172 = vector.load %arg5[%c18_141, %c0_142] : memref<328x128xbf16, #tpu.memory_space<vmem>>, vector<288x128xbf16>
      %c9_i32_143 = arith.constant 9 : i32
      %173 = arith.muli %arg6, %c9_i32_143 : i32
      %c3_i32 = arith.constant 3 : i32
      %174 = arith.addi %173, %c3_i32 : i32
      %c0_i32_144 = arith.constant 0 : i32
      %175 = arith.addi %174, %c0_i32_144 : i32
      %176 = arith.index_cast %175 : i32 to index
      %c0_145 = arith.constant 0 : index
      %c0_146 = arith.constant 0 : index
      %177 = vector.load %arg2[%176, %c0_145, %c0_146] : memref<18x128x128xbf16, #tpu.memory_space<vmem>>, vector<1x128x128xbf16>
      %178 = vector.shape_cast %177 : vector<1x128x128xbf16> to vector<128x128xbf16>
      %cst_147 = arith.constant dense<0.000000e+00> : vector<288x128xf32>
      %179 = tpu.matmul %172, %178, %cst_147 {dimension_numbers = #tpu.dot_dimension_numbers<[1], [0], [0], [1], [0, 0, 1, 1], [], []>} : vector<288x128xbf16>, vector<128x128xbf16>, vector<288x128xf32> -> vector<288x128xf32>
      %180 = arith.addf %171, %179 : vector<288x128xf32>
      %c19_148 = arith.constant 19 : index
      %c0_149 = arith.constant 0 : index
      %181 = vector.load %arg5[%c19_148, %c0_149] : memref<328x128xbf16, #tpu.memory_space<vmem>>, vector<288x128xbf16>
      %c9_i32_150 = arith.constant 9 : i32
      %182 = arith.muli %arg6, %c9_i32_150 : i32
      %c3_i32_151 = arith.constant 3 : i32
      %183 = arith.addi %182, %c3_i32_151 : i32
      %c1_i32_152 = arith.constant 1 : i32
      %184 = arith.addi %183, %c1_i32_152 : i32
      %185 = arith.index_cast %184 : i32 to index
      %c0_153 = arith.constant 0 : index
      %c0_154 = arith.constant 0 : index
      %186 = vector.load %arg2[%185, %c0_153, %c0_154] : memref<18x128x128xbf16, #tpu.memory_space<vmem>>, vector<1x128x128xbf16>
      %187 = vector.shape_cast %186 : vector<1x128x128xbf16> to vector<128x128xbf16>
      %cst_155 = arith.constant dense<0.000000e+00> : vector<288x128xf32>
      %188 = tpu.matmul %181, %187, %cst_155 {dimension_numbers = #tpu.dot_dimension_numbers<[1], [0], [0], [1], [0, 0, 1, 1], [], []>} : vector<288x128xbf16>, vector<128x128xbf16>, vector<288x128xf32> -> vector<288x128xf32>
      %189 = arith.addf %180, %188 : vector<288x128xf32>
      %c20_156 = arith.constant 20 : index
      %c0_157 = arith.constant 0 : index
      %190 = vector.load %arg5[%c20_156, %c0_157] : memref<328x128xbf16, #tpu.memory_space<vmem>>, vector<288x128xbf16>
      %c9_i32_158 = arith.constant 9 : i32
      %191 = arith.muli %arg6, %c9_i32_158 : i32
      %c3_i32_159 = arith.constant 3 : i32
      %192 = arith.addi %191, %c3_i32_159 : i32
      %c2_i32_160 = arith.constant 2 : i32
      %193 = arith.addi %192, %c2_i32_160 : i32
      %194 = arith.index_cast %193 : i32 to index
      %c0_161 = arith.constant 0 : index
      %c0_162 = arith.constant 0 : index
      %195 = vector.load %arg2[%194, %c0_161, %c0_162] : memref<18x128x128xbf16, #tpu.memory_space<vmem>>, vector<1x128x128xbf16>
      %196 = vector.shape_cast %195 : vector<1x128x128xbf16> to vector<128x128xbf16>
      %cst_163 = arith.constant dense<0.000000e+00> : vector<288x128xf32>
      %197 = tpu.matmul %190, %196, %cst_163 {dimension_numbers = #tpu.dot_dimension_numbers<[1], [0], [0], [1], [0, 0, 1, 1], [], []>} : vector<288x128xbf16>, vector<128x128xbf16>, vector<288x128xf32> -> vector<288x128xf32>
      %198 = arith.addf %189, %197 : vector<288x128xf32>
      %c36_164 = arith.constant 36 : index
      %c0_165 = arith.constant 0 : index
      %199 = vector.load %arg5[%c36_164, %c0_165] : memref<328x128xbf16, #tpu.memory_space<vmem>>, vector<288x128xbf16>
      %c9_i32_166 = arith.constant 9 : i32
      %200 = arith.muli %arg6, %c9_i32_166 : i32
      %c6_i32 = arith.constant 6 : i32
      %201 = arith.addi %200, %c6_i32 : i32
      %c0_i32_167 = arith.constant 0 : i32
      %202 = arith.addi %201, %c0_i32_167 : i32
      %203 = arith.index_cast %202 : i32 to index
      %c0_168 = arith.constant 0 : index
      %c0_169 = arith.constant 0 : index
      %204 = vector.load %arg2[%203, %c0_168, %c0_169] : memref<18x128x128xbf16, #tpu.memory_space<vmem>>, vector<1x128x128xbf16>
      %205 = vector.shape_cast %204 : vector<1x128x128xbf16> to vector<128x128xbf16>
      %cst_170 = arith.constant dense<0.000000e+00> : vector<288x128xf32>
      %206 = tpu.matmul %199, %205, %cst_170 {dimension_numbers = #tpu.dot_dimension_numbers<[1], [0], [0], [1], [0, 0, 1, 1], [], []>} : vector<288x128xbf16>, vector<128x128xbf16>, vector<288x128xf32> -> vector<288x128xf32>
      %207 = arith.addf %198, %206 : vector<288x128xf32>
      %c37_171 = arith.constant 37 : index
      %c0_172 = arith.constant 0 : index
      %208 = vector.load %arg5[%c37_171, %c0_172] : memref<328x128xbf16, #tpu.memory_space<vmem>>, vector<288x128xbf16>
      %c9_i32_173 = arith.constant 9 : i32
      %209 = arith.muli %arg6, %c9_i32_173 : i32
      %c6_i32_174 = arith.constant 6 : i32
      %210 = arith.addi %209, %c6_i32_174 : i32
      %c1_i32_175 = arith.constant 1 : i32
      %211 = arith.addi %210, %c1_i32_175 : i32
      %212 = arith.index_cast %211 : i32 to index
      %c0_176 = arith.constant 0 : index
      %c0_177 = arith.constant 0 : index
      %213 = vector.load %arg2[%212, %c0_176, %c0_177] : memref<18x128x128xbf16, #tpu.memory_space<vmem>>, vector<1x128x128xbf16>
      %214 = vector.shape_cast %213 : vector<1x128x128xbf16> to vector<128x128xbf16>
      %cst_178 = arith.constant dense<0.000000e+00> : vector<288x128xf32>
      %215 = tpu.matmul %208, %214, %cst_178 {dimension_numbers = #tpu.dot_dimension_numbers<[1], [0], [0], [1], [0, 0, 1, 1], [], []>} : vector<288x128xbf16>, vector<128x128xbf16>, vector<288x128xf32> -> vector<288x128xf32>
      %216 = arith.addf %207, %215 : vector<288x128xf32>
      %c38_179 = arith.constant 38 : index
      %c0_180 = arith.constant 0 : index
      %217 = vector.load %arg5[%c38_179, %c0_180] : memref<328x128xbf16, #tpu.memory_space<vmem>>, vector<288x128xbf16>
      %c9_i32_181 = arith.constant 9 : i32
      %218 = arith.muli %arg6, %c9_i32_181 : i32
      %c6_i32_182 = arith.constant 6 : i32
      %219 = arith.addi %218, %c6_i32_182 : i32
      %c2_i32_183 = arith.constant 2 : i32
      %220 = arith.addi %219, %c2_i32_183 : i32
      %221 = arith.index_cast %220 : i32 to index
      %c0_184 = arith.constant 0 : index
      %c0_185 = arith.constant 0 : index
      %222 = vector.load %arg2[%221, %c0_184, %c0_185] : memref<18x128x128xbf16, #tpu.memory_space<vmem>>, vector<1x128x128xbf16>
      %223 = vector.shape_cast %222 : vector<1x128x128xbf16> to vector<128x128xbf16>
      %cst_186 = arith.constant dense<0.000000e+00> : vector<288x128xf32>
      %224 = tpu.matmul %217, %223, %cst_186 {dimension_numbers = #tpu.dot_dimension_numbers<[1], [0], [0], [1], [0, 0, 1, 1], [], []>} : vector<288x128xbf16>, vector<128x128xbf16>, vector<288x128xf32> -> vector<288x128xf32>
      %225 = arith.addf %216, %224 : vector<288x128xf32>
      %226 = arith.index_cast %arg6 : i32 to index
      %c0_187 = arith.constant 0 : index
      %c0_188 = arith.constant 0 : index
      %227 = vector.load %arg3[%226, %c0_187, %c0_188] : memref<2x1x128xf32, #tpu.memory_space<vmem>>, vector<1x1x128xf32>
      %228 = vector.shape_cast %227 : vector<1x1x128xf32> to vector<1x128xf32>
      %229 = vector.broadcast %228 : vector<1x128xf32> to vector<288x128xf32>
      %230 = arith.addf %225, %229 : vector<288x128xf32>
      %cst_189 = arith.constant 0.000000e+00 : f32
      %231 = vector.broadcast %cst_189 : f32 to vector<288x128xf32>
      %232 = arith.maximumf %230, %231 : vector<288x128xf32>
      %cst_190 = arith.constant 0.000000e+00 : f32
      %233 = vector.shape_cast %18 : vector<288x1xi1> to vector<288x1xi1>
      %234 = vector.broadcast %233 : vector<288x1xi1> to vector<288x128xi1>
      %235 = vector.broadcast %cst_190 : f32 to vector<288x128xf32>
      %236 = arith.select %234, %232, %235 : vector<288x128xi1>, vector<288x128xf32>
      %237 = arith.truncf %236 : vector<288x128xf32> to vector<288x128xbf16>
      %c19_191 = arith.constant 19 : index
      %c0_192 = arith.constant 0 : index
      %238 = vector.load %arg5[%c19_191, %c0_192] : memref<328x128xbf16, #tpu.memory_space<vmem>>, vector<288x128xbf16>
      tpu.vector_store %arg5[%c19_191, %c0_192], %237 {strides = array<i32>} : memref<328x128xbf16, #tpu.memory_space<vmem>>, vector<288x128xbf16>,
    }
    %c0_i32_65 = arith.constant 0 : i32
    %c0_66 = arith.constant 0 : index
    %c0_67 = arith.constant 0 : index
    %89 = vector.load %arg5[%c0_66, %c0_67] : memref<328x128xbf16, #tpu.memory_space<vmem>>, vector<288x128xbf16>
    %c9 = arith.constant 9 : index
    %c0_68 = arith.constant 0 : index
    %c0_69 = arith.constant 0 : index
    %90 = vector.load %arg2[%c9, %c0_68, %c0_69] : memref<18x128x128xbf16, #tpu.memory_space<vmem>>, vector<1x128x128xbf16>
    %91 = vector.shape_cast %90 : vector<1x128x128xbf16> to vector<128x128xbf16>
    %cst_70 = arith.constant dense<0.000000e+00> : vector<288x128xf32>
    %92 = tpu.matmul %89, %91, %cst_70 {dimension_numbers = #tpu.dot_dimension_numbers<[1], [0], [0], [1], [0, 0, 1, 1], [], []>} : vector<288x128xbf16>, vector<128x128xbf16>, vector<288x128xf32> -> vector<288x128xf32>
    %c1_71 = arith.constant 1 : index
    %c0_72 = arith.constant 0 : index
    %93 = vector.load %arg5[%c1_71, %c0_72] : memref<328x128xbf16, #tpu.memory_space<vmem>>, vector<288x128xbf16>
    %c10 = arith.constant 10 : index
    %c0_73 = arith.constant 0 : index
    %c0_74 = arith.constant 0 : index
    %94 = vector.load %arg2[%c10, %c0_73, %c0_74] : memref<18x128x128xbf16, #tpu.memory_space<vmem>>, vector<1x128x128xbf16>
    %95 = vector.shape_cast %94 : vector<1x128x128xbf16> to vector<128x128xbf16>
    %cst_75 = arith.constant dense<0.000000e+00> : vector<288x128xf32>
    %96 = tpu.matmul %93, %95, %cst_75 {dimension_numbers = #tpu.dot_dimension_numbers<[1], [0], [0], [1], [0, 0, 1, 1], [], []>} : vector<288x128xbf16>, vector<128x128xbf16>, vector<288x128xf32> -> vector<288x128xf32>
    %97 = arith.addf %92, %96 : vector<288x128xf32>
    %c2_76 = arith.constant 2 : index
    %c0_77 = arith.constant 0 : index
    %98 = vector.load %arg5[%c2_76, %c0_77] : memref<328x128xbf16, #tpu.memory_space<vmem>>, vector<288x128xbf16>
    %c11 = arith.constant 11 : index
    %c0_78 = arith.constant 0 : index
    %c0_79 = arith.constant 0 : index
    %99 = vector.load %arg2[%c11, %c0_78, %c0_79] : memref<18x128x128xbf16, #tpu.memory_space<vmem>>, vector<1x128x128xbf16>
    %100 = vector.shape_cast %99 : vector<1x128x128xbf16> to vector<128x128xbf16>
    %cst_80 = arith.constant dense<0.000000e+00> : vector<288x128xf32>
    %101 = tpu.matmul %98, %100, %cst_80 {dimension_numbers = #tpu.dot_dimension_numbers<[1], [0], [0], [1], [0, 0, 1, 1], [], []>} : vector<288x128xbf16>, vector<128x128xbf16>, vector<288x128xf32> -> vector<288x128xf32>
    %102 = arith.addf %97, %101 : vector<288x128xf32>
    %c18_81 = arith.constant 18 : index
    %c0_82 = arith.constant 0 : index
    %103 = vector.load %arg5[%c18_81, %c0_82] : memref<328x128xbf16, #tpu.memory_space<vmem>>, vector<288x128xbf16>
    %c12 = arith.constant 12 : index
    %c0_83 = arith.constant 0 : index
    %c0_84 = arith.constant 0 : index
    %104 = vector.load %arg2[%c12, %c0_83, %c0_84] : memref<18x128x128xbf16, #tpu.memory_space<vmem>>, vector<1x128x128xbf16>
    %105 = vector.shape_cast %104 : vector<1x128x128xbf16> to vector<128x128xbf16>
    %cst_85 = arith.constant dense<0.000000e+00> : vector<288x128xf32>
    %106 = tpu.matmul %103, %105, %cst_85 {dimension_numbers = #tpu.dot_dimension_numbers<[1], [0], [0], [1], [0, 0, 1, 1], [], []>} : vector<288x128xbf16>, vector<128x128xbf16>, vector<288x128xf32> -> vector<288x128xf32>
    %107 = arith.addf %102, %106 : vector<288x128xf32>
    %c19_86 = arith.constant 19 : index
    %c0_87 = arith.constant 0 : index
    %108 = vector.load %arg5[%c19_86, %c0_87] : memref<328x128xbf16, #tpu.memory_space<vmem>>, vector<288x128xbf16>
    %c13 = arith.constant 13 : index
    %c0_88 = arith.constant 0 : index
    %c0_89 = arith.constant 0 : index
    %109 = vector.load %arg2[%c13, %c0_88, %c0_89] : memref<18x128x128xbf16, #tpu.memory_space<vmem>>, vector<1x128x128xbf16>
    %110 = vector.shape_cast %109 : vector<1x128x128xbf16> to vector<128x128xbf16>
    %cst_90 = arith.constant dense<0.000000e+00> : vector<288x128xf32>
    %111 = tpu.matmul %108, %110, %cst_90 {dimension_numbers = #tpu.dot_dimension_numbers<[1], [0], [0], [1], [0, 0, 1, 1], [], []>} : vector<288x128xbf16>, vector<128x128xbf16>, vector<288x128xf32> -> vector<288x128xf32>
    %112 = arith.addf %107, %111 : vector<288x128xf32>
    %c20_91 = arith.constant 20 : index
    %c0_92 = arith.constant 0 : index
    %113 = vector.load %arg5[%c20_91, %c0_92] : memref<328x128xbf16, #tpu.memory_space<vmem>>, vector<288x128xbf16>
    %c14 = arith.constant 14 : index
    %c0_93 = arith.constant 0 : index
    %c0_94 = arith.constant 0 : index
    %114 = vector.load %arg2[%c14, %c0_93, %c0_94] : memref<18x128x128xbf16, #tpu.memory_space<vmem>>, vector<1x128x128xbf16>
    %115 = vector.shape_cast %114 : vector<1x128x128xbf16> to vector<128x128xbf16>
    %cst_95 = arith.constant dense<0.000000e+00> : vector<288x128xf32>
    %116 = tpu.matmul %113, %115, %cst_95 {dimension_numbers = #tpu.dot_dimension_numbers<[1], [0], [0], [1], [0, 0, 1, 1], [], []>} : vector<288x128xbf16>, vector<128x128xbf16>, vector<288x128xf32> -> vector<288x128xf32>
    %117 = arith.addf %112, %116 : vector<288x128xf32>
    %c36_96 = arith.constant 36 : index
    %c0_97 = arith.constant 0 : index
    %118 = vector.load %arg5[%c36_96, %c0_97] : memref<328x128xbf16, #tpu.memory_space<vmem>>, vector<288x128xbf16>
    %c15 = arith.constant 15 : index
    %c0_98 = arith.constant 0 : index
    %c0_99 = arith.constant 0 : index
    %119 = vector.load %arg2[%c15, %c0_98, %c0_99] : memref<18x128x128xbf16, #tpu.memory_space<vmem>>, vector<1x128x128xbf16>
    %120 = vector.shape_cast %119 : vector<1x128x128xbf16> to vector<128x128xbf16>
    %cst_100 = arith.constant dense<0.000000e+00> : vector<288x128xf32>
    %121 = tpu.matmul %118, %120, %cst_100 {dimension_numbers = #tpu.dot_dimension_numbers<[1], [0], [0], [1], [0, 0, 1, 1], [], []>} : vector<288x128xbf16>, vector<128x128xbf16>, vector<288x128xf32> -> vector<288x128xf32>
    %122 = arith.addf %117, %121 : vector<288x128xf32>
    %c37_101 = arith.constant 37 : index
    %c0_102 = arith.constant 0 : index
    %123 = vector.load %arg5[%c37_101, %c0_102] : memref<328x128xbf16, #tpu.memory_space<vmem>>, vector<288x128xbf16>
    %c16 = arith.constant 16 : index
    %c0_103 = arith.constant 0 : index
    %c0_104 = arith.constant 0 : index
    %124 = vector.load %arg2[%c16, %c0_103, %c0_104] : memref<18x128x128xbf16, #tpu.memory_space<vmem>>, vector<1x128x128xbf16>
    %125 = vector.shape_cast %124 : vector<1x128x128xbf16> to vector<128x128xbf16>
    %cst_105 = arith.constant dense<0.000000e+00> : vector<288x128xf32>
    %126 = tpu.matmul %123, %125, %cst_105 {dimension_numbers = #tpu.dot_dimension_numbers<[1], [0], [0], [1], [0, 0, 1, 1], [], []>} : vector<288x128xbf16>, vector<128x128xbf16>, vector<288x128xf32> -> vector<288x128xf32>
    %127 = arith.addf %122, %126 : vector<288x128xf32>
    %c38_106 = arith.constant 38 : index
    %c0_107 = arith.constant 0 : index
    %128 = vector.load %arg5[%c38_106, %c0_107] : memref<328x128xbf16, #tpu.memory_space<vmem>>, vector<288x128xbf16>
    %c17 = arith.constant 17 : index
    %c0_108 = arith.constant 0 : index
    %c0_109 = arith.constant 0 : index
    %129 = vector.load %arg2[%c17, %c0_108, %c0_109] : memref<18x128x128xbf16, #tpu.memory_space<vmem>>, vector<1x128x128xbf16>
    %130 = vector.shape_cast %129 : vector<1x128x128xbf16> to vector<128x128xbf16>
    %cst_110 = arith.constant dense<0.000000e+00> : vector<288x128xf32>
    %131 = tpu.matmul %128, %130, %cst_110 {dimension_numbers = #tpu.dot_dimension_numbers<[1], [0], [0], [1], [0, 0, 1, 1], [], []>} : vector<288x128xbf16>, vector<128x128xbf16>, vector<288x128xf32> -> vector<288x128xf32>
    %132 = arith.addf %127, %131 : vector<288x128xf32>
    %c1_111 = arith.constant 1 : index
    %c0_112 = arith.constant 0 : index
    %c0_113 = arith.constant 0 : index
    %133 = vector.load %arg3[%c1_111, %c0_112, %c0_113] : memref<2x1x128xf32, #tpu.memory_space<vmem>>, vector<1x1x128xf32>
    %134 = vector.shape_cast %133 : vector<1x1x128xf32> to vector<1x128xf32>
    %135 = vector.broadcast %134 : vector<1x128xf32> to vector<288x128xf32>
    %136 = arith.addf %132, %135 : vector<288x128xf32>
    %cst_114 = arith.constant 0.000000e+00 : f32
    %137 = vector.broadcast %cst_114 : f32 to vector<288x128xf32>
    %138 = arith.maximumf %136, %137 : vector<288x128xf32>
    %cst_115 = arith.constant 0.000000e+00 : f32
    %139 = vector.shape_cast %18 : vector<288x1xi1> to vector<288x1xi1>
    %140 = vector.broadcast %139 : vector<288x1xi1> to vector<288x128xi1>
    %141 = vector.broadcast %cst_115 : f32 to vector<288x128xf32>
    %142 = arith.select %140, %138, %141 : vector<288x128xi1>, vector<288x128xf32>
    %c0_116 = arith.constant 0 : index
    %c0_117 = arith.constant 0 : index
    %c0_118 = arith.constant 0 : index
    %143 = vector.load %arg4[%c0_116, %c0_117, %c0_118] : memref<1x288x128xf32, #tpu.memory_space<vmem>>, vector<1x288x128xf32>
    %144 = vector.shape_cast %143 : vector<1x288x128xf32> to vector<288x128xf32>
    %145 = vector.shape_cast %142 : vector<288x128xf32> to vector<1x288x128xf32>
    tpu.vector_store %arg4[%c0_116, %c0_117, %c0_118], %145 {strides = array<i32>} : memref<1x288x128xf32, #tpu.memory_space<vmem>>, vector<1x288x128xf32>,
    return
  }
  func.func @transform_0(%arg0: i32) -> (i32, i32, i32) {
    %c0_i32 = arith.constant 0 : i32
    %c0_i32_0 = arith.constant 0 : i32
    %c0_i32_1 = arith.constant 0 : i32
    return %arg0, %c0_i32, %c0_i32_0 : i32, i32, i32
  }
  func.func @transform_1(%arg0: i32) -> (i32, i32, i32) {
    %c0_i32 = arith.constant 0 : i32
    %c0_i32_0 = arith.constant 0 : i32
    %c0_i32_1 = arith.constant 0 : i32
    %c0_i32_2 = arith.constant 0 : i32
    return %c0_i32, %c0_i32_0, %c0_i32_1 : i32, i32, i32
  }
  func.func @transform_2(%arg0: i32) -> (i32, i32, i32) {
    %c0_i32 = arith.constant 0 : i32
    %c0_i32_0 = arith.constant 0 : i32
    %c0_i32_1 = arith.constant 0 : i32
    %c0_i32_2 = arith.constant 0 : i32
    return %c0_i32, %c0_i32_0, %c0_i32_1 : i32, i32, i32
  }
  func.func @transform_3(%arg0: i32) -> (i32, i32, i32) {
    %c0_i32 = arith.constant 0 : i32
    %c0_i32_0 = arith.constant 0 : i32
    %c0_i32_1 = arith.constant 0 : i32
    return %arg0, %c0_i32, %c0_i32_0 : i32, i32, i32
  }
}

</mosaic_0001>

<bundles_post_ra>
// kernel: fused_conv_relu_chain.1
= control target key start
LH: loop header
LB: loop body
LE: loop exit
PB: predicated region body
PF: predicated region fallthrough
CT: control target
= control target key end

     0   :  { %s11551_s12 = smov 0   ;;  %s16534_s0 = inlined_call_operand.vmem [shape: bf16[2,328,128], index: 0, kind: input, shape index: {}]   ;;  %s16535_s1 = inlined_call_operand.vmem [shape: bf16[18,128,128], index: 1, kind: input, shape index: {}]   ;;  %s16536_s2 = inlined_call_operand.vmem [shape: f32[2,1,128], index: 2, kind: input, shape index: {}]   ;;  %s16537_s3 = inlined_call_operand.vmem [shape: f32[2,288,128], index: 3, kind: output, shape index: {}]  }
   0x1 LB: > { %s9133_s13 = sadd.s32 4294967295, %s11528_s12   ;;  %p9137_p0 = scmp.ge.s32.totalorder %s11528_s12, 1  ;;  %s11528_s12 = sphi %s11551_s12, %s13_s12  }
   0x2   : > { %p137_p1 = scmp.lt.s32.totalorder %s11528_s12, 3 }
   0x4   : > { %p138_p2 = pnand %p9137_p0, %p137_p1 }
   0x6   : > { %141 = sbr.rel (%p138_p2) target bundleno = 1228 (0x4cc), region = 32 }
   0xb   : > { %v11244_v0 = vld [vmem:[%s16535_s1 + $0x78] sm:$0xff]   ;;  %p161_p3 = scmp.lt.s32.totalorder %s9133_s13, 1  ;;  %v11246_v2 = vld [vmem:[%s16535_s1 + $0x70] sm:$0xff]   ;;  %v11248_v4 = vld [vmem:[%s16535_s1 + $0x68] sm:$0xff]   ;;  %vm16559_vm0 = vsmask.f32 7424 }
   0xc   : > { %v11245_v1 = vld [vmem:[%s16535_s1 + $0x38] sm:$0xff]   ;;  %10225 = vmatprep.subr.bf16.mxu0 %v11244_v0  ;;  %v11247_v3 = vld [vmem:[%s16535_s1 + $0x30] sm:$0xff]   ;;  %v11249_v5 = vld [vmem:[%s16535_s1 + $0x28] sm:$0xff]   ;;  %vm16558_vm1 = vcmask 1046528   ;;  %vm16552_vm2 = vsmask.f32 6400 }
   0xd   : > { %10277 = vmatprep.subr.bf16.mxu1 %v11245_v1  ;;  %10226 = vmatpush3.bf16.msra.mxu0 %v11244_v0  ;;  %s17585_s13 = smov (!%p161_p3, %s9133_s13), 1  ;;  %v11250_v6 = vld [vmem:[%s16535_s1 + $0x60] sm:$0xff]   ;;  %v11252_v8 = vld [vmem:[%s16535_s1 + $0x58] sm:$0xff]   ;;  %v11254_v10 = vld [vmem:[%s16535_s1 + $0x50] sm:$0xff]   ;;  %vm16553_vm3 = vcmask 1045504   ;;  %vm16551_vm4 = vcmask 1044480  }
   0xe   : > { %10278 = vmatpush3.bf16.msra.mxu1 %v11245_v1  ;;  %10227 = vmatprep.subr.bf16.mxu0 %v11246_v2  ;;  %v11251_v7 = vld [vmem:[%s16535_s1 + $0x20] sm:$0xff]   ;;  %s11161_s30 = smul.u32 164, %s17585_s13  ;;  %v11253_v9 = vld [vmem:[%s16535_s1 + $0x18] sm:$0xff]   ;;  %v11255_v13 = vld [vmem:[%s16535_s1 + $0x10] sm:$0xff]   ;;  %vm16550_vm5 = vsmask.f32 5376 }
   0xf   : > { %10279 = vmatprep.subr.bf16.mxu1 %v11247_v3  ;;  %v11256_v20 = vld [vmem:[%s16535_s1 + $0x48] sm:$0xff]   ;;  %v11258_v25 = vld [vmem:[%s16535_s1 + $0x40] sm:$0xff]   ;;  %v11263_v36 = vld [vmem:[%s16535_s1 + $0xb8] sm:$0xff]   ;;  %vm823_vm6 = vcmask 1041408   ;;  %vm16562_vm7 = vsmask.f32 1280 }
  0x10   : > { %s11595_s10 = scalar_lea.vmem %s16534_s0, %s11161_s30  ;;  %v11257_v21 = vld [vmem:[%s16535_s1 + $0x8] sm:$0xff]   ;;  %v11259_v29 = vld [vmem:[%s16535_s1] sm:$0xff]   ;;  %v11266_v46 = vld [vmem:[%s16535_s1 + $0xb0] sm:$0xff]   ;;  %vm829_vm9 = vcmask 1043457   ;;  %vm830_vm10 = vsmask.f32 7942 }
  0x11   : > { %10228 = vmatpush3.bf16.msra.mxu0 %v11246_v2  ;;  %v837_v11 = vld [vmem:[%s11595_s10] sm:$0xf]  ;;  %v11602_v12 = vld [vmem:[%s11595_s10 + $0x4] sm:$0xf]  ;;  %v11609_v15 = vld [vmem:[%s11595_s10 + $0x8] sm:$0xff]   ;;  %s11162_s18 = smul.u32 288, %s17585_s13 }
  0x12   : > { %10280 = vmatpush3.bf16.msra.mxu1 %v11247_v3  ;;  %10229 = vmatprep.subr.bf16.mxu0 %v11248_v4  ;;  %v9156_v14 = vcombine.low %v837_v11, %v11602_v12  ;;  %v1009_v18 = vshll.u32 %v11609_v15, 16  ;;  %v11613_v19 = vld [vmem:[%s11595_s10 + $0x10] sm:$0xff]   ;;  %v11622_v24 = vld [vmem:[%s11595_s10 + $0x18] sm:$0xff]   ;;  %v1013_v27 = vshrl.u32 %v11609_v15, 16  ;;  %v11636_v33 = vld [vmem:[%s11595_s10 + $0x20] sm:$0xff]  }
  0x13   : > { %10281 = vmatprep.subr.bf16.mxu1 %v11249_v5  ;;  %v1017_v28 = vshll.u32 %v11613_v19, 16  ;;  %v1021_v31 = vshrl.u32 %v11613_v19, 16  ;;  %v1025_v32 = vshll.u32 %v11622_v24, 16  ;;  %v11642_v37 = vld [vmem:[%s11595_s10 + $0x28] sm:$0xff]   ;;  %v1033_v40 = vshll.u32 %v11636_v33, 16  ;;  %v11654_v48 = vld [vmem:[%s11595_s10 + $0x30] sm:$0xff]   ;;  %vm12812_vm8 = vmand %vm823_vm6, %vm16562_vm7  ;;  %s16312_s21 = scalar_lea.vmem %s16537_s3, %s11162_s18 }
  0x14   : > { %v1002_v16 = vshrl.u32 %v9156_v14, 16  ;;  %v1004_v17 = vshll.u32 %v9156_v14, 16  ;;  %10293 = vmatprep.mubr.bf16.mxu1 %v9156_v14  ;;  %v1011_v23 = vrot.slane %v1009_v18, 1  ;;  %v1029_v42 = vshrl.u32 %v11622_v24, 16  ;;  %v11269_v50 = vld [vmem:[%s16535_s1 + $0xa8] sm:$0xff]   ;;  %v11662_v53 = vld [vmem:[%s11595_s10 + $0x38] sm:$0xff]   ;;  %vm12860_vm11 = vmand %vm829_vm9, %vm830_vm10 }
  0x15   : > { %10230 = vmatpush3.bf16.msra.mxu0 %v11248_v4  ;;  %v1019_v35 = vrot.slane %v1017_v28, 1  ;;  %v1027_v39 = vrot.slane %v1025_v32, 1  ;;  %v1037_v43 = vshrl.u32 %v11636_v33, 16  ;;  %v1041_v44 = vshll.u32 %v11642_v37, 16  ;;  %v11278_v54 = vld [vmem:[%s16535_s1 + $0xf8] sm:$0xff]   ;;  %v11280_v59 = vld [vmem:[%s16535_s1 + $0xf0] sm:$0xff]  }
  0x16   : > { %10282 = vmatpush3.bf16.msra.mxu1 %v11249_v5  ;;  %10231 = vmatprep.subr.bf16.mxu0 %v11250_v6  ;;  %v1006_v22 = vrot.slane %v1004_v17, 1  ;;  %v1015_v34 = vor.u32 %v1013_v27, %v1011_v23  ;;  %v1035_v47 = vrot.slane %v1033_v40, 1  ;;  %v1045_v55 = vshrl.u32 %v11642_v37, 16  ;;  %v11677_v62 = vld [vmem:[%s11595_s10 + $0x40] sm:$0xff]   ;;  %v11683_v1 = vld [vmem:[%s11595_s10 + $0x48] sm:$0xff]   ;;  %v11705_v18 = vld [vmem:[%s11595_s10 + $0x50] sm:$0xff]  }
  0x17   : > { %10283 = vmatprep.subr.bf16.mxu1 %v11251_v7  ;;  %v1023_v38 = vor.u32 %v1021_v31, %v1019_v35  ;;  %v1031_v49 = vor.u32 %v1029_v42, %v1027_v39  ;;  %v1043_v52 = vrot.slane %v1041_v44, 1  ;;  %v1049_v56 = vshll.u32 %v11654_v48, 16  ;;  %v11272_v63 = vld [vmem:[%s16535_s1 + $0xa0] sm:$0xff]   ;;  %v11283_v4 = vld [vmem:[%s16535_s1 + $0xe8] sm:$0xff]  }
  0x18   : > { %v1007_v26 = vor.u32 %v1006_v22, %v1002_v16  ;;  %v1020_v41 = vsel %vm16559_vm0, %v1015_v34, %v1019_v35  ;;  %v1039_v51 = vor.u32 %v1037_v43, %v1035_v47  ;;  %v1053_v58 = vshrl.u32 %v11654_v48, 16  ;;  %v11285_v11 = vld [vmem:[%s16535_s1 + $0xe0] sm:$0xff]   ;;  %v11279_v22 = vld [vmem:[%s16535_s1 + $0x90] sm:$0xff]   ;;  %v11731_v34 = vld [vmem:[%s11595_s10 + $0x68] sm:$0xff]  }
  0x19   : > { %10232 = vmatpush3.bf16.msra.mxu0 %v11250_v6  ;;  %v1028_v45 = vsel %vm16559_vm0, %v1023_v38, %v1027_v39  ;;  %v1036_v57 = vsel %vm16559_vm0, %v1031_v49, %v1035_v47  ;;  %v1057_v61 = vshll.u32 %v11662_v53, 16  ;;  %v1051_v0 = vrot.slane %v1049_v56, 1  ;;  %v11727_v31 = vld [vmem:[%s11595_s10 + $0x60] sm:$0xff]   ;;  %v11284_v35 = vld [vmem:[%s16535_s1 + $0x88] sm:$0xff]   ;;  %v11289_v38 = vld [vmem:[%s16535_s1 + $0xd0] sm:$0xff]  }
  0x1a   : > { %10284 = vmatpush3.bf16.msra.mxu1 %v11251_v7  ;;  %10233 = vmatprep.subr.bf16.mxu0 %v11252_v8  ;;  %v1012_v30 = vsel %vm16559_vm0, %v1007_v26, %v1011_v23  ;;  %v1044_v60 = vsel %vm16559_vm0, %v1039_v51, %v1043_v52  ;;  %v1047_v2 = vor.u32 %v1045_v55, %v1043_v52  ;;  %v1061_v3 = vshrl.u32 %v11662_v53, 16 }
  0x1b   : > { %10285 = vmatprep.subr.bf16.mxu1 %v11253_v9  ;;  %10241 = vmatprep.mubr.bf16.mxu0 %v1012_v30  ;;  %v1055_v5 = vor.u32 %v1053_v58, %v1051_v0  ;;  %v1059_v6 = vrot.slane %v1057_v61, 1  ;;  %v1065_v7 = vshll.u32 %v11677_v62, 16  ;;  %v1073_v14 = vshll.u32 %v11683_v1, 16  ;;  %v11762_v58 = vld [vmem:[%s11595_s10 + $0x78] sm:$0xff]  }
  0x1c   : > { %v1660_v16 = vrot.slane %v11613_v19, 1  ;;  %v1077_v28 = vshrl.u32 %v11683_v1, 16  ;;  %v1085_v32 = vshrl.u32 %v11705_v18, 16  ;;  %v1097_v44 = vshll.u32 %v11727_v31, 16 }
  0x1d   : > { %10234 = vmatpush3.bf16.msra.mxu0 %v11252_v8  ;;  %v11275_v8 = vld [vmem:[%s16535_s1 + $0x98] sm:$0xff]   ;;  %v1060_v17 = vsel %vm16559_vm0, %v1055_v5, %v1059_v6  ;;  %v1075_v27 = vrot.slane %v1073_v14, 1  ;;  %v1101_v49 = vshrl.u32 %v11727_v31, 16  ;;  %v1662_v52 = vrot.slane %v11622_v24, 1  ;;  %v11804_v14 = vld [vmem:[%s11595_s10 + $0x88] sm:$0xff]  }
  0x1e   : > { %10286 = vmatpush3.bf16.msra.mxu1 %v11253_v9  ;;  %10235 = vmatprep.subr.bf16.mxu0 %v11254_v10  ;;  %v1658_v9 = vrot.slane %v11609_v15, 1  ;;  %v1105_v55 = vshll.u32 %v11731_v34, 16  ;;  %v1664_v56 = vrot.slane %v11636_v33, 1  ;;  %v1666_v61 = vrot.slane %v11642_v37, 1 }
  0x1f   : > { %10287 = vmatprep.subr.bf16.mxu1 %v11255_v13 }
  0x20   : > { %v11716_v23 = vsel %vm16558_vm1, %v1658_v9, %v1660_v16  ;;  %v11791_v5 = vsel %vm16558_vm1, %v1664_v56, %v1666_v61 }
  0x21   : > { %10236 = vmatpush3.bf16.msra.mxu0 %v11254_v10  ;;  %v1069_v10 = vshrl.u32 %v11677_v62, 16 }
  0x22   : > { %10288 = vmatpush3.bf16.msra.mxu1 %v11255_v13  ;;  %10237 = vmatprep.subr.bf16.mxu0 %v11256_v20  ;;  %v1052_v13 = vsel %vm16559_vm0, %v1047_v2, %v1051_v0  ;;  %v11294_v0 = vld [vmem:[%s16535_s1 + $0xc0] sm:$0xff]   ;;  %v1668_v2 = vrot.slane %v11654_v48, 1 }
  0x23   : > { %10289 = vmatprep.subr.bf16.mxu1 %v11257_v21 }
  0x25   : > { %10238 = vmatpush3.bf16.msra.mxu0 %v11256_v20  ;;  %v11708_v20 = vld [vmem:[%s11595_s10 + $0x58] sm:$0xff]  }
  0x26   : > { %10290 = vmatpush3.bf16.msra.mxu1 %v11257_v21  ;;  %10239 = vmatprep.subr.bf16.mxu0 %v11258_v25  ;;  %v1067_v21 = vrot.slane %v1065_v7, 1  ;;  %v1089_v30 = vshll.u32 %v11708_v20, 16 }
  0x27   : > { %10291 = vmatprep.subr.bf16.mxu1 %v11259_v29 }
  0x28   : > { %v1071_v26 = vor.u32 %v1069_v10, %v1067_v21  ;;  %v1091_v43 = vrot.slane %v1089_v30, 1  ;;  %v1121_v10 = vshll.u32 %v11762_v58, 16 }
  0x29   : > { %10240 = vmatpush3.bf16.msra.mxu0 %v11258_v25  ;;  %v1063_v25 = vor.u32 %v1061_v3, %v1059_v6  ;;  %v1107_v6 = vrot.slane %v1105_v55, 1 }
  0x2a   : > { %10292 = vmatpush3.bf16.msra.mxu1 %v11259_v29  ;;  %10329 = vmatprep.subr.bf16.mxu0 %v11263_v36  ;;  %v1081_v29 = vshll.u32 %v11705_v18, 16  ;;  %v1076_v40 = vsel %vm16559_vm0, %v1071_v26, %v1075_v27 }
  0x2b   : > { %10381 = vmatprep.subr.bf16.mxu1 %v11278_v54  ;;  %v1068_v39 = vsel %vm16559_vm0, %v1063_v25, %v1067_v21  ;;  %v11815_v21 = vld [vmem:[%s11595_s10 + $0x90] ss:$0 sps:$4 sm:$0x11]   ;;  %v1125_v25 = vshrl.u32 %v11762_v58, 16 }
  0x2c   : > { %10242 = vmatmul.mubr.bf16.vlgmr.msra.gmra.mxu0 %v1020_v41  ;;  %v1635_v41 = vld [vmem:[%s11595_s10] sm:$0xe]  ;;  %v1083_v42 = vrot.slane %v1081_v29, 1 }
  0x2d   : > { %10294 = vmatmul.mubr.bf16.vlgmr.msra.gmra.mxu1 %v11609_v15  ;;  %10330 = vmatpush3.bf16.msra.mxu0 %v11263_v36  ;;  %v1093_v36 = vshrl.u32 %v11708_v20, 16  ;;  %v9207_v47 = vcombine.low %v1635_v41, %v11602_v12  ;;  %v11782_v15 = vld [vmem:[%s11595_s10 + $0x80] sm:$0xff]   ;;  %v1145_v41 = vshll.u32 %v11815_v21, 16 }
  0x2e   : > { %10245 = vmatprep.mubr.bf16.mxu0 %v1028_v45  ;;  %10297 = vmatprep.mubr.bf16.mxu1 %v11613_v19  ;;  %v11288_v19 = vld [vmem:[%s16535_s1 + $0xd8] sm:$0xff]   ;;  %v11745_v45 = vld [vmem:[%s11595_s10 + $0x70] sm:$0xff]   ;;  %v1087_v12 = vor.u32 %v1085_v32, %v1083_v42 }
  0x2f   : > { %10331 = vmatprep.subr.bf16.mxu0 %v11266_v46  ;;  %10382 = vmatpush3.bf16.msra.mxu1 %v11278_v54  ;;  %v1657_v51 = vrot.slane %v9207_v47, 1  ;;  %v1079_v54 = vor.u32 %v1077_v28, %v1075_v27  ;;  %v1123_v27 = vrot.slane %v1121_v10, 1  ;;  %v1133_v28 = vshrl.u32 %v11782_v15, 16  ;;  %v11849_v47 = vld [vmem:[%s11595_s10 + $0xc] sm:$0xf] }
  0x30   : > { %10383 = vmatprep.subr.bf16.mxu1 %v11280_v59 }
  0x31   : > { %10332 = vmatpush3.bf16.msra.mxu0 %v11266_v46  ;;  %v11291_v46 = vld [vmem:[%s16535_s1 + $0x80] sm:$0xff]   ;;  %v1084_v3 = vsel %vm16559_vm0, %v1079_v54, %v1083_v42  ;;  %v1973_v42 = vld [vmem:[%s11595_s10 + $0x8] sm:$0xe]  ;;  %v1686_v54 = vrot.slane %v11762_v58, 1  ;;  %v1127_v10 = vor.u32 %v1125_v25, %v1123_v27 }
  0x32   : > { %10333 = vmatprep.subr.bf16.mxu0 %v11269_v50 }
  0x33   : > { %10384 = vmatpush3.bf16.msra.mxu1 %v11280_v59  ;;  %v11770_v59 = vsel %vm16558_vm1, %v1660_v16, %v1662_v52 }
  0x34   : > { %10246 = vmatmul.mubr.bf16.gmra.mxu0 %v1036_v57  ;;  %10385 = vmatprep.subr.bf16.mxu1 %v11283_v4  ;;  %v1113_v57 = vshll.u32 %v11745_v45, 16 }
  0x35   : > { %10298 = vmatmul.mubr.bf16.gmra.mxu1 %v11622_v24  ;;  %10249 = vmatprep.mubr.bf16.mxu0 %v1044_v60  ;;  %v11767_v24 = vsel %vm16558_vm1, %v1657_v51, %v1658_v9  ;;  %v11778_v60 = vsel %vm16558_vm1, %v1662_v52, %v1664_v56  ;;  %v1672_v9 = vrot.slane %v11677_v62, 1  ;;  %v11856_v51 = vld [vmem:[%s11595_s10 + $0x10] sm:$0xff]   ;;  %v1684_v52 = vrot.slane %v11745_v45, 1 }
  0x36   : > { %10301 = vmatprep.mubr.bf16.mxu1 %v11636_v33  ;;  %10334 = vmatpush3.bf16.msra.mxu0 %v11269_v50  ;;  %v11293_v50 = vld [vmem:[%s16535_s1 + $0xc8] sm:$0xff]   ;;  %v11775_v33 = vld [vmem:[%s16535_s1 + $0x138] sm:$0xff]   ;;  %v1115_v7 = vrot.slane %v1113_v57, 1  ;;  %v1147_v57 = vrot.slane %v1145_v41, 1 }
  0x37   : > { %10335 = vmatprep.subr.bf16.mxu0 %v11272_v63  ;;  %10386 = vmatpush3.bf16.msra.mxu1 %v11283_v4  ;;  %v1092_v4 = vsel %vm16559_vm0, %v1087_v12, %v1091_v43  ;;  %v11862_v12 = vld [vmem:[%s11595_s10 + $0x18] sm:$0xff]  }
  0x38   : > { %10387 = vmatprep.subr.bf16.mxu1 %v11285_v11 }
  0x3a   : > { %10336 = vmatpush3.bf16.msra.mxu0 %v11272_v63  ;;  %v1099_v63 = vrot.slane %v1097_v44, 1  ;;  %v11845_v44 = vld [vmem:[%s16535_s1 + $0x178] sm:$0xff]  }
  0x3b   : > { %10337 = vmatprep.subr.bf16.mxu0 %v11275_v8  ;;  %10388 = vmatpush3.bf16.msra.mxu1 %v11285_v11  ;;  %v1129_v11 = vshll.u32 %v11782_v15, 16 }
  0x3c   : > { %10250 = vmatmul.mubr.bf16.gmra.mxu0 %v1052_v13  ;;  %10389 = vmatprep.subr.bf16.mxu1 %v11288_v19  ;;  %v1095_v13 = vor.u32 %v1093_v36, %v1091_v43  ;;  %v1680_v36 = vrot.slane %v11727_v31, 1 }
  0x3d   : > { %10302 = vmatmul.mubr.bf16.gmra.mxu1 %v11642_v37  ;;  %10253 = vmatprep.mubr.bf16.mxu0 %v1060_v17  ;;  %v1109_v37 = vshrl.u32 %v11731_v34, 16  ;;  %v1131_v30 = vrot.slane %v1129_v11, 1 }
  0x3e   : > { %10305 = vmatprep.mubr.bf16.mxu1 %v11654_v48  ;;  %10338 = vmatpush3.bf16.msra.mxu0 %v11275_v8  ;;  %v11795_v8 = vsel %vm16558_vm1, %v1666_v61, %v1668_v2  ;;  %v1670_v48 = vrot.slane %v11662_v53, 1  ;;  %v1100_v29 = vsel %vm16559_vm0, %v1095_v13, %v1099_v63  ;;  %v9232_v61 = vcombine.low %v1973_v42, %v11849_v47  ;;  %v11894_v13 = vld [vmem:[%s11595_s10 + $0x40] sm:$0xff]  }
  0x3f   : > { %10339 = vmatprep.subr.bf16.mxu0 %v11279_v22  ;;  %10390 = vmatpush3.bf16.msra.mxu1 %v11288_v19  ;;  %v1117_v19 = vshrl.u32 %v11745_v45, 16 }
  0x40   : > { %10391 = vmatprep.subr.bf16.mxu1 %v11289_v38  ;;  %v11807_v16 = vsel %vm16558_vm1, %v1668_v2, %v1670_v48  ;;  %v11810_v17 = vsel %vm16558_vm1, %v1670_v48, %v1672_v9  ;;  %v11889_v48 = vld [vmem:[%s11595_s10 + $0x38] sm:$0xff]   ;;  %v2120_v11 = vrot.slane %v9232_v61, 1 }
  0x42   : > { %10340 = vmatpush3.bf16.msra.mxu0 %v11279_v22  ;;  %v1676_v22 = vrot.slane %v11705_v18, 1 }
  0x43   : > { %10341 = vmatprep.subr.bf16.mxu0 %v11284_v35  ;;  %10392 = vmatpush3.bf16.msra.mxu1 %v11289_v38  ;;  %v1141_v38 = vshrl.u32 %v11804_v14, 16 }
  0x44   : > { %10254 = vmatmul.mubr.bf16.gmra.mxu0 %v1068_v39  ;;  %10393 = vmatprep.subr.bf16.mxu1 %v11293_v50 }
  0x45   : > { %10306 = vmatmul.mubr.bf16.gmra.mxu1 %v11662_v53  ;;  %10257 = vmatprep.mubr.bf16.mxu0 %v1076_v40  ;;  %v1674_v53 = vrot.slane %v11683_v1, 1  ;;  %v1682_v40 = vrot.slane %v11731_v34, 1 }
  0x46   : > { %10309 = vmatprep.mubr.bf16.mxu1 %v11677_v62  ;;  %10342 = vmatpush3.bf16.msra.mxu0 %v11284_v35  ;;  %v1103_v62 = vor.u32 %v1101_v49, %v1099_v63  ;;  %v1137_v35 = vshll.u32 %v11804_v14, 16  ;;  %v11871_v63 = vld [vmem:[%s11595_s10 + $0x20] sm:$0xff]  }
  0x47   : > { %10343 = vmatprep.subr.bf16.mxu0 %v11291_v46  ;;  %10394 = vmatpush3.bf16.msra.mxu1 %v11293_v50  ;;  %v11821_v26 = vsel %vm16558_vm1, %v1672_v9, %v1674_v53  ;;  %v11852_v49 = vsel %vm16558_vm1, %v1680_v36, %v1682_v40  ;;  %v1119_v50 = vor.u32 %v1117_v19, %v1115_v7  ;;  %v1692_v9 = vrot.slane %v11815_v21, 1 }
  0x48   : > { %10395 = vmatprep.subr.bf16.mxu1 %v11294_v0  ;;  %v1108_v32 = vsel %vm16559_vm0, %v1103_v62, %v1107_v6  ;;  %v11865_v55 = vsel %vm16558_vm1, %v1682_v40, %v1684_v52  ;;  %v1135_v62 = vor.u32 %v1133_v28, %v1131_v30  ;;  %v2462_v28 = vshll.u32 %v9232_v61, 16 }
  0x49   : > { %v1124_v2 = vsel %vm16559_vm0, %v1119_v50, %v1123_v27 }
  0x4a   : > { %10344 = vmatpush3.bf16.msra.mxu0 %v11291_v46  ;;  %v1111_v46 = vor.u32 %v1109_v37, %v1107_v6  ;;  %v11885_v37 = vld [vmem:[%s11595_s10 + $0x30] sm:$0xff]   ;;  %v2464_v50 = vrot.slane %v2462_v28, 2 }
  0x4b   : > { %10433 = vmatprep.subr.bf16.mxu0 %v11775_v33  ;;  %10396 = vmatpush3.bf16.msra.mxu1 %v11294_v0  ;;  %v11874_v0 = vsel %vm16558_vm1, %v1684_v52, %v1686_v54  ;;  %v2129_v27 = vrot.slane %v11885_v37, 1 }
  0x4c   : > { %10258 = vmatmul.mubr.bf16.gmra.mxu0 %v1084_v3  ;;  %10485 = vmatprep.subr.bf16.mxu1 %v11845_v44  ;;  %v1116_v56 = vsel %vm16559_vm0, %v1111_v46, %v1115_v7  ;;  %v2121_v3 = vrot.slane %v11856_v51, 1  ;;  %v1690_v7 = vrot.slane %v11804_v14, 1 }
  0x4d   : > { %10310 = vmatmul.mubr.bf16.gmra.mxu1 %v11683_v1  ;;  %10261 = vmatprep.mubr.bf16.mxu0 %v1092_v4  ;;  %v11825_v1 = vsel %vm16558_vm1, %v1674_v53, %v1676_v22  ;;  %v11879_v4 = vld [vmem:[%s11595_s10 + $0x28] sm:$0xff]  }
  0x4e   : > { %10313 = vmatprep.mubr.bf16.mxu1 %v11705_v18  ;;  %v1678_v18 = vrot.slane %v11708_v20, 1  ;;  %v11902_v19 = vsel %vm16558_vm1, %v1690_v7, %v1692_v9  ;;  %v2127_v25 = vrot.slane %v11879_v4, 1 }
  0x50   : > { %v11834_v39 = vsel %vm16558_vm1, %v1676_v22, %v1678_v18  ;;  %v11840_v43 = vsel %vm16558_vm1, %v1678_v18, %v1680_v36  ;;  %v2123_v22 = vrot.slane %v11862_v12, 1  ;;  %v2131_v18 = vrot.slane %v11889_v48, 1 }
  0x52   : > { %v11914_v41 = vsel %vm16558_vm1, %v2121_v3, %v2123_v22  ;;  %v11927_v52 = vsel %vm16558_vm1, %v2129_v27, %v2131_v18 }
  0x54   : > { %10262 = vmatmul.mubr.bf16.gmra.mxu0 %v1100_v29  ;;  %v2459_v29 = vshrl.u32 %v9232_v61, 16 }
  0x55   : > { %10314 = vmatmul.mubr.bf16.gmra.mxu1 %v11708_v20  ;;  %10265 = vmatprep.mubr.bf16.mxu0 %v1108_v32  ;;  %v1139_v20 = vrot.slane %v1137_v35, 1  ;;  %v1132_v32 = vsel %vm16559_vm0, %v1127_v10, %v1131_v30  ;;  %v11923_v30 = vsel %vm16558_vm1, %v2127_v25, %v2129_v27 }
  0x56   : > { %10317 = vmatprep.mubr.bf16.mxu1 %v11727_v31  ;;  %v1688_v31 = vrot.slane %v11782_v15, 1  ;;  %v2461_v36 = vrot.slane %v2459_v29, 1  ;;  %v2488_v29 = vshll.u32 %v11871_v63, 16 }
  0x57   : > { %v1143_v21 = vor.u32 %v1141_v38, %v1139_v20  ;;  %v1140_v35 = vsel %vm16559_vm0, %v1135_v62, %v1139_v20  ;;  %v2122_v38 = vsel %vm16558_vm1, %v2120_v11, %v2121_v3  ;;  %v2907_v3 = vld [vmem:[%s11595_s10 + $0x8] sm:$0xc]  ;;  %v2932_v62 = vrot.slane %v11862_v12, 2 }
  0x58   : > { %v11882_v6 = vsel %vm16558_vm1, %v1686_v54, %v1688_v31  ;;  %v11897_v53 = vsel %vm16558_vm1, %v1688_v31, %v1690_v7  ;;  %v2467_v54 = vshrl.u32 %v11856_v51, 16  ;;  %v2470_v31 = vshll.u32 %v11856_v51, 16 }
  0x59   : > { %v1148_v40 = vsel %vm16559_vm0, %v1143_v21, %v1147_v57  ;;  %v2476_v57 = vshrl.u32 %v11862_v12, 16  ;;  %v2930_v7 = vrot.slane %v11856_v51, 2  ;;  %v9300_v11 = vcombine.low %v2907_v3, %v11849_v47  ;;  %v11977_v3 = vld [vmem:[%s11595_s10 + $0x48] sm:$0xff]  }
  0x5a   : > { %v2469_v61 = vrot.slane %v2467_v54, 1  ;;  %v2494_v21 = vshrl.u32 %v11879_v4, 16  ;;  %v2497_v51 = vshll.u32 %v11879_v4, 16 }
  0x5b   : > { %v2478_v9 = vrot.slane %v2476_v57, 1  ;;  %v11947_v27 = vsel %vm16553_vm3, %v2930_v7, %v2932_v62 }
  0x5c   : > { %10266 = vmatmul.mubr.bf16.gmra.mxu0 %v1116_v56  ;;  %v2465_v56 = vor.u32 %v2464_v50, %v2461_v36  ;;  %v2499_v36 = vrot.slane %v2497_v51, 2  ;;  %v2934_v50 = vrot.slane %v11871_v63, 2  ;;  %v2533_v51 = vshll.u32 %v11977_v3, 16 }
  0x5d   : > { %10318 = vmatmul.mubr.bf16.gmra.mxu1 %v11731_v34  ;;  %10269 = vmatprep.mubr.bf16.mxu0 %v1124_v2  ;;  %v2125_v34 = vrot.slane %v11871_v63, 1  ;;  %v2472_v2 = vrot.slane %v2470_v31, 2  ;;  %v2936_v31 = vrot.slane %v11879_v4, 2 }
  0x5e   : > { %10321 = vmatprep.mubr.bf16.mxu1 %v11745_v45  ;;  %v16538_v45 = vrot.slane %v11894_v13, 1 }
  0x5f   : > { %v11917_v42 = vsel %vm16558_vm1, %v2123_v22, %v2125_v34  ;;  %v11920_v46 = vsel %vm16558_vm1, %v2125_v34, %v2127_v25  ;;  %v2473_v22 = vor.u32 %v2472_v2, %v2469_v61  ;;  %v2929_v25 = vrot.slane %v9300_v11, 2  ;;  %v11301_v11 = vld [vmem:[%s16535_s1 + $0x130] sm:$0xff]  }
  0x60   : > { %v11932_v20 = vsel %vm16558_vm1, %v2131_v18, %v16538_v45  ;;  %v2512_v61 = vshrl.u32 %v11889_v48, 16 }
  0x61   : > { %v11951_v18 = vsel %vm16552_vm2, %v2465_v56, %v2473_v22  ;;  %v2503_v56 = vshrl.u32 %v11885_v37, 16 }
  0x63   : > { %v2505_v4 = vrot.slane %v2503_v56, 1 }
  0x64   : > { %10270 = vmatmul.mubr.bf16.gmra.mxu0 %v1132_v32  ;;  %v2490_v32 = vrot.slane %v2488_v29, 2  ;;  %v2524_v29 = vshll.u32 %v11894_v13, 16 }
  0x65   : > { %10322 = vmatmul.mubr.bf16.gmra.mxu1 %v11762_v58  ;;  %10273 = vmatprep.mubr.bf16.mxu0 %v1140_v35  ;;  %v2479_v58 = vshll.u32 %v11862_v12, 16  ;;  %v2496_v12 = vrot.slane %v2494_v21, 1  ;;  %v11957_v35 = vsel %vm16553_vm3, %v2929_v25, %v2930_v7  ;;  %v2514_v7 = vrot.slane %v2512_v61, 1 }
  0x66   : > { %10325 = vmatprep.mubr.bf16.mxu1 %v11782_v15  ;;  %v2485_v15 = vshrl.u32 %v11871_v63, 16  ;;  %v2515_v63 = vshll.u32 %v11889_v48, 16  ;;  %v2530_v25 = vshrl.u32 %v11977_v3, 16 }
  0x67   : > { %v2481_v10 = vrot.slane %v2479_v58, 2  ;;  %v2500_v57 = vor.u32 %v2499_v36, %v2496_v12  ;;  %v11966_v58 = vsel %vm16553_vm3, %v2932_v62, %v2934_v50  ;;  %v2526_v36 = vrot.slane %v2524_v29, 2 }
  0x68   : > { %v2487_v47 = vrot.slane %v2485_v15, 1  ;;  %v2521_v15 = vshrl.u32 %v11894_v13, 16  ;;  %v2532_v56 = vrot.slane %v2530_v25, 1 }
  0x69   : > { %v2482_v34 = vor.u32 %v2481_v10, %v2478_v9  ;;  %v2517_v9 = vrot.slane %v2515_v63, 2  ;;  %v2938_v10 = vrot.slane %v11885_v37, 2  ;;  %v2944_v63 = vrot.slane %v11977_v3, 2 }
  0x6a   : > { %v2491_v54 = vor.u32 %v2490_v32, %v2487_v47  ;;  %v11998_v47 = vld [vmem:[%s11595_s10 + $0x58] sm:$0xff]   ;;  %v2523_v12 = vrot.slane %v2521_v15, 1 }
  0x6b   : > { %v11954_v28 = vsel %vm16552_vm2, %v2473_v22, %v2482_v34  ;;  %v2940_v22 = vrot.slane %v11889_v48, 2  ;;  %v2518_v21 = vor.u32 %v2517_v9, %v2514_v7  ;;  %v12030_v7 = vld [vmem:[%s11595_s10 + $0x68] sm:$0xff]  }
  0x6c   : > { %10274 = vmatmul.mubr.bf16.gmra.mxu0 %v1148_v40  ;;  %v2506_v40 = vshll.u32 %v11885_v37, 16  ;;  %v11995_v37 = vld [vmem:[%s11595_s10 + $0x50] sm:$0xff]   ;;  %v2527_v61 = vor.u32 %v2526_v36, %v2523_v12  ;;  %v2948_v12 = vrot.slane %v11998_v47, 2 }
  0x6d   : > { %10326 = vmatmul.mubr.bf16.gmra.mxu1 %v11804_v14  ;;  %10345 = vmatprep.mubr.bf16.mxu0 %v11767_v24  ;;  %v11971_v14 = vsel %vm16552_vm2, %v2482_v34, %v2491_v54  ;;  %v11974_v24 = vsel %vm16553_vm3, %v2934_v50, %v2936_v31  ;;  %v11990_v34 = vsel %vm16553_vm3, %v2936_v31, %v2938_v10  ;;  %v12010_v50 = vld [vmem:[%s16535_s1 + $0x128] sm:$0xff]  }
  0x6e   : > { %10397 = vmatprep.mubr.bf16.mxu1 %v2122_v38  ;;  %v2508_v2 = vrot.slane %v2506_v40, 2  ;;  %v11980_v38 = vsel %vm16552_vm2, %v2491_v54, %v2500_v57  ;;  %v12004_v48 = vsel %vm16553_vm3, %v2938_v10, %v2940_v22  ;;  %v11316_v54 = vld [vmem:[%s16535_s1 + $0x170] sm:$0xff]   ;;  %v2535_v40 = vrot.slane %v2533_v51, 2 }
  0x6f   : > { %v2551_v10 = vshll.u32 %v11998_v47, 16 }
  0x70   : > { %v2509_v62 = vor.u32 %v2508_v2, %v2505_v4  ;;  %v2539_v4 = vshrl.u32 %v11995_v37, 16  ;;  %v2542_v2 = vshll.u32 %v11995_v37, 16  ;;  %v2536_v9 = vor.u32 %v2535_v40, %v2532_v56 }
  0x72   : > { %v12001_v32 = vsel %vm16552_vm2, %v2500_v57, %v2509_v62  ;;  %v12016_v31 = vsel %vm16552_vm2, %v2509_v62, %v2518_v21  ;;  %v2942_v57 = vrot.slane %v11894_v13, 2  ;;  %v12039_v62 = vsel %vm16552_vm2, %v2518_v21, %v2527_v61 }
  0x73   : > { %v2544_v15 = vrot.slane %v2542_v2, 2  ;;  %v12048_v29 = vsel %vm16552_vm2, %v2527_v61, %v2536_v9  ;;  %v2946_v21 = vrot.slane %v11995_v37, 2  ;;  %v2566_v61 = vshrl.u32 %v12030_v7, 16  ;;  %v12064_v2 = vld [vmem:[%s11595_s10 + $0x70] sm:$0xff]  }
  0x74   : > { %10346 = vmatmul.mubr.bf16.vlgmr.msra.gmra.mxu0 %v11716_v23  ;;  %v12022_v23 = vld [vmem:[%s11595_s10 + $0x60] sm:$0xff]  }
  0x75   : > { %10434 = vmatpush3.bf16.msra.mxu0 %v11775_v33  ;;  %10398 = vmatmul.mubr.bf16.vlgmr.msra.gmra.mxu1 %v11914_v41  ;;  %v12033_v33 = vsel %vm16553_vm3, %v2940_v22, %v2942_v57  ;;  %v2548_v41 = vshrl.u32 %v11998_v47, 16  ;;  %v11319_v22 = vld [vmem:[%s16535_s1 + $0x168] sm:$0xff]   ;;  %v2557_v36 = vshrl.u32 %v12022_v23, 16  ;;  %v2560_v56 = vshll.u32 %v12022_v23, 16 }
  0x76   : > { %10349 = vmatprep.mubr.bf16.mxu0 %v11770_v59  ;;  %10401 = vmatprep.mubr.bf16.mxu1 %v11917_v42  ;;  %v12042_v59 = vsel %vm16553_vm3, %v2942_v57, %v2944_v63  ;;  %v2541_v42 = vrot.slane %v2539_v4, 1  ;;  %v12056_v57 = vsel %vm16553_vm3, %v2944_v63, %v2946_v21  ;;  %v2569_v4 = vshll.u32 %v12030_v7, 16 }
  0x77   : > { %10435 = vmatprep.subr.bf16.mxu0 %v11301_v11  ;;  %10486 = vmatpush3.bf16.msra.mxu1 %v11845_v44  ;;  %v2550_v25 = vrot.slane %v2548_v41, 1  ;;  %v2553_v44 = vrot.slane %v2551_v10, 2  ;;  %v12067_v41 = vld [vmem:[%s11595_s10 + $0x78] sm:$0xff]   ;;  %v2559_v63 = vrot.slane %v2557_v36, 1  ;;  %v2575_v36 = vshrl.u32 %v12064_v2, 16 }
  0x78   : > { %10487 = vmatprep.subr.bf16.mxu1 %v11316_v54  ;;  %v2545_v51 = vor.u32 %v2544_v15, %v2541_v42  ;;  %v12073_v42 = vsel %vm16553_vm3, %v2946_v21, %v2948_v12  ;;  %v2562_v15 = vrot.slane %v2560_v56, 2  ;;  %v2571_v45 = vrot.slane %v2569_v4, 2 }
  0x79   : > { %10436 = vmatpush3.bf16.msra.mxu0 %v11301_v11  ;;  %v2554_v40 = vor.u32 %v2553_v44, %v2550_v25  ;;  %v11308_v11 = vld [vmem:[%s16535_s1 + $0x120] sm:$0xff]   ;;  %16740 = vst [vmem:[#allocation3_spill] sm:$0xff] %v12073_v42  ;;  %v2568_v44 = vrot.slane %v2566_v61, 1  ;;  %v2578_v56 = vshll.u32 %v12064_v2, 16  ;;  %v2587_v4 = vshll.u32 %v12067_v41, 16 }
  0x7a   : > { %10437 = vmatprep.subr.bf16.mxu0 %v12010_v50  ;;  %v12070_v10 = vsel %vm16552_vm2, %v2536_v9, %v2545_v51  ;;  %v11321_v25 = vld [vmem:[%s16535_s1 + $0x160] sm:$0xff]   ;;  %v2950_v9 = vrot.slane %v12022_v23, 2  ;;  %v2563_v21 = vor.u32 %v2562_v15, %v2559_v63  ;;  %v12102_v15 = vld [vmem:[%s11595_s10 + $0x88] sm:$0xff]  }
  0x7b   : > { %10488 = vmatpush3.bf16.msra.mxu1 %v11316_v54  ;;  %v12080_v54 = vsel %vm16552_vm2, %v2545_v51, %v2554_v40  ;;  %v2572_v51 = vor.u32 %v2571_v45, %v2568_v44  ;;  %v12099_v63 = vld [vmem:[%s11595_s10 + $0x80] sm:$0xff]   ;;  %v11324_v44 = vld [vmem:[%s16535_s1 + $0x158] sm:$0xff]   ;;  %v2589_v42 = vrot.slane %v2587_v4, 2  ;;  %v12129_v4 = vld [vmem:[%s11595_s10 + $0x90] sm:$0xff]  }
  0x7c   : > { %10350 = vmatmul.mubr.bf16.gmra.mxu0 %v11778_v60  ;;  %10489 = vmatprep.subr.bf16.mxu1 %v11319_v22  ;;  %16741 = vst [vmem:[#allocation4_spill] sm:$0xff] %v12080_v54  ;;  %v2952_v60 = vrot.slane %v12030_v7, 2  ;;  %v12091_v61 = vsel %vm16553_vm3, %v2948_v12, %v2950_v9  ;;  %v2580_v12 = vrot.slane %v2578_v56, 2  ;;  %v2954_v54 = vrot.slane %v12064_v2, 2 }
  0x7d   : > { %10402 = vmatmul.mubr.bf16.gmra.mxu1 %v11920_v46  ;;  %10353 = vmatprep.mubr.bf16.mxu0 %v11791_v5  ;;  %16742 = vst [vmem:[#allocation5_spill] sm:$0xff] %v12091_v61  ;;  %v2584_v46 = vshrl.u32 %v12067_v41, 16  ;;  %v11311_v5 = vld [vmem:[%s16535_s1 + $0x118] sm:$0xff]   ;;  %v12114_v61 = vsel %vm16552_vm2, %v2563_v21, %v2572_v51 }
  0x7e   : > { %10405 = vmatprep.mubr.bf16.mxu1 %v11923_v30  ;;  %10438 = vmatpush3.bf16.msra.mxu0 %v12010_v50  ;;  %v12105_v30 = vsel %vm16552_vm2, %v2554_v40, %v2563_v21  ;;  %v12108_v45 = vsel %vm16553_vm3, %v2950_v9, %v2952_v60  ;;  %v2577_v50 = vrot.slane %v2575_v36, 1  ;;  %16745 = vst [vmem:[#allocation8_spill] sm:$0xff] %v12114_v61  ;;  %v2593_v9 = vshrl.u32 %v12099_v63, 16 }
  0x7f   : > { %10439 = vmatprep.subr.bf16.mxu0 %v11308_v11  ;;  %10490 = vmatpush3.bf16.msra.mxu1 %v11319_v22  ;;  %16743 = vst [vmem:[#allocation6_spill] sm:$0xff] %v12105_v30  ;;  %16744 = vst [vmem:[#allocation7_spill] sm:$0xff] %v12108_v45  ;;  %v2586_v22 = vrot.slane %v2584_v46, 1  ;;  %v2956_v30 = vrot.slane %v12067_v41, 2  ;;  %v2596_v36 = vshll.u32 %v12099_v63, 16  ;;  %v12121_v45 = vsel %vm16553_vm3, %v2952_v60, %v2954_v54  ;;  %v11315_v46 = vld [vmem:[%s16535_s1 + $0x110] sm:$0xff]  }
  0x80   : > { %10491 = vmatprep.subr.bf16.mxu1 %v11321_v25  ;;  %v2581_v40 = vor.u32 %v2580_v12, %v2577_v50  ;;  %16746 = vst [vmem:[#allocation9_spill] sm:$0xff] %v12121_v45  ;;  %v2602_v21 = vshrl.u32 %v12102_v15, 16  ;;  %v2605_v61 = vshll.u32 %v12102_v15, 16  ;;  %v11325_v12 = vld [vmem:[%s16535_s1 + $0x150] sm:$0xff]  }
  0x81   : > { %v2590_v56 = vor.u32 %v2589_v42, %v2586_v22  ;;  %v2595_v42 = vrot.slane %v2593_v9, 1  ;;  %v2598_v60 = vrot.slane %v2596_v36, 2  ;;  %v2960_v9 = vrot.slane %v12102_v15, 2 }
  0x82   : > { %10440 = vmatpush3.bf16.msra.mxu0 %v11308_v11  ;;  %v12132_v50 = vsel %vm16552_vm2, %v2572_v51, %v2581_v40  ;;  %v12135_v11 = vsel %vm16553_vm3, %v2954_v54, %v2956_v30  ;;  %v2607_v45 = vrot.slane %v2605_v61, 2  ;;  %v2958_v51 = vrot.slane %v12099_v63, 2 }
  0x83   : > { %10441 = vmatprep.subr.bf16.mxu0 %v11311_v5  ;;  %10492 = vmatpush3.bf16.msra.mxu1 %v11321_v25  ;;  %v12142_v22 = vsel %vm16552_vm2, %v2581_v40, %v2590_v56  ;;  %v2604_v25 = vrot.slane %v2602_v21, 1  ;;  %v2599_v54 = vor.u32 %v2598_v60, %v2595_v42  ;;  %v2614_v36 = vshll.u32 %v12129_v4, 16 }
  0x84   : > { %10354 = vmatmul.mubr.bf16.gmra.mxu0 %v11795_v8  ;;  %10493 = vmatprep.subr.bf16.mxu1 %v11324_v44  ;;  %v2611_v8 = vshrl.u32 %v12129_v4, 16  ;;  %v2135_v40 = vrot.slane %v11977_v3, 1  ;;  %v2137_v21 = vrot.slane %v11995_v37, 1  ;;  %v11329_v37 = vld [vmem:[%s16535_s1 + $0x148] sm:$0xff]  }
  0x85   : > { %10406 = vmatmul.mubr.bf16.gmra.mxu1 %v11927_v52  ;;  %10357 = vmatprep.mubr.bf16.mxu0 %v11807_v16  ;;  %v11320_v52 = vld [vmem:[%s16535_s1 + $0x108] sm:$0xff]   ;;  %v2608_v61 = vor.u32 %v2607_v45, %v2604_v25  ;;  %v12157_v16 = vsel %vm16553_vm3, %v2956_v30, %v2958_v51  ;;  %v12160_v42 = vsel %vm16552_vm2, %v2590_v56, %v2599_v54  ;;  %v2616_v60 = vrot.slane %v2614_v36, 2 }
  0x86   : > { %10409 = vmatprep.mubr.bf16.mxu1 %v11932_v20  ;;  %10442 = vmatpush3.bf16.msra.mxu0 %v11311_v5  ;;  %v12163_v20 = vsel %vm16553_vm3, %v2958_v51, %v2960_v9  ;;  %v2613_v3 = vrot.slane %v2611_v8, 1  ;;  %v2962_v30 = vrot.slane %v12129_v4, 2  ;;  %v2138_v51 = vsel %vm16558_vm1, %v2135_v40, %v2137_v21 }
  0x87   : > { %10443 = vmatprep.subr.bf16.mxu0 %v11315_v46  ;;  %10494 = vmatpush3.bf16.msra.mxu1 %v11324_v44  ;;  %v12169_v5 = vsel %vm16552_vm2, %v2599_v54, %v2608_v61  ;;  %v16747_v44 = vrot.slane %v11894_v13, 1  ;;  %v11326_v54 = vld [vmem:[%s16535_s1 + $0x100] sm:$0xff]  }
  0x88   : > { %10495 = vmatprep.subr.bf16.mxu1 %v11325_v12  ;;  %v12172_v45 = vor.u32 %v2616_v60, %v2613_v3  ;;  %v12180_v25 = vsel %vm16553_vm3, %v2960_v9, %v2962_v30  ;;  %v11330_v13 = vld [vmem:[%s16535_s1 + $0x140] sm:$0xff]   ;;  %v11337_v9 = vld [vmem:[%s16535_s1 + $0x1f8] sm:$0xff]   ;;  %v11344_v60 = vld [vmem:[%s16535_s1 + $0x1d0] sm:$0xff]  }
  0x89   : > { %v2136_v56 = vsel %vm16558_vm1, %v16747_v44, %v2135_v40 }
  0x8a   : > { %10444 = vmatpush3.bf16.msra.mxu0 %v11315_v46  ;;  %v12188_v8 = vsel %vm16552_vm2, %v2608_v61, %v12172_v45  ;;  %v2139_v46 = vrot.slane %v11998_v47, 1  ;;  %v2143_v47 = vrot.slane %v12030_v7, 1  ;;  %v11328_v61 = vld [vmem:[%s11595_s10 + $0x98] ss:$0 sps:$4 sm:$0x11]  }
  0x8b   : > { %10445 = vmatprep.subr.bf16.mxu0 %v11320_v52  ;;  %10496 = vmatpush3.bf16.msra.mxu1 %v11325_v12  ;;  %v2141_v12 = vrot.slane %v12022_v23, 1  ;;  %v2145_v23 = vrot.slane %v12064_v2, 1  ;;  %v2153_v2 = vrot.slane %v12129_v4, 1 }
  0x8c   : > { %10358 = vmatmul.mubr.bf16.gmra.mxu0 %v11810_v17  ;;  %10497 = vmatprep.subr.bf16.mxu1 %v11329_v37  ;;  %v11331_v17 = vld [vmem:[%s16535_s1 + $0x1b8] sm:$0xff]   ;;  %v2140_v36 = vsel %vm16558_vm1, %v2137_v21, %v2139_v46 }
  0x8d   : > { %10410 = vmatmul.mubr.bf16.gmra.mxu1 %v2136_v56  ;;  %10361 = vmatprep.mubr.bf16.mxu0 %v11821_v26  ;;  %v2142_v26 = vsel %vm16558_vm1, %v2139_v46, %v2141_v12  ;;  %v2144_v40 = vsel %vm16558_vm1, %v2141_v12, %v2143_v47  ;;  %v2146_v21 = vsel %vm16558_vm1, %v2143_v47, %v2145_v23  ;;  %v16754_v46 = vld [vmem:[#allocation9_spill] sm:$0xff]  ;;  %v3245_v12 = vld [vmem:[%s11595_s10 + $0x10] sm:$0xc] }
  0x8e   : > { %10413 = vmatprep.mubr.bf16.mxu1 %v2138_v51  ;;  %10446 = vmatpush3.bf16.msra.mxu0 %v11320_v52  ;;  %v11341_v51 = vld [vmem:[%s16535_s1 + $0x188] sm:$0xff]  }
  0x8f   : > { %10447 = vmatprep.subr.bf16.mxu0 %v11326_v54  ;;  %10498 = vmatpush3.bf16.msra.mxu1 %v11329_v37 }
  0x90   : > { %10499 = vmatprep.subr.bf16.mxu1 %v11330_v13 }
  0x92   : > { %10448 = vmatpush3.bf16.msra.mxu0 %v11326_v54  ;;  %v16751_v54 = vld [vmem:[#allocation5_spill] sm:$0xff] }
  0x93   : > { %10500 = vmatpush3.bf16.msra.mxu1 %v11330_v13  ;;  %10537 = vmatprep.subr.bf16.mxu0 %v11331_v17  ;;  %v16752_v13 = vld [vmem:[#allocation8_spill] sm:$0xff] }
  0x94   : > { %10362 = vmatmul.mubr.bf16.gmra.mxu0 %v11825_v1  ;;  %10589 = vmatprep.subr.bf16.mxu1 %v11337_v9  ;;  %v2147_v1 = vrot.slane %v12067_v41, 1 }
  0x95   : > { %10414 = vmatmul.mubr.bf16.gmra.mxu1 %v2140_v36  ;;  %10365 = vmatprep.mubr.bf16.mxu0 %v11834_v39  ;;  %v2149_v39 = vrot.slane %v12099_v63, 1 }
  0x96   : > { %10417 = vmatprep.mubr.bf16.mxu1 %v2142_v26  ;;  %v2148_v52 = vsel %vm16558_vm1, %v2145_v23, %v2147_v1 }
  0x97   : > { %v2150_v7 = vsel %vm16558_vm1, %v2147_v1, %v2149_v39 }
  0x9c   : > { %10366 = vmatmul.mubr.bf16.gmra.mxu0 %v11840_v43  ;;  %v2151_v43 = vrot.slane %v12102_v15, 1  ;;  %v4179_v15 = vld [vmem:[%s11595_s10 + $0x10] sm:$0x8] }
  0x9d   : > { %10418 = vmatmul.mubr.bf16.gmra.mxu1 %v2144_v40  ;;  %10369 = vmatprep.mubr.bf16.mxu0 %v11852_v49 }
  0x9e   : > { %10421 = vmatprep.mubr.bf16.mxu1 %v2146_v21  ;;  %v2152_v49 = vsel %vm16558_vm1, %v2149_v39, %v2151_v43  ;;  %v2154_v41 = vsel %vm16558_vm1, %v2151_v43, %v2153_v2 }
  0xa4   : > { %10370 = vmatmul.mubr.bf16.gmra.mxu0 %v11865_v55  ;;  %v2155_v55 = vrot.slane %v11328_v61, 1 }
  0xa5   : > { %10422 = vmatmul.mubr.bf16.gmra.mxu1 %v2148_v52  ;;  %10373 = vmatprep.mubr.bf16.mxu0 %v11874_v0  ;;  %v11333_v0 = vld [vmem:[%s16535_s1 + $0x1b0] sm:$0xff]  }
  0xa6   : > { %10425 = vmatprep.mubr.bf16.mxu1 %v2150_v7  ;;  %v2156_v63 = vsel %vm16558_vm1, %v2153_v2, %v2155_v55 }
  0xac   : > { %10374 = vmatmul.mubr.bf16.gmra.mxu0 %v11882_v6  ;;  %v11339_v6 = vld [vmem:[%s16535_s1 + $0x1f0] sm:$0xff]  }
  0xad   : > { %10426 = vmatmul.mubr.bf16.gmra.mxu1 %v2152_v49  ;;  %10377 = vmatprep.mubr.bf16.mxu0 %v11897_v53  ;;  %v11334_v53 = vld [vmem:[%s16535_s1 + $0x1a8] sm:$0xff]  }
  0xae   : > { %10429 = vmatprep.mubr.bf16.mxu1 %v2154_v41 }
  0xb4   : > { %10378 = vmatmul.mubr.bf16.gmra.mxu0 %v11902_v19  ;;  %v11340_v19 = vld [vmem:[%s16535_s1 + $0x1e8] sm:$0xff]  }
  0xb5   : > { %10430 = vmatmul.mubr.bf16.gmra.mxu1 %v2156_v63  ;;  %10449 = vmatprep.mubr.bf16.mxu0 %v11951_v18  ;;  %v11342_v18 = vld [vmem:[%s16535_s1 + $0x1e0] sm:$0xff]  }
  0xb6   : > { %10501 = vmatprep.mubr.bf16.mxu1 %v11957_v35  ;;  %v11336_v35 = vld [vmem:[%s16535_s1 + $0x198] sm:$0xff]  }
  0xbc   : > { %10450 = vmatmul.mubr.bf16.vlgmr.msra.gmra.mxu0 %v11954_v28  ;;  %v12254_v28 = vld [vmem:[%s11595_s10 + $0x14] sm:$0xf] }
  0xbd   : > { %10538 = vmatpush3.bf16.msra.mxu0 %v11331_v17  ;;  %10502 = vmatmul.mubr.bf16.vlgmr.msra.gmra.mxu1 %v11947_v27  ;;  %v11335_v27 = vld [vmem:[%s16535_s1 + $0x1a0] sm:$0xff]   ;;  %v11346_v17 = vld [vmem:[%s11595_s10 + $0x98] ss:$0 sps:$4 sm:$0x33]  }
  0xbe   : > { %10453 = vmatprep.mubr.bf16.mxu0 %v11971_v14  ;;  %10505 = vmatprep.mubr.bf16.mxu1 %v11966_v58  ;;  %v12262_v58 = vld [vmem:[%s11595_s10 + $0x18] sm:$0xff]   ;;  %v2620_v47 = vshrl.u32 %v11346_v17, 16  ;;  %v2623_v23 = vshll.u32 %v11346_v17, 16 }
  0xbf   : > { %10539 = vmatprep.subr.bf16.mxu0 %v11333_v0  ;;  %10590 = vmatpush3.bf16.msra.mxu1 %v11337_v9  ;;  %v11343_v14 = vld [vmem:[%s16535_s1 + $0x1d8] sm:$0xff]   ;;  %v9325_v9 = vcombine.low %v3245_v12, %v12254_v28  ;;  %v3739_v52 = vshrl.u32 %v12262_v58, 16 }
  0xc0   : > { %10591 = vmatprep.subr.bf16.mxu1 %v11339_v6  ;;  %v2625_v2 = vrot.slane %v2623_v23, 2 }
  0xc1   : > { %10540 = vmatpush3.bf16.msra.mxu0 %v11333_v0  ;;  %v3731_v1 = vshrl.u32 %v9325_v9, 16  ;;  %v3734_v39 = vshll.u32 %v9325_v9, 16  ;;  %v3741_v63 = vrot.slane %v3739_v52, 2 }
  0xc2   : > { %10541 = vmatprep.subr.bf16.mxu0 %v11334_v53 }
  0xc3   : > { %10592 = vmatpush3.bf16.msra.mxu1 %v11339_v6  ;;  %v3733_v55 = vrot.slane %v3731_v1, 2  ;;  %v12339_v6 = vld [vmem:[%s11595_s10 + $0x28] sm:$0xff]  }
  0xc4   : > { %10454 = vmatmul.mubr.bf16.gmra.mxu0 %v11980_v38  ;;  %10593 = vmatprep.subr.bf16.mxu1 %v11340_v19  ;;  %v12269_v38 = vld [vmem:[%s11595_s10 + $0x20] sm:$0xff]  }
  0xc5   : > { %10506 = vmatmul.mubr.bf16.gmra.mxu1 %v11974_v24  ;;  %10457 = vmatprep.mubr.bf16.mxu0 %v12001_v32  ;;  %v9393_v24 = vcombine.low %v4179_v15, %v12254_v28  ;;  %v11338_v32 = vld [vmem:[%s16535_s1 + $0x190] sm:$0xff]   ;;  %v16539_v37 = vrot.slane %v12269_v38, 3  ;;  %v2964_v28 = vrot.slane %v11346_v17, 2 }
  0xc6   : > { %10509 = vmatprep.mubr.bf16.mxu1 %v11990_v34  ;;  %10542 = vmatpush3.bf16.msra.mxu0 %v11334_v53  ;;  %v4202_v34 = vrot.slane %v12262_v58, 3 }
  0xc7   : > { %10543 = vmatprep.subr.bf16.mxu0 %v11335_v27  ;;  %10594 = vmatpush3.bf16.msra.mxu1 %v11340_v19  ;;  %v4201_v3 = vrot.slane %v9393_v24, 3  ;;  %v3392_v24 = vrot.slane %v9325_v9, 2  ;;  %v12369_v9 = vld [vmem:[%s11595_s10 + $0x38] sm:$0xff]  }
  0xc8   : > { %10595 = vmatprep.subr.bf16.mxu1 %v11342_v18  ;;  %v12288_v56 = vsel %vm16551_vm4, %v4202_v34, %v16539_v37 }
  0xc9   : > { %v12282_v44 = vsel %vm16551_vm4, %v4201_v3, %v4202_v34  ;;  %v3751_v3 = vshll.u32 %v12269_v38, 16 }
  0xca   : > { %10544 = vmatpush3.bf16.msra.mxu0 %v11335_v27 }
  0xcb   : > { %10545 = vmatprep.subr.bf16.mxu0 %v11336_v35  ;;  %10596 = vmatpush3.bf16.msra.mxu1 %v11342_v18 }
  0xcc   : > { %10458 = vmatmul.mubr.bf16.gmra.mxu0 %v12016_v31  ;;  %10597 = vmatprep.subr.bf16.mxu1 %v11343_v14  ;;  %v11347_v31 = vld [vmem:[%s16535_s1 + $0x1c8] sm:$0xff]  }
  0xcd   : > { %10510 = vmatmul.mubr.bf16.gmra.mxu1 %v12004_v48  ;;  %10461 = vmatprep.mubr.bf16.mxu0 %v12039_v62  ;;  %v11345_v48 = vld [vmem:[%s16535_s1 + $0x180] sm:$0xff]  }
  0xce   : > { %10513 = vmatprep.mubr.bf16.mxu1 %v12033_v33  ;;  %10546 = vmatpush3.bf16.msra.mxu0 %v11336_v35  ;;  %v11348_v62 = vld [vmem:[%s16535_s1 + $0x1c0] sm:$0xff]   ;;  %v12311_v33 = vld [vmem:[%s16535_s1 + $0x238] sm:$0xff]   ;;  %v3393_v35 = vrot.slane %v12262_v58, 2 }
  0xcf   : > { %10547 = vmatprep.subr.bf16.mxu0 %v11338_v32  ;;  %10598 = vmatpush3.bf16.msra.mxu1 %v11343_v14 }
  0xd0   : > { %10599 = vmatprep.subr.bf16.mxu1 %v11344_v60 }
  0xd2   : > { %10548 = vmatpush3.bf16.msra.mxu0 %v11338_v32  ;;  %v3748_v32 = vshrl.u32 %v12269_v38, 16 }
  0xd3   : > { %10549 = vmatprep.subr.bf16.mxu0 %v11341_v51  ;;  %10600 = vmatpush3.bf16.msra.mxu1 %v11344_v60  ;;  %v3760_v60 = vshll.u32 %v12339_v6, 16 }
  0xd4   : > { %10462 = vmatmul.mubr.bf16.gmra.mxu0 %v12048_v29  ;;  %10601 = vmatprep.subr.bf16.mxu1 %v11347_v31  ;;  %v16749_v29 = vld [vmem:[#allocation3_spill] sm:$0xff] }
  0xd5   : > { %10514 = vmatmul.mubr.bf16.gmra.mxu1 %v12042_v59  ;;  %10465 = vmatprep.mubr.bf16.mxu0 %v12070_v10  ;;  %v16748_v59 = vld [vmem:[#allocation4_spill] sm:$0xff]  ;;  %v16750_v10 = vld [vmem:[#allocation6_spill] sm:$0xff]  ;;  %v3762_v17 = vrot.slane %v3760_v60, 3 }
  0xd6   : > { %10517 = vmatprep.mubr.bf16.mxu1 %v12056_v57  ;;  %10550 = vmatpush3.bf16.msra.mxu0 %v11341_v51  ;;  %v16753_v57 = vld [vmem:[#allocation7_spill] sm:$0xff] }
  0xd7   : > { %10551 = vmatprep.subr.bf16.mxu0 %v11345_v48  ;;  %10602 = vmatpush3.bf16.msra.mxu1 %v11347_v31 }
  0xd8   : > { %10603 = vmatprep.subr.bf16.mxu1 %v11348_v62 }
  0xda   : > { %10552 = vmatpush3.bf16.msra.mxu0 %v11345_v48  ;;  %v2965_v48 = vsel %vm16553_vm3, %v2962_v30, %v2964_v28 }
  0xdb   : > { %10604 = vmatpush3.bf16.msra.mxu1 %v11348_v62  ;;  %10641 = vmatprep.subr.bf16.mxu0 %v12311_v33 }
  0xdc   : > { %10466 = vmatmul.mubr.bf16.gmra.mxu0 %v16748_v59 }
  0xdd   : > { %10518 = vmatmul.mubr.bf16.gmra.mxu1 %v16749_v29  ;;  %10469 = vmatprep.mubr.bf16.mxu0 %v16750_v10  ;;  %v3394_v29 = vsel %vm16553_vm3, %v3392_v24, %v3393_v35  ;;  %v3750_v10 = vrot.slane %v3748_v32, 2  ;;  %v12396_v32 = vld [vmem:[%s11595_s10 + $0x48] sm:$0xff]  }
  0xde   : > { %10521 = vmatprep.mubr.bf16.mxu1 %v16751_v54  ;;  %v3753_v54 = vrot.slane %v3751_v3, 3 }
  0xe0   : > { %v3754_v23 = vor.u32 %v3753_v54, %v3750_v10  ;;  %v3793_v10 = vshrl.u32 %v12396_v32, 16  ;;  %v3796_v54 = vshll.u32 %v12396_v32, 16 }
  0xe4   : > { %10470 = vmatmul.mubr.bf16.gmra.mxu0 %v16752_v13  ;;  %v12365_v13 = vld [vmem:[%s11595_s10 + $0x30] sm:$0xff]  }
  0xe5   : > { %10522 = vmatmul.mubr.bf16.gmra.mxu1 %v16753_v57  ;;  %10473 = vmatprep.mubr.bf16.mxu0 %v12132_v50 }
  0xe6   : > { %10525 = vmatprep.mubr.bf16.mxu1 %v16754_v46 }
  0xec   : > { %v10243_v36 = vpop.f32.mrf.mxu0  ;;  %10474 = vmatmul.mubr.bf16.gmra.mxu0 %v12142_v22  ;;  %v3742_v22 = vshll.u32 %v12262_v58, 16 }
  0xed   : > { %v10295_v26 = vpop.f32.mrf.mxu1  ;;  %10526 = vmatmul.mubr.bf16.gmra.mxu1 %v12135_v11  ;;  %10477 = vmatprep.mubr.bf16.mxu0 %v12160_v42  ;;  %v2622_v42 = vrot.slane %v2620_v47, 1 }
  0xee   : > { %v12329_v40 = vadd.f32 %v10295_v26, %v10243_v36  ;;  %v1249_v21 = vpop.f32.mrf.mxu0  ;;  %10529 = vmatprep.mubr.bf16.mxu1 %v12157_v16  ;;  %v3736_v16 = vrot.slane %v3734_v39, 3  ;;  %v3744_v0 = vrot.slane %v3742_v22, 3  ;;  %v3395_v36 = vrot.slane %v12269_v38, 2 }
  0xef   : > { %v1492_v50 = vpop.f32.mrf.mxu1  ;;  %v2626_v18 = vor.u32 %v2625_v2, %v2622_v42  ;;  %v3397_v39 = vrot.slane %v12339_v6, 2  ;;  %v3775_v22 = vshrl.u32 %v12369_v9, 16 }
  0xf0   : > { %v12334_v7 = vadd.f32 %v1492_v50, %v1249_v21  ;;  %v10244_v11 = vpop.f32.mrf.mxu0  ;;  %v3737_v34 = vor.u32 %v3736_v16, %v3733_v55  ;;  %v3766_v21 = vshrl.u32 %v12365_v13, 16  ;;  %v3769_v50 = vshll.u32 %v12365_v13, 16 }
  0xf1   : > { %v10296_v43 = vpop.f32.mrf.mxu1  ;;  %v3777_v24 = vrot.slane %v3775_v22, 2 }
  0xf2   : > { %v12336_v49 = vadd.f32 %v10296_v43, %v10244_v11  ;;  %v1252_v61 = vpop.f32.mrf.mxu0  ;;  %v3778_v11 = vshll.u32 %v12369_v9, 16 }
  0xf3   : > { %v1495_v41 = vpop.f32.mrf.mxu1 }
  0xf4   : > { %v12341_v53 = vadd.f32 %v1495_v41, %v1252_v61  ;;  %v10247_v19 = vpop.f32.mrf.mxu0  ;;  %10478 = vmatmul.mubr.bf16.gmra.mxu0 %v12169_v5  ;;  %v3396_v61 = vsel %vm16553_vm3, %v3393_v35, %v3395_v36  ;;  %v3780_v35 = vrot.slane %v3778_v11, 3  ;;  %v3795_v11 = vrot.slane %v3793_v10, 2 }
  0xf5   : > { %v10299_v27 = vpop.f32.mrf.mxu1  ;;  %10530 = vmatmul.mubr.bf16.gmra.mxu1 %v12163_v20  ;;  %10481 = vmatprep.mubr.bf16.mxu0 %v12188_v8  ;;  %v3745_v20 = vor.u32 %v3744_v0, %v3741_v63  ;;  %v3757_v8 = vshrl.u32 %v12339_v6, 16  ;;  %v3768_v63 = vrot.slane %v3766_v21, 2  ;;  %v3771_v0 = vrot.slane %v3769_v50, 3 }
  0xf6   : > { %v12347_v14 = vadd.f32 %v10299_v27, %v10247_v19  ;;  %v1265_v15 = vpop.f32.mrf.mxu0  ;;  %10533 = vmatprep.mubr.bf16.mxu1 %v12180_v25  ;;  %v2627_v25 = vsel %vm16552_vm2, %v12172_v45, %v2626_v18  ;;  %v12388_v19 = vld [vmem:[%s11595_s10 + $0x40] sm:$0xff]   ;;  %v3398_v18 = vsel %vm16553_vm3, %v3395_v36, %v3397_v39 }
  0xf7   : > { %v1508_v5 = vpop.f32.mrf.mxu1  ;;  %v3746_v46 = vsel %vm16550_vm5, %v3737_v34, %v3745_v20  ;;  %v3759_v12 = vrot.slane %v3757_v8, 2  ;;  %v3755_v16 = vsel %vm16550_vm5, %v3745_v20, %v3754_v23  ;;  %v3399_v20 = vrot.slane %v12365_v13, 2 }
  0xf8   : > { %v12354_v51 = vadd.f32 %v1508_v5, %v1265_v15  ;;  %v10248_v58 = vpop.f32.mrf.mxu0  ;;  %v11355_v15 = vld [vmem:[%s16535_s1 + $0x230] sm:$0xff]   ;;  %v3401_v8 = vrot.slane %v12369_v9, 2 }
  0xf9   : > { %v10300_v31 = vpop.f32.mrf.mxu1  ;;  %v3763_v52 = vor.u32 %v3762_v17, %v3759_v12  ;;  %v3400_v17 = vsel %vm16553_vm3, %v3397_v39, %v3399_v20  ;;  %v11361_v39 = vld [vmem:[%s16535_s1 + $0x220] sm:$0xff]  }
  0xfa   : > { %v12361_v62 = vadd.f32 %v10300_v31, %v10248_v58  ;;  %v1268_v59 = vpop.f32.mrf.mxu0  ;;  %v3772_v31 = vor.u32 %v3771_v0, %v3768_v63 }
  0xfb   : > { %v1511_v57 = vpop.f32.mrf.mxu1  ;;  %v3764_v28 = vsel %vm16550_vm5, %v3754_v23, %v3763_v52 }
  0xfc   : > { %v12371_v45 = vadd.f32 %v1511_v57, %v1268_v59  ;;  %v10251_v4 = vpop.f32.mrf.mxu0  ;;  %10482 = vmatmul.mubr.bf16.gmra.mxu0 %v2627_v25  ;;  %v3784_v25 = vshrl.u32 %v12388_v19, 16  ;;  %v3773_v23 = vsel %vm16550_vm5, %v3763_v52, %v3772_v31  ;;  %v3403_v52 = vrot.slane %v12388_v19, 2 }
  0xfd   : > { %v10303_v30 = vpop.f32.mrf.mxu1  ;;  %10534 = vmatmul.mubr.bf16.gmra.mxu1 %v2965_v48  ;;  %10553 = vmatprep.mubr.bf16.mxu0 %v3394_v29  ;;  %v3787_v48 = vshll.u32 %v12388_v19, 16  ;;  %v3781_v29 = vor.u32 %v3780_v35, %v3777_v24 }
  0xfe   : > { %v12374_v26 = vadd.f32 %v10303_v30, %v10251_v4  ;;  %v1281_v47 = vpop.f32.mrf.mxu0  ;;  %10605 = vmatprep.mubr.bf16.mxu1 %v3746_v46  ;;  %v3402_v4 = vsel %vm16553_vm3, %v3399_v20, %v3401_v8  ;;  %v12417_v30 = vld [vmem:[%s11595_s10 + $0x50] sm:$0xff]   ;;  %v3786_v21 = vrot.slane %v3784_v25, 2  ;;  %v11364_v20 = vld [vmem:[%s16535_s1 + $0x218] sm:$0xff]  }
  0xff   : > { %v1524_v1 = vpop.f32.mrf.mxu1  ;;  %v3789_v50 = vrot.slane %v3787_v48, 3  ;;  %v3782_v22 = vsel %vm16550_vm5, %v3772_v31, %v3781_v29  ;;  %v3802_v63 = vshrl.u32 %v12417_v30, 16  ;;  %v3404_v48 = vsel %vm16553_vm3, %v3401_v8, %v3403_v52  ;;  %v11367_v8 = vld [vmem:[%s16535_s1 + $0x210] sm:$0xff]  }
 0x100   : > { %v12381_v43 = vadd.f32 %v1524_v1, %v1281_v47  ;;  %v10252_v42 = vpop.f32.mrf.mxu0 }
 0x101   : > { %v10304_v2 = vpop.f32.mrf.mxu1 }
 0x102   : > { %v12384_v41 = vadd.f32 %v10304_v2, %v10252_v42  ;;  %v1284_v55 = vpop.f32.mrf.mxu0  ;;  %v3798_v42 = vrot.slane %v3796_v54, 3  ;;  %v12427_v2 = vld [vmem:[%s11595_s10 + $0x58] sm:$0xff]  }
 0x103   : > { %v1527_v27 = vpop.f32.mrf.mxu1 }
 0x104   : > { %v12398_v3 = vadd.f32 %v1527_v27, %v1284_v55  ;;  %v10255_v5 = vpop.f32.mrf.mxu0  ;;  %10554 = vmatmul.mubr.bf16.vlgmr.msra.gmra.mxu0 %v3396_v61  ;;  %v3799_v35 = vor.u32 %v3798_v42, %v3795_v11  ;;  %v3407_v11 = vrot.slane %v12417_v30, 2 }
 0x105   : > { %v10307_v34 = vpop.f32.mrf.mxu1  ;;  %10642 = vmatpush3.bf16.msra.mxu0 %v12311_v33  ;;  %10606 = vmatmul.mubr.bf16.vlgmr.msra.gmra.mxu1 %v3755_v16  ;;  %v11358_v33 = vld [vmem:[%s16535_s1 + $0x228] sm:$0xff]  }
 0x106   : > { %v12403_v60 = vadd.f32 %v10307_v34, %v10255_v5  ;;  %v1297_v58 = vpop.f32.mrf.mxu0  ;;  %10557 = vmatprep.mubr.bf16.mxu0 %v3398_v18  ;;  %10609 = vmatprep.mubr.bf16.mxu1 %v3764_v28  ;;  %v3790_v18 = vor.u32 %v3789_v50, %v3786_v21  ;;  %v3405_v28 = vrot.slane %v12396_v32, 2  ;;  %v3811_v5 = vshrl.u32 %v12427_v2, 16  ;;  %v12454_v50 = vld [vmem:[%s11595_s10 + $0x68] sm:$0xff]  }
 0x107   : > { %v1540_v59 = vpop.f32.mrf.mxu1  ;;  %10643 = vmatprep.subr.bf16.mxu0 %v11355_v15  ;;  %v3814_v34 = vshll.u32 %v12427_v2, 16  ;;  %16756 = vst [vmem:[#allocation3_spill] sm:$0xff] %v12454_v50 }
 0x108   : > { %v12412_v57 = vadd.f32 %v1540_v59, %v1297_v58  ;;  %v10256_v46 = vpop.f32.mrf.mxu0  ;;  %v12446_v59 = vld [vmem:[%s11595_s10 + $0x60] sm:$0xff]  }
 0x109   : > { %v10308_v12 = vpop.f32.mrf.mxu1  ;;  %10644 = vmatpush3.bf16.msra.mxu0 %v11355_v15  ;;  %v3805_v15 = vshll.u32 %v12417_v30, 16  ;;  %16755 = vst [vmem:[#allocation4_spill] sm:$0xff] %v12446_v59  ;;  %v3816_v21 = vrot.slane %v3814_v34, 3  ;;  %v3820_v42 = vshrl.u32 %v12446_v59, 16 }
 0x10a   : > { %v12419_v36 = vadd.f32 %v10308_v12, %v10256_v46  ;;  %v1300_v47 = vpop.f32.mrf.mxu0  ;;  %10645 = vmatprep.subr.bf16.mxu0 %v11358_v33  ;;  %v3791_v46 = vsel %vm16550_vm5, %v3781_v29, %v3790_v18  ;;  %v3406_v12 = vsel %vm16553_vm3, %v3403_v52, %v3405_v28 }
 0x10b   : > { %v1543_v1 = vpop.f32.mrf.mxu1 }
 0x10c   : > { %v12429_v61 = vadd.f32 %v1543_v1, %v1300_v47  ;;  %v10259_v55 = vpop.f32.mrf.mxu0  ;;  %10558 = vmatmul.mubr.bf16.gmra.mxu0 %v3400_v17  ;;  %v3807_v17 = vrot.slane %v3805_v15, 3  ;;  %v3800_v47 = vsel %vm16550_vm5, %v3790_v18, %v3799_v35  ;;  %v3829_v15 = vshrl.u32 %v12454_v50, 16 }
 0x10d   : > { %v10311_v16 = vpop.f32.mrf.mxu1  ;;  %10610 = vmatmul.mubr.bf16.gmra.mxu1 %v3773_v23  ;;  %10561 = vmatprep.mubr.bf16.mxu0 %v3402_v4  ;;  %v3813_v23 = vrot.slane %v3811_v5, 2  ;;  %v11370_v5 = vld [vmem:[%s16535_s1 + $0x208] sm:$0xff]  }
 0x10e   : > { %v12433_v0 = vadd.f32 %v10311_v16, %v10259_v55  ;;  %v1313_v27 = vpop.f32.mrf.mxu0  ;;  %10613 = vmatprep.mubr.bf16.mxu1 %v3782_v22  ;;  %10646 = vmatpush3.bf16.msra.mxu0 %v11358_v33  ;;  %v3804_v33 = vrot.slane %v3802_v63, 2  ;;  %v3409_v63 = vrot.slane %v12427_v2, 2 }
 0x10f   : > { %v1556_v24 = vpop.f32.mrf.mxu1  ;;  %10647 = vmatprep.subr.bf16.mxu0 %v11361_v39  ;;  %v3817_v18 = vor.u32 %v3816_v21, %v3813_v23  ;;  %v3831_v21 = vrot.slane %v3829_v15, 2 }
 0x110   : > { %v12442_v58 = vadd.f32 %v1556_v24, %v1313_v27  ;;  %v10260_v31 = vpop.f32.mrf.mxu0  ;;  %v3808_v52 = vor.u32 %v3807_v17, %v3804_v33  ;;  %v3832_v24 = vshll.u32 %v12454_v50, 16  ;;  %v3410_v17 = vsel %vm16553_vm3, %v3407_v11, %v3409_v63 }
 0x111   : > { %v10312_v25 = vpop.f32.mrf.mxu1 }
 0x112   : > { %v12448_v10 = vadd.f32 %v10312_v25, %v10260_v31  ;;  %v1316_v54 = vpop.f32.mrf.mxu0  ;;  %10648 = vmatpush3.bf16.msra.mxu0 %v11361_v39  ;;  %v3823_v39 = vshll.u32 %v12446_v59, 16  ;;  %v3818_v23 = vsel %vm16550_vm5, %v3808_v52, %v3817_v18 }
 0x113   : > { %v1559_v4 = vpop.f32.mrf.mxu1  ;;  %10649 = vmatprep.subr.bf16.mxu0 %v11364_v20 }
 0x114   : > { %v12459_v1 = vadd.f32 %v1559_v4, %v1316_v54  ;;  %v10263_v22 = vpop.f32.mrf.mxu0  ;;  %10562 = vmatmul.mubr.bf16.gmra.mxu0 %v3404_v48  ;;  %v3408_v48 = vsel %vm16553_vm3, %v3405_v28, %v3407_v11  ;;  %v3825_v33 = vrot.slane %v3823_v39, 3  ;;  %v12480_v4 = vld [vmem:[%s11595_s10 + $0x70] sm:$0xff]   ;;  %v11374_v28 = vld [vmem:[%s16535_s1 + $0x200] sm:$0xff]  }
 0x115   : > { %v10315_v29 = vpop.f32.mrf.mxu1  ;;  %10614 = vmatmul.mubr.bf16.gmra.mxu1 %v3791_v46  ;;  %10565 = vmatprep.mubr.bf16.mxu0 %v3406_v12  ;;  %v3809_v12 = vsel %vm16550_vm5, %v3799_v35, %v3808_v52  ;;  %16757 = vst [vmem:[#allocation6_spill] sm:$0xff] %v12480_v4  ;;  %v3838_v15 = vshrl.u32 %v12480_v4, 16 }
 0x116   : > { %v12464_v55 = vadd.f32 %v10315_v29, %v10263_v22  ;;  %v1329_v16 = vpop.f32.mrf.mxu0  ;;  %10617 = vmatprep.mubr.bf16.mxu1 %v3800_v47  ;;  %10650 = vmatpush3.bf16.msra.mxu0 %v11364_v20  ;;  %v3822_v20 = vrot.slane %v3820_v42, 2  ;;  %v3834_v22 = vrot.slane %v3832_v24, 3  ;;  %v12484_v29 = vld [vmem:[%s11595_s10 + $0x78] sm:$0xff]   ;;  %v3841_v24 = vshll.u32 %v12480_v4, 16 }
 0x117   : > { %v1572_v27 = vpop.f32.mrf.mxu1  ;;  %10651 = vmatprep.subr.bf16.mxu0 %v11367_v8  ;;  %16758 = vst [vmem:[#allocation5_spill] sm:$0xff] %v12484_v29 }
 0x118   : > { %v12472_v34 = vadd.f32 %v1572_v27, %v1329_v16  ;;  %v10264_v31 = vpop.f32.mrf.mxu0  ;;  %v3826_v39 = vor.u32 %v3825_v33, %v3822_v20  ;;  %v3413_v27 = vrot.slane %v12454_v50, 2  ;;  %v12511_v50 = vld [vmem:[%s11595_s10 + $0x88] sm:$0xff]  }
 0x119   : > { %v10316_v25 = vpop.f32.mrf.mxu1  ;;  %16761 = vst [vmem:[#allocation9_spill] sm:$0xff] %v12511_v50 }
 0x11a   : > { %v12475_v54 = vadd.f32 %v10316_v25, %v10264_v31  ;;  %v1332_v46 = vpop.f32.mrf.mxu0  ;;  %10652 = vmatpush3.bf16.msra.mxu0 %v11367_v8  ;;  %v3411_v8 = vrot.slane %v12446_v59, 2  ;;  %v3835_v25 = vor.u32 %v3834_v22, %v3831_v21  ;;  %v3840_v22 = vrot.slane %v3838_v15, 2 }
 0x11b   : > { %v1575_v47 = vpop.f32.mrf.mxu1  ;;  %10653 = vmatprep.subr.bf16.mxu0 %v11370_v5 }
 0x11c   : > { %v12489_v42 = vadd.f32 %v1575_v47, %v1332_v46  ;;  %v10267_v35 = vpop.f32.mrf.mxu0  ;;  %10566 = vmatmul.mubr.bf16.gmra.mxu0 %v3408_v48  ;;  %v3847_v48 = vshrl.u32 %v12484_v29, 16  ;;  %v3850_v46 = vshll.u32 %v12484_v29, 16  ;;  %v3827_v47 = vsel %vm16550_vm5, %v3817_v18, %v3826_v39 }
 0x11d   : > { %v10319_v11 = vpop.f32.mrf.mxu1  ;;  %10618 = vmatmul.mubr.bf16.gmra.mxu1 %v3809_v12  ;;  %10569 = vmatprep.mubr.bf16.mxu0 %v3410_v17  ;;  %v3412_v17 = vsel %vm16553_vm3, %v3409_v63, %v3411_v8  ;;  %v3414_v21 = vsel %vm16553_vm3, %v3411_v8, %v3413_v27 }
 0x11e   : > { %v12492_v16 = vadd.f32 %v10319_v11, %v10267_v35  ;;  %v1345_v52 = vpop.f32.mrf.mxu0  ;;  %10621 = vmatprep.mubr.bf16.mxu1 %v3818_v23  ;;  %10654 = vmatpush3.bf16.msra.mxu0 %v11370_v5  ;;  %v12504_v23 = vld [vmem:[%s11595_s10 + $0x80] sm:$0xff]   ;;  %v3843_v11 = vrot.slane %v3841_v24, 3 }
 0x11f   : > { %v1588_v31 = vpop.f32.mrf.mxu1  ;;  %10655 = vmatprep.subr.bf16.mxu0 %v11374_v28  ;;  %16760 = vst [vmem:[#allocation7_spill] sm:$0xff] %v12504_v23  ;;  %v3856_v8 = vshrl.u32 %v12504_v23, 16 }
 0x120   : > { %v12499_v20 = vadd.f32 %v1588_v31, %v1345_v52  ;;  %v10268_v33 = vpop.f32.mrf.mxu0  ;;  %v3836_v52 = vsel %vm16550_vm5, %v3826_v39, %v3835_v25  ;;  %v3849_v31 = vrot.slane %v3847_v48, 2  ;;  %v3844_v24 = vor.u32 %v3843_v11, %v3840_v22 }
 0x121   : > { %v10320_v12 = vpop.f32.mrf.mxu1 }
 0x122   : > { %16759 = vst [vmem:[#allocation8_spill] sm:$0xff] %v12499_v20  ;;  %v12506_v35 = vadd.f32 %v10320_v12, %v10268_v33  ;;  %v1348_v5 = vpop.f32.mrf.mxu0  ;;  %10656 = vmatpush3.bf16.msra.mxu0 %v11374_v28  ;;  %v3852_v20 = vrot.slane %v3850_v46, 3  ;;  %v3415_v33 = vrot.slane %v12480_v4, 2  ;;  %v3859_v28 = vshll.u32 %v12504_v23, 16 }
 0x123   : > { %v1591_v37 = vpop.f32.mrf.mxu1  ;;  %v3865_v12 = vshrl.u32 %v12511_v50, 16  ;;  %v3845_v11 = vsel %vm16550_vm5, %v3835_v25, %v3844_v24  ;;  %v3419_v25 = vrot.slane %v12504_v23, 2 }
 0x124   : > { %v12513_v63 = vadd.f32 %v1591_v37, %v1348_v5  ;;  %v10271_v18 = vpop.f32.mrf.mxu0  ;;  %10570 = vmatmul.mubr.bf16.gmra.mxu0 %v3412_v17  ;;  %v3417_v37 = vrot.slane %v12484_v29, 2  ;;  %v3853_v46 = vor.u32 %v3852_v20, %v3849_v31  ;;  %v3868_v17 = vshll.u32 %v12511_v50, 16  ;;  %v12531_v31 = vld [vmem:[%s11595_s10 + $0x90] sm:$0xff]  }
 0x125   : > { %v10323_v59 = vpop.f32.mrf.mxu1  ;;  %10622 = vmatmul.mubr.bf16.gmra.mxu1 %v3827_v47  ;;  %10573 = vmatprep.mubr.bf16.mxu0 %v3414_v21  ;;  %v3861_v4 = vrot.slane %v3859_v28, 3 }
 0x126   : > { %16762 = vst [vmem:[#allocation10_spill] sm:$0xff] %v12513_v63  ;;  %v12518_v15 = vadd.f32 %v10323_v59, %v10271_v18  ;;  %v1361_v39 = vpop.f32.mrf.mxu0  ;;  %10625 = vmatprep.mubr.bf16.mxu1 %v3836_v52  ;;  %v3416_v59 = vsel %vm16553_vm3, %v3413_v27, %v3415_v33  ;;  %v3858_v18 = vrot.slane %v3856_v8, 2  ;;  %v3418_v20 = vsel %vm16553_vm3, %v3415_v33, %v3417_v37 }
 0x127   : > { %v1604_v48 = vpop.f32.mrf.mxu1 }
 0x128   : > { %16763 = vst [vmem:[#allocation11_spill] sm:$0xff] %v12518_v15  ;;  %v12523_v47 = vadd.f32 %v1604_v48, %v1361_v39  ;;  %v10272_v5 = vpop.f32.mrf.mxu0  ;;  %v3854_v15 = vsel %vm16550_vm5, %v3844_v24, %v3853_v46  ;;  %v3867_v39 = vrot.slane %v3865_v12, 2  ;;  %v3870_v48 = vrot.slane %v3868_v17, 3 }
 0x129   : > { %v10324_v21 = vpop.f32.mrf.mxu1  ;;  %v3862_v28 = vor.u32 %v3861_v4, %v3858_v18  ;;  %v3421_v24 = vrot.slane %v12511_v50, 2  ;;  %v3874_v12 = vshrl.u32 %v12531_v31, 16 }
 0x12a   : > { %16764 = vst [vmem:[#allocation12_spill] sm:$0xff] %v12523_v47  ;;  %v12526_v52 = vadd.f32 %v10324_v21, %v10272_v5  ;;  %v1364_v22 = vpop.f32.mrf.mxu0  ;;  %v12535_v47 = vld [vmem:[%s11595_s10 + $0x98] sm:$0xff]   ;;  %v3871_v21 = vor.u32 %v3870_v48, %v3867_v39  ;;  %v12557_v48 = vld [vmem:[%s11595_s10 + $0xa0] ss:$0 sps:$4 sm:$0x77]  }
 0x12b   : > { %v1607_v29 = vpop.f32.mrf.mxu1  ;;  %16765 = vst [vmem:[#allocation13_spill] sm:$0xff] %v12535_v47  ;;  %v3422_v50 = vsel %vm16553_vm3, %v3419_v25, %v3421_v24  ;;  %v3876_v23 = vrot.slane %v3874_v12, 2  ;;  %16770 = vst [vmem:[#allocation18_spill] sm:$0xff] %v12557_v48 }
 0x12c   : > { %v12537_v63 = vadd.f32 %v1607_v29, %v1364_v22  ;;  %v10275_v27 = vpop.f32.mrf.mxu0  ;;  %10574 = vmatmul.mubr.bf16.gmra.mxu0 %v3416_v59  ;;  %v3877_v29 = vshll.u32 %v12531_v31, 16  ;;  %v3883_v59 = vshrl.u32 %v12535_v47, 16  ;;  %v3886_v22 = vshll.u32 %v12535_v47, 16 }
 0x12d   : > { %v10327_v8 = vpop.f32.mrf.mxu1  ;;  %10626 = vmatmul.mubr.bf16.gmra.mxu1 %v3845_v11  ;;  %10577 = vmatprep.mubr.bf16.mxu0 %v3418_v20  ;;  %v3420_v20 = vsel %vm16553_vm3, %v3417_v37, %v3419_v25 }
 0x12e   : > { %16766 = vst [vmem:[#allocation14_spill] sm:$0xff] %v12537_v63  ;;  %v12540_v33 = vadd.f32 %v10327_v8, %v10275_v27  ;;  %v1377_v5 = vpop.f32.mrf.mxu0  ;;  %10629 = vmatprep.mubr.bf16.mxu1 %v3854_v15  ;;  %v3863_v15 = vsel %vm16550_vm5, %v3853_v46, %v3862_v28  ;;  %v3879_v39 = vrot.slane %v3877_v29, 3  ;;  %v3425_v29 = vrot.slane %v12535_v47, 2 }
 0x12f   : > { %v1620_v17 = vpop.f32.mrf.mxu1 }
 0x130   : > { %16767 = vst [vmem:[#allocation15_spill] sm:$0xff] %v12540_v33  ;;  %v12547_v11 = vadd.f32 %v1620_v17, %v1377_v5  ;;  %v10276_v4 = vpop.f32.mrf.mxu0  ;;  %v3872_v5 = vsel %vm16550_vm5, %v3862_v28, %v3871_v21  ;;  %v3885_v17 = vrot.slane %v3883_v59, 2  ;;  %v3880_v12 = vor.u32 %v3879_v39, %v3876_v23  ;;  %v11375_v39 = vld [vmem:[%s11595_s10 + $0xa0] ss:$0 sps:$4 sm:$0x33]  }
 0x131   : > { %v10328_v18 = vpop.f32.mrf.mxu1  ;;  %v3895_v28 = vshll.u32 %v12557_v48, 16 }
 0x132   : > { %16768 = vst [vmem:[#allocation16_spill] sm:$0xff] %v12547_v11  ;;  %v12551_v27 = vadd.f32 %v10328_v18, %v10276_v4  ;;  %v12553_v8 = vpop.f32.mrf.mxu0  ;;  %v3888_v11 = vrot.slane %v3886_v22, 3  ;;  %v3423_v4 = vrot.slane %v12531_v31, 2  ;;  %v3892_v18 = vshrl.u32 %v12557_v48, 16 }
 0x133   : > { %16769 = vst [vmem:[#allocation17_spill] sm:$0xff] %v12553_v8  ;;  %v12559_v33 = vpop.f32.mrf.mxu1  ;;  %v3881_v8 = vsel %vm16550_vm5, %v3871_v21, %v3880_v12  ;;  %v3427_v21 = vrot.slane %v11375_v39, 2 }
 0x134   : > { %16771 = vst [vmem:[#allocation19_spill] sm:$0xff] %v12559_v33  ;;  %v10347_v63 = vpop.f32.mrf.mxu0  ;;  %10578 = vmatmul.mubr.bf16.gmra.mxu0 %v3420_v20  ;;  %v3424_v23 = vsel %vm16553_vm3, %v3421_v24, %v3423_v4  ;;  %v3426_v48 = vsel %vm16553_vm3, %v3423_v4, %v3425_v29  ;;  %v3894_v47 = vrot.slane %v3892_v18, 2 }
 0x135   : > { %v1939_v37 = vadd.f32 %v10347_v63, %v12329_v40  ;;  %v10399_v46 = vpop.f32.mrf.mxu1  ;;  %10630 = vmatmul.mubr.bf16.gmra.mxu1 %v3863_v15  ;;  %10581 = vmatprep.mubr.bf16.mxu0 %v3422_v50  ;;  %v3889_v63 = vor.u32 %v3888_v11, %v3885_v17 }
 0x136   : > { %v1794_v25 = vpop.f32.mrf.mxu0  ;;  %10633 = vmatprep.mubr.bf16.mxu1 %v3872_v5 }
 0x137   : > { %v1937_v59 = vadd.f32 %v1794_v25, %v12334_v7  ;;  %v12568_v22 = vadd.f32 %v10399_v46, %v1939_v37  ;;  %v2257_v40 = vpop.f32.mrf.mxu1  ;;  %v3897_v7 = vrot.slane %v3895_v28, 3 }
 0x138   : > { %v10348_v20 = vpop.f32.mrf.mxu0 }
 0x139   : > { %v1940_v50 = vadd.f32 %v10348_v20, %v12336_v49  ;;  %v12571_v15 = vadd.f32 %v2257_v40, %v1937_v59  ;;  %v10400_v33 = vpop.f32.mrf.mxu1  ;;  %v3890_v49 = vsel %vm16550_vm5, %v3880_v12, %v3889_v63  ;;  %v3898_v18 = vor.u32 %v3897_v7, %v3894_v47 }
 0x13a   : > { %v1797_v5 = vpop.f32.mrf.mxu0 }
 0x13b   : > { %v12578_v37 = vadd.f32 %v1797_v5, %v12341_v53  ;;  %v12580_v11 = vadd.f32 %v10400_v33, %v1940_v50  ;;  %v12582_v17 = vpop.f32.mrf.mxu1 }
 0x13c   : > { %v10351_v46 = vpop.f32.mrf.mxu0  ;;  %10582 = vmatmul.mubr.bf16.gmra.mxu0 %v3424_v23 }
 0x13d   : > { %v1943_v24 = vadd.f32 %v10351_v46, %v12347_v14  ;;  %v10403_v25 = vpop.f32.mrf.mxu1  ;;  %10634 = vmatmul.mubr.bf16.gmra.mxu1 %v3881_v8  ;;  %10585 = vmatprep.mubr.bf16.mxu0 %v3426_v48  ;;  %v3428_v14 = vsel %vm16553_vm3, %v3425_v29, %v3427_v21  ;;  %v3899_v8 = vsel %vm16550_vm5, %v3889_v63, %v3898_v18  ;;  %v4206_v29 = vrot.slane %v12339_v6, 3 }
 0x13e   : > { %v1810_v4 = vpop.f32.mrf.mxu0  ;;  %10637 = vmatprep.mubr.bf16.mxu1 %v3890_v49 }
 0x13f   : > { %v1941_v53 = vadd.f32 %v1810_v4, %v12354_v51  ;;  %v12587_v28 = vadd.f32 %v10403_v25, %v1943_v24  ;;  %v2273_v33 = vpop.f32.mrf.mxu1 }
 0x140   : > { %v10352_v59 = vpop.f32.mrf.mxu0 }
 0x141   : > { %v1944_v40 = vadd.f32 %v10352_v59, %v12361_v62  ;;  %v12590_v12 = vadd.f32 %v2273_v33, %v1941_v53  ;;  %v10404_v20 = vpop.f32.mrf.mxu1  ;;  %v4208_v33 = vrot.slane %v12365_v13, 3 }
 0x142   : > { %v1813_v50 = vpop.f32.mrf.mxu0 }
 0x143   : > { %v12595_v48 = vadd.f32 %v1813_v50, %v12371_v45  ;;  %v12597_v47 = vadd.f32 %v10404_v20, %v1944_v40  ;;  %v12599_v51 = vpop.f32.mrf.mxu1 }
 0x144   : > { %v10355_v23 = vpop.f32.mrf.mxu0  ;;  %10586 = vmatmul.mubr.bf16.gmra.mxu0 %v3428_v14 }
 0x145   : > { %v1947_v39 = vadd.f32 %v10355_v23, %v12374_v26  ;;  %v10407_v62 = vpop.f32.mrf.mxu1  ;;  %10638 = vmatmul.mubr.bf16.gmra.mxu1 %v3899_v8  ;;  %10657 = vmatprep.mubr.bf16.mxu0 %v12282_v44  ;;  %v16772_v26 = vrot.slane %v12269_v38, 3  ;;  %v4210_v38 = vrot.slane %v12369_v9, 3 }
 0x146   : > { %v1826_v5 = vpop.f32.mrf.mxu0 }
 0x147   : > { %v1945_v63 = vadd.f32 %v1826_v5, %v12381_v43  ;;  %v12605_v7 = vadd.f32 %v10407_v62, %v1947_v39  ;;  %v2289_v45 = vpop.f32.mrf.mxu1  ;;  %v4207_v4 = vsel %vm16551_vm4, %v16772_v26, %v4206_v29  ;;  %v4211_v39 = vsel %vm16551_vm4, %v4208_v33, %v4210_v38 }
 0x148   : > { %v10356_v49 = vpop.f32.mrf.mxu0 }
 0x149   : > { %v1948_v46 = vadd.f32 %v10356_v49, %v12384_v41  ;;  %v12608_v24 = vadd.f32 %v2289_v45, %v1945_v63  ;;  %v10408_v25 = vpop.f32.mrf.mxu1  ;;  %v4212_v63 = vrot.slane %v12388_v19, 3 }
 0x14a   : > { %v1829_v21 = vpop.f32.mrf.mxu0 }
 0x14b   : > { %v12614_v44 = vadd.f32 %v1829_v21, %v12398_v3  ;;  %v12616_v6 = vadd.f32 %v10408_v25, %v1948_v46  ;;  %v12618_v43 = vpop.f32.mrf.mxu1 }
 0x14c   : > { %v10359_v18 = vpop.f32.mrf.mxu0  ;;  %10658 = vmatmul.mubr.bf16.vlgmr.msra.gmra.mxu0 %v12288_v56 }
 0x14d   : > { %v1951_v41 = vadd.f32 %v10359_v18, %v12403_v60  ;;  %v10411_v53 = vpop.f32.mrf.mxu1  ;;  %10661 = vmatprep.mubr.bf16.mxu0 %v4207_v4  ;;  %v4209_v60 = vsel %vm16551_vm4, %v4206_v29, %v4208_v33  ;;  %v4214_v29 = vrot.slane %v12396_v32, 3 }
 0x14e   : > { %v1842_v59 = vpop.f32.mrf.mxu0 }
 0x14f   : > { %v1949_v40 = vadd.f32 %v1842_v59, %v12412_v57  ;;  %v12625_v3 = vadd.f32 %v10411_v53, %v1951_v41  ;;  %v2305_v20 = vpop.f32.mrf.mxu1  ;;  %v4215_v41 = vsel %vm16551_vm4, %v4212_v63, %v4214_v29  ;;  %v4216_v59 = vrot.slane %v12417_v30, 3 }
 0x150   : > { %v10360_v14 = vpop.f32.mrf.mxu0 }
 0x151   : > { %v1952_v50 = vadd.f32 %v10360_v14, %v12419_v36  ;;  %v12628_v8 = vadd.f32 %v2305_v20, %v1949_v40  ;;  %v10412_v56 = vpop.f32.mrf.mxu1 }
 0x152   : > { %v1845_v23 = vpop.f32.mrf.mxu0 }
 0x153   : > { %v12633_v13 = vadd.f32 %v1845_v23, %v12429_v61  ;;  %v12635_v9 = vadd.f32 %v10412_v56, %v1952_v50  ;;  %v12637_v57 = vpop.f32.mrf.mxu1 }
 0x154   : > { %v10363_v62 = vpop.f32.mrf.mxu0  ;;  %10662 = vmatmul.mubr.bf16.gmra.mxu0 %v4209_v60 }
 0x155   : > { %v1955_v5 = vadd.f32 %v10363_v62, %v12433_v0  ;;  %v10415_v36 = vpop.f32.mrf.mxu1  ;;  %10665 = vmatprep.mubr.bf16.mxu0 %v4211_v39  ;;  %v4213_v0 = vsel %vm16551_vm4, %v4210_v38, %v4212_v63  ;;  %v4218_v38 = vrot.slane %v12427_v2, 3  ;;  %v16773_v63 = vld [vmem:[#allocation4_spill] sm:$0xff] }
 0x156   : > { %v1858_v45 = vpop.f32.mrf.mxu0 }
 0x157   : > { %v1953_v49 = vadd.f32 %v1858_v45, %v12442_v58  ;;  %v12643_v46 = vadd.f32 %v10415_v36, %v1955_v5  ;;  %v2321_v61 = vpop.f32.mrf.mxu1  ;;  %v4219_v62 = vsel %vm16551_vm4, %v4216_v59, %v4218_v38  ;;  %v4220_v45 = vrot.slane %v16773_v63, 3 }
 0x158   : > { %v10364_v25 = vpop.f32.mrf.mxu0 }
 0x159   : > { %v1956_v21 = vadd.f32 %v10364_v25, %v12448_v10  ;;  %v12646_v26 = vadd.f32 %v2321_v61, %v1953_v49  ;;  %v10416_v4 = vpop.f32.mrf.mxu1  ;;  %v16775_v25 = vld [vmem:[#allocation8_spill] sm:$0xff] }
 0x15a   : > { %v1861_v18 = vpop.f32.mrf.mxu0 }
 0x15b   : > { %v12651_v19 = vadd.f32 %v1861_v18, %v12459_v1  ;;  %v12653_v32 = vadd.f32 %v10416_v4, %v1956_v21  ;;  %v12655_v58 = vpop.f32.mrf.mxu1 }
 0x15c   : > { %v10367_v53 = vpop.f32.mrf.mxu0  ;;  %10666 = vmatmul.mubr.bf16.gmra.mxu0 %v4213_v0 }
 0x15d   : > { %v1959_v33 = vadd.f32 %v10367_v53, %v12464_v55  ;;  %v10419_v10 = vpop.f32.mrf.mxu1  ;;  %10669 = vmatprep.mubr.bf16.mxu0 %v4215_v41  ;;  %v4217_v55 = vsel %vm16551_vm4, %v4214_v29, %v4216_v59  ;;  %v16774_v29 = vld [vmem:[#allocation3_spill] sm:$0xff]  ;;  %v16776_v59 = vld [vmem:[#allocation10_spill] sm:$0xff] }
 0x15e   : > { %v1874_v40 = vpop.f32.mrf.mxu0  ;;  %v4222_v61 = vrot.slane %v16774_v29, 3 }
 0x15f   : > { %v1957_v20 = vadd.f32 %v1874_v40, %v12472_v34  ;;  %v12661_v14 = vadd.f32 %v10419_v10, %v1959_v33  ;;  %v2337_v1 = vpop.f32.mrf.mxu1 }
 0x160   : > { %v10368_v50 = vpop.f32.mrf.mxu0  ;;  %v4223_v10 = vsel %vm16551_vm4, %v4220_v45, %v4222_v61 }
 0x161   : > { %v1960_v56 = vadd.f32 %v10368_v50, %v12475_v54  ;;  %v12664_v60 = vadd.f32 %v2337_v1, %v1957_v20  ;;  %v10420_v23 = vpop.f32.mrf.mxu1 }
 0x162   : > { %v1877_v39 = vpop.f32.mrf.mxu0 }
 0x163   : > { %v12669_v30 = vadd.f32 %v1877_v39, %v12489_v42  ;;  %v12671_v2 = vadd.f32 %v10420_v23, %v1960_v56  ;;  %v12673_v34 = vpop.f32.mrf.mxu1  ;;  %v16777_v56 = vld [vmem:[#allocation11_spill] sm:$0xff] }
 0x164   : > { %v10371_v5 = vpop.f32.mrf.mxu0  ;;  %10670 = vmatmul.mubr.bf16.gmra.mxu0 %v4217_v55  ;;  %v16778_v55 = vld [vmem:[#allocation6_spill] sm:$0xff] }
 0x165   : > { %v1963_v36 = vadd.f32 %v10371_v5, %v12492_v16  ;;  %v10423_v54 = vpop.f32.mrf.mxu1  ;;  %10673 = vmatprep.mubr.bf16.mxu0 %v4219_v62  ;;  %v4221_v16 = vsel %vm16551_vm4, %v4218_v38, %v4220_v45  ;;  %v4224_v39 = vrot.slane %v16778_v55, 3  ;;  %v11378_v38 = vld [vmem:[%s16535_s1 + $0x2b8] sm:$0xff]  }
 0x166   : > { %v1890_v49 = vpop.f32.mrf.mxu0  ;;  %v16779_v5 = vld [vmem:[#allocation5_spill] sm:$0xff]  ;;  %10693 = vmatprep.subr.bf16.mxu1 %v11378_v38 }
 0x167   : > { %v1961_v21 = vadd.f32 %v1890_v49, %v16775_v25  ;;  %v12679_v4 = vadd.f32 %v10423_v54, %v1963_v36  ;;  %v2353_v42 = vpop.f32.mrf.mxu1  ;;  %v4226_v36 = vrot.slane %v16779_v5, 3  ;;  %v16780_v54 = vld [vmem:[#allocation12_spill] sm:$0xff]  ;;  %10694 = vmatpush3.bf16.msra.mxu1 %v11378_v38  ;;  %v16784_v38 = vld [vmem:[#allocation9_spill] sm:$0xff] }
 0x168   : > { %v10372_v0 = vpop.f32.mrf.mxu0  ;;  %v16785_v5 = vld [vmem:[#allocation16_spill] sm:$0xff] }
 0x169   : > { %v1964_v18 = vadd.f32 %v10372_v0, %v12506_v35  ;;  %v12682_v41 = vadd.f32 %v2353_v42, %v1961_v21  ;;  %v10424_v53 = vpop.f32.mrf.mxu1  ;;  %v4225_v0 = vsel %vm16551_vm4, %v4222_v61, %v4224_v39  ;;  %v11379_v61 = vld [vmem:[%s16535_s1 + $0x2b0] sm:$0xff]  }
 0x16a   : > { %v1893_v33 = vpop.f32.mrf.mxu0  ;;  %10695 = vmatprep.subr.bf16.mxu1 %v11379_v61 }
 0x16b   : > { %v12687_v40 = vadd.f32 %v1893_v33, %v16776_v59  ;;  %v12689_v20 = vadd.f32 %v10424_v53, %v1964_v18  ;;  %v12691_v1 = vpop.f32.mrf.mxu1  ;;  %v4227_v53 = vsel %vm16551_vm4, %v4224_v39, %v4226_v36  ;;  %10696 = vmatpush3.bf16.msra.mxu1 %v11379_v61 }
 0x16c   : > { %v10375_v50 = vpop.f32.mrf.mxu0  ;;  %10674 = vmatmul.mubr.bf16.gmra.mxu0 %v4221_v16  ;;  %v16781_v16 = vld [vmem:[#allocation14_spill] sm:$0xff] }
 0x16d   : > { %v1967_v23 = vadd.f32 %v10375_v50, %v16777_v56  ;;  %v10427_v35 = vpop.f32.mrf.mxu1  ;;  %10677 = vmatprep.mubr.bf16.mxu0 %v4223_v10  ;;  %v16782_v56 = vld [vmem:[#allocation15_spill] sm:$0xff] }
 0x16e   : > { %v1906_v62 = vpop.f32.mrf.mxu0 }
 0x16f   : > { %v1965_v63 = vadd.f32 %v1906_v62, %v16780_v54  ;;  %v12700_v45 = vadd.f32 %v10427_v35, %v1967_v23  ;;  %v2369_v49 = vpop.f32.mrf.mxu1  ;;  %v16783_v35 = vld [vmem:[#allocation7_spill] sm:$0xff]  ;;  %v4230_v62 = vrot.slane %v16784_v38, 3 }
 0x170   : > { %v10376_v29 = vpop.f32.mrf.mxu0  ;;  %v4228_v55 = vrot.slane %v16783_v35, 3 }
 0x171   : > { %v1968_v25 = vadd.f32 %v10376_v29, %v12526_v52  ;;  %v12703_v21 = vadd.f32 %v2369_v49, %v1965_v63  ;;  %v10428_v42 = vpop.f32.mrf.mxu1 }
 0x172   : > { %v1909_v18 = vpop.f32.mrf.mxu0 }
 0x173   : > { %v12708_v33 = vadd.f32 %v1909_v18, %v16781_v16  ;;  %v12710_v10 = vadd.f32 %v10428_v42, %v1968_v25  ;;  %v12712_v59 = vpop.f32.mrf.mxu1  ;;  %v4229_v18 = vsel %vm16551_vm4, %v4226_v36, %v4228_v55  ;;  %v4231_v16 = vsel %vm16551_vm4, %v4228_v55, %v4230_v62 }
 0x174   : > { %v10379_v50 = vpop.f32.mrf.mxu0  ;;  %10678 = vmatmul.mubr.bf16.gmra.mxu0 %v4225_v0 }
 0x175   : > { %v1971_v23 = vadd.f32 %v10379_v50, %v16782_v56  ;;  %v10431_v52 = vpop.f32.mrf.mxu1  ;;  %10681 = vmatprep.mubr.bf16.mxu0 %v4227_v53 }
 0x176   : > { %v1922_v39 = vpop.f32.mrf.mxu0 }
 0x177   : > { %v1969_v54 = vadd.f32 %v1922_v39, %v16785_v5  ;;  %v12721_v63 = vadd.f32 %v10431_v52, %v1971_v23  ;;  %v2385_v49 = vpop.f32.mrf.mxu1  ;;  %v16786_v39 = vld [vmem:[#allocation13_spill] sm:$0xff] }
 0x178   : > { %v10380_v29 = vpop.f32.mrf.mxu0  ;;  %v4234_v38 = vrot.slane %v16786_v39, 3 }
 0x179   : > { %v1972_v25 = vadd.f32 %v10380_v29, %v12551_v27  ;;  %v12724_v42 = vadd.f32 %v2385_v49, %v1969_v54  ;;  %v10432_v0 = vpop.f32.mrf.mxu1  ;;  %v4232_v27 = vrot.slane %v12531_v31, 3  ;;  %v11380_v54 = vld [vmem:[%s16535_s1 + $0x2a8] sm:$0xff]  }
 0x17a   : > { %v12727_v53 = vpop.f32.mrf.mxu0  ;;  %10697 = vmatprep.subr.bf16.mxu1 %v11380_v54 }
 0x17b   : > { %v12730_v50 = vadd.f32 %v10432_v0, %v1972_v25  ;;  %v12732_v56 = vpop.f32.mrf.mxu1  ;;  %v4233_v31 = vsel %vm16551_vm4, %v4230_v62, %v4232_v27  ;;  %10698 = vmatpush3.bf16.msra.mxu1 %v11380_v54  ;;  %v11381_v54 = vld [vmem:[%s16535_s1 + $0x2a0] sm:$0xff]  }
 0x17c   : > { %v10451_v23 = vpop.f32.mrf.mxu0  ;;  %10682 = vmatmul.mubr.bf16.gmra.mxu0 %v4229_v18  ;;  %10699 = vmatprep.subr.bf16.mxu1 %v11381_v54 }
 0x17d   : > { %v2873_v52 = vadd.f32 %v10451_v23, %v12568_v22  ;;  %v10503_v35 = vpop.f32.mrf.mxu1  ;;  %10685 = vmatprep.mubr.bf16.mxu0 %v4231_v16 }
 0x17e   : > { %v2728_v61 = vpop.f32.mrf.mxu0 }
 0x17f   : > { %v2871_v36 = vadd.f32 %v2728_v61, %v12571_v15  ;;  %v12738_v5 = vadd.f32 %v10503_v35, %v2873_v52  ;;  %v3066_v55 = vpop.f32.mrf.mxu1  ;;  %v4235_v15 = vsel %vm16551_vm4, %v4232_v27, %v4234_v38  ;;  %v172_v52 = vlaneseq  ;;  %v16789_v61 = vld [vmem:[#allocation18_spill] sm:$0xff]  ;;  %10700 = vmatpush3.bf16.msra.mxu1 %v11381_v54  ;;  %v11384_v54 = vld [vmem:[%s16535_s1 + $0x270] sm:$0xff]  }
 0x180   : > { %v10452_v49 = vpop.f32.mrf.mxu0  ;;  %v4236_v39 = vrot.slane %v16789_v61, 3 }
 0x181   : > { %v2874_v29 = vadd.f32 %v10452_v49, %v12580_v11  ;;  %v12744_v22 = vadd.f32 %v3066_v55, %v2871_v36  ;;  %v10504_v25 = vpop.f32.mrf.mxu1 }
 0x182   : > { %v12747_v0 = vpop.f32.mrf.mxu0 }
 0x183   : > { %16787 = vst [vmem:[#allocation4_spill] sm:$0xff] %v12744_v22  ;;  %v12750_v18 = vadd.f32 %v10504_v25, %v2874_v29  ;;  %v12752_v16 = vpop.f32.mrf.mxu1  ;;  %v12762_v29 = vshrl.u32 %v172_v52, 7  ;;  %v11382_v52 = vld [vmem:[%s16535_s1 + $0x278] sm:$0xff]  }
 0x184   : > { %v10455_v23 = vpop.f32.mrf.mxu0  ;;  %10686 = vmatmul.mubr.bf16.gmra.mxu0 %v4233_v31  ;;  %10745 = vmatprep.subr.bf16.mxu0 %v11382_v52 }
 0x185   : > { %16788 = vst [vmem:[#allocation3_spill] sm:$0xff] %v12750_v18  ;;  %v2877_v11 = vadd.f32 %v10455_v23, %v12587_v28  ;;  %v10507_v35 = vpop.f32.mrf.mxu1  ;;  %10689 = vmatprep.mubr.bf16.mxu0 %v4235_v15  ;;  %v4237_v15 = vsel %vm16551_vm4, %v4234_v38, %v4236_v39  ;;  %10746 = vmatpush3.bf16.msra.mxu0 %v11382_v52 }
 0x186   : > { %v2744_v62 = vpop.f32.mrf.mxu0  ;;  %10747 = vmatprep.subr.bf16.mxu0 %v11384_v54 }
 0x187   : > { %v2875_v36 = vadd.f32 %v2744_v62, %v12590_v12  ;;  %v12757_v55 = vadd.f32 %v10507_v35, %v2877_v11  ;;  %v3082_v27 = vpop.f32.mrf.mxu1 }
 0x188   : > { %v10456_v49 = vpop.f32.mrf.mxu0 }
 0x189   : > { %16790 = vst [vmem:[#allocation8_spill] sm:$0xff] %v12757_v55  ;;  %v2878_v25 = vadd.f32 %v10456_v49, %v12597_v47  ;;  %v12765_v28 = vadd.f32 %v3082_v27, %v2875_v36  ;;  %v10508_v31 = vpop.f32.mrf.mxu1  ;;  %v12778_v47 = vadd.s32 16, %v12762_v29  ;;  %10748 = vmatpush3.bf16.msra.mxu0 %v11384_v54  ;;  %v16796_v54 = vmov 0 }
 0x18a   : > { %v12768_v23 = vpop.f32.mrf.mxu0  ;;  %v16797_v54 = vsel %vm12812_vm8, 4294967295, %v16796_v54 }
 0x18b   : > { %16791 = vst [vmem:[#allocation10_spill] sm:$0xff] %v12765_v28  ;;  %v12770_v12 = vadd.f32 %v10508_v31, %v2878_v25  ;;  %v12772_v11 = vpop.f32.mrf.mxu1  ;;  %v12788_v25 = vmul.u32.u64.low 3817748708, %v12778_v47  ;;  %v12789_v31 = vmul.u32.u64.high 3817748708, %v12778_v47, %v12788_v25  ;;  %16798 = vst [vmem:[#allocation14_spill] sm:$0xff] %v16797_v54 }
 0x18c   : > { %v10459_v35 = vpop.f32.mrf.mxu0  ;;  %10690 = vmatmul.mubr.bf16.gmra.mxu0 %v4237_v15  ;;  %v11385_v25 = vld [vmem:[%s16535_s1 + $0x268] sm:$0xff]  }
 0x18d   : > { %16792 = vst [vmem:[#allocation11_spill] sm:$0xff] %v12770_v12  ;;  %v2881_v61 = vadd.f32 %v10459_v35, %v12605_v7  ;;  %v10511_v38 = vpop.f32.mrf.mxu1  ;;  %10749 = vmatprep.subr.bf16.mxu0 %v11385_v25  ;;  %v237_v12 = vshrl.u32 %v12789_v31, 4  ;;  %v16801_v31 = vld [vmem:[#allocation17_spill] sm:$0xff] }
 0x18e   : > { %v2760_v39 = vpop.f32.mrf.mxu0  ;;  %10750 = vmatpush3.bf16.msra.mxu0 %v11385_v25 }
 0x18f   : > { %v2879_v62 = vadd.f32 %v2760_v39, %v12608_v24  ;;  %v12782_v36 = vadd.f32 %v10511_v38, %v2881_v61  ;;  %v3098_v27 = vpop.f32.mrf.mxu1  ;;  %v12797_v24 = vmul.u32.u64.low 3817748708, %v12762_v29  ;;  %v12798_v61 = vmul.u32.u64.high 3817748708, %v12762_v29, %v12797_v24 }
 0x190   : > { %v10460_v49 = vpop.f32.mrf.mxu0 }
 0x191   : > { %16793 = vst [vmem:[#allocation6_spill] sm:$0xff] %v12782_v36  ;;  %v2882_v7 = vadd.f32 %v10460_v49, %v12616_v6  ;;  %v12792_v15 = vadd.f32 %v3098_v27, %v2879_v62  ;;  %v10512_v35 = vpop.f32.mrf.mxu1  ;;  %v12808_v62 = vadd.s32 24, %v12762_v29 }
 0x192   : > { %v12794_v52 = vpop.f32.mrf.mxu0 }
 0x193   : > { %16794 = vst [vmem:[#allocation5_spill] sm:$0xff] %v12792_v15  ;;  %v12800_v38 = vadd.f32 %v10512_v35, %v2882_v7  ;;  %v12802_v39 = vpop.f32.mrf.mxu1  ;;  %v826_v7 = vld [vmem:[#allocation2 + $0x8] sm:$0x3]  ;;  %v12826_v28 = vmul.u32.u64.low 3817748708, %v12808_v62  ;;  %v12827_v55 = vmul.u32.u64.high 3817748708, %v12808_v62, %v12826_v28 }
 0x194   : > { %v10463_v6 = vpop.f32.mrf.mxu0  ;;  %v827_v24 = vsel %vm12812_vm8, 0, %v826_v7 }
 0x195   : > { %16795 = vst [vmem:[#allocation12_spill] sm:$0xff] %v12800_v38  ;;  %v2885_v27 = vadd.f32 %v10463_v6, %v12625_v3  ;;  %v10515_v49 = vpop.f32.mrf.mxu1  ;;  %v12819_v38 = vadd.s32 8, %v12762_v29  ;;  %828 = vst [vmem:[#allocation2 + $0x8] sm:$0x3] %v827_v24 }
 0x196   : > { %v2776_v35 = vpop.f32.mrf.mxu0 }
 0x197   : > { %v2883_v15 = vadd.f32 %v2776_v35, %v12628_v8  ;;  %v12822_v36 = vadd.f32 %v10515_v49, %v2885_v27  ;;  %v3114_v3 = vpop.f32.mrf.mxu1  ;;  %v215_v8 = vshrl.u32 %v12798_v61, 4  ;;  %v12840_v49 = vadd.s32 48, %v12762_v29  ;;  %v16802_v35 = vld [vmem:[#allocation19_spill] sm:$0xff] }
 0x198   : > { %v10464_v6 = vpop.f32.mrf.mxu0  ;;  %v12836_v25 = vmul.u32.u64.low 3817748708, %v12819_v38  ;;  %v12837_v27 = vmul.u32.u64.high 3817748708, %v12819_v38, %v12836_v25  ;;  %v1624_v24 = vadd.f32 %v16802_v35, %v16801_v31  ;;  %v2401_v61 = vadd.f32 %v12582_v17, %v12578_v37 }
 0x199   : > { %16799 = vst [vmem:[#allocation15_spill] sm:$0xff] %v12822_v36  ;;  %v2886_v54 = vadd.f32 %v10464_v6, %v12635_v9  ;;  %v12830_v7 = vadd.f32 %v3114_v3, %v2883_v15  ;;  %v10516_v18 = vpop.f32.mrf.mxu1  ;;  %v12849_v15 = vadd.s32 32, %v12762_v29  ;;  %v238_v6 = vmul.u32 18, %v237_v12  ;;  %v832_v25 = vld [vmem:[#allocation2 + $0x98] sm:$0xe] }
 0x19a   : > { %v12832_v22 = vpop.f32.mrf.mxu0  ;;  %v16804_v35 = vmov 0  ;;  %v12865_v37 = vadd.s32 56, %v12762_v29  ;;  %v216_v12 = vmul.u32 18, %v215_v8  ;;  %v11387_v8 = vld [vmem:[%s16535_s1 + $0x260] sm:$0xff]  }
 0x19b   : > { %16800 = vst [vmem:[#allocation7_spill] sm:$0xff] %v12830_v7  ;;  %v12844_v28 = vadd.f32 %v10516_v18, %v2886_v54  ;;  %v12846_v9 = vpop.f32.mrf.mxu1  ;;  %v2405_v7 = vadd.f32 %v12599_v51, %v12595_v48  ;;  %v12857_v18 = vadd.f32 %v12618_v43, %v12614_v44  ;;  %v16805_v35 = vsel %vm12860_vm11, 4294967295, %v16804_v35  ;;  %10751 = vmatprep.subr.bf16.mxu0 %v11387_v8 }
 0x19c   : > { %v10467_v3 = vpop.f32.mrf.mxu0  ;;  %16806 = vst [vmem:[#allocation16_spill] sm:$0xff] %v16805_v35  ;;  %v12870_v48 = vmul.u32.u64.low 3817748708, %v12840_v49  ;;  %v12871_v51 = vmul.u32.u64.high 3817748708, %v12840_v49, %v12870_v48  ;;  %10752 = vmatpush3.bf16.msra.mxu0 %v11387_v8 }
 0x19d   : > { %16803 = vst [vmem:[#allocation9_spill] sm:$0xff] %v12844_v28  ;;  %v2889_v54 = vadd.f32 %v10467_v3, %v12643_v46  ;;  %v10519_v31 = vpop.f32.mrf.mxu1  ;;  %v833_v28 = vsel %vm12860_vm11, 0, %v832_v25  ;;  %v12877_v3 = vmul.u32.u64.low 3817748708, %v12849_v15  ;;  %v12878_v36 = vmul.u32.u64.high 3817748708, %v12849_v15, %v12877_v3 }
 0x19e   : > { %v2792_v17 = vpop.f32.mrf.mxu0  ;;  %834 = vst [vmem:[#allocation2 + $0x98] sm:$0xe] %v833_v28  ;;  %v12885_v25 = vadd.f32 %v12637_v57, %v12633_v13  ;;  %v12888_v48 = vsub.s32 %v12778_v47, %v238_v6  ;;  %v12892_v28 = vadd.s32 40, %v12762_v29  ;;  %v12903_v13 = vadd.f32 %v12655_v58, %v12651_v19  ;;  %v11383_v47 = vld [vmem:[%s16535_s1 + $0x298] sm:$0xff]  }
 0x19f   : > { %v2887_v44 = vadd.f32 %v2792_v17, %v12646_v26  ;;  %v12874_v43 = vadd.f32 %v10519_v31, %v2889_v54  ;;  %v3130_v46 = vpop.f32.mrf.mxu1  ;;  %v248_v26 = vshrl.u32 %v12827_v55, 4  ;;  %v12907_v57 = vadd.f32 %v12673_v34, %v12669_v30  ;;  %v11388_v19 = vld [vmem:[%s16535_s1 + $0x258] sm:$0xff]   ;;  %10701 = vmatprep.subr.bf16.mxu1 %v11383_v47 }
 0x1a0   : > { %v10468_v35 = vpop.f32.mrf.mxu0  ;;  %16808 = vst [vmem:[#allocation18_spill] sm:$0xff] %v12888_v48  ;;  %v226_v6 = vshrl.u32 %v12837_v27, 4  ;;  %v12923_v58 = vadd.f32 %v12691_v1, %v12687_v40  ;;  %v1970_v30 = vadd.f32 %v12727_v53, %v1624_v24  ;;  %v2872_v34 = vadd.f32 %v12747_v0, %v2401_v61  ;;  %10753 = vmatprep.subr.bf16.mxu0 %v11388_v19 }
 0x1a1   : > { %16807 = vst [vmem:[#allocation13_spill] sm:$0xff] %v12874_v43  ;;  %v2890_v54 = vadd.f32 %v10468_v35, %v12653_v32  ;;  %v12895_v31 = vadd.f32 %v3130_v46, %v2887_v44  ;;  %v10520_v17 = vpop.f32.mrf.mxu1  ;;  %v12898_v3 = vmul.u32.u64.low 3817748708, %v12865_v37  ;;  %v12899_v43 = vmul.u32.u64.high 3817748708, %v12865_v37, %v12898_v3  ;;  %10702 = vmatpush3.bf16.msra.mxu1 %v11383_v47  ;;  %10754 = vmatpush3.bf16.msra.mxu0 %v11388_v19 }
 0x1a2   : > { %v12909_v55 = vpop.f32.mrf.mxu0  ;;  %v12912_v32 = vsub.s32 %v12762_v29, %v216_v12  ;;  %v2876_v44 = vadd.f32 %v12768_v23, %v2405_v7  ;;  %v12933_v46 = vmul.u32.u64.low 3817748708, %v12892_v28  ;;  %v12934_v8 = vmul.u32.u64.high 3817748708, %v12892_v28, %v12933_v46 }
 0x1a3   : > { %v12927_v35 = vadd.f32 %v10520_v17, %v2890_v54  ;;  %v12929_v12 = vpop.f32.mrf.mxu1  ;;  %v12937_v3 = vadd.s32 80, %v12762_v29  ;;  %vm607_vm12 = vcmp.ne.s32.totalorder %v12888_v48, 0  ;;  %vm643_vm13 = vcmp.lt.s32.totalorder %v12888_v48, 0 }
 0x1a4   : > { %16809 = vst [vmem:[#allocation17_spill] sm:$0xff] %v12912_v32  ;;  %v10471_v27 = vpop.f32.mrf.mxu0  ;;  %v249_v53 = vmul.u32 18, %v248_v26  ;;  %vm605_vm14 = vcmp.ne.s32.totalorder %v12912_v32, 0  ;;  %vm641_vm15 = vcmp.lt.s32.totalorder %v12912_v32, 0  ;;  %v227_v23 = vmul.u32 18, %v226_v6  ;;  %vm12963_vm6 = vmand %vm643_vm13, %vm607_vm12 }
 0x1a5   : > { %v2893_v40 = vadd.f32 %v10471_v27, %v12661_v14  ;;  %v10523_v1 = vpop.f32.mrf.mxu1  ;;  %v281_v7 = vshrl.u32 %v12871_v51, 4  ;;  %v11389_v14 = vld [vmem:[%s16535_s1 + $0x250] sm:$0xff]   ;;  %v12952_v26 = vadd.s32 18, %v12888_v48  ;;  %v259_v17 = vshrl.u32 %v12878_v36, 4  ;;  %vm12981_vm9 = vmand %vm641_vm15, %vm605_vm14 }
 0x1a6   : > { %v2808_v0 = vpop.f32.mrf.mxu0  ;;  %v12957_v47 = vadd.f32 %v12712_v59, %v12708_v33  ;;  %v16811_v6 = vmov 0  ;;  %v12971_v19 = vmul.u32.u64.low 3817748708, %v12937_v3  ;;  %v12972_v27 = vmul.u32.u64.high 3817748708, %v12937_v3, %v12971_v19  ;;  %10755 = vmatprep.subr.bf16.mxu0 %v11389_v14 }
 0x1a7   : > { %v2891_v24 = vadd.f32 %v2808_v0, %v12664_v60  ;;  %v12949_v61 = vadd.f32 %v10523_v1, %v2893_v40  ;;  %v3146_v54 = vpop.f32.mrf.mxu1  ;;  %16810 = vst [vmem:[#allocation19_spill] sm:$0xff] %v12952_v26  ;;  %v16812_v6 = vsel %vm12963_vm6, 4294967295, %v16811_v6  ;;  %v12968_v60 = vadd.s32 18, %v12912_v32  ;;  %10756 = vmatpush3.bf16.msra.mxu0 %v11389_v14 }
 0x1a8   : > { %v10472_v51 = vpop.f32.mrf.mxu0  ;;  %16813 = vst [vmem:[#allocation20_spill] sm:$0xff] %v16812_v6  ;;  %v16815_v46 = vmov 0  ;;  %v12986_v40 = vsub.s32 %v12808_v62, %v249_v53  ;;  %v292_v1 = vshrl.u32 %v12899_v43, 4  ;;  %v12990_v0 = vadd.f32 %v12732_v56, %v1970_v30 }
 0x1a9   : > { %16814 = vst [vmem:[#allocation21_spill] sm:$0xff] %v12968_v60  ;;  %v2894_v33 = vadd.f32 %v10472_v51, %v12671_v2  ;;  %v12975_v59 = vadd.f32 %v3146_v54, %v2891_v24  ;;  %v10524_v36 = vpop.f32.mrf.mxu1  ;;  %v16816_v46 = vsel %vm12981_vm9, 4294967295, %v16815_v46  ;;  %v12993_v2 = vadd.f32 %v12752_v16, %v2872_v34 }
 0x1aa   : > { %16817 = vst [vmem:[#allocation22_spill] sm:$0xff] %v16816_v46  ;;  %16818 = vst [vmem:[#allocation23_spill] sm:$0xff] %v12986_v40  ;;  %v12995_v24 = vpop.f32.mrf.mxu0  ;;  %v12998_v54 = vsub.s32 %v12819_v38, %v227_v23  ;;  %v282_v51 = vmul.u32 18, %v281_v7  ;;  %v13001_v19 = vadd.f32 %v12772_v11, %v2876_v44  ;;  %v260_v16 = vmul.u32 18, %v259_v17  ;;  %v11391_v44 = vld [vmem:[%s16535_s1 + $0x248] sm:$0xff]  }
 0x1ab   : > { %v13003_v62 = vadd.f32 %v10524_v36, %v2894_v33  ;;  %v13005_v53 = vpop.f32.mrf.mxu1  ;;  %v13013_v43 = vadd.f32 %v12794_v52, %v12857_v18  ;;  %v270_v30 = vshrl.u32 %v12934_v8, 4  ;;  %v13021_v34 = vadd.s32 64, %v12762_v29  ;;  %v11386_v18 = vld [vmem:[%s16535_s1 + $0x290] sm:$0xff]   ;;  %10757 = vmatprep.subr.bf16.mxu0 %v11391_v44 }
 0x1ac   : > { %16819 = vst [vmem:[#allocation24_spill] sm:$0xff] %v12998_v54  ;;  %v10475_v38 = vpop.f32.mrf.mxu0  ;;  %vm608_vm10 = vcmp.ne.s32.totalorder %v12986_v40, 0  ;;  %vm644_vm12 = vcmp.lt.s32.totalorder %v12986_v40, 0  ;;  %v293_v52 = vmul.u32 18, %v292_v1  ;;  %v13033_v14 = vadd.s32 18, %v12986_v40  ;;  %10703 = vmatprep.subr.bf16.mxu1 %v11386_v18  ;;  %10758 = vmatpush3.bf16.msra.mxu0 %v11391_v44 }
 0x1ad   : > { %v2897_v23 = vadd.f32 %v10475_v38, %v12679_v4  ;;  %v10527_v7 = vpop.f32.mrf.mxu1  ;;  %vm606_vm13 = vcmp.ne.s32.totalorder %v12998_v54, 0  ;;  %vm642_vm14 = vcmp.lt.s32.totalorder %v12998_v54, 0  ;;  %v13038_v4 = vsub.s32 %v12840_v49, %v282_v51  ;;  %10704 = vmatpush3.bf16.msra.mxu1 %v11386_v18  ;;  %vm13125_vm1 = vmand %vm644_vm12, %vm608_vm10 }
 0x1ae   : > { %v2824_v8 = vpop.f32.mrf.mxu0  ;;  %16820 = vst [vmem:[#allocation25_spill] sm:$0xff] %v13033_v14  ;;  %v13044_v1 = vadd.s32 18, %v12998_v54  ;;  %v13047_v38 = vsub.s32 %v12849_v15, %v260_v16  ;;  %v13051_v11 = vadd.f32 %v12832_v22, %v12885_v25  ;;  %v271_v51 = vmul.u32 18, %v270_v30  ;;  %vm13142_vm10 = vmand %vm642_vm14, %vm606_vm13 }
 0x1af   : > { %16821 = vst [vmem:[#allocation26_spill] sm:$0xff] %v13038_v4  ;;  %v2895_v17 = vadd.f32 %v2824_v8, %v12682_v41  ;;  %v13041_v33 = vadd.f32 %v10527_v7, %v2897_v23  ;;  %v3162_v36 = vpop.f32.mrf.mxu1  ;;  %v13054_v41 = vmul.u32.u64.low 3817748708, %v13021_v34  ;;  %v13055_v23 = vmul.u32.u64.high 3817748708, %v13021_v34, %v13054_v41 }
 0x1b0   : > { %16823 = vst [vmem:[#allocation28_spill] sm:$0xff] %v13044_v1  ;;  %16824 = vst [vmem:[#allocation29_spill] sm:$0xff] %v13047_v38  ;;  %v10476_v49 = vpop.f32.mrf.mxu0  ;;  %v13061_v15 = vsub.s32 %v12865_v37, %v293_v52  ;;  %v325_v16 = vshrl.u32 %v12972_v27, 4  ;;  %vm611_vm15 = vcmp.ne.s32.totalorder %v13038_v4, 0  ;;  %vm647_vm5 = vcmp.lt.s32.totalorder %v13038_v4, 0 }
 0x1b1   : > { %16822 = vst [vmem:[#allocation27_spill] sm:$0xff] %v13041_v33  ;;  %v2898_v7 = vadd.f32 %v10476_v49, %v12689_v20  ;;  %v13058_v8 = vadd.f32 %v3162_v36, %v2895_v17  ;;  %v10528_v56 = vpop.f32.mrf.mxu1  ;;  %v13069_v22 = vadd.s32 18, %v13038_v4  ;;  %v13072_v25 = vadd.s32 88, %v12762_v29  ;;  %v11390_v20 = vld [vmem:[%s16535_s1 + $0x288] sm:$0xff]   ;;  %vm13156_vm12 = vmand %vm647_vm5, %vm611_vm15 }
 0x1b2   : > { %16826 = vst [vmem:[#allocation31_spill] sm:$0xff] %v13061_v15  ;;  %v13064_v44 = vpop.f32.mrf.mxu0  ;;  %v13079_v37 = vadd.f32 %v12909_v55, %v12903_v13  ;;  %vm609_vm4 = vcmp.ne.s32.totalorder %v13047_v38, 0  ;;  %v13087_v52 = vadd.s32 72, %v12762_v29  ;;  %vm645_vm2 = vcmp.lt.s32.totalorder %v13047_v38, 0  ;;  %10705 = vmatprep.subr.bf16.mxu1 %v11390_v20  ;;  %v11392_v55 = vld [vmem:[%s16535_s1 + $0x240] sm:$0xff]  }
 0x1b3   : > { %16825 = vst [vmem:[#allocation30_spill] sm:$0xff] %v13058_v8  ;;  %16827 = vst [vmem:[#allocation32_spill] sm:$0xff] %v13069_v22  ;;  %v13081_v27 = vadd.f32 %v10528_v56, %v2898_v7  ;;  %v13083_v30 = vpop.f32.mrf.mxu1  ;;  %v13091_v17 = vadd.s32 18, %v13047_v38  ;;  %v13094_v36 = vsub.s32 %v12892_v28, %v271_v51  ;;  %v13097_v13 = vadd.s32 112, %v12762_v29  ;;  %10706 = vmatpush3.bf16.msra.mxu1 %v11390_v20 }
 0x1b4   : > { %v10479_v18 = vpop.f32.mrf.mxu0  ;;  %vm612_vm3 = vcmp.ne.s32.totalorder %v13061_v15, 0  ;;  %v326_v41 = vmul.u32 18, %v325_v16  ;;  %v13105_v7 = vadd.s32 96, %v12762_v29  ;;  %v13112_v60 = vadd.s32 120, %v12762_v29  ;;  %10759 = vmatprep.subr.bf16.mxu0 %v11392_v55  ;;  %vm13182_vm5 = vmand %vm645_vm2, %vm609_vm4 }
 0x1b5   : > { %16828 = vst [vmem:[#allocation33_spill] sm:$0xff] %v13081_v27  ;;  %16829 = vst [vmem:[#allocation34_spill] sm:$0xff] %v13091_v17  ;;  %v2901_v56 = vadd.f32 %v10479_v18, %v12700_v45  ;;  %v10531_v49 = vpop.f32.mrf.mxu1  ;;  %v13108_v51 = vmul.u32.u64.low 3817748708, %v13072_v25  ;;  %v13109_v32 = vmul.u32.u64.high 3817748708, %v13072_v25, %v13108_v51  ;;  %10760 = vmatpush3.bf16.msra.mxu0 %v11392_v55  ;;  %v11530_v48 = vmov 0  }
 0x1b6   : > { %16830 = vst [vmem:[#allocation35_spill] sm:$0xff] %v13094_v36  ;;  %v2840_v28 = vpop.f32.mrf.mxu0  ;;  %v13118_v16 = vmul.u32.u64.low 3817748708, %v13087_v52  ;;  %v13119_v20 = vmul.u32.u64.high 3817748708, %v13087_v52, %v13118_v16  ;;  %821 = vst [vmem:[#allocation2] sm:$0xf] %v11530_v48  ;;  %vm648_vm0 = vcmp.lt.s32.totalorder %v13061_v15, 0 }
 0x1b7   : > { %v2899_v46 = vadd.f32 %v2840_v28, %v12703_v21  ;;  %v13115_v45 = vadd.f32 %v10531_v49, %v2901_v56  ;;  %v3178_v18 = vpop.f32.mrf.mxu1  ;;  %822 = vst [vmem:[#allocation2 + $0x4] sm:$0xf] %v11530_v48  ;;  %835 = vst [vmem:[#allocation2 + $0x9c] sm:$0xf] %v11530_v48  ;;  %v16832_v21 = vmov 0  ;;  %v303_v56 = vshrl.u32 %v13055_v23, 4 }
 0x1b8   : > { %836 = vst [vmem:[#allocation2 + $0xa0] sm:$0xf] %v11530_v48  ;;  %v10480_v51 = vpop.f32.mrf.mxu0  ;;  %v16833_v21 = vsel %vm13125_vm1, 4294967295, %v16832_v21  ;;  %v13132_v55 = vmul.u32.u64.low 3817748708, %v13097_v13  ;;  %v13133_v49 = vmul.u32.u64.high 3817748708, %v13097_v13, %v13132_v55  ;;  %v16836_v26 = vmov 0  ;;  %vm13202_vm2 = vmand %vm648_vm0, %vm612_vm3 }
 0x1b9   : > { %16831 = vst [vmem:[#allocation36_spill] sm:$0xff] %v13115_v45  ;;  %16834 = vst [vmem:[#allocation37_spill] sm:$0xff] %v16833_v21  ;;  %v2902_v28 = vadd.f32 %v10480_v51, %v12710_v10  ;;  %v13136_v48 = vadd.f32 %v3178_v18, %v2899_v46  ;;  %v10532_v16 = vpop.f32.mrf.mxu1  ;;  %v16837_v26 = vsel %vm13142_vm10, 4294967295, %v16836_v26  ;;  %v16839_v10 = vmov 0 }
 0x1ba   : > { %16838 = vst [vmem:[#allocation39_spill] sm:$0xff] %v16837_v26  ;;  %v13147_v6 = vmul.u32.u64.low 3817748708, %v13105_v7  ;;  %v13148_v23 = vmul.u32.u64.high 3817748708, %v13105_v7, %v13147_v6  ;;  %v13150_v45 = vpop.f32.mrf.mxu0  ;;  %v16840_v10 = vsel %vm13156_vm12, 4294967295, %v16839_v10  ;;  %vm610_vm7 = vcmp.ne.s32.totalorder %v13094_v36, 0 }
 0x1bb   : > { %16835 = vst [vmem:[#allocation38_spill] sm:$0xff] %v13136_v48  ;;  %16841 = vst [vmem:[#allocation40_spill] sm:$0xff] %v16840_v10  ;;  %vm646_vm13 = vcmp.lt.s32.totalorder %v13094_v36, 0  ;;  %v13163_v46 = vmul.u32.u64.low 3817748708, %v13112_v60  ;;  %v13164_v18 = vmul.u32.u64.high 3817748708, %v13112_v60, %v13163_v46  ;;  %v13168_v6 = vadd.f32 %v12802_v39, %v13013_v43  ;;  %v13172_v55 = vpop.f32.mrf.mxu1  ;;  %v11393_v43 = vld [vmem:[%s16535_s1 + $0x280] sm:$0xff]  }
 0x1bc   : > { %v13170_v51 = vadd.f32 %v10532_v16, %v2902_v28  ;;  %v16843_v27 = vmov 0  ;;  %v13187_v39 = vadd.s32 18, %v13061_v15  ;;  %v2892_v28 = vadd.f32 %v12995_v24, %v12907_v57  ;;  %v10483_v16 = vpop.f32.mrf.mxu0  ;;  %vm13226_vm0 = vmand %vm646_vm13, %vm610_vm7  ;;  %10707 = vmatprep.subr.bf16.mxu1 %v11393_v43 }
 0x1bd   : > { %v16844_v27 = vsel %vm13182_vm5, 4294967295, %v16843_v27  ;;  %v16847_v48 = vmov 0  ;;  %v13207_v40 = vadd.s32 18, %v13094_v36  ;;  %v304_v14 = vmul.u32 18, %v303_v56  ;;  %v10535_v54 = vpop.f32.mrf.mxu1  ;;  %10708 = vmatpush3.bf16.msra.mxu1 %v11393_v43 }
 0x1be   : > { %16842 = vst [vmem:[#allocation41_spill] sm:$0xff] %v13170_v51  ;;  %16845 = vst [vmem:[#allocation42_spill] sm:$0xff] %v16844_v27  ;;  %v16848_v48 = vsel %vm13202_vm2, 4294967295, %v16847_v48  ;;  %v13211_v57 = vadd.f32 %v12846_v9, %v13051_v11  ;;  %v13215_v24 = vadd.f32 %v12929_v12, %v13079_v37  ;;  %v2905_v46 = vadd.f32 %v10483_v16, %v12721_v63  ;;  %v2856_v9 = vpop.f32.mrf.mxu0  ;;  %v5251_v16 = vld [vmem:[#allocation2] sm:$0xf] }
 0x1bf   : > { %16846 = vst [vmem:[#allocation43_spill] sm:$0xff] %v13187_v39  ;;  %16849 = vst [vmem:[#allocation44_spill] sm:$0xff] %v16848_v48  ;;  %v16851_v56 = vmov 0  ;;  %v13235_v12 = vsub.s32 %v12937_v3, %v326_v41  ;;  %v336_v11 = vshrl.u32 %v13109_v32, 4  ;;  %v13239_v37 = vadd.s32 104, %v12762_v29  ;;  %v3194_v10 = vpop.f32.mrf.mxu1 }
 0x1c0   : > { %16850 = vst [vmem:[#allocation45_spill] sm:$0xff] %v13207_v40  ;;  %v16852_v56 = vsel %vm13226_vm0, 4294967295, %v16851_v56  ;;  %v5252_v1 = vld [vmem:[#allocation2 + $0x4] sm:$0xf]  ;;  %v2903_v4 = vadd.f32 %v2856_v9, %v12724_v42  ;;  %v13242_v22 = vadd.f32 %v10535_v54, %v2905_v46  ;;  %v314_v3 = vshrl.u32 %v13119_v20, 4  ;;  %v10484_v41 = vpop.f32.mrf.mxu0 }
 0x1c1   : > { %16853 = vst [vmem:[#allocation46_spill] sm:$0xff] %v16852_v56  ;;  %16854 = vst [vmem:[#allocation47_spill] sm:$0xff] %v13235_v12  ;;  %v13250_v32 = vadd.f32 %v13005_v53, %v2892_v28  ;;  %v13257_v42 = vsub.s32 %v13021_v34, %v304_v14  ;;  %v369_v54 = vshrl.u32 %v13133_v49, 4  ;;  %v2906_v46 = vadd.f32 %v10484_v41, %v12730_v50  ;;  %v10536_v63 = vpop.f32.mrf.mxu1 }
 0x1c2   : > { %16855 = vst [vmem:[#allocation48_spill] sm:$0xff] %v13242_v22  ;;  %v13261_v9 = vadd.f32 %v3194_v10, %v2903_v4  ;;  %v347_v20 = vshrl.u32 %v13148_v23, 4  ;;  %v13264_v53 = vcombine.low %v5251_v16, %v5252_v1  ;;  %v13266_v28 = vpop.f32.mrf.mxu0  ;;  %v337_v15 = vmul.u32 18, %v336_v11  ;;  %v16890_v22 = vld [vmem:[#allocation10_spill] sm:$0xff] }
 0x1c3   : > { %16856 = vst [vmem:[#allocation49_spill] sm:$0xff] %v13250_v32  ;;  %16857 = vst [vmem:[#allocation50_spill] sm:$0xff] %v13257_v42  ;;  %v380_v56 = vshrl.u32 %v13164_v18, 4  ;;  %v13270_v43 = vmul.u32.u64.low 3817748708, %v13239_v37  ;;  %v13271_v34 = vmul.u32.u64.high 3817748708, %v13239_v37, %v13270_v43  ;;  %v13273_v14 = vadd.f32 %v10536_v63, %v2906_v46  ;;  %v13275_v49 = vpop.f32.mrf.mxu1 }
 0x1c4   : > { %16858 = vst [vmem:[#allocation51_spill] sm:$0xff] %v13261_v9  ;;  %vm615_vm3 = vcmp.ne.s32.totalorder %v13235_v12, 0  ;;  %v315_v50 = vmul.u32 18, %v314_v3  ;;  %v13279_v4 = vadd.s32 144, %v12762_v29  ;;  %10761 = vmatprep.mubr.bf16.mxu0 %v13264_v53  ;;  %v10555_v1 = vpop.f32.mrf.mxu0  ;;  %vm651_vm4 = vcmp.lt.s32.totalorder %v13235_v12, 0 }
 0x1c5   : > { %16859 = vst [vmem:[#allocation52_spill] sm:$0xff] %v13273_v14  ;;  %v13284_v23 = vadd.s32 18, %v13235_v12  ;;  %v370_v10 = vmul.u32 18, %v369_v54  ;;  %v13287_v18 = vadd.s32 128, %v12762_v29  ;;  %v13290_v63 = vadd.f32 %v10555_v1, %v12738_v5  ;;  %v13292_v11 = vpop.f32.mrf.mxu1  ;;  %v16863_v5 = vld [vmem:[#allocation4_spill] sm:$0xff]  ;;  %vm13353_vm14 = vmand %vm651_vm4, %vm615_vm3  ;;  %v16903_v12 = vld [vmem:[#allocation11_spill] sm:$0xff] }
 0x1c6   : > { %v348_v16 = vmul.u32 18, %v347_v20  ;;  %v13296_v3 = vadd.s32 152, %v12762_v29  ;;  %v3529_v41 = vpop.f32.mrf.mxu0  ;;  %v13300_v43 = vadd.s32 18, %v13257_v42  ;;  %v13303_v54 = vsub.s32 %v13072_v25, %v337_v15 }
 0x1c7   : > { %16860 = vst [vmem:[#allocation53_spill] sm:$0xff] %v13284_v23  ;;  %v381_v46 = vmul.u32 18, %v380_v56  ;;  %v13306_v1 = vadd.f32 %v3529_v41, %v16863_v5  ;;  %v13308_v36 = vpop.f32.mrf.mxu1  ;;  %v13311_v20 = vsub.s32 %v13087_v52, %v315_v50  ;;  %v13318_v38 = vsub.s32 %v13097_v13, %v370_v10  ;;  %v16866_v41 = vld [vmem:[#allocation3_spill] sm:$0xff] }
 0x1c8   : > { %16861 = vst [vmem:[#allocation54_spill] sm:$0xff] %v13300_v43  ;;  %16862 = vst [vmem:[#allocation55_spill] sm:$0xff] %v13303_v54  ;;  %v13314_v40 = vmul.u32.u64.low 3817748708, %v13279_v4  ;;  %v13315_v39 = vmul.u32.u64.high 3817748708, %v13279_v4, %v13314_v40  ;;  %v10556_v48 = vpop.f32.mrf.mxu0  ;;  %v13321_v15 = vmul.u32.u64.low 3817748708, %v13287_v18  ;;  %v13322_v25 = vmul.u32.u64.high 3817748708, %v13287_v18, %v13321_v15 }
 0x1c9   : > { %16864 = vst [vmem:[#allocation4_spill] sm:$0xff] %v13311_v20  ;;  %16865 = vst [vmem:[#allocation56_spill] sm:$0xff] %v13318_v38  ;;  %v13325_v56 = vadd.s32 136, %v12762_v29  ;;  %v13328_v5 = vadd.f32 %v10556_v48, %v16866_v41  ;;  %v13330_v52 = vpop.f32.mrf.mxu1  ;;  %v13333_v50 = vsub.s32 %v13105_v7, %v348_v16  ;;  %v13344_v10 = vsub.s32 %v13112_v60, %v381_v46 }
 0x1ca   : > { %v13336_v40 = vmul.u32.u64.low 3817748708, %v13296_v3  ;;  %v13337_v17 = vmul.u32.u64.high 3817748708, %v13296_v3, %v13336_v40  ;;  %v13339_v13 = vpop.f32.mrf.mxu0  ;;  %v358_v48 = vshrl.u32 %v13271_v34, 4  ;;  %v16869_v7 = vmov 0 }
 0x1cb   : > { %16867 = vst [vmem:[#allocation3_spill] sm:$0xff] %v13333_v50  ;;  %16868 = vst [vmem:[#allocation57_spill] sm:$0xff] %v13344_v10  ;;  %v13347_v15 = vpop.f32.mrf.mxu1  ;;  %v16870_v7 = vsel %vm13353_vm14, 4294967295, %v16869_v7  ;;  %v13360_v16 = vmul.u32.u64.low 3817748708, %v13325_v56  ;;  %v13361_v60 = vmul.u32.u64.high 3817748708, %v13325_v56, %v13360_v16  ;;  %v2896_v34 = vadd.f32 %v13064_v44, %v12923_v58 }
 0x1cc   : > { %16871 = vst [vmem:[#allocation58_spill] sm:$0xff] %v16870_v7  ;;  %v10559_v46 = vpop.f32.mrf.mxu0  ;;  %vm16872_vm13 = vcmp.ne.s32.totalorder %v13257_v42, 0  ;;  %vm16873_vm8 = vcmp.lt.s32.totalorder %v13257_v42, 0  ;;  %v16874_v41 = vmov 0  ;;  %v13374_v40 = vadd.s32 18, %v13303_v54  ;;  %v16878_v16 = vld [vmem:[#allocation8_spill] sm:$0xff] }
 0x1cd   : > { %vm13369_vm3 = vmand %vm16873_vm8, %vm16872_vm13  ;;  %v13379_v27 = vadd.f32 %v10559_v46, %v16878_v16  ;;  %v13381_v58 = vpop.f32.mrf.mxu1  ;;  %vm16879_vm7 = vcmp.ne.s32.totalorder %v13303_v54, 0  ;;  %vm16880_vm11 = vcmp.lt.s32.totalorder %v13303_v54, 0  ;;  %v16881_v44 = vmov 0 }
 0x1ce   : > { %v16875_v41 = vsel %vm13369_vm3, 4294967295, %v16874_v41  ;;  %16877 = vst [vmem:[#allocation60_spill] sm:$0xff] %v13374_v40  ;;  %vm13387_vm8 = vmand %vm16880_vm11, %vm16879_vm7  ;;  %v13392_v26 = vadd.s32 18, %v13311_v20  ;;  %vm617_vm13 = vcmp.ne.s32.totalorder %v13333_v50, 0  ;;  %v2900_v46 = vadd.f32 %v13150_v45, %v12957_v47  ;;  %v3545_v16 = vpop.f32.mrf.mxu0  ;;  %v16936_v40 = vld [vmem:[#allocation9_spill] sm:$0xff] }
 0x1cf   : > { %16876 = vst [vmem:[#allocation59_spill] sm:$0xff] %v16875_v41  ;;  %v16882_v44 = vsel %vm13387_vm8, 4294967295, %v16881_v44  ;;  %vm16885_vm4 = vcmp.ne.s32.totalorder %v13311_v20, 0  ;;  %vm16886_vm0 = vcmp.lt.s32.totalorder %v13311_v20, 0  ;;  %v16887_v21 = vmov 0  ;;  %v13413_v47 = vpop.f32.mrf.mxu1 }
 0x1d0   : > { %16883 = vst [vmem:[#allocation8_spill] sm:$0xff] %v16882_v44  ;;  %16884 = vst [vmem:[#allocation61_spill] sm:$0xff] %v13392_v26  ;;  %vm620_vm11 = vcmp.ne.s32.totalorder %v13344_v10, 0  ;;  %vm656_vm7 = vcmp.lt.s32.totalorder %v13344_v10, 0  ;;  %v359_v14 = vmul.u32 18, %v358_v48  ;;  %v2904_v9 = vadd.f32 %v13266_v28, %v12990_v0  ;;  %v10560_v0 = vpop.f32.mrf.mxu0 }
 0x1d1   : > { %vm13402_vm2 = vmand %vm16886_vm0, %vm16885_vm4  ;;  %v13411_v51 = vadd.f32 %v3545_v16, %v16890_v22  ;;  %vm16891_vm15 = vcmp.ne.s32.totalorder %v13318_v38, 0  ;;  %vm16892_vm0 = vcmp.lt.s32.totalorder %v13318_v38, 0  ;;  %v16893_v45 = vmov 0  ;;  %v13455_v28 = vpop.f32.mrf.mxu1 }
 0x1d2   : > { %v16888_v21 = vsel %vm13402_vm2, 4294967295, %v16887_v21  ;;  %vm13419_vm4 = vmand %vm16892_vm0, %vm16891_vm15  ;;  %v13424_v32 = vadd.s32 18, %v13318_v38  ;;  %v13427_v48 = vadd.s32 18, %v13333_v50  ;;  %vm16898_vm15 = vcmp.lt.s32.totalorder %v13333_v50, 0 }
 0x1d3   : > { %16889 = vst [vmem:[#allocation62_spill] sm:$0xff] %v16888_v21  ;;  %v16894_v45 = vsel %vm13419_vm4, 4294967295, %v16893_v45  ;;  %vm13441_vm0 = vmand %vm16898_vm15, %vm617_vm13  ;;  %v16899_v16 = vmov 0  ;;  %v13446_v8 = vadd.s32 18, %v13344_v10  ;;  %v413_v33 = vshrl.u32 %v13315_v39, 4 }
 0x1d4   : > { %16895 = vst [vmem:[#allocation10_spill] sm:$0xff] %v16894_v45  ;;  %16896 = vst [vmem:[#allocation63_spill] sm:$0xff] %v13424_v32  ;;  %v16900_v16 = vsel %vm13441_vm0, 4294967295, %v16899_v16  ;;  %v13450_v22 = vadd.f32 %v13083_v30, %v2896_v34  ;;  %v13453_v23 = vadd.f32 %v10560_v0, %v16903_v12  ;;  %v16904_v42 = vmov 0  ;;  %v3548_v34 = vpop.f32.mrf.mxu0 }
 0x1d5   : > { %16897 = vst [vmem:[#allocation64_spill] sm:$0xff] %v13427_v48  ;;  %16901 = vst [vmem:[#allocation65_spill] sm:$0xff] %v16900_v16  ;;  %v391_v43 = vshrl.u32 %v13322_v25, 4  ;;  %v424_v39 = vshrl.u32 %v13337_v17, 4  ;;  %v13468_v30 = vadd.f32 %v13172_v55, %v2900_v46  ;;  %v13479_v41 = vsub.s32 %v13239_v37, %v359_v14  ;;  %v13484_v17 = vpop.f32.mrf.mxu1  ;;  %v16908_v16 = vld [vmem:[#allocation6_spill] sm:$0xff] }
 0x1d6   : > { %16902 = vst [vmem:[#allocation66_spill] sm:$0xff] %v13446_v8  ;;  %vm13461_vm13 = vmand %vm656_vm7, %vm620_vm11  ;;  %v13482_v25 = vadd.f32 %v13275_v49, %v2904_v9  ;;  %v402_v0 = vshrl.u32 %v13361_v60, 4  ;;  %v10563_v12 = vpop.f32.mrf.mxu0  ;;  %v414_v9 = vmul.u32 18, %v413_v33  ;;  %v13501_v49 = vadd.s32 176, %v12762_v29 }
 0x1d7   : > { %v16905_v42 = vsel %vm13461_vm13, 4294967295, %v16904_v42  ;;  %16907 = vst [vmem:[#allocation67_spill] sm:$0xff] %v13479_v41  ;;  %v13505_v55 = vadd.f32 %v13292_v11, %v13290_v63  ;;  %v13508_v46 = vadd.f32 %v10563_v12, %v16908_v16  ;;  %v13510_v60 = vpop.f32.mrf.mxu1  ;;  %v392_v50 = vmul.u32 18, %v391_v43  ;;  %v16910_v11 = vld [vmem:[#allocation5_spill] sm:$0xff] }
 0x1d8   : > { %16906 = vst [vmem:[#allocation11_spill] sm:$0xff] %v16905_v42  ;;  %v425_v48 = vmul.u32 18, %v424_v39  ;;  %v13514_v37 = vadd.f32 %v13308_v36, %v13306_v1  ;;  %v3561_v33 = vpop.f32.mrf.mxu0  ;;  %vm618_vm11 = vcmp.ne.s32.totalorder %v13479_v41, 0  ;;  %vm654_vm7 = vcmp.lt.s32.totalorder %v13479_v41, 0 }
 0x1d9   : > { %v13519_v14 = vadd.s32 18, %v13479_v41  ;;  %v3673_v63 = vadd.f32 %v13339_v13, %v12993_v2  ;;  %v13524_v16 = vadd.f32 %v3561_v33, %v16910_v11  ;;  %v13526_v43 = vpop.f32.mrf.mxu1  ;;  %v403_v39 = vmul.u32 18, %v402_v0  ;;  %v16912_v2 = vld [vmem:[#allocation12_spill] sm:$0xff]  ;;  %vm13546_vm15 = vmand %vm654_vm7, %vm618_vm11 }
 0x1da   : > { %v13529_v36 = vadd.s32 160, %v12762_v29  ;;  %v10564_v1 = vpop.f32.mrf.mxu0  ;;  %v13532_v12 = vsub.s32 %v13279_v4, %v414_v9  ;;  %v13535_v10 = vmul.u32.u64.low 3817748708, %v13501_v49  ;;  %v13536_v8 = vmul.u32.u64.high 3817748708, %v13501_v49, %v13535_v10 }
 0x1db   : > { %16909 = vst [vmem:[#allocation6_spill] sm:$0xff] %v13519_v14  ;;  %v13539_v42 = vadd.s32 184, %v12762_v29  ;;  %v13542_v13 = vadd.f32 %v10564_v1, %v16912_v2  ;;  %v13544_v33 = vpop.f32.mrf.mxu1  ;;  %v16913_v0 = vmov 0  ;;  %v13551_v11 = vsub.s32 %v13287_v18, %v392_v50  ;;  %v11398_v10 = vld [vmem:[%s16535_s1 + $0x2f8] sm:$0xff]  }
 0x1dc   : > { %16911 = vst [vmem:[#allocation5_spill] sm:$0xff] %v13532_v12  ;;  %v16914_v0 = vsel %vm13546_vm15, 4294967295, %v16913_v0  ;;  %v13554_v4 = vsub.s32 %v13296_v3, %v425_v48  ;;  %v13560_v9 = vadd.s32 168, %v12762_v29  ;;  %v13562_v1 = vpop.f32.mrf.mxu0  ;;  %v13574_v3 = vadd.f32 %v13330_v52, %v13328_v5  ;;  %10797 = vmatprep.subr.bf16.mxu1 %v11398_v10  ;;  %v16920_v52 = vld [vmem:[#allocation15_spill] sm:$0xff] }
 0x1dd   : > { %16915 = vst [vmem:[#allocation12_spill] sm:$0xff] %v16914_v0  ;;  %16916 = vst [vmem:[#allocation68_spill] sm:$0xff] %v13551_v11  ;;  %v13565_v2 = vmul.u32.u64.low 3817748708, %v13529_v36  ;;  %v13566_v38 = vmul.u32.u64.high 3817748708, %v13529_v36, %v13565_v2  ;;  %v13569_v32 = vmul.u32.u64.low 3817748708, %v13539_v42  ;;  %v13570_v18 = vmul.u32.u64.high 3817748708, %v13539_v42, %v13569_v32  ;;  %v13576_v50 = vpop.f32.mrf.mxu1 }
 0x1de   : > { %16917 = vst [vmem:[#allocation69_spill] sm:$0xff] %v13554_v4  ;;  %16918 = vst [vmem:[#allocation70_spill] sm:$0xff] %v13574_v3  ;;  %v13579_v48 = vsub.s32 %v13325_v56, %v403_v39  ;;  %v13582_v45 = vmul.u32.u64.low 3817748708, %v13560_v9  ;;  %v13583_v20 = vmul.u32.u64.high 3817748708, %v13560_v9, %v13582_v45  ;;  %v10567_v26 = vpop.f32.mrf.mxu0  ;;  %v457_v5 = vshrl.u32 %v13536_v8, 4 }
 0x1df   : > { %v13593_v56 = vadd.f32 %v10567_v26, %v16920_v52  ;;  %v13595_v39 = vpop.f32.mrf.mxu1  ;;  %v13598_v10 = vadd.s32 18, %v13532_v12  ;;  %v3677_v45 = vadd.f32 %v3548_v34, %v13001_v19  ;;  %v13604_v32 = vadd.s32 18, %v13551_v11  ;;  %v16923_v26 = vld [vmem:[#allocation7_spill] sm:$0xff] }
 0x1e0   : > { %16919 = vst [vmem:[#allocation71_spill] sm:$0xff] %v13579_v48  ;;  %v3577_v2 = vpop.f32.mrf.mxu0  ;;  %vm16924_vm15 = vcmp.ne.s32.totalorder %v13532_v12, 0  ;;  %vm16925_vm13 = vcmp.lt.s32.totalorder %v13532_v12, 0  ;;  %v16926_v41 = vmov 0  ;;  %vm622_vm4 = vcmp.ne.s32.totalorder %v13579_v48, 0 }
 0x1e1   : > { %16921 = vst [vmem:[#allocation15_spill] sm:$0xff] %v13598_v10  ;;  %16922 = vst [vmem:[#allocation72_spill] sm:$0xff] %v13604_v32  ;;  %v13609_v8 = vadd.f32 %v3577_v2, %v16923_v26  ;;  %v13611_v52 = vpop.f32.mrf.mxu1  ;;  %vm658_vm2 = vcmp.lt.s32.totalorder %v13579_v48, 0  ;;  %v435_v19 = vshrl.u32 %v13566_v38, 4  ;;  %vm16929_vm11 = vcmp.ne.s32.totalorder %v13551_v11, 0 }
 0x1e2   : > { %vm13617_vm0 = vmand %vm16925_vm13, %vm16924_vm15  ;;  %v10568_v34 = vpop.f32.mrf.mxu0  ;;  %vm16930_vm7 = vcmp.lt.s32.totalorder %v13551_v11, 0  ;;  %v16931_v2 = vmov 0  ;;  %v13633_v26 = vadd.s32 18, %v13554_v4  ;;  %v5416_v14 = vshrl.u32 %v13264_v53, 16 }
 0x1e3   : > { %v16927_v41 = vsel %vm13617_vm0, 4294967295, %v16926_v41  ;;  %vm13628_vm8 = vmand %vm16930_vm7, %vm16929_vm11  ;;  %v16935_v0 = vshll.u32 %v13264_v53, 16  ;;  %v458_v54 = vmul.u32 18, %v457_v5  ;;  %v13639_v38 = vadd.f32 %v13347_v15, %v3673_v63  ;;  %v13644_v7 = vpop.f32.mrf.mxu1 }
 0x1e4   : > { %16928 = vst [vmem:[#allocation7_spill] sm:$0xff] %v16927_v41  ;;  %v16932_v2 = vsel %vm13628_vm8, 4294967295, %v16931_v2  ;;  %16934 = vst [vmem:[#allocation74_spill] sm:$0xff] %v13633_v26  ;;  %v13642_v44 = vadd.f32 %v10568_v34, %v16936_v40  ;;  %vm16937_vm13 = vcmp.ne.s32.totalorder %v13554_v4, 0  ;;  %vm16938_vm15 = vcmp.lt.s32.totalorder %v13554_v4, 0  ;;  %v3580_v5 = vpop.f32.mrf.mxu0 }
 0x1e5   : > { %16933 = vst [vmem:[#allocation73_spill] sm:$0xff] %v16932_v2  ;;  %v5420_v21 = vrot.slane %v16935_v0, 1  ;;  %vm13650_vm11 = vmand %vm16938_vm15, %vm16937_vm13  ;;  %v16939_v3 = vmov 0  ;;  %v13655_v53 = vadd.s32 18, %v13579_v48  ;;  %v468_v0 = vshrl.u32 %v13570_v18, 4 }
 0x1e6   : > { %v16940_v3 = vsel %vm13650_vm11, 4294967295, %v16939_v3  ;;  %v13660_v15 = vadd.f32 %v13381_v58, %v13379_v27  ;;  %v13664_v40 = vadd.f32 %v13413_v47, %v13411_v51  ;;  %v13668_v63 = vadd.f32 %v13455_v28, %v13453_v23  ;;  %vm13678_vm7 = vmand %vm658_vm2, %vm622_vm4  ;;  %v13685_v58 = vpop.f32.mrf.mxu1  ;;  %v10571_v18 = vpop.f32.mrf.mxu0 }
 0x1e7   : > { %16941 = vst [vmem:[#allocation9_spill] sm:$0xff] %v16940_v3  ;;  %16942 = vst [vmem:[#allocation75_spill] sm:$0xff] %v13655_v53  ;;  %v16943_v27 = vmov 0  ;;  %v13683_v51 = vadd.f32 %v13484_v17, %v3677_v45  ;;  %v436_v47 = vmul.u32 18, %v435_v19  ;;  %v446_v28 = vshrl.u32 %v13583_v20, 4  ;;  %v16947_v19 = vld [vmem:[#allocation13_spill] sm:$0xff] }
 0x1e8   : > { %v16944_v27 = vsel %vm13678_vm7, 4294967295, %v16943_v27  ;;  %v13696_v12 = vor.u32 %v5420_v21, %v5416_v14  ;;  %v13699_v17 = vsub.s32 %v13501_v49, %v458_v54  ;;  %v13702_v45 = vadd.s32 208, %v12762_v29  ;;  %v13711_v11 = vpop.f32.mrf.mxu1 }
 0x1e9   : > { %16945 = vst [vmem:[#allocation76_spill] sm:$0xff] %v16944_v27  ;;  %v13706_v23 = vadd.f32 %v13510_v60, %v13508_v46  ;;  %v13709_v20 = vadd.f32 %v10571_v18, %v16947_v19  ;;  %v469_v14 = vmul.u32 18, %v468_v0  ;;  %v13719_v54 = vadd.f32 %v13526_v43, %v13524_v16  ;;  %v3593_v60 = vpop.f32.mrf.mxu0 }
 0x1ea   : > { %16946 = vst [vmem:[#allocation77_spill] sm:$0xff] %v13696_v12  ;;  %v3681_v49 = vadd.f32 %v13562_v1, %v13168_v6  ;;  %v13725_v46 = vadd.f32 %v13544_v33, %v13542_v13  ;;  %v13728_v18 = vadd.s32 192, %v12762_v29  ;;  %v13731_v19 = vadd.f32 %v3593_v60, %v12895_v31  ;;  %v13733_v21 = vpop.f32.mrf.mxu1 }
 0x1eb   : > { %16948 = vst [vmem:[#allocation13_spill] sm:$0xff] %v13719_v54  ;;  %v13736_v0 = vsub.s32 %v13529_v36, %v436_v47  ;;  %v447_v16 = vmul.u32 18, %v446_v28  ;;  %v13739_v43 = vadd.s32 216, %v12762_v29  ;;  %v10572_v6 = vpop.f32.mrf.mxu0  ;;  %vm627_vm2 = vcmp.ne.s32.totalorder %v13699_v17, 0 }
 0x1ec   : > { %16949 = vst [vmem:[#allocation78_spill] sm:$0xff] %v13725_v46  ;;  %v13743_v13 = vmul.u32.u64.low 3817748708, %v13702_v45  ;;  %v13744_v33 = vmul.u32.u64.high 3817748708, %v13702_v45, %v13743_v13  ;;  %v13747_v1 = vadd.s32 200, %v12762_v29  ;;  %v13750_v31 = vadd.f32 %v10572_v6, %v12927_v35  ;;  %v13752_v60 = vpop.f32.mrf.mxu1 }
 0x1ed   : > { %vm663_vm4 = vcmp.lt.s32.totalorder %v13699_v17, 0  ;;  %v13756_v36 = vadd.s32 18, %v13699_v17  ;;  %v13759_v47 = vsub.s32 %v13539_v42, %v469_v14  ;;  %v3685_v28 = vadd.f32 %v3580_v5, %v13211_v57  ;;  %v3596_v34 = vpop.f32.mrf.mxu0 }
 0x1ee   : > { %v13763_v13 = vmul.u32.u64.low 3817748708, %v13728_v18  ;;  %v13764_v12 = vmul.u32.u64.high 3817748708, %v13728_v18, %v13763_v13  ;;  %v13767_v35 = vadd.s32 240, %v12762_v29  ;;  %v4067_v6 = vpop.f32.mrf.mxu1  ;;  %v13772_v48 = vadd.s32 18, %v13736_v0  ;;  %vm13810_vm15 = vmand %vm663_vm4, %vm627_vm2 }
 0x1ef   : > { %16950 = vst [vmem:[#allocation79_spill] sm:$0xff] %v13759_v47  ;;  %v13775_v42 = vsub.s32 %v13560_v9, %v447_v16  ;;  %v10575_v57 = vpop.f32.mrf.mxu0  ;;  %v501_v5 = vshrl.u32 %v13744_v33, 4  ;;  %v13779_v14 = vmul.u32.u64.low 3817748708, %v13739_v43  ;;  %v13780_v13 = vmul.u32.u64.high 3817748708, %v13739_v43, %v13779_v14 }
 0x1f0   : > { %v13783_v53 = vadd.s32 224, %v12762_v29  ;;  %v13786_v27 = vadd.f32 %v10575_v57, %v12949_v61  ;;  %v13788_v4 = vpop.f32.mrf.mxu1  ;;  %v13792_v9 = vmul.u32.u64.low 3817748708, %v13747_v1  ;;  %v13793_v16 = vmul.u32.u64.high 3817748708, %v13747_v1, %v13792_v9 }
 0x1f1   : > { %16951 = vst [vmem:[#allocation80_spill] sm:$0xff] %v13775_v42  ;;  %v3609_v26 = vpop.f32.mrf.mxu0  ;;  %v479_v33 = vshrl.u32 %v13764_v12, 4  ;;  %v13798_v14 = vmul.u32.u64.low 3817748708, %v13767_v35  ;;  %v13799_v3 = vmul.u32.u64.high 3817748708, %v13767_v35, %v13798_v14  ;;  %vm626_vm13 = vcmp.ne.s32.totalorder %v13775_v42, 0 }
 0x1f2   : > { %v13802_v61 = vadd.f32 %v3609_v26, %v12975_v59  ;;  %v13804_v57 = vpop.f32.mrf.mxu1  ;;  %vm662_vm7 = vcmp.lt.s32.totalorder %v13775_v42, 0  ;;  %v502_v12 = vmul.u32 18, %v501_v5  ;;  %vm16954_vm11 = vcmp.ne.s32.totalorder %v13736_v0, 0 }
 0x1f3   : > { %v10576_v32 = vpop.f32.mrf.mxu0  ;;  %vm16955_vm8 = vcmp.lt.s32.totalorder %v13736_v0, 0  ;;  %v16956_v59 = vmov 0  ;;  %v480_v26 = vmul.u32 18, %v479_v33  ;;  %v512_v14 = vshrl.u32 %v13780_v13, 4  ;;  %vm13864_vm4 = vmand %vm662_vm7, %vm626_vm13 }
 0x1f4   : > { %vm13820_vm0 = vmand %vm16955_vm8, %vm16954_vm11  ;;  %v13826_v2 = vmul.u32.u64.low 3817748708, %v13783_v53  ;;  %v13827_v10 = vmul.u32.u64.high 3817748708, %v13783_v53, %v13826_v2  ;;  %v13830_v41 = vadd.f32 %v13576_v50, %v3681_v49  ;;  %v3695_v5 = vadd.f32 %v10576_v32, %v13003_v62  ;;  %v10628_v46 = vpop.f32.mrf.mxu1 }
 0x1f5   : > { %v16957_v59 = vsel %vm13820_vm0, 4294967295, %v16956_v59  ;;  %vm16959_vm2 = vcmp.ne.s32.totalorder %v13759_v47, 0  ;;  %vm16960_vm8 = vcmp.lt.s32.totalorder %v13759_v47, 0  ;;  %v16961_v54 = vmov 0  ;;  %v3612_v49 = vpop.f32.mrf.mxu0 }
 0x1f6   : > { %16958 = vst [vmem:[#allocation81_spill] sm:$0xff] %v13830_v41  ;;  %vm13837_vm11 = vmand %vm16960_vm8, %vm16959_vm2  ;;  %v13842_v13 = vadd.s32 18, %v13759_v47  ;;  %v13845_v33 = vadd.s32 18, %v13775_v42  ;;  %v13849_v50 = vadd.f32 %v13595_v39, %v13593_v56  ;;  %v13853_v62 = vadd.f32 %v13611_v52, %v13609_v8  ;;  %v4083_v39 = vpop.f32.mrf.mxu1 }
 0x1f7   : > { %v16962_v54 = vsel %vm13837_vm11, 4294967295, %v16961_v54  ;;  %v13857_v32 = vadd.f32 %v13644_v7, %v13642_v44  ;;  %v3689_v2 = vadd.f32 %v3596_v34, %v13215_v24  ;;  %v16966_v41 = vmov 0  ;;  %v10579_v52 = vpop.f32.mrf.mxu0 }
 0x1f8   : > { %16963 = vst [vmem:[#allocation82_spill] sm:$0xff] %v16962_v54  ;;  %16964 = vst [vmem:[#allocation83_spill] sm:$0xff] %v13842_v13  ;;  %v16967_v41 = vsel %vm13864_vm4, 4294967295, %v16966_v41  ;;  %v13869_v56 = vadd.f32 %v13685_v58, %v3685_v28  ;;  %v13876_v24 = vsub.s32 %v13702_v45, %v502_v12  ;;  %v490_v44 = vshrl.u32 %v13793_v16, 4  ;;  %v16971_v12 = vld [vmem:[#allocation27_spill] sm:$0xff]  ;;  %v10631_v7 = vpop.f32.mrf.mxu1 }
 0x1f9   : > { %16965 = vst [vmem:[#allocation84_spill] sm:$0xff] %v13845_v33  ;;  %16968 = vst [vmem:[#allocation85_spill] sm:$0xff] %v16967_v41  ;;  %v13881_v8 = vadd.f32 %v13711_v11, %v13709_v20  ;;  %v13888_v58 = vsub.s32 %v13728_v18, %v480_v26  ;;  %v513_v28 = vmul.u32 18, %v512_v14  ;;  %v13892_v45 = vadd.f32 %v13733_v21, %v13731_v19  ;;  %v3625_v21 = vpop.f32.mrf.mxu0 }
 0x1fa   : > { %16969 = vst [vmem:[#allocation86_spill] sm:$0xff] %v13876_v24  ;;  %v3698_v16 = vadd.f32 %v10579_v52, %v16971_v12  ;;  %v13905_v18 = vadd.f32 %v13752_v60, %v13750_v31  ;;  %v13907_v26 = vadd.f32 %v4067_v6, %v3689_v2  ;;  %v545_v19 = vshrl.u32 %v13799_v3, 4  ;;  %v16972_v52 = vld [vmem:[#allocation30_spill] sm:$0xff]  ;;  %v4096_v11 = vpop.f32.mrf.mxu1  ;;  %v16974_v60 = vld [vmem:[#allocation33_spill] sm:$0xff] }
 0x1fb   : > { %16970 = vst [vmem:[#allocation87_spill] sm:$0xff] %v13888_v58  ;;  %v13911_v14 = vadd.s32 248, %v12762_v29  ;;  %v13914_v12 = vadd.f32 %v3625_v21, %v16972_v52  ;;  %vm631_vm7 = vcmp.ne.s32.totalorder %v13876_v24, 0  ;;  %vm667_vm13 = vcmp.lt.s32.totalorder %v13876_v24, 0  ;;  %v10580_v34 = vpop.f32.mrf.mxu0 }
 0x1fc   : > { %v491_v20 = vmul.u32 18, %v490_v44  ;;  %vm629_vm2 = vcmp.ne.s32.totalorder %v13888_v58, 0  ;;  %v13921_v31 = vsub.s32 %v13739_v43, %v513_v28  ;;  %v523_v3 = vshrl.u32 %v13827_v10, 4  ;;  %v10632_v2 = vpop.f32.mrf.mxu1  ;;  %v16975_v44 = vld [vmem:[#allocation49_spill] sm:$0xff]  ;;  %vm13934_vm8 = vmand %vm667_vm13, %vm631_vm7 }
 0x1fd   : > { %v3699_v6 = vadd.f32 %v10580_v34, %v16974_v60  ;;  %v13926_v21 = vadd.s32 18, %v13876_v24  ;;  %v546_v52 = vmul.u32 18, %v545_v19  ;;  %v13929_v42 = vadd.s32 232, %v12762_v29  ;;  %v3628_v41 = vpop.f32.mrf.mxu0  ;;  %v17012_v24 = vld [vmem:[#allocation51_spill] sm:$0xff] }
 0x1fe   : > { %16973 = vst [vmem:[#allocation27_spill] sm:$0xff] %v13921_v31  ;;  %v3693_v33 = vadd.f32 %v3612_v49, %v16975_v44  ;;  %v16976_v43 = vmov 0  ;;  %v13939_v10 = vadd.s32 18, %v13888_v58  ;;  %v13947_v19 = vadd.f32 %v13788_v4, %v13786_v27  ;;  %v4099_v44 = vpop.f32.mrf.mxu1 }
 0x1ff   : > { %v16977_v43 = vsel %vm13934_vm8, 4294967295, %v16976_v43  ;;  %v13942_v34 = vmul.u32.u64.low 3817748708, %v13911_v14  ;;  %v13943_v28 = vmul.u32.u64.high 3817748708, %v13911_v14, %v13942_v34  ;;  %v13951_v49 = vadd.f32 %v13804_v57, %v13802_v61  ;;  %v10583_v4 = vpop.f32.mrf.mxu0  ;;  %v16986_v61 = vld [vmem:[#allocation36_spill] sm:$0xff] }
 0x200   : > { %16978 = vst [vmem:[#allocation30_spill] sm:$0xff] %v13939_v10  ;;  %v13953_v60 = vadd.f32 %v10628_v46, %v3695_v5  ;;  %vm16981_vm7 = vcmp.lt.s32.totalorder %v13888_v58, 0  ;;  %v16982_v47 = vmov 0  ;;  %v13964_v34 = vsub.s32 %v13747_v1, %v491_v20  ;;  %v10635_v5 = vpop.f32.mrf.mxu1 }
 0x201   : > { %16979 = vst [vmem:[#allocation33_spill] sm:$0xff] %v13951_v49  ;;  %vm13959_vm13 = vmand %vm16981_vm7, %vm629_vm2  ;;  %vm632_vm4 = vcmp.ne.s32.totalorder %v13921_v31, 0  ;;  %vm668_vm11 = vcmp.lt.s32.totalorder %v13921_v31, 0  ;;  %v524_v27 = vmul.u32 18, %v523_v3  ;;  %v13969_v46 = vadd.s32 272, %v12762_v29  ;;  %v3641_v49 = vpop.f32.mrf.mxu0  ;;  %v16995_v3 = vld [vmem:[#allocation41_spill] sm:$0xff] }
 0x202   : > { %16980 = vst [vmem:[#allocation49_spill] sm:$0xff] %v13953_v60  ;;  %v16983_v47 = vsel %vm13959_vm13, 4294967295, %v16982_v47  ;;  %16985 = vst [vmem:[#allocation89_spill] sm:$0xff] %v13964_v34  ;;  %v3702_v57 = vadd.f32 %v10583_v4, %v16986_v61  ;;  %v13973_v60 = vsub.s32 %v13767_v35, %v546_v52  ;;  %v13979_v1 = vadd.f32 %v4083_v39, %v3693_v33  ;;  %v16989_v52 = vld [vmem:[#allocation38_spill] sm:$0xff]  ;;  %v4112_v61 = vpop.f32.mrf.mxu1 }
 0x203   : > { %16984 = vst [vmem:[#allocation88_spill] sm:$0xff] %v16983_v47  ;;  %v13976_v13 = vmul.u32.u64.low 3817748708, %v13929_v42  ;;  %v13977_v54 = vmul.u32.u64.high 3817748708, %v13929_v42, %v13976_v13  ;;  %v13981_v20 = vadd.f32 %v10631_v7, %v3698_v16  ;;  %v3700_v4 = vadd.f32 %v3641_v49, %v16989_v52  ;;  %v10584_v33 = vpop.f32.mrf.mxu0  ;;  %vm14001_vm8 = vmand %vm668_vm11, %vm632_vm4 }
 0x204   : > { %16987 = vst [vmem:[#allocation36_spill] sm:$0xff] %v13973_v60  ;;  %v13993_v13 = vadd.s32 18, %v13921_v31  ;;  %vm630_vm2 = vcmp.ne.s32.totalorder %v13964_v34, 0  ;;  %vm666_vm7 = vcmp.lt.s32.totalorder %v13964_v34, 0  ;;  %v16991_v39 = vmov 0  ;;  %v10636_v10 = vpop.f32.mrf.mxu1 }
 0x205   : > { %16988 = vst [vmem:[#allocation90_spill] sm:$0xff] %v13981_v20  ;;  %v16992_v39 = vsel %vm14001_vm8, 4294967295, %v16991_v39  ;;  %v14006_v7 = vsub.s32 %v13783_v53, %v524_v27  ;;  %v556_v16 = vshrl.u32 %v13943_v28, 4  ;;  %v3697_v35 = vadd.f32 %v3628_v41, %v13450_v22  ;;  %v3644_v20 = vpop.f32.mrf.mxu0  ;;  %vm14037_vm4 = vmand %vm666_vm7, %vm630_vm2 }
 0x206   : > { %16990 = vst [vmem:[#allocation38_spill] sm:$0xff] %v13993_v13  ;;  %16993 = vst [vmem:[#allocation91_spill] sm:$0xff] %v16992_v39  ;;  %v14010_v49 = vmul.u32.u64.low 3817748708, %v13969_v46  ;;  %v14011_v52 = vmul.u32.u64.high 3817748708, %v13969_v46, %v14010_v49  ;;  %v3703_v58 = vadd.f32 %v10584_v33, %v16995_v3  ;;  %v14016_v47 = vadd.s32 18, %v13964_v34  ;;  %v4115_v22 = vpop.f32.mrf.mxu1 }
 0x207   : > { %16994 = vst [vmem:[#allocation92_spill] sm:$0xff] %v14006_v7  ;;  %v557_v53 = vmul.u32 18, %v556_v16  ;;  %v534_v28 = vshrl.u32 %v13977_v54, 4  ;;  %v14022_v27 = vadd.s32 256, %v12762_v29  ;;  %v14025_v49 = vadd.f32 %v4096_v11, %v13914_v12  ;;  %v10587_v11 = vpop.f32.mrf.mxu0 }
 0x208   : > { %16996 = vst [vmem:[#allocation41_spill] sm:$0xff] %v14016_v47  ;;  %v14027_v41 = vadd.f32 %v10632_v2, %v3699_v6  ;;  %v16999_v54 = vmov 0  ;;  %v14042_v33 = vadd.s32 18, %v13973_v60  ;;  %vm633_vm11 = vcmp.ne.s32.totalorder %v14006_v7, 0  ;;  %v17002_v2 = vld [vmem:[#allocation48_spill] sm:$0xff]  ;;  %v10639_v3 = vpop.f32.mrf.mxu1 }
 0x209   : > { %16997 = vst [vmem:[#allocation93_spill] sm:$0xff] %v14025_v49  ;;  %v17000_v54 = vsel %vm14037_vm4, 4294967295, %v16999_v54  ;;  %vm669_vm13 = vcmp.lt.s32.totalorder %v14006_v7, 0  ;;  %v535_v12 = vmul.u32 18, %v534_v28  ;;  %v589_v6 = vshrl.u32 %v14011_v52, 4  ;;  %v3657_v52 = vpop.f32.mrf.mxu0 }
 0x20a   : > { %16998 = vst [vmem:[#allocation94_spill] sm:$0xff] %v14027_v41  ;;  %17001 = vst [vmem:[#allocation95_spill] sm:$0xff] %v14042_v33  ;;  %v3706_v16 = vadd.f32 %v10587_v11, %v17002_v2  ;;  %vm17003_vm8 = vcmp.ne.s32.totalorder %v13973_v60, 0  ;;  %vm17004_vm2 = vcmp.lt.s32.totalorder %v13973_v60, 0  ;;  %v17005_v41 = vmov 0 }
 0x20b   : > { %vm14052_vm7 = vmand %vm17004_vm2, %vm17003_vm8  ;;  %v14057_v49 = vsub.s32 %v13911_v14, %v557_v53  ;;  %v14060_v31 = vmul.u32.u64.low 3817748708, %v14022_v27  ;;  %v14061_v13 = vmul.u32.u64.high 3817748708, %v14022_v27, %v14060_v31  ;;  %v14063_v28 = vadd.f32 %v4099_v44, %v3697_v35  ;;  %v4128_v44 = vpop.f32.mrf.mxu1  ;;  %v10588_v34 = vpop.f32.mrf.mxu0 }
 0x20c   : > { %v17006_v41 = vsel %vm14052_vm7, 4294967295, %v17005_v41  ;;  %v14070_v2 = vadd.s32 18, %v14006_v7  ;;  %v14073_v39 = vadd.s32 280, %v12762_v29  ;;  %v14075_v14 = vadd.f32 %v10635_v5, %v3702_v57  ;;  %vm14083_vm8 = vmand %vm669_vm13, %vm633_vm11  ;;  %v17018_v57 = vld [vmem:[#allocation19_spill] sm:$0xff]  ;;  %v17019_v5 = vld [vmem:[#allocation18_spill] sm:$0xff] }
 0x20d   : > { %17007 = vst [vmem:[#allocation48_spill] sm:$0xff] %v17006_v41  ;;  %17008 = vst [vmem:[#allocation96_spill] sm:$0xff] %v14057_v49  ;;  %v3701_v53 = vadd.f32 %v3644_v20, %v13468_v30  ;;  %v3704_v31 = vadd.f32 %v3657_v52, %v17012_v24  ;;  %v17013_v35 = vmov 0  ;;  %v590_v11 = vmul.u32 18, %v589_v6  ;;  %v17028_v20 = vld [vmem:[#allocation17_spill] sm:$0xff]  ;;  %v17076_v41 = vld [vmem:[#allocation34_spill] sm:$0xff] }
 0x20e   : > { %17009 = vst [vmem:[#allocation97_spill] sm:$0xff] %v14063_v28  ;;  %17010 = vst [vmem:[#allocation98_spill] sm:$0xff] %v14070_v2  ;;  %v17014_v35 = vsel %vm14083_vm8, 4294967295, %v17013_v35  ;;  %v14087_v28 = vadd.f32 %v4112_v61, %v3700_v4  ;;  %v17020_v30 = vsel %vm12963_vm6, %v17018_v57, %v17019_v5  ;;  %v17021_v24 = vmov 0  ;;  %v17025_v61 = vld [vmem:[#allocation52_spill] sm:$0xff]  ;;  %v3660_v57 = vpop.f32.mrf.mxu0  ;;  %v17038_v7 = vld [vmem:[#allocation25_spill] sm:$0xff] }
 0x20f   : > { %17011 = vst [vmem:[#allocation99_spill] sm:$0xff] %v14075_v14  ;;  %17015 = vst [vmem:[#allocation51_spill] sm:$0xff] %v17014_v35  ;;  %vm14094_vm2 = vcmp.lt.s32.totalorder %v17020_v30, 16  ;;  %v14103_v52 = vsub.s32 %v13929_v42, %v535_v12  ;;  %v14106_v4 = vadd.s32 264, %v12762_v29  ;;  %v3707_v47 = vadd.f32 %v10588_v34, %v17025_v61  ;;  %v17027_v30 = vld [vmem:[#allocation21_spill] sm:$0xff] }
 0x210   : > { %17016 = vst [vmem:[#allocation100_spill] sm:$0xff] %v14087_v28  ;;  %v17022_v24 = vsel %vm14094_vm2, 4294967295, %v17021_v24  ;;  %vm636_vm13 = vcmp.ne.s32.totalorder %v14057_v49, 0  ;;  %vm672_vm6 = vcmp.lt.s32.totalorder %v14057_v49, 0  ;;  %v14112_v6 = vsub.s32 %v13969_v46, %v590_v11  ;;  %v14141_v5 = vld [vmem:[%s16536_s2] ss:$0 sm:$0xff] }
 0x211   : > { %17023 = vst [vmem:[#allocation20_spill] sm:$0xff] %v17022_v24  ;;  %17024 = vst [vmem:[#allocation19_spill] sm:$0xff] %v14106_v4  ;;  %v17029_v28 = vsel %vm12981_vm9, %v17027_v30, %v17028_v20  ;;  %v17030_v42 = vmov 0  ;;  %v567_v34 = vshrl.u32 %v14061_v13, 4  ;;  %v14132_v11 = vadd.f32 %v10636_v10, %v3703_v58  ;;  %v10659_v13 = vpop.f32.mrf.mxu0 }
 0x212   : > { %vm14119_vm11 = vcmp.lt.s32.totalorder %v17029_v28, 16  ;;  %v14129_v46 = vmul.u32.u64.low 3817748708, %v14073_v39  ;;  %v14130_v12 = vmul.u32.u64.high 3817748708, %v14073_v39, %v14129_v46  ;;  %v14134_v61 = vadd.f32 %v4115_v22, %v3701_v53  ;;  %v10640_v28 = vpop.f32.mrf.mxu1  ;;  %vm14159_vm8 = vmand %vm672_vm6, %vm636_vm13 }
 0x213   : > { %v17031_v42 = vsel %vm14119_vm11, 4294967295, %v17030_v42  ;;  %17033 = vst [vmem:[#allocation52_spill] sm:$0xff] %v14132_v11  ;;  %v14136_v20 = vadd.f32 %v10639_v3, %v3706_v16  ;;  %v14144_v30 = vadd.s32 18, %v14057_v49  ;;  %v17039_v46 = vld [vmem:[#allocation23_spill] sm:$0xff]  ;;  %v17041_v10 = vmov 0  ;;  %v17069_v49 = vld [vmem:[#allocation70_spill] sm:$0xff] }
 0x214   : > { %17032 = vst [vmem:[#allocation18_spill] sm:$0xff] %v17031_v42  ;;  %17034 = vst [vmem:[#allocation22_spill] sm:$0xff] %v14134_v61  ;;  %v17040_v58 = vsel %vm13125_vm1, %v17038_v7, %v17039_v46  ;;  %v17044_v22 = vmov 0  ;;  %vm634_vm7 = vcmp.ne.s32.totalorder %v14103_v52, 0  ;;  %vm670_vm4 = vcmp.lt.s32.totalorder %v14103_v52, 0  ;;  %v14169_v7 = vld [vmem:[%s16535_s1 + $0x338] sm:$0xff]  }
 0x215   : > { %17035 = vst [vmem:[#allocation21_spill] sm:$0xff] %v14136_v20  ;;  %17036 = vst [vmem:[#allocation17_spill] sm:$0xff] %v14144_v30  ;;  %vm14151_vm9 = vcmp.lt.s32.totalorder %v17040_v58, 16  ;;  %v17045_v22 = vsel %vm14159_vm8, 4294967295, %v17044_v22  ;;  %vm639_vm0 = vcmp.ne.s32.totalorder %v14112_v6, 0  ;;  %v568_v3 = vmul.u32 18, %v567_v34  ;;  %v4338_v58 = vpop.f32.mrf.mxu0  ;;  %10849 = vmatprep.subr.bf16.mxu0 %v14169_v7 }
 0x216   : > { %v17042_v10 = vsel %vm14151_vm9, 4294967295, %v17041_v10  ;;  %17046 = vst [vmem:[#allocation25_spill] sm:$0xff] %v17045_v22  ;;  %v4483_v16 = vadd.f32 %v10659_v13, %v13505_v55  ;;  %vm675_vm1 = vcmp.lt.s32.totalorder %v14112_v6, 0  ;;  %v3705_v46 = vadd.f32 %v3660_v57, %v13482_v25  ;;  %v17049_v61 = vld [vmem:[#allocation28_spill] sm:$0xff]  ;;  %v4131_v25 = vpop.f32.mrf.mxu1 }
 0x217   : > { %17043 = vst [vmem:[#allocation37_spill] sm:$0xff] %v17042_v10  ;;  %v14174_v53 = vmul.u32.u64.low 3817748708, %v14106_v4  ;;  %v14175_v29 = vmul.u32.u64.high 3817748708, %v14106_v4, %v14174_v53  ;;  %v17050_v34 = vld [vmem:[#allocation24_spill] sm:$0xff]  ;;  %v17052_v2 = vmov 0  ;;  %v14188_v55 = vadd.s32 18, %v14103_v52 }
 0x218   : > { %v17051_v11 = vsel %vm13142_vm10, %v17049_v61, %v17050_v34  ;;  %v14191_v13 = vsub.s32 %v14022_v27, %v568_v3  ;;  %v600_v53 = vshrl.u32 %v14130_v12, 4  ;;  %v4526_v57 = vadd.f32 %v14141_v5, %v4483_v16  ;;  %vm14205_vm10 = vmand %vm670_vm4, %vm634_vm7  ;;  %v10660_v61 = vpop.f32.mrf.mxu0  ;;  %v17060_v16 = vld [vmem:[#allocation26_spill] sm:$0xff] }
 0x219   : > { %17047 = vst [vmem:[#allocation23_spill] sm:$0xff] %v14175_v29  ;;  %vm14183_vm13 = vcmp.lt.s32.totalorder %v17051_v11, 16  ;;  %v4481_v20 = vadd.f32 %v4338_v58, %v13514_v37  ;;  %v14210_v12 = vadd.s32 18, %v14112_v6  ;;  %v17059_v37 = vld [vmem:[#allocation32_spill] sm:$0xff]  ;;  %v17062_v34 = vmov 0  ;;  %vm14225_vm4 = vmand %vm675_vm1, %vm639_vm0 }
 0x21a   : > { %v17053_v2 = vsel %vm14183_vm13, 4294967295, %v17052_v2  ;;  %17055 = vst [vmem:[#allocation28_spill] sm:$0xff] %v14191_v13  ;;  %v17061_v58 = vsel %vm13156_vm12, %v17059_v37, %v17060_v16  ;;  %vm637_vm7 = vcmp.ne.s32.totalorder %v14191_v13, 0  ;;  %vm673_vm8 = vcmp.lt.s32.totalorder %v14191_v13, 0  ;;  %v4341_v60 = vpop.f32.mrf.mxu0 }
 0x21b   : > { %17054 = vst [vmem:[#allocation39_spill] sm:$0xff] %v17053_v2  ;;  %vm14217_vm6 = vcmp.lt.s32.totalorder %v17061_v58, 16  ;;  %v14232_v3 = vadd.s32 18, %v14191_v13  ;;  %v601_v37 = vmul.u32 18, %v600_v53  ;;  %v14234_v16 = vadd.f32 %v4128_v44, %v3704_v31  ;;  %vm14238_vm12 = vmand %vm673_vm8, %vm637_vm7  ;;  %v17077_v53 = vld [vmem:[#allocation29_spill] sm:$0xff] }
 0x21c   : > { %v17063_v34 = vsel %vm14217_vm6, 4294967295, %v17062_v34  ;;  %v4562_v58 = vmax.f32 %v4526_v57, 0.0  ;;  %v4524_v4 = vadd.f32 %v14141_v5, %v4481_v20  ;;  %v4484_v30 = vadd.f32 %v10660_v61, %v17069_v49  ;;  %v10663_v57 = vpop.f32.mrf.mxu0 }
 0x21d   : > { %17064 = vst [vmem:[#allocation24_spill] sm:$0xff] %v17063_v34  ;;  %17067 = vst [vmem:[#allocation40_spill] sm:$0xff] %v14232_v3  ;;  %v17070_v22 = vmov 0  ;;  %v14242_v35 = vadd.f32 %v10640_v28, %v3707_v47  ;;  %v14244_v14 = vadd.f32 %v4131_v25, %v3705_v46  ;;  %v17078_v31 = vsel %vm13182_vm5, %v17076_v41, %v17077_v53 }
 0x21e   : > { %17068 = vst [vmem:[#allocation32_spill] sm:$0xff] %v14234_v16  ;;  %v17071_v22 = vsel %vm14238_vm12, 4294967295, %v17070_v22  ;;  %vm14251_vm0 = vcmp.lt.s32.totalorder %v17078_v31, 16  ;;  %v17079_v44 = vmov 0  ;;  %v14260_v47 = vsub.s32 %v14073_v39, %v601_v37  ;;  %v4354_v31 = vpop.f32.mrf.mxu0  ;;  %v17113_v16 = vld [vmem:[#allocation54_spill] sm:$0xff] }
 0x21f   : > { %17072 = vst [vmem:[#allocation26_spill] sm:$0xff] %v17071_v22  ;;  %17073 = vst [vmem:[#allocation70_spill] sm:$0xff] %v14242_v35  ;;  %v17080_v44 = vsel %vm14251_vm0, 4294967295, %v17079_v44  ;;  %v4670_v28 = vsel %vm14094_vm2, %v4562_v58, 0.0  ;;  %v4560_v46 = vmax.f32 %v4524_v4, 0.0  ;;  %v4527_v33 = vadd.f32 %v14141_v5, %v4484_v30 }
 0x220   : > { %17074 = vst [vmem:[#allocation101_spill] sm:$0xff] %v14244_v14  ;;  %17081 = vst [vmem:[#allocation42_spill] sm:$0xff] %v17080_v44  ;;  %v4482_v41 = vadd.f32 %v4341_v60, %v13639_v38  ;;  %v9723_v25 = vpack.c.bf16 %v4670_v28, %v4670_v28  ;;  %v4487_v60 = vadd.f32 %v10663_v57, %v13660_v15  ;;  %v14280_v28 = vadd.s32 18, %v14260_v47  ;;  %v10664_v15 = vpop.f32.mrf.mxu0 }
 0x221   : > { %v4668_v4 = vsel %vm14119_vm11, %v4560_v46, 0.0  ;;  %v4563_v30 = vmax.f32 %v4527_v33, 0.0  ;;  %v4485_v46 = vadd.f32 %v4354_v31, %v13664_v40 }
 0x222   : > { %v4525_v38 = vadd.f32 %v14141_v5, %v4482_v41  ;;  %v4834_v37 = vshrl.u32 %v9723_v25, 16  ;;  %v4837_v58 = vshll.u32 %v9723_v25, 16  ;;  %v9721_v53 = vpack.c.bf16 %v4668_v4, %v4668_v4  ;;  %17082 = vst [vmem:[#allocation34_spill] sm:$0xff] %v14280_v28  ;;  %v4357_v29 = vpop.f32.mrf.mxu0 }
 0x223   : > { %v4671_v39 = vsel %vm14151_vm9, %v4563_v30, 0.0  ;;  %v4530_v61 = vadd.f32 %v14141_v5, %v4487_v60  ;;  %v4528_v24 = vadd.f32 %v14141_v5, %v4485_v46  ;;  %v5210_v60 = vld [vmem:[#allocation2 + $0x8] sm:$0xe]  ;;  %v4486_v13 = vadd.f32 %v4357_v29, %v13683_v51 }
 0x224   : > { %v4561_v20 = vmax.f32 %v4525_v38, 0.0  ;;  %v4836_v33 = vrot.slane %v4834_v37, 6  ;;  %v4839_v49 = vrot.slane %v4837_v58, 7  ;;  %v4815_v41 = vshrl.u32 %v9721_v53, 16  ;;  %v17086_v46 = vld [vmem:[#allocation31_spill] sm:$0xff] }
 0x225   : > { %v4818_v42 = vshll.u32 %v9721_v53, 16  ;;  %v9724_v57 = vpack.c.bf16 %v4671_v39, %v4671_v39  ;;  %v4566_v4 = vmax.f32 %v4530_v61, 0.0  ;;  %v4564_v58 = vmax.f32 %v4528_v24, 0.0  ;;  %v17085_v61 = vld [vmem:[#allocation43_spill] sm:$0xff] }
 0x226   : > { %v4669_v25 = vsel %vm14183_vm13, %v4561_v20, 0.0  ;;  %v4840_v14 = vor.u32 %v4839_v49, %v4836_v33  ;;  %v4817_v10 = vrot.slane %v4815_v41, 6  ;;  %v17083_v20 = vld [vmem:[#allocation44_spill] sm:$0xff]  ;;  %v17091_v33 = vld [vmem:[#allocation46_spill] sm:$0xff]  ;;  %v17093_v41 = vld [vmem:[#allocation45_spill] sm:$0xff]  ;;  %v17096_v24 = vmov 0 }
 0x227   : > { %v4820_v30 = vrot.slane %v4818_v42, 7  ;;  %v9722_v38 = vpack.c.bf16 %v4669_v25, %v4669_v25  ;;  %v4844_v35 = vshrl.u32 %v9724_v57, 16  ;;  %v4847_v40 = vshll.u32 %v9724_v57, 16  ;;  %v17094_v57 = vld [vmem:[#allocation35_spill] sm:$0xff] }
 0x228   : > { %v4674_v37 = vsel %vm14217_vm6, %v4566_v4, 0.0  ;;  %v4842_v53 = vrot.slane %v4840_v14, 4  ;;  %vm17084_vm5 = vnez %v17083_v20  ;;  %v17088_v42 = vmov 0  ;;  %v17100_v4 = vld [vmem:[#allocation53_spill] sm:$0xff] }
 0x229   : > { %v4821_v39 = vor.u32 %v4820_v30, %v4817_v10  ;;  %v4824_v31 = vshrl.u32 %v9722_v38, 16  ;;  %v4827_v2 = vshll.u32 %v9722_v38, 16  ;;  %v17087_v49 = vsel %vm17084_vm5, %v17085_v61, %v17086_v46  ;;  %v17101_v30 = vld [vmem:[#allocation47_spill] sm:$0xff]  ;;  %v10667_v61 = vpop.f32.mrf.mxu0  ;;  %v17110_v10 = vld [vmem:[#allocation16_spill] sm:$0xff] }
 0x22a   : > { %vm14296_vm1 = vcmp.lt.s32.totalorder %v17087_v49, 16  ;;  %vm17092_vm7 = vnez %v17091_v33  ;;  %v17102_v38 = vsel %vm13353_vm14, %v17100_v4, %v17101_v30  ;;  %v17103_v20 = vmov 0 }
 0x22b   : > { %v17089_v42 = vsel %vm14296_vm1, 4294967295, %v17088_v42  ;;  %v17095_v25 = vsel %vm17092_vm7, %v17093_v41, %v17094_v57  ;;  %vm14314_vm6 = vcmp.lt.s32.totalorder %v17102_v38, 16  ;;  %v4846_v46 = vrot.slane %v4844_v35, 6  ;;  %v4370_v34 = vpop.f32.mrf.mxu0 }
 0x22c   : > { %17090 = vst [vmem:[#allocation29_spill] sm:$0xff] %v17089_v42  ;;  %vm14305_vm8 = vcmp.lt.s32.totalorder %v17095_v25, 16  ;;  %v17104_v20 = vsel %vm14314_vm6, 4294967295, %v17103_v20  ;;  %v4849_v49 = vrot.slane %v4847_v40, 7  ;;  %v9727_v33 = vpack.c.bf16 %v4674_v37, %v4674_v37 }
 0x22d   : > { %v17097_v24 = vsel %vm14305_vm8, 4294967295, %v17096_v24  ;;  %17105 = vst [vmem:[#allocation43_spill] sm:$0xff] %v17104_v20  ;;  %v4672_v41 = vsel %vm14251_vm0, %v4564_v58, 0.0  ;;  %vm17106_vm5 = vsmask.f32 5392  ;;  %v4822_v25 = vrot.slane %v4821_v39, 4 }
 0x22e   : > { %17098 = vst [vmem:[#allocation44_spill] sm:$0xff] %v17097_v24  ;;  %vm17107_vm7 = vsmask.f32 1280  ;;  %vm17111_vm14 = vnez %v17110_v10  ;;  %v4826_v30 = vrot.slane %v4824_v31, 6  ;;  %v4829_v38 = vrot.slane %v4827_v2, 7  ;;  %v17114_v10 = vld [vmem:[#allocation50_spill] sm:$0xff] }
 0x22f   : > { %vm14322_vm13 = vmor %vm17107_vm7, %vm17106_vm5  ;;  %v5211_v4 = vsel %vm17111_vm14, %v4821_v39, %v5210_v60  ;;  %v4850_v35 = vor.u32 %v4849_v49, %v4846_v46  ;;  %v4874_v40 = vshrl.u32 %v9727_v33, 16  ;;  %v4877_v37 = vshll.u32 %v9727_v33, 16  ;;  %v10668_v39 = vpop.f32.mrf.mxu0 }
 0x230   : > { %5212 = vst [vmem:[#allocation2 + $0x8] sm:$0xe] %v5211_v4  ;;  %v9725_v28 = vpack.c.bf16 %v4672_v41, %v4672_v41  ;;  %v4830_v44 = vor.u32 %v4829_v38, %v4826_v30  ;;  %v4488_v58 = vadd.f32 %v10664_v15, %v13668_v63  ;;  %v4491_v3 = vadd.f32 %v10667_v61, %v13706_v23  ;;  %v17119_v15 = vld [vmem:[#allocation8_spill] sm:$0xff]  ;;  %v17122_v61 = vld [vmem:[#allocation55_spill] sm:$0xff] }
 0x231   : > { %v17115_v60 = vsel %vm13369_vm3, %v17113_v16, %v17114_v10  ;;  %v17116_v2 = vmov 0  ;;  %v4851_v31 = vsel %vm14322_vm13, %v4842_v53, %v4850_v35  ;;  %v4852_v46 = vrot.slane %v4850_v35, 4  ;;  %v17121_v16 = vld [vmem:[#allocation60_spill] sm:$0xff]  ;;  %v4373_v53 = vpop.f32.mrf.mxu0 }
 0x232   : > { %vm14336_vm5 = vcmp.lt.s32.totalorder %v17115_v60, 16  ;;  %v4876_v49 = vrot.slane %v4874_v40, 6  ;;  %v4879_v63 = vrot.slane %v4877_v37, 7  ;;  %5215 = vst [vmem:[#allocation2 + $0x14] sm:$0xf] %v4851_v31  ;;  %v4831_v51 = vsel %vm14322_vm13, %v4822_v25, %v4830_v44  ;;  %v17127_v40 = vld [vmem:[#allocation13_spill] sm:$0xff] }
 0x233   : > { %v17117_v2 = vsel %vm14336_vm5, 4294967295, %v17116_v2  ;;  %v4832_v23 = vrot.slane %v4830_v44, 4  ;;  %v4854_v22 = vshrl.u32 %v9725_v28, 16  ;;  %v4857_v29 = vshll.u32 %v9725_v28, 16  ;;  %5213 = vst [vmem:[#allocation2 + $0xc] sm:$0xf] %v4831_v51  ;;  %v10671_v10 = vpop.f32.mrf.mxu0 }
 0x234   : > { %17118 = vst [vmem:[#allocation31_spill] sm:$0xff] %v17117_v2  ;;  %vm17120_vm3 = vnez %v17119_v15  ;;  %v17124_v41 = vmov 0  ;;  %v14353_v4 = vor.u32 %v4879_v63, %v4876_v49  ;;  %v4531_v30 = vadd.f32 %v14141_v5, %v4488_v58 }
 0x235   : > { %v17123_v33 = vsel %vm17120_vm3, %v17121_v16, %v17122_v61  ;;  %v4529_v25 = vadd.f32 %v14141_v5, %v4486_v13  ;;  %v4534_v44 = vadd.f32 %v14141_v5, %v4491_v3  ;;  %v4841_v28 = vsel %vm14322_vm13, %v4832_v23, %v4840_v14  ;;  %v17128_v13 = vld [vmem:[#allocation78_spill] sm:$0xff]  ;;  %v17129_v3 = vld [vmem:[#allocation81_spill] sm:$0xff]  ;;  %v14365_v61 = vpop.f32.mrf.mxu0 }
 0x236   : > { %vm14349_vm7 = vcmp.lt.s32.totalorder %v17123_v33, 16  ;;  %v4856_v38 = vrot.slane %v4854_v22, 6  ;;  %v4859_v35 = vrot.slane %v4857_v29, 7  ;;  %v4489_v37 = vadd.f32 %v4370_v34, %v17127_v40  ;;  %5214 = vst [vmem:[#allocation2 + $0x10] sm:$0xf] %v4841_v28  ;;  %v17130_v22 = vld [vmem:[#allocation62_spill] sm:$0xff] }
 0x237   : > { %v17125_v41 = vsel %vm14349_vm7, 4294967295, %v17124_v41  ;;  %v4882_v60 = vrot.slane %v14353_v4, 4  ;;  %v4567_v31 = vmax.f32 %v4531_v30, 0.0  ;;  %v4565_v49 = vmax.f32 %v4529_v25, 0.0  ;;  %v17132_v29 = vld [vmem:[#allocation61_spill] sm:$0xff]  ;;  %v17133_v33 = vld [vmem:[#allocation4_spill] sm:$0xff] }
 0x238   : > { %17126 = vst [vmem:[#allocation46_spill] sm:$0xff] %v17125_v41  ;;  %v4570_v63 = vmax.f32 %v4534_v44, 0.0  ;;  %v4860_v51 = vor.u32 %v4859_v35, %v4856_v38  ;;  %v4532_v58 = vadd.f32 %v14141_v5, %v4489_v37  ;;  %v4492_v15 = vadd.f32 %v10668_v39, %v17128_v13  ;;  %v14385_v35 = vpop.f32.mrf.mxu0  ;;  %v17140_v13 = vld [vmem:[#allocation63_spill] sm:$0xff] }
 0x239   : > { %v4490_v16 = vadd.f32 %v4373_v53, %v17129_v3  ;;  %v4675_v14 = vsel %vm14296_vm1, %v4567_v31, 0.0  ;;  %v4673_v34 = vsel %vm14305_vm8, %v4565_v49, 0.0  ;;  %vm17131_vm14 = vnez %v17130_v22  ;;  %v17141_v3 = vld [vmem:[#allocation56_spill] sm:$0xff] }
 0x23a   : > { %v4678_v23 = vsel %vm14314_vm6, %v4570_v63, 0.0  ;;  %v17134_v30 = vsel %vm17131_vm14, %v17132_v29, %v17133_v33  ;;  %v17135_v39 = vmov 0  ;;  %v4495_v53 = vadd.f32 %v10671_v10, %v13849_v50  ;;  %v17138_v63 = vld [vmem:[#allocation10_spill] sm:$0xff]  ;;  %v14400_v29 = vld [vmem:[#allocation2 + $0x8] sm:$0xff]   ;;  %v11414_v33 = vld [vmem:[%s16535_s1 + $0x330] sm:$0xff]  }
 0x23b   : > { %vm14378_vm3 = vcmp.lt.s32.totalorder %v17134_v30, 16  ;;  %v4861_v25 = vsel %vm14322_vm13, %v4852_v46, %v4860_v51  ;;  %v4862_v44 = vrot.slane %v4860_v51, 4  ;;  %v9728_v28 = vpack.c.bf16 %v4675_v14, %v4675_v14  ;;  %10762 = vmatmul.mubr.bf16.vlgmr.msra.gmra.mxu0 %v14400_v29 }
 0x23c   : > { %v17136_v39 = vsel %vm14378_vm3, 4294967295, %v17135_v39  ;;  %v9726_v38 = vpack.c.bf16 %v4673_v34, %v4673_v34  ;;  %5216 = vst [vmem:[#allocation2 + $0x18] sm:$0xf] %v4861_v25  ;;  %v9731_v40 = vpack.c.bf16 %v4678_v23, %v4678_v23  ;;  %v4568_v37 = vmax.f32 %v4532_v58, 0.0  ;;  %10850 = vmatpush3.bf16.msra.mxu0 %v14169_v7 }
 0x23d   : > { %17137 = vst [vmem:[#allocation45_spill] sm:$0xff] %v17136_v39  ;;  %v4535_v31 = vadd.f32 %v14141_v5, %v4492_v15  ;;  %v4533_v49 = vadd.f32 %v14141_v5, %v4490_v16  ;;  %vm17139_vm14 = vnez %v17138_v63  ;;  %v17143_v10 = vmov 0  ;;  %v4389_v16 = vpop.f32.mrf.mxu0  ;;  %10851 = vmatprep.subr.bf16.mxu0 %v11414_v33 }
 0x23e   : > { %v17142_v50 = vsel %vm17139_vm14, %v17140_v13, %v17141_v3  ;;  %v4884_v46 = vshrl.u32 %v9728_v28, 16  ;;  %v4887_v51 = vshll.u32 %v9728_v28, 16  ;;  %v4864_v14 = vshrl.u32 %v9726_v38, 16 }
 0x23f   : > { %vm14394_vm6 = vcmp.lt.s32.totalorder %v17142_v50, 16  ;;  %v4867_v34 = vshll.u32 %v9726_v38, 16  ;;  %v4914_v22 = vshrl.u32 %v9731_v40, 16  ;;  %v4917_v23 = vshll.u32 %v9731_v40, 16 }
 0x240   : > { %v17144_v10 = vsel %vm14394_vm6, 4294967295, %v17143_v10  ;;  %v4676_v58 = vsel %vm14336_vm5, %v4568_v37, 0.0  ;;  %v4571_v15 = vmax.f32 %v4535_v31, 0.0  ;;  %v4886_v30 = vrot.slane %v4884_v46, 6  ;;  %v14408_v37 = vld [vmem:[#allocation2 + $0x10] sm:$0xff]   ;;  %10852 = vmatpush3.bf16.msra.mxu0 %v11414_v33 }
 0x241   : > { %17145 = vst [vmem:[#allocation35_spill] sm:$0xff] %v17144_v10  ;;  %v4889_v25 = vrot.slane %v4887_v51, 7  ;;  %v4866_v63 = vrot.slane %v4864_v14, 6  ;;  %v4869_v13 = vrot.slane %v4867_v34, 7  ;;  %v4916_v28 = vrot.slane %v4914_v22, 6  ;;  %v10675_v22 = vpop.f32.mrf.mxu0  ;;  %10765 = vmatprep.mubr.bf16.mxu0 %v14408_v37 }
 0x242   : > { %v4919_v3 = vrot.slane %v4917_v23, 7  ;;  %v9729_v38 = vpack.c.bf16 %v4676_v58, %v4676_v58  ;;  %v4679_v40 = vsel %vm14349_vm7, %v4571_v15, 0.0  ;;  %v4569_v20 = vmax.f32 %v4533_v49, 0.0  ;;  %v11416_v23 = vld [vmem:[%s16535_s1 + $0x328] sm:$0xff]  }
 0x243   : > { %v4890_v31 = vor.u32 %v4889_v25, %v4886_v30  ;;  %v4870_v50 = vor.u32 %v4869_v13, %v4866_v63  ;;  %v9732_v2 = vpack.c.bf16 %v4679_v40, %v4679_v40  ;;  %v4538_v34 = vadd.f32 %v14141_v5, %v4495_v53  ;;  %v17146_v30 = vld [vmem:[#allocation65_spill] sm:$0xff]  ;;  %v17148_v25 = vld [vmem:[#allocation64_spill] sm:$0xff]  ;;  %v17149_v53 = vld [vmem:[#allocation3_spill] sm:$0xff]  ;;  %10853 = vmatprep.subr.bf16.mxu0 %v11416_v23 }
 0x244   : > { %v14411_v46 = vor.u32 %v4919_v3, %v4916_v28  ;;  %v4894_v51 = vshrl.u32 %v9729_v38, 16  ;;  %v4897_v14 = vshll.u32 %v9729_v38, 16  ;;  %vm17147_vm14 = vnez %v17146_v30  ;;  %v17154_v28 = vld [vmem:[#allocation11_spill] sm:$0xff]  ;;  %v17156_v3 = vld [vmem:[#allocation66_spill] sm:$0xff]  ;;  %v17157_v38 = vld [vmem:[#allocation57_spill] sm:$0xff]  ;;  %10854 = vmatpush3.bf16.msra.mxu0 %v11416_v23 }
 0x245   : > { %v4891_v58 = vsel %vm14322_vm13, %v4882_v60, %v4890_v31  ;;  %v4892_v49 = vrot.slane %v4890_v31, 4  ;;  %v4871_v7 = vsel %vm14322_vm13, %v4862_v44, %v4870_v50  ;;  %v4872_v15 = vrot.slane %v4870_v50, 4 }
 0x246   : > { %v17150_v63 = vsel %vm17147_vm14, %v17148_v25, %v17149_v53  ;;  %v17151_v13 = vmov 0  ;;  %vm17155_vm5 = vnez %v17154_v28  ;;  %v17159_v60 = vmov 0  ;;  %5219 = vst [vmem:[#allocation2 + $0x24] sm:$0xf] %v4891_v58  ;;  %5217 = vst [vmem:[#allocation2 + $0x1c] sm:$0xf] %v4871_v7 }
 0x247   : > { %vm14427_vm7 = vcmp.lt.s32.totalorder %v17150_v63, 16  ;;  %v17158_v40 = vsel %vm17155_vm5, %v17156_v3, %v17157_v38  ;;  %v4922_v44 = vrot.slane %v14411_v46, 4  ;;  %v4896_v31 = vrot.slane %v4894_v51, 6  ;;  %v17162_v25 = vld [vmem:[#allocation12_spill] sm:$0xff]  ;;  %v17164_v53 = vld [vmem:[#allocation6_spill] sm:$0xff]  ;;  %v17165_v63 = vld [vmem:[#allocation67_spill] sm:$0xff] }
 0x248   : > { %v17152_v13 = vsel %vm14427_vm7, 4294967295, %v17151_v13  ;;  %vm14436_vm8 = vcmp.lt.s32.totalorder %v17158_v40, 16  ;;  %v4899_v50 = vrot.slane %v4897_v14, 7  ;;  %v4924_v30 = vshrl.u32 %v9732_v2, 16 }
 0x249   : > { %17153 = vst [vmem:[#allocation58_spill] sm:$0xff] %v17152_v13  ;;  %v17160_v60 = vsel %vm14436_vm8, 4294967295, %v17159_v60  ;;  %vm17163_vm14 = vnez %v17162_v25  ;;  %v17167_v28 = vmov 0  ;;  %v4881_v3 = vsel %vm14322_vm13, %v4872_v15, %v14353_v4  ;;  %v4402_v25 = vpop.f32.mrf.mxu0  ;;  %v17172_v15 = vld [vmem:[#allocation15_spill] sm:$0xff] }
 0x24a   : > { %17161 = vst [vmem:[#allocation53_spill] sm:$0xff] %v17160_v60  ;;  %v17166_v41 = vsel %vm17163_vm14, %v17164_v53, %v17165_v63  ;;  %v4927_v58 = vshll.u32 %v9732_v2, 16  ;;  %v4677_v7 = vsel %vm14378_vm3, %v4569_v20, 0.0  ;;  %v4574_v51 = vmax.f32 %v4538_v34, 0.0  ;;  %5218 = vst [vmem:[#allocation2 + $0x20] sm:$0xf] %v4881_v3 }
 0x24b   : > { %vm14446_vm1 = vcmp.lt.s32.totalorder %v17166_v41, 16  ;;  %v4900_v14 = vor.u32 %v4899_v50, %v4896_v31  ;;  %v4926_v38 = vrot.slane %v4924_v30, 6  ;;  %v9730_v40 = vpack.c.bf16 %v4677_v7, %v4677_v7  ;;  %v11419_v53 = vld [vmem:[%s16535_s1 + $0x320] sm:$0xff]   ;;  %v17173_v31 = vld [vmem:[#allocation5_spill] sm:$0xff] }
 0x24c   : > { %v17168_v28 = vsel %vm14446_vm1, 4294967295, %v17167_v28  ;;  %v4493_v41 = vadd.f32 %v14365_v61, %v13853_v62  ;;  %v4929_v4 = vrot.slane %v4927_v58, 7  ;;  %v4682_v2 = vsel %vm14394_vm6, %v4574_v51, 0.0  ;;  %v17170_v34 = vld [vmem:[#allocation7_spill] sm:$0xff]  ;;  %10855 = vmatprep.subr.bf16.mxu0 %v11419_v53 }
 0x24d   : > { %17169 = vst [vmem:[#allocation47_spill] sm:$0xff] %v17168_v28  ;;  %v4496_v20 = vadd.f32 %v14385_v35, %v13857_v32  ;;  %v4494_v33 = vadd.f32 %v4389_v16, %v13869_v56  ;;  %vm17171_vm5 = vnez %v17170_v34  ;;  %v17175_v61 = vmov 0  ;;  %10856 = vmatpush3.bf16.msra.mxu0 %v11419_v53 }
 0x24e   : > { %v17174_v62 = vsel %vm17171_vm5, %v17172_v15, %v17173_v31  ;;  %v4901_v50 = vsel %vm14322_vm13, %v4892_v49, %v4900_v14  ;;  %v4902_v30 = vrot.slane %v4900_v14, 4  ;;  %v4904_v63 = vshrl.u32 %v9730_v40, 16  ;;  %v14482_v15 = vpop.f32.mrf.mxu0  ;;  %v11421_v49 = vld [vmem:[%s16535_s1 + $0x318] sm:$0xff]  }
 0x24f   : > { %vm14470_vm14 = vcmp.lt.s32.totalorder %v17174_v62, 16  ;;  %v4907_v3 = vshll.u32 %v9730_v40, 16  ;;  %5220 = vst [vmem:[#allocation2 + $0x28] sm:$0xf] %v4901_v50  ;;  %v14476_v58 = vor.u32 %v4929_v4, %v4926_v38  ;;  %v9735_v32 = vpack.c.bf16 %v4682_v2, %v4682_v2  ;;  %v17180_v4 = vld [vmem:[#allocation72_spill] sm:$0xff]  ;;  %10857 = vmatprep.subr.bf16.mxu0 %v11421_v49 }
 0x250   : > { %v17176_v61 = vsel %vm14470_vm14, 4294967295, %v17175_v61  ;;  %v4536_v56 = vadd.f32 %v14141_v5, %v4493_v41  ;;  %v4539_v35 = vadd.f32 %v14141_v5, %v4496_v20  ;;  %v4906_v16 = vrot.slane %v4904_v63, 6  ;;  %v17178_v41 = vld [vmem:[#allocation73_spill] sm:$0xff]  ;;  %v17181_v2 = vld [vmem:[#allocation68_spill] sm:$0xff] }
 0x251   : > { %17177 = vst [vmem:[#allocation16_spill] sm:$0xff] %v17176_v61  ;;  %v4909_v7 = vrot.slane %v4907_v3, 7  ;;  %v4537_v51 = vadd.f32 %v14141_v5, %v4494_v33  ;;  %v4499_v34 = vadd.f32 %v10675_v22, %v13881_v8  ;;  %v4931_v14 = vsel %vm14322_vm13, %v4922_v44, %v14476_v58  ;;  %v14500_v20 = vld [vmem:[#allocation2 + $0x18] sm:$0xff]   ;;  %10858 = vmatpush3.bf16.msra.mxu0 %v11421_v49 }
 0x252   : > { %v4954_v23 = vshrl.u32 %v9735_v32, 16  ;;  %v4957_v40 = vshll.u32 %v9735_v32, 16  ;;  %vm17179_vm5 = vnez %v17178_v41  ;;  %v17183_v22 = vmov 0  ;;  %5223 = vst [vmem:[#allocation2 + $0x34] sm:$0xf] %v4931_v14  ;;  %10766 = vmatmul.mubr.bf16.gmra.mxu0 %v14500_v20  ;;  %v14505_v41 = vld [vmem:[#allocation2 + $0x20] sm:$0xff]  }
 0x253   : > { %v17182_v8 = vsel %vm17179_vm5, %v17180_v4, %v17181_v2  ;;  %v4910_v33 = vor.u32 %v4909_v7, %v4906_v16  ;;  %v4572_v31 = vmax.f32 %v4536_v56, 0.0  ;;  %v4575_v62 = vmax.f32 %v4539_v35, 0.0  ;;  %v4405_v35 = vpop.f32.mrf.mxu0  ;;  %10769 = vmatprep.mubr.bf16.mxu0 %v14505_v41 }
 0x254   : > { %vm14496_vm6 = vcmp.lt.s32.totalorder %v17182_v8, 16  ;;  %v4573_v44 = vmax.f32 %v4537_v51, 0.0  ;;  %v4956_v50 = vrot.slane %v4954_v23, 6  ;;  %v4959_v63 = vrot.slane %v4957_v40, 7 }
 0x255   : > { %v17184_v22 = vsel %vm14496_vm6, 4294967295, %v17183_v22  ;;  %v4542_v3 = vadd.f32 %v14141_v5, %v4499_v34  ;;  %v4497_v32 = vadd.f32 %v4402_v25, %v13892_v45  ;;  %v4911_v4 = vsel %vm14322_vm13, %v4902_v30, %v4910_v33  ;;  %v11423_v30 = vld [vmem:[%s16535_s1 + $0x310] sm:$0xff]  }
 0x256   : > { %17185 = vst [vmem:[#allocation59_spill] sm:$0xff] %v17184_v22  ;;  %v4912_v2 = vrot.slane %v4910_v33, 4  ;;  %v4680_v16 = vsel %vm14427_vm7, %v4572_v31, 0.0  ;;  %v4683_v56 = vsel %vm14436_vm8, %v4575_v62, 0.0  ;;  %5221 = vst [vmem:[#allocation2 + $0x2c] sm:$0xf] %v4911_v4  ;;  %v14513_v7 = vor.u32 %v4959_v63, %v4956_v50  ;;  %10859 = vmatprep.subr.bf16.mxu0 %v11423_v30 }
 0x257   : > { %v9733_v45 = vpack.c.bf16 %v4680_v16, %v4680_v16  ;;  %v9736_v25 = vpack.c.bf16 %v4683_v56, %v4683_v56  ;;  %v4681_v51 = vsel %vm14446_vm1, %v4573_v44, 0.0  ;;  %v4578_v14 = vmax.f32 %v4542_v3, 0.0  ;;  %v17186_v4 = vld [vmem:[#allocation9_spill] sm:$0xff]  ;;  %v17188_v16 = vld [vmem:[#allocation74_spill] sm:$0xff]  ;;  %v17196_v56 = vld [vmem:[#allocation75_spill] sm:$0xff]  ;;  %10860 = vmatpush3.bf16.msra.mxu0 %v11423_v30 }
 0x258   : > { %v4921_v34 = vsel %vm14322_vm13, %v4912_v2, %v14411_v46  ;;  %v9734_v53 = vpack.c.bf16 %v4681_v51, %v4681_v51  ;;  %v4540_v23 = vadd.f32 %v14141_v5, %v4497_v32  ;;  %v4962_v40 = vrot.slane %v14513_v7, 4  ;;  %v17189_v46 = vld [vmem:[#allocation69_spill] sm:$0xff]  ;;  %v17194_v32 = vld [vmem:[#allocation76_spill] sm:$0xff] }
 0x259   : > { %5222 = vst [vmem:[#allocation2 + $0x30] sm:$0xf] %v4921_v34  ;;  %v4934_v8 = vshrl.u32 %v9733_v45, 16  ;;  %v4937_v33 = vshll.u32 %v9733_v45, 16  ;;  %v4964_v31 = vshrl.u32 %v9736_v25, 16  ;;  %v4967_v62 = vshll.u32 %v9736_v25, 16  ;;  %v10679_v34 = vpop.f32.mrf.mxu0 }
 0x25a   : > { %v4944_v44 = vshrl.u32 %v9734_v53, 16  ;;  %v4947_v50 = vshll.u32 %v9734_v53, 16  ;;  %v4686_v63 = vsel %vm14470_vm14, %v4578_v14, 0.0  ;;  %vm17187_vm5 = vnez %v17186_v4  ;;  %v17197_v45 = vld [vmem:[#allocation71_spill] sm:$0xff] }
 0x25b   : > { %v17190_v2 = vsel %vm17187_vm5, %v17188_v16, %v17189_v46  ;;  %v17191_v3 = vmov 0  ;;  %vm17195_vm8 = vnez %v17194_v32  ;;  %v17199_v25 = vmov 0  ;;  %v11426_v16 = vld [vmem:[%s16535_s1 + $0x308] sm:$0xff]  }
 0x25c   : > { %vm14533_vm1 = vcmp.lt.s32.totalorder %v17190_v2, 16  ;;  %v17198_v51 = vsel %vm17195_vm8, %v17196_v56, %v17197_v45  ;;  %v4936_v53 = vrot.slane %v4934_v8, 6  ;;  %v4939_v14 = vrot.slane %v4937_v33, 7  ;;  %10861 = vmatprep.subr.bf16.mxu0 %v11426_v16 }
 0x25d   : > { %v17192_v3 = vsel %vm14533_vm1, 4294967295, %v17191_v3  ;;  %vm14542_vm7 = vcmp.lt.s32.totalorder %v17198_v51, 16  ;;  %v4966_v4 = vrot.slane %v4964_v31, 6  ;;  %v9739_v38 = vpack.c.bf16 %v4686_v63, %v4686_v63  ;;  %v4418_v63 = vpop.f32.mrf.mxu0  ;;  %v14556_v60 = vld [vmem:[#allocation2 + $0x28] sm:$0xff]   ;;  %10862 = vmatpush3.bf16.msra.mxu0 %v11426_v16 }
 0x25e   : > { %17193 = vst [vmem:[#allocation54_spill] sm:$0xff] %v17192_v3  ;;  %v17200_v25 = vsel %vm14542_vm7, 4294967295, %v17199_v25  ;;  %v4969_v46 = vrot.slane %v4967_v62, 7  ;;  %v4946_v2 = vrot.slane %v4944_v44, 6  ;;  %v4949_v32 = vrot.slane %v4947_v50, 7  ;;  %10770 = vmatmul.mubr.bf16.gmra.mxu0 %v14556_v60  ;;  %v15010_v57 = vld [vmem:[#allocation2 + $0x28] sm:$0xff]  }
 0x25f   : > { %17201 = vst [vmem:[#allocation50_spill] sm:$0xff] %v17200_v25  ;;  %v4576_v61 = vmax.f32 %v4540_v23, 0.0  ;;  %v4940_v56 = vor.u32 %v4939_v14, %v4936_v53  ;;  %v4994_v45 = vshrl.u32 %v9739_v38, 16  ;;  %v4997_v51 = vshll.u32 %v9739_v38, 16 }
 0x260   : > { %v4500_v28 = vadd.f32 %v14482_v15, %v13905_v18  ;;  %v14551_v49 = vor.u32 %v4969_v46, %v4966_v4  ;;  %v4950_v8 = vor.u32 %v4949_v32, %v4946_v2  ;;  %v4498_v31 = vadd.f32 %v4405_v35, %v13907_v26  ;;  %v11429_v15 = vld [vmem:[%s16535_s1 + $0x300] sm:$0xff]   ;;  %v14579_v53 = vld [vmem:[#allocation2 + $0x30] sm:$0xff]  }
 0x261   : > { %v4684_v33 = vsel %vm14496_vm6, %v4576_v61, 0.0  ;;  %v17202_v23 = vrot.slane %v14476_v58, 4  ;;  %v4942_v62 = vrot.slane %v4940_v56, 4  ;;  %v4996_v44 = vrot.slane %v4994_v45, 6  ;;  %10773 = vmatprep.mubr.bf16.mxu0 %v14579_v53  ;;  %10863 = vmatprep.subr.bf16.mxu0 %v11429_v15 }
 0x262   : > { %v4999_v18 = vrot.slane %v4997_v51, 7  ;;  %v4971_v26 = vsel %vm14322_vm13, %v4962_v40, %v14551_v49  ;;  %v4972_v61 = vrot.slane %v14551_v49, 4  ;;  %v4952_v35 = vrot.slane %v4950_v8, 4  ;;  %10864 = vmatpush3.bf16.msra.mxu0 %v11429_v15  ;;  %v17225_v15 = vld [vmem:[#allocation84_spill] sm:$0xff] }
 0x263   : > { %v4941_v38 = vsel %vm14322_vm13, %v17202_v23, %v4940_v56  ;;  %v9737_v58 = vpack.c.bf16 %v4684_v33, %v4684_v33  ;;  %v17203_v30 = vsel %vm13810_vm15, %v13756_v36, %v13699_v17  ;;  %v17204_v50 = vmov 0  ;;  %5227 = vst [vmem:[#allocation2 + $0x44] sm:$0xf] %v4971_v26  ;;  %v10680_v56 = vpop.f32.mrf.mxu0  ;;  %v17212_v23 = vld [vmem:[#allocation33_spill] sm:$0xff] }
 0x264   : > { %5224 = vst [vmem:[#allocation2 + $0x38] sm:$0xf] %v4941_v38  ;;  %vm14574_vm8 = vcmp.lt.s32.totalorder %v17203_v30, 16  ;;  %v4951_v40 = vsel %vm14322_vm13, %v4942_v62, %v4950_v8  ;;  %v14583_v14 = vor.u32 %v4999_v18, %v4996_v44  ;;  %v4543_v4 = vadd.f32 %v14141_v5, %v4500_v28 }
 0x265   : > { %v17205_v50 = vsel %vm14574_vm8, 4294967295, %v17204_v50  ;;  %v4541_v9 = vadd.f32 %v14141_v5, %v4498_v31  ;;  %vm17207_vm15 = vnez %v16957_v59  ;;  %v17209_v36 = vmov 0  ;;  %5225 = vst [vmem:[#allocation2 + $0x3c] sm:$0xf] %v4951_v40  ;;  %v17215_v40 = vld [vmem:[#allocation82_spill] sm:$0xff] }
 0x266   : > { %17206 = vst [vmem:[#allocation8_spill] sm:$0xff] %v17205_v50  ;;  %v17208_v17 = vsel %vm17207_vm15, %v13772_v48, %v13736_v0  ;;  %v4961_v46 = vsel %vm14322_vm13, %v4952_v35, %v14513_v7  ;;  %v4974_v2 = vshrl.u32 %v9737_v58, 16  ;;  %v4977_v32 = vshll.u32 %v9737_v58, 16  ;;  %v4421_v35 = vpop.f32.mrf.mxu0 }
 0x267   : > { %vm14592_vm5 = vcmp.lt.s32.totalorder %v17208_v17, 16  ;;  %v5423_v28 = vshll.u32 %v14400_v29, 16  ;;  %5226 = vst [vmem:[#allocation2 + $0x40] sm:$0xf] %v4961_v46  ;;  %v5002_v48 = vrot.slane %v14583_v14, 4  ;;  %v4579_v0 = vmax.f32 %v4543_v4, 0.0 }
 0x268   : > { %v17210_v36 = vsel %vm14592_vm5, 4294967295, %v17209_v36  ;;  %v4577_v59 = vmax.f32 %v4541_v9, 0.0  ;;  %v5427_v45 = vshrl.u32 %v14400_v29, 16  ;;  %v4976_v51 = vrot.slane %v4974_v2, 6  ;;  %v17213_v29 = vld [vmem:[#allocation77_spill] sm:$0xff]  ;;  %v17217_v4 = vld [vmem:[#allocation83_spill] sm:$0xff] }
 0x269   : > { %17211 = vst [vmem:[#allocation60_spill] sm:$0xff] %v17210_v36  ;;  %v4979_v49 = vrot.slane %v4977_v32, 7  ;;  %v5425_v7 = vrot.slane %v5423_v28, 1  ;;  %v4503_v8 = vadd.f32 %v10679_v34, %v13947_v19  ;;  %v4687_v33 = vsel %vm14533_vm1, %v4579_v0, 0.0  ;;  %v17223_v46 = vld [vmem:[#allocation85_spill] sm:$0xff]  ;;  %v17226_v2 = vld [vmem:[#allocation80_spill] sm:$0xff] }
 0x26a   : > { %v4685_v31 = vsel %vm14542_vm7, %v4577_v59, 0.0  ;;  %v5431_v16 = vshll.u32 %v14408_v37, 16  ;;  %v4501_v38 = vadd.f32 %v4418_v63, %v17212_v23  ;;  %v9740_v44 = vpack.c.bf16 %v4687_v33, %v4687_v33  ;;  %v17218_v63 = vld [vmem:[#allocation79_spill] sm:$0xff] }
 0x26b   : > { %v4980_v62 = vor.u32 %v4979_v49, %v4976_v51  ;;  %v9738_v18 = vpack.c.bf16 %v4685_v31, %v4685_v31  ;;  %vm17214_vm15 = vsmask.f32 7424  ;;  %v5429_v58 = vor.u32 %v5427_v45, %v5425_v7  ;;  %v11402_v49 = vld [vmem:[%s16535_s1 + $0x2f0] sm:$0xff]  }
 0x26c   : > { %v5426_v26 = vsel %vm17214_vm15, %v17213_v29, %v5425_v7  ;;  %v4546_v19 = vadd.f32 %v14141_v5, %v4503_v8  ;;  %v14613_v34 = vrot.slane %v5431_v16, 1  ;;  %v4544_v30 = vadd.f32 %v14141_v5, %v4501_v38  ;;  %v14641_v16 = vld [vmem:[#allocation2 + $0x38] sm:$0xff]  }
 0x26d   : > { %10709 = vmatprep.mubr.bf16.mxu1 %v5426_v26  ;;  %vm17216_vm7 = vnez %v17215_v40  ;;  %v17220_v17 = vmov 0  ;;  %vm17224_vm15 = vnez %v17223_v46  ;;  %v17228_v28 = vmov 0  ;;  %10774 = vmatmul.mubr.bf16.gmra.mxu0 %v14641_v16  ;;  %v11405_v46 = vld [vmem:[%s16535_s1 + $0x2e8] sm:$0xff]  }
 0x26e   : > { %v17219_v9 = vsel %vm17216_vm7, %v17217_v4, %v17218_v63  ;;  %v17227_v32 = vsel %vm17224_vm15, %v17225_v15, %v17226_v2  ;;  %v4981_v0 = vsel %vm14322_vm13, %v4972_v61, %v4980_v62  ;;  %v4982_v59 = vrot.slane %v4980_v62, 4  ;;  %v17232_v62 = vld [vmem:[#allocation49_spill] sm:$0xff]  ;;  %v14644_v26 = vld [vmem:[#allocation2 + $0x40] sm:$0xff]  }
 0x26f   : > { %vm14621_vm1 = vcmp.lt.s32.totalorder %v17219_v9, 16  ;;  %vm14630_vm6 = vcmp.lt.s32.totalorder %v17227_v32, 16  ;;  %v5004_v45 = vshrl.u32 %v9740_v44, 16  ;;  %v5007_v51 = vshll.u32 %v9740_v44, 16  ;;  %5228 = vst [vmem:[#allocation2 + $0x48] sm:$0xf] %v4981_v0  ;;  %v10683_v44 = vpop.f32.mrf.mxu0  ;;  %10777 = vmatprep.mubr.bf16.mxu0 %v14644_v26 }
 0x270   : > { %v17221_v17 = vsel %vm14621_vm1, 4294967295, %v17220_v17  ;;  %v17229_v28 = vsel %vm14630_vm6, 4294967295, %v17228_v28  ;;  %v4984_v7 = vshrl.u32 %v9738_v18, 16  ;;  %v4987_v8 = vshll.u32 %v9738_v18, 16 }
 0x271   : > { %17222 = vst [vmem:[#allocation55_spill] sm:$0xff] %v17221_v17  ;;  %17230 = vst [vmem:[#allocation13_spill] sm:$0xff] %v17229_v28  ;;  %v4582_v33 = vmax.f32 %v4546_v19, 0.0  ;;  %vm17231_vm7 = vsmask.f32 7424  ;;  %v5006_v23 = vrot.slane %v5004_v45, 6  ;;  %v4504_v29 = vadd.f32 %v10680_v56, %v17232_v62 }
 0x272   : > { %v5434_v31 = vsel %vm17231_vm7, %v5429_v58, %v14613_v34  ;;  %v5009_v38 = vrot.slane %v5007_v51, 7  ;;  %v4580_v61 = vmax.f32 %v4544_v30, 0.0  ;;  %v4986_v40 = vrot.slane %v4984_v7, 6  ;;  %v11512_v58 = vld [vmem:[%s16535_s1 + $0x2f8] sm:$0xff]   ;;  %v4434_v7 = vpop.f32.mrf.mxu0  ;;  %v11409_v62 = vld [vmem:[%s16535_s1 + $0x2e0] sm:$0xff]  }
 0x273   : > { %10710 = vmatmul.mubr.bf16.vlgmr.msra.gmra.mxu1 %v5434_v31  ;;  %v4989_v4 = vrot.slane %v4987_v8, 7  ;;  %v4690_v18 = vsel %vm14574_vm8, %v4582_v33, 0.0  ;;  %v4502_v19 = vadd.f32 %v4421_v35, %v13979_v1  ;;  %v4547_v9 = vadd.f32 %v14141_v5, %v4504_v29  ;;  %v14669_v8 = vld [vmem:[%s16535_s1 + $0x3b8] sm:$0xff]  }
 0x274   : > { %10798 = vmatpush3.bf16.msra.mxu1 %v11512_v58  ;;  %v5010_v30 = vor.u32 %v5009_v38, %v5006_v23  ;;  %v9743_v63 = vpack.c.bf16 %v4690_v18, %v4690_v18  ;;  %v4688_v56 = vsel %vm14592_vm5, %v4580_v61, 0.0  ;;  %v5435_v35 = vshrl.u32 %v14408_v37, 16  ;;  %10953 = vmatprep.subr.bf16.mxu0 %v14669_v8 }
 0x275   : > { %10799 = vmatprep.subr.bf16.mxu1 %v11402_v49  ;;  %v4990_v15 = vor.u32 %v4989_v4, %v4986_v40  ;;  %v9741_v2 = vpack.c.bf16 %v4688_v56, %v4688_v56  ;;  %v4545_v1 = vadd.f32 %v14141_v5, %v4502_v19  ;;  %vm17233_vm15 = vnez %v16977_v43  ;;  %v10684_v56 = vpop.f32.mrf.mxu0 }
 0x276   : > { %v5011_v32 = vsel %vm14322_vm13, %v5002_v48, %v5010_v30  ;;  %v5012_v0 = vrot.slane %v5010_v30, 4  ;;  %v5034_v45 = vshrl.u32 %v9743_v63, 16  ;;  %v5037_v51 = vshll.u32 %v9743_v63, 16  ;;  %v17234_v48 = vld [vmem:[#allocation86_spill] sm:$0xff] }
 0x277   : > { %5231 = vst [vmem:[#allocation2 + $0x54] sm:$0xf] %v5011_v32  ;;  %v4991_v33 = vsel %vm14322_vm13, %v4982_v59, %v4990_v15  ;;  %v4992_v31 = vrot.slane %v4990_v15, 4  ;;  %v5014_v37 = vshrl.u32 %v9741_v2, 16  ;;  %v5017_v23 = vshll.u32 %v9741_v2, 16  ;;  %v17240_v32 = vld [vmem:[#allocation88_spill] sm:$0xff] }
 0x278   : > { %v17235_v38 = vsel %vm17233_vm15, %v13926_v21, %v17234_v48  ;;  %v17236_v61 = vmov 0  ;;  %10800 = vmatpush3.bf16.msra.mxu1 %v11402_v49  ;;  %5229 = vst [vmem:[#allocation2 + $0x4c] sm:$0xf] %v4991_v33  ;;  %v5036_v29 = vrot.slane %v5034_v45, 6  ;;  %v5039_v59 = vrot.slane %v5037_v51, 7  ;;  %v17248_v48 = vld [vmem:[#allocation91_spill] sm:$0xff] }
 0x279   : > { %vm14678_vm7 = vcmp.lt.s32.totalorder %v17235_v38, 16  ;;  %v4583_v40 = vmax.f32 %v4547_v9, 0.0  ;;  %v4581_v4 = vmax.f32 %v4545_v1, 0.0  ;;  %10801 = vmatprep.subr.bf16.mxu1 %v11405_v46  ;;  %v5001_v21 = vsel %vm14322_vm13, %v4992_v31, %v14583_v14  ;;  %v17239_v14 = vld [vmem:[#allocation90_spill] sm:$0xff]  ;;  %v17251_v38 = vld [vmem:[#allocation27_spill] sm:$0xff] }
 0x27a   : > { %v17237_v61 = vsel %vm14678_vm7, 4294967295, %v17236_v61  ;;  %v5016_v43 = vrot.slane %v5014_v37, 6  ;;  %v5019_v18 = vrot.slane %v5017_v23, 7  ;;  %v5437_v49 = vor.u32 %v5435_v35, %v14613_v34  ;;  %5230 = vst [vmem:[#allocation2 + $0x50] sm:$0xf] %v5001_v21  ;;  %v17242_v34 = vld [vmem:[#allocation30_spill] sm:$0xff] }
 0x27b   : > { %17238 = vst [vmem:[#allocation78_spill] sm:$0xff] %v17237_v61  ;;  %v14690_v58 = vor.u32 %v5039_v59, %v5036_v29  ;;  %v4691_v19 = vsel %vm14621_vm1, %v4583_v40, 0.0  ;;  %v4689_v30 = vsel %vm14630_vm6, %v4581_v4, 0.0  ;;  %v5439_v63 = vshll.u32 %v14500_v20, 16  ;;  %v17243_v35 = vld [vmem:[#allocation87_spill] sm:$0xff] }
 0x27c   : > { %v5020_v9 = vor.u32 %v5019_v18, %v5016_v43  ;;  %v9744_v15 = vpack.c.bf16 %v4691_v19, %v4691_v19  ;;  %v9742_v2 = vpack.c.bf16 %v4689_v30, %v4689_v30  ;;  %v4507_v1 = vadd.f32 %v10683_v44, %v17239_v14  ;;  %10802 = vmatpush3.bf16.msra.mxu1 %v11405_v46  ;;  %v17250_v44 = vld [vmem:[#allocation38_spill] sm:$0xff]  ;;  %v17257_v43 = vld [vmem:[#allocation41_spill] sm:$0xff] }
 0x27d   : > { %vm17241_vm15 = vnez %v17240_v32  ;;  %v17245_v51 = vmov 0  ;;  %v5042_v33 = vrot.slane %v14690_v58, 4  ;;  %v5441_v31 = vrot.slane %v5439_v63, 1  ;;  %10803 = vmatprep.subr.bf16.mxu1 %v11409_v62  ;;  %v11413_v46 = vld [vmem:[%s16535_s1 + $0x2d8] sm:$0xff]  }
 0x27e   : > { %v17244_v45 = vsel %vm17241_vm15, %v17242_v34, %v17243_v35  ;;  %v5443_v37 = vshrl.u32 %v14500_v20, 16  ;;  %v5447_v23 = vshll.u32 %v14505_v41, 16  ;;  %vm17249_vm6 = vnez %v17248_v48  ;;  %v17258_v18 = vld [vmem:[#allocation89_spill] sm:$0xff] }
 0x27f   : > { %vm14703_vm5 = vcmp.lt.s32.totalorder %v17244_v45, 16  ;;  %v17252_v29 = vsel %vm17249_vm6, %v17250_v44, %v17251_v38  ;;  %v17253_v59 = vmov 0  ;;  %v5021_v40 = vsel %vm14322_vm13, %v5012_v0, %v5020_v9  ;;  %v4437_v0 = vpop.f32.mrf.mxu0  ;;  %v14735_v45 = vld [vmem:[#allocation2 + $0x48] sm:$0xff]  }
 0x280   : > { %v17246_v51 = vsel %vm14703_vm5, 4294967295, %v17245_v51  ;;  %vm14715_vm1 = vcmp.lt.s32.totalorder %v17252_v29, 16  ;;  %v5022_v20 = vrot.slane %v5020_v9, 4  ;;  %v5044_v4 = vshrl.u32 %v9744_v15, 16  ;;  %5232 = vst [vmem:[#allocation2 + $0x58] sm:$0xf] %v5021_v40  ;;  %10804 = vmatpush3.bf16.msra.mxu1 %v11409_v62  ;;  %10778 = vmatmul.mubr.bf16.gmra.mxu0 %v14735_v45 }
 0x281   : > { %17247 = vst [vmem:[#allocation81_spill] sm:$0xff] %v17246_v51  ;;  %v17254_v59 = vsel %vm14715_vm1, 4294967295, %v17253_v59  ;;  %v5047_v21 = vshll.u32 %v9744_v15, 16  ;;  %vm17256_vm15 = vnez %v17000_v54  ;;  %v17260_v30 = vmov 0  ;;  %v17264_v29 = vld [vmem:[#allocation93_spill] sm:$0xff]  ;;  %10805 = vmatprep.subr.bf16.mxu1 %v11413_v46 }
 0x282   : > { %17255 = vst [vmem:[#allocation62_spill] sm:$0xff] %v17254_v59  ;;  %v17259_v19 = vsel %vm17256_vm15, %v17257_v43, %v17258_v18  ;;  %v5024_v63 = vshrl.u32 %v9742_v2, 16  ;;  %v5027_v14 = vshll.u32 %v9742_v2, 16  ;;  %vm17263_vm8 = vsmask.f32 7424  ;;  %v14747_v62 = vld [vmem:[#allocation2 + $0x50] sm:$0xff]   ;;  %v10687_v18 = vpop.f32.mrf.mxu0 }
 0x283   : > { %vm14729_vm6 = vcmp.lt.s32.totalorder %v17259_v19, 16  ;;  %v5442_v32 = vsel %vm17263_vm8, %v5437_v49, %v5441_v31  ;;  %v4550_v34 = vadd.f32 %v14141_v5, %v4507_v1  ;;  %v5046_v9 = vrot.slane %v5044_v4, 6  ;;  %v11418_v49 = vld [vmem:[%s16535_s1 + $0x2d0] sm:$0xff]   ;;  %v17265_v1 = vld [vmem:[#allocation94_spill] sm:$0xff]  ;;  %10781 = vmatprep.mubr.bf16.mxu0 %v14747_v62 }
 0x284   : > { %v17261_v30 = vsel %vm14729_vm6, 4294967295, %v17260_v30  ;;  %v5049_v35 = vrot.slane %v5047_v21, 7  ;;  %10713 = vmatprep.mubr.bf16.mxu1 %v5442_v32  ;;  %v5445_v15 = vor.u32 %v5443_v37, %v5441_v31  ;;  %v5449_v54 = vrot.slane %v5447_v23, 1  ;;  %v17266_v37 = vld [vmem:[#allocation97_spill] sm:$0xff]  ;;  %v14754_v21 = vld [vmem:[%s16536_s2] ss:$0 sm:$0xff]  ;;  %10806 = vmatpush3.bf16.msra.mxu1 %v11413_v46 }
 0x285   : > { %17262 = vst [vmem:[#allocation61_spill] sm:$0xff] %v17261_v30  ;;  %v5026_v48 = vrot.slane %v5024_v63, 6  ;;  %v5029_v44 = vrot.slane %v5027_v14, 7  ;;  %v4586_v38 = vmax.f32 %v4550_v34, 0.0  ;;  %v4505_v40 = vadd.f32 %v4434_v7, %v17264_v29  ;;  %v17267_v34 = vld [vmem:[#allocation48_spill] sm:$0xff]  ;;  %10807 = vmatprep.subr.bf16.mxu1 %v11418_v49 }
 0x286   : > { %v14741_v5 = vor.u32 %v5049_v35, %v5046_v9  ;;  %v5450_v2 = vsel %vm17263_vm8, %v5445_v15, %v5449_v54  ;;  %v4508_v31 = vadd.f32 %v10684_v56, %v17265_v1  ;;  %v4506_v23 = vadd.f32 %v4437_v0, %v17266_v37  ;;  %v17269_v0 = vld [vmem:[#allocation95_spill] sm:$0xff]  ;;  %v17270_v9 = vld [vmem:[#allocation36_spill] sm:$0xff] }
 0x287   : > { %v5030_v4 = vor.u32 %v5029_v44, %v5026_v48  ;;  %v4694_v7 = vsel %vm14678_vm7, %v4586_v38, 0.0  ;;  %10714 = vmatmul.mubr.bf16.gmra.mxu1 %v5450_v2  ;;  %v4548_v43 = vadd.f32 %v14754_v21, %v4505_v40  ;;  %v5451_v56 = vshrl.u32 %v14505_v41, 16  ;;  %v11424_v41 = vld [vmem:[%s16535_s1 + $0x2c8] sm:$0xff]  }
 0x288   : > { %v5051_v19 = vsel %vm14322_vm13, %v5042_v33, %v14741_v5  ;;  %v5052_v63 = vrot.slane %v14741_v5, 4  ;;  %v9747_v14 = vpack.c.bf16 %v4694_v7, %v4694_v7  ;;  %v4551_v32 = vadd.f32 %v14754_v21, %v4508_v31  ;;  %10808 = vmatpush3.bf16.msra.mxu1 %v11418_v49 }
 0x289   : > { %vm17268_vm15 = vnez %v17267_v34  ;;  %v17272_v15 = vmov 0  ;;  %5235 = vst [vmem:[#allocation2 + $0x64] sm:$0xf] %v5051_v19  ;;  %v5031_v33 = vsel %vm14322_vm13, %v5022_v20, %v5030_v4  ;;  %v5032_v48 = vrot.slane %v5030_v4, 4  ;;  %v4450_v4 = vpop.f32.mrf.mxu0  ;;  %10809 = vmatprep.subr.bf16.mxu1 %v11424_v41  ;;  %v11430_v34 = vld [vmem:[%s16535_s1 + $0x2c0] sm:$0xff]  }
 0x28a   : > { %v17271_v35 = vsel %vm17268_vm15, %v17269_v0, %v17270_v9  ;;  %v4584_v44 = vmax.f32 %v4548_v43, 0.0  ;;  %v4549_v38 = vadd.f32 %v14754_v21, %v4506_v23  ;;  %5233 = vst [vmem:[#allocation2 + $0x5c] sm:$0xf] %v5031_v33  ;;  %v5074_v29 = vshrl.u32 %v9747_v14, 16 }
 0x28b   : > { %vm14768_vm8 = vcmp.lt.s32.totalorder %v17271_v35, 16  ;;  %v5077_v40 = vshll.u32 %v9747_v14, 16  ;;  %v4587_v2 = vmax.f32 %v4551_v32, 0.0  ;;  %v5453_v1 = vor.u32 %v5451_v56, %v5449_v54  ;;  %v17275_v14 = vld [vmem:[#allocation99_spill] sm:$0xff] }
 0x28c   : > { %v17273_v15 = vsel %vm14768_vm8, 4294967295, %v17272_v15  ;;  %v5041_v46 = vsel %vm14322_vm13, %v5032_v48, %v14690_v58  ;;  %v4692_v31 = vsel %vm14703_vm5, %v4584_v44, 0.0  ;;  %v4585_v37 = vmax.f32 %v4549_v38, 0.0  ;;  %10810 = vmatpush3.bf16.msra.mxu1 %v11424_v41 }
 0x28d   : > { %17274 = vst [vmem:[#allocation4_spill] sm:$0xff] %v17273_v15  ;;  %v5455_v20 = vshll.u32 %v14556_v60, 16  ;;  %5234 = vst [vmem:[#allocation2 + $0x60] sm:$0xf] %v5041_v46  ;;  %v5076_v7 = vrot.slane %v5074_v29, 6  ;;  %v5079_v23 = vrot.slane %v5077_v40, 7  ;;  %v9745_v43 = vpack.c.bf16 %v4692_v31, %v4692_v31  ;;  %v10688_v31 = vpop.f32.mrf.mxu0  ;;  %10811 = vmatprep.subr.bf16.mxu1 %v11430_v34 }
 0x28e   : > { %v4695_v19 = vsel %vm14715_vm1, %v4587_v2, 0.0  ;;  %v4693_v56 = vsel %vm14729_vm6, %v4585_v37, 0.0  ;;  %v4511_v32 = vadd.f32 %v10687_v18, %v17275_v14  ;;  %vm17276_vm15 = vsmask.f32 7424  ;;  %v17277_v29 = vld [vmem:[#allocation51_spill] sm:$0xff]  ;;  %v17279_v40 = vld [vmem:[#allocation98_spill] sm:$0xff] }
 0x28f   : > { %v9748_v54 = vpack.c.bf16 %v4695_v19, %v4695_v19  ;;  %v5457_v58 = vrot.slane %v5455_v20, 1  ;;  %v14793_v0 = vor.u32 %v5079_v23, %v5076_v7  ;;  %v5054_v9 = vshrl.u32 %v9745_v43, 16  ;;  %v17280_v18 = vld [vmem:[#allocation92_spill] sm:$0xff]  ;;  %v14809_v37 = vld [vmem:[%s16535_s1 + $0x378] sm:$0xff]  }
 0x290   : > { %v5057_v35 = vshll.u32 %v9745_v43, 16  ;;  %v9746_v33 = vpack.c.bf16 %v4693_v56, %v4693_v56  ;;  %v4554_v38 = vadd.f32 %v14754_v21, %v4511_v32  ;;  %vm17278_vm6 = vnez %v17277_v29  ;;  %v17285_v14 = vld [vmem:[#allocation25_spill] sm:$0xff]  ;;  %v17288_v29 = vld [vmem:[#allocation96_spill] sm:$0xff]  ;;  %10812 = vmatpush3.bf16.msra.mxu1 %v11430_v34 }
 0x291   : > { %v5084_v48 = vshrl.u32 %v9748_v54, 16  ;;  %v5087_v44 = vshll.u32 %v9748_v54, 16  ;;  %v5458_v49 = vsel %vm17276_vm15, %v5453_v1, %v5457_v58  ;;  %v17281_v2 = vsel %vm17278_vm6, %v17279_v40, %v17280_v18  ;;  %v17287_v32 = vld [vmem:[#allocation17_spill] sm:$0xff]  ;;  %10901 = vmatprep.subr.bf16.mxu1 %v14809_v37 }
 0x292   : > { %vm14802_vm1 = vcmp.lt.s32.totalorder %v17281_v2, 16  ;;  %v17282_v46 = vmov 0  ;;  %v5082_v20 = vrot.slane %v14793_v0, 4  ;;  %v5056_v1 = vrot.slane %v5054_v9, 6  ;;  %10717 = vmatprep.mubr.bf16.mxu1 %v5458_v49  ;;  %v15044_v15 = vld [vmem:[#allocation2 + $0x50] sm:$0xff]   ;;  %v15065_v59 = vld [vmem:[#allocation2 + $0x58] sm:$0xff]  }
 0x293   : > { %v17283_v46 = vsel %vm14802_vm1, 4294967295, %v17282_v46  ;;  %v5059_v7 = vrot.slane %v5057_v35, 7  ;;  %v5064_v23 = vshrl.u32 %v9746_v33, 16  ;;  %v5086_v43 = vrot.slane %v5084_v48, 6 }
 0x294   : > { %17284 = vst [vmem:[#allocation10_spill] sm:$0xff] %v17283_v46  ;;  %v5089_v19 = vrot.slane %v5087_v44, 7  ;;  %v5067_v54 = vshll.u32 %v9746_v33, 16  ;;  %v4590_v56 = vmax.f32 %v4554_v38, 0.0  ;;  %vm17286_vm6 = vnez %v17285_v14  ;;  %v14832_v44 = vld [vmem:[#allocation2 + $0x58] sm:$0xff]   ;;  %v14839_v14 = vld [vmem:[#allocation2 + $0x60] sm:$0xff]  }
 0x295   : > { %v17289_v40 = vsel %vm17286_vm6, %v17287_v32, %v17288_v29  ;;  %v17290_v18 = vmov 0  ;;  %v5060_v2 = vor.u32 %v5059_v7, %v5056_v1  ;;  %v5066_v9 = vrot.slane %v5064_v23, 6  ;;  %v4453_v23 = vpop.f32.mrf.mxu0  ;;  %10782 = vmatmul.mubr.bf16.gmra.mxu0 %v14832_v44  ;;  %v15084_v28 = vld [vmem:[#allocation2 + $0x60] sm:$0xff]  }
 0x296   : > { %vm14817_vm15 = vcmp.lt.s32.totalorder %v17289_v40, 16  ;;  %v5459_v35 = vshrl.u32 %v14556_v60, 16  ;;  %v5463_v41 = vshll.u32 %v14579_v53, 16  ;;  %v17293_v33 = vsel %vm14205_vm10, %v14188_v55, %v14103_v52  ;;  %v17297_v60 = vld [vmem:[#allocation100_spill] sm:$0xff]  ;;  %10785 = vmatprep.mubr.bf16.mxu0 %v14839_v14 }
 0x297   : > { %v17291_v18 = vsel %vm14817_vm15, 4294967295, %v17290_v18  ;;  %vm14828_vm5 = vcmp.lt.s32.totalorder %v17293_v33, 16  ;;  %v17294_v48 = vmov 0  ;;  %v14834_v49 = vor.u32 %v5089_v19, %v5086_v43 }
 0x298   : > { %17292 = vst [vmem:[#allocation63_spill] sm:$0xff] %v17291_v18  ;;  %v17295_v48 = vsel %vm14828_vm5, 4294967295, %v17294_v48  ;;  %v5069_v38 = vrot.slane %v5067_v54, 7  ;;  %v4698_v1 = vsel %vm14768_vm8, %v4590_v56, 0.0  ;;  %v4509_v7 = vadd.f32 %v4450_v4, %v17297_v60  ;;  %v17302_v56 = vld [vmem:[#allocation52_spill] sm:$0xff] }
 0x299   : > { %17296 = vst [vmem:[#allocation56_spill] sm:$0xff] %v17295_v48  ;;  %v5061_v52 = vsel %vm14322_vm13, %v5052_v63, %v5060_v2  ;;  %v5062_v55 = vrot.slane %v5060_v2, 4  ;;  %v9751_v27 = vpack.c.bf16 %v4698_v1, %v4698_v1  ;;  %v5461_v32 = vor.u32 %v5459_v35, %v5457_v58  ;;  %v15039_v18 = vld [vmem:[#allocation2 + $0x48] sm:$0xff]  }
 0x29a   : > { %5236 = vst [vmem:[#allocation2 + $0x68] sm:$0xf] %v5061_v52  ;;  %v5091_v43 = vsel %vm14322_vm13, %v5082_v20, %v14834_v49  ;;  %v5092_v4 = vrot.slane %v14834_v49, 4  ;;  %v5070_v19 = vor.u32 %v5069_v38, %v5066_v9  ;;  %v5465_v54 = vrot.slane %v5463_v41, 1  ;;  %v10691_v9 = vpop.f32.mrf.mxu0 }
 0x29b   : > { %v17298_v5 = vsel %vm14225_vm4, %v14210_v12, %v14112_v6  ;;  %v17299_v63 = vmov 0  ;;  %5239 = vst [vmem:[#allocation2 + $0x74] sm:$0xf] %v5091_v43  ;;  %v5114_v58 = vshrl.u32 %v9751_v27, 16  ;;  %v5117_v34 = vshll.u32 %v9751_v27, 16  ;;  %v17304_v12 = vld [vmem:[#allocation22_spill] sm:$0xff] }
 0x29c   : > { %vm14855_vm10 = vcmp.lt.s32.totalorder %v17298_v5, 16  ;;  %v4552_v20 = vadd.f32 %v14754_v21, %v4509_v7  ;;  %v4512_v29 = vadd.f32 %v10688_v31, %v17302_v56  ;;  %v5071_v11 = vsel %vm14322_vm13, %v5062_v55, %v5070_v19  ;;  %v17305_v27 = vld [vmem:[#allocation21_spill] sm:$0xff]  ;;  %v4466_v56 = vpop.f32.mrf.mxu0 }
 0x29d   : > { %v17300_v63 = vsel %vm14855_vm10, 4294967295, %v17299_v63  ;;  %v5072_v40 = vrot.slane %v5070_v19, 4  ;;  %vm17303_vm4 = vsmask.f32 7424  ;;  %v4510_v2 = vadd.f32 %v4453_v23, %v17304_v12  ;;  %5237 = vst [vmem:[#allocation2 + $0x6c] sm:$0xf] %v5071_v11 }
 0x29e   : > { %17301 = vst [vmem:[#allocation65_spill] sm:$0xff] %v17300_v63  ;;  %v5466_v6 = vsel %vm17303_vm4, %v5461_v32, %v5465_v54  ;;  %vm640_vm6 = vcmp.ne.s32.totalorder %v14260_v47, 0  ;;  %vm676_vm8 = vcmp.lt.s32.totalorder %v14260_v47, 0  ;;  %v5116_v35 = vrot.slane %v5114_v58, 6 }
 0x29f   : > { %v5119_v41 = vrot.slane %v5117_v34, 7  ;;  %10718 = vmatmul.mubr.bf16.gmra.mxu1 %v5466_v6  ;;  %v4588_v33 = vmax.f32 %v4552_v20, 0.0  ;;  %v4555_v31 = vadd.f32 %v14754_v21, %v4512_v29  ;;  %v5081_v38 = vsel %vm14322_vm13, %v5072_v40, %v14793_v0 }
 0x2a0   : > { %v4553_v1 = vadd.f32 %v14754_v21, %v4510_v2  ;;  %v5467_v60 = vshrl.u32 %v14579_v53, 16  ;;  %v5471_v7 = vshll.u32 %v14641_v16, 16  ;;  %5238 = vst [vmem:[#allocation2 + $0x70] sm:$0xf] %v5081_v38  ;;  %v4515_v32 = vadd.f32 %v10691_v9, %v17305_v27 }
 0x2a1   : > { %v14876_v23 = vor.u32 %v5119_v41, %v5116_v35  ;;  %v4696_v52 = vsel %vm14802_vm1, %v4588_v33, 0.0  ;;  %v4591_v55 = vmax.f32 %v4555_v31, 0.0  ;;  %v5475_v20 = vshrl.u32 %v14641_v16, 16 }
 0x2a2   : > { %v9749_v43 = vpack.c.bf16 %v4696_v52, %v4696_v52  ;;  %v4589_v19 = vmax.f32 %v4553_v1, 0.0  ;;  %v5469_v5 = vor.u32 %v5467_v60, %v5465_v54  ;;  %v5473_v58 = vrot.slane %v5471_v7, 1  ;;  %v10692_v52 = vpop.f32.mrf.mxu0 }
 0x2a3   : > { %v5122_v0 = vrot.slane %v14876_v23, 4  ;;  %v4699_v53 = vsel %vm14817_vm15, %v4591_v55, 0.0  ;;  %v4558_v34 = vadd.f32 %v14754_v21, %v4515_v32  ;;  %v5479_v7 = vshll.u32 %v14644_v26, 16 }
 0x2a4   : > { %v5094_v29 = vshrl.u32 %v9749_v43, 16  ;;  %v5097_v11 = vshll.u32 %v9749_v43, 16  ;;  %v9752_v40 = vpack.c.bf16 %v4699_v53, %v4699_v53  ;;  %v4697_v6 = vsel %vm14828_vm5, %v4589_v19, 0.0  ;;  %v14892_v55 = vld [vmem:[#allocation2 + $0x68] sm:$0xff]  }
 0x2a5   : > { %v9750_v12 = vpack.c.bf16 %v4697_v6, %v4697_v6  ;;  %v5474_v54 = vsel %vm17303_vm4, %v5469_v5, %v5473_v58  ;;  %v4594_v2 = vmax.f32 %v4558_v34, 0.0  ;;  %v5477_v9 = vor.u32 %v5475_v20, %v5473_v58  ;;  %v17306_v20 = vld [vmem:[#allocation32_spill] sm:$0xff]  ;;  %vm14901_vm4 = vmand %vm676_vm8, %vm640_vm6  ;;  %10786 = vmatmul.mubr.bf16.gmra.mxu0 %v14892_v55 }
 0x2a6   : > { %v5096_v35 = vrot.slane %v5094_v29, 6  ;;  %v5099_v41 = vrot.slane %v5097_v11, 7  ;;  %v5124_v33 = vshrl.u32 %v9752_v40, 16  ;;  %v5127_v31 = vshll.u32 %v9752_v40, 16  ;;  %10721 = vmatprep.mubr.bf16.mxu1 %v5474_v54 }
 0x2a7   : > { %v5104_v38 = vshrl.u32 %v9750_v12, 16  ;;  %v5107_v1 = vshll.u32 %v9750_v12, 16  ;;  %v4702_v60 = vsel %vm14855_vm10, %v4594_v2, 0.0  ;;  %v14894_v5 = vld [vmem:[#allocation2 + $0x70] sm:$0xff]   ;;  %v5481_v34 = vrot.slane %v5479_v7, 1 }
 0x2a8   : > { %v5100_v27 = vor.u32 %v5099_v41, %v5096_v35  ;;  %v5126_v32 = vrot.slane %v5124_v33, 6  ;;  %v5129_v43 = vrot.slane %v5127_v31, 7  ;;  %v9755_v19 = vpack.c.bf16 %v4702_v60, %v4702_v60  ;;  %10789 = vmatprep.mubr.bf16.mxu0 %v14894_v5  ;;  %v4469_v33 = vpop.f32.mrf.mxu0 }
 0x2a9   : > { %v5106_v58 = vrot.slane %v5104_v38, 6  ;;  %v5109_v53 = vrot.slane %v5107_v1, 7  ;;  %v4513_v29 = vadd.f32 %v4466_v56, %v17306_v20  ;;  %vm17309_vm8 = vsmask.f32 7424  ;;  %v17311_v38 = vld [vmem:[#allocation40_spill] sm:$0xff] }
 0x2aa   : > { %v5101_v40 = vsel %vm14322_vm13, %v5092_v4, %v5100_v27  ;;  %v5102_v6 = vrot.slane %v5100_v27, 4  ;;  %v14910_v12 = vor.u32 %v5129_v43, %v5126_v32  ;;  %v5154_v54 = vshrl.u32 %v9755_v19, 16  ;;  %v17312_v1 = vld [vmem:[#allocation28_spill] sm:$0xff] }
 0x2ab   : > { %5240 = vst [vmem:[#allocation2 + $0x78] sm:$0xf] %v5101_v40  ;;  %v5110_v56 = vor.u32 %v5109_v53, %v5106_v58  ;;  %v5157_v2 = vshll.u32 %v9755_v19, 16  ;;  %v5482_v35 = vsel %vm17309_vm8, %v5477_v9, %v5481_v34  ;;  %v4556_v41 = vadd.f32 %v14754_v21, %v4513_v29  ;;  %v17317_v9 = vld [vmem:[#allocation34_spill] sm:$0xff]  ;;  %v17319_v29 = vld [vmem:[#allocation23_spill] sm:$0xff] }
 0x2ac   : > { %v5131_v49 = vsel %vm14322_vm13, %v5122_v0, %v14910_v12  ;;  %v5156_v31 = vrot.slane %v5154_v54, 6  ;;  %10722 = vmatmul.mubr.bf16.gmra.mxu1 %v5482_v35  ;;  %v17313_v60 = vsel %vm14238_vm12, %v17311_v38, %v17312_v1  ;;  %v17314_v7 = vmov 0  ;;  %v17318_v53 = vld [vmem:[#allocation70_spill] sm:$0xff]  ;;  %v17321_v35 = vld [vmem:[#allocation101_spill] sm:$0xff] }
 0x2ad   : > { %vm14923_vm6 = vcmp.lt.s32.totalorder %v17313_v60, 16  ;;  %v784_v27 = vsel %vm14901_vm4, %v17317_v9, %v14260_v47  ;;  %5243 = vst [vmem:[#allocation2 + $0x84] sm:$0xf] %v5131_v49  ;;  %v5111_v0 = vsel %vm14322_vm13, %v5102_v6, %v5110_v56  ;;  %v5112_v32 = vrot.slane %v5110_v56, 4 }
 0x2ae   : > { %v17315_v7 = vsel %vm14923_vm6, 4294967295, %v17314_v7  ;;  %v5159_v43 = vrot.slane %v5157_v2, 7  ;;  %v4592_v19 = vmax.f32 %v4556_v41, 0.0  ;;  %v5132_v58 = vrot.slane %v14910_v12, 4  ;;  %5241 = vst [vmem:[#allocation2 + $0x7c] sm:$0xf] %v5111_v0 }
 0x2af   : > { %17316 = vst [vmem:[#allocation64_spill] sm:$0xff] %v17315_v7  ;;  %v4516_v20 = vadd.f32 %v10692_v52, %v17318_v53  ;;  %v17320_v40 = vshrl.u32 %v17319_v29, 4  ;;  %v4514_v4 = vadd.f32 %v4469_v33, %v17321_v35  ;;  %v5121_v47 = vsel %vm14322_vm13, %v5112_v32, %v14876_v23  ;;  %v17325_v2 = vld [vmem:[#allocation19_spill] sm:$0xff] }
 0x2b0   : > { %v4700_v11 = vsel %vm14923_vm6, %v4592_v19, 0.0  ;;  %vm14943_vm12 = vcmp.lt.s32.totalorder %v784_v27, 16  ;;  %v17322_v6 = vmov 0  ;;  %v5483_v12 = vshrl.u32 %v14644_v26, 16  ;;  %5242 = vst [vmem:[#allocation2 + $0x80] sm:$0xf] %v5121_v47 }
 0x2b1   : > { %v579_v54 = vmul.u32 18, %v17320_v40  ;;  %v17323_v6 = vsel %vm14943_vm12, 4294967295, %v17322_v6  ;;  %v9753_v52 = vpack.c.bf16 %v4700_v11, %v4700_v11  ;;  %v4559_v56 = vadd.f32 %v14754_v21, %v4516_v20 }
 0x2b2   : > { %17324 = vst [vmem:[#allocation3_spill] sm:$0xff] %v17323_v6  ;;  %v4557_v33 = vadd.f32 %v14754_v21, %v4514_v4  ;;  %v14951_v49 = vor.u32 %v5159_v43, %v5156_v31  ;;  %v5485_v23 = vor.u32 %v5483_v12, %v5481_v34  ;;  %v5487_v38 = vshll.u32 %v14735_v45, 16 }
 0x2b3   : > { %v580_v41 = vsub.s32 %v17325_v2, %v579_v54  ;;  %v5491_v1 = vshrl.u32 %v14735_v45, 16  ;;  %v5134_v60 = vshrl.u32 %v9753_v52, 16  ;;  %v5137_v9 = vshll.u32 %v9753_v52, 16 }
 0x2b4   : > { %v4595_v27 = vmax.f32 %v4559_v56, 0.0  ;;  %v4593_v32 = vmax.f32 %v4557_v33, 0.0  ;;  %v5489_v19 = vrot.slane %v5487_v38, 1  ;;  %v5495_v34 = vshll.u32 %v14747_v62, 16 }
 0x2b5   : > { %vm638_vm4 = vcmp.ne.s32.totalorder %v580_v41, 0  ;;  %vm674_vm8 = vcmp.lt.s32.totalorder %v580_v41, 0  ;;  %v746_v0 = vadd.s32 18, %v580_v41  ;;  %v5136_v53 = vrot.slane %v5134_v60, 6  ;;  %v14959_v54 = vld [vmem:[#allocation2 + $0x78] sm:$0xff]  }
 0x2b6   : > { %v5139_v20 = vrot.slane %v5137_v9, 7  ;;  %v4703_v21 = vsel %vm14943_vm12, %v4595_v27, 0.0  ;;  %vm710_vm6 = vmand %vm674_vm8, %vm638_vm4  ;;  %vm17326_vm10 = vsmask.f32 7424  ;;  %v5493_v40 = vor.u32 %v5491_v1, %v5489_v19  ;;  %10790 = vmatmul.mubr.bf16.gmra.mxu0 %v14959_v54 }
 0x2b7   : > { %v9756_v31 = vpack.c.bf16 %v4703_v21, %v4703_v21  ;;  %v782_v43 = vsel %vm710_vm6, %v746_v0, %v580_v41  ;;  %v5490_v29 = vsel %vm17326_vm10, %v5485_v23, %v5489_v19  ;;  %v17327_v4 = vmov 0  ;;  %v14974_v1 = vld [vmem:[#allocation2 + $0x80] sm:$0xff]   ;;  %v5248_v0 = vld [vmem:[#allocation2 + $0x98] sm:$0x3]  ;;  %vm17330_vm6 = vmmov %vm17326_vm10 }
 0x2b8   : > { %v5140_v35 = vor.u32 %v5139_v20, %v5136_v53  ;;  %vm14961_vm5 = vcmp.lt.s32.totalorder %v782_v43, 16  ;;  %10725 = vmatprep.mubr.bf16.mxu1 %v5490_v29  ;;  %v5497_v47 = vrot.slane %v5495_v34, 1  ;;  %v5499_v11 = vshrl.u32 %v14747_v62, 16  ;;  %10793 = vmatprep.mubr.bf16.mxu0 %v14974_v1  ;;  %vm17331_vm4 = vmmov %vm17330_vm6 }
 0x2b9   : > { %v17328_v4 = vsel %vm14961_vm5, 4294967295, %v17327_v4  ;;  %v5164_v12 = vshrl.u32 %v9756_v31, 16  ;;  %v5167_v52 = vshll.u32 %v9756_v31, 16  ;;  %v4701_v56 = vsel %vm14961_vm5, %v4593_v32, 0.0 }
 0x2ba   : > { %17329 = vst [vmem:[#allocation11_spill] sm:$0xff] %v17328_v4  ;;  %v5503_v2 = vshll.u32 %v14832_v44, 16  ;;  %v5162_v41 = vrot.slane %v14951_v49, 4  ;;  %v5141_v33 = vsel %vm14322_vm13, %v5132_v58, %v5140_v35  ;;  %v9754_v23 = vpack.c.bf16 %v4701_v56, %v4701_v56 }
 0x2bb   : > { %v5498_v38 = vsel %vm17326_vm10, %v5493_v40, %v5497_v47  ;;  %5244 = vst [vmem:[#allocation2 + $0x88] sm:$0xf] %v5141_v33  ;;  %v5166_v62 = vrot.slane %v5164_v12, 6  ;;  %v5169_v60 = vrot.slane %v5167_v52, 7  ;;  %v5501_v9 = vor.u32 %v5499_v11, %v5497_v47  ;;  %vm17334_vm10 = vmmov %vm17331_vm4 }
 0x2bc   : > { %10726 = vmatmul.mubr.bf16.gmra.mxu1 %v5498_v38  ;;  %v5505_v27 = vrot.slane %v5503_v2, 1  ;;  %v5144_v32 = vshrl.u32 %v9754_v23, 16  ;;  %v5147_v19 = vshll.u32 %v9754_v23, 16  ;;  %v5507_v53 = vshrl.u32 %v14832_v44, 16 }
 0x2bd   : > { %v5511_v20 = vshll.u32 %v14839_v14, 16  ;;  %v5170_v58 = vor.u32 %v5169_v60, %v5166_v62  ;;  %v5515_v34 = vshrl.u32 %v14839_v14, 16  ;;  %v5519_v31 = vshll.u32 %v14892_v55, 16  ;;  %v6049_v62 = vld [vmem:[#allocation2] sm:$0xe] }
 0x2be   : > { %v5506_v21 = vsel %vm17330_vm6, %v5501_v9, %v5505_v27  ;;  %v5146_v43 = vrot.slane %v5144_v32, 6  ;;  %v5149_v29 = vrot.slane %v5147_v19, 7  ;;  %v5509_v40 = vor.u32 %v5507_v53, %v5505_v27  ;;  %v17332_v60 = vld [vmem:[#allocation14_spill] sm:$0xff]  ;;  %v14990_v32 = vld [vmem:[#allocation2 + $0xc] sm:$0xf]  ;;  %vm17336_vm6 = vmmov %vm17331_vm4 }
 0x2bf   : > { %10729 = vmatprep.mubr.bf16.mxu1 %v5506_v21  ;;  %v5513_v47 = vrot.slane %v5511_v20, 1  ;;  %v5142_v11 = vrot.slane %v5140_v35, 4  ;;  %v5171_v12 = vsel %vm14322_vm13, %v5162_v41, %v5170_v58  ;;  %v5172_v52 = vrot.slane %v5170_v58, 4  ;;  %v6386_v21 = vld [vmem:[#allocation2 + $0x8] sm:$0xe] }
 0x2c0   : > { %v5521_v56 = vrot.slane %v5519_v31, 1  ;;  %5247 = vst [vmem:[#allocation2 + $0x94] sm:$0xf] %v5171_v12  ;;  %v5150_v2 = vor.u32 %v5149_v29, %v5146_v43  ;;  %v5527_v38 = vshll.u32 %v14894_v5, 16  ;;  %vm17333_vm8 = vnez %v17332_v60  ;;  %v15005_v12 = vld [vmem:[#allocation2 + $0x18] sm:$0xff]  }
 0x2c1   : > { %v5514_v33 = vsel %vm17331_vm4, %v5509_v40, %v5513_v47  ;;  %v5517_v23 = vor.u32 %v5515_v34, %v5513_v47  ;;  %v5249_v9 = vsel %vm17333_vm8, %v5172_v52, %v5248_v0  ;;  %v5523_v27 = vshrl.u32 %v14892_v55, 16  ;;  %v14995_v34 = vld [vmem:[#allocation2 + $0x10] sm:$0xff]   ;;  %v11514_v40 = vld [vmem:[#allocation2 + $0x4] sm:$0xf]  ;;  %vm17338_vm8 = vmmov %vm17336_vm6 }
 0x2c2   : > { %v5535_v35 = vshll.u32 %v14959_v54, 16  ;;  %5250 = vst [vmem:[#allocation2 + $0x98] sm:$0x3] %v5249_v9  ;;  %v5151_v41 = vsel %vm14322_vm13, %v5142_v11, %v5150_v2  ;;  %v5152_v19 = vrot.slane %v5150_v2, 4  ;;  %v5529_v58 = vrot.slane %v5527_v38, 1 }
 0x2c3   : > { %v5522_v53 = vsel %vm17334_vm10, %v5517_v23, %v5521_v56  ;;  %5245 = vst [vmem:[#allocation2 + $0x8c] sm:$0xf] %v5151_v41  ;;  %v5525_v20 = vor.u32 %v5523_v27, %v5521_v56  ;;  %v5543_v43 = vshll.u32 %v14974_v1, 16  ;;  %v15002_v29 = vcombine.low %v6386_v21, %v14990_v32  ;;  %v15008_v56 = vld [vmem:[#allocation2 + $0x20] sm:$0xff]   ;;  %v15014_v23 = vld [vmem:[#allocation2 + $0x30] sm:$0xff]   ;;  %v15018_v27 = vld [vmem:[#allocation2 + $0x38] sm:$0xff]  }
 0x2c4   : > { %10730 = vmatmul.mubr.bf16.gmra.mxu1 %v5514_v33  ;;  %v5161_v0 = vsel %vm14322_vm13, %v5152_v19, %v14951_v49  ;;  %v5537_v31 = vrot.slane %v5535_v35, 1  ;;  %v9522_v47 = vcombine.low %v6049_v62, %v11514_v40  ;;  %v5531_v11 = vshrl.u32 %v14894_v5, 16  ;;  %vm17335_vm13 = vmmov %vm17331_vm4  ;;  %v11515_v19 = vld [vmem:[#allocation2 + $0x8] sm:$0xff]  }
 0x2c5   : > { %10733 = vmatprep.mubr.bf16.mxu1 %v5522_v53  ;;  %5246 = vst [vmem:[#allocation2 + $0x90] sm:$0xf] %v5161_v0  ;;  %v5539_v52 = vshrl.u32 %v14959_v54, 16  ;;  %v5530_v49 = vsel %vm17335_vm13, %v5525_v20, %v5529_v58  ;;  %v6534_v33 = vrot.slane %v14995_v34, 1  ;;  %v5545_v62 = vrot.slane %v5543_v43, 1  ;;  %v11516_v43 = vld [vmem:[#allocation2 + $0x10] sm:$0xff]  }
 0x2c6   : > { %v5533_v2 = vor.u32 %v5531_v11, %v5529_v58  ;;  %v6533_v60 = vrot.slane %v15002_v29, 1  ;;  %v5547_v9 = vshrl.u32 %v14974_v1, 16  ;;  %v6070_v41 = vrot.slane %v9522_v47, 1  ;;  %v15022_v58 = vld [vmem:[#allocation2 + $0x40] sm:$0xff]   ;;  %v11517_v11 = vld [vmem:[#allocation2 + $0x18] sm:$0xff]  }
 0x2c7   : > { %v5541_v38 = vor.u32 %v5539_v52, %v5537_v31  ;;  %v6071_v53 = vrot.slane %v11515_v19, 1  ;;  %v6536_v20 = vrot.slane %v15005_v12, 1  ;;  %v6538_v0 = vrot.slane %v15008_v56, 1  ;;  %v11518_v47 = vld [vmem:[#allocation2 + $0x20] sm:$0xff]   ;;  %v11519_v19 = vld [vmem:[#allocation2 + $0x28] sm:$0xff]  }
 0x2c8   : > { %v5538_v35 = vsel %vm17336_vm6, %v5533_v2, %v5537_v31  ;;  %v6073_v40 = vrot.slane %v11516_v43, 1  ;;  %v6075_v52 = vrot.slane %v11517_v11, 1  ;;  %v6540_v4 = vrot.slane %v15010_v57, 1 }
 0x2c9   : > { %v6542_v31 = vrot.slane %v15014_v23, 1  ;;  %v6077_v2 = vrot.slane %v11518_v47, 1  ;;  %v6079_v6 = vrot.slane %v11519_v19, 1  ;;  %vm17337_vm4 = vcmask 1046528  }
 0x2ca   : > { %v15024_v21 = vld [vmem:[#allocation2 + $0x88] sm:$0xff]   ;;  %v6535_v7 = vsel %vm17337_vm4, %v6533_v60, %v6534_v33  ;;  %v5546_v43 = vsel %vm17338_vm8, %v5541_v38, %v5545_v62  ;;  %vm17339_vm10 = vmmov %vm17337_vm4  ;;  %v6544_v47 = vrot.slane %v15018_v27, 1  ;;  %v6546_v46 = vrot.slane %v15022_v58, 1 }
 0x2cb   : > { %10794 = vmatmul.mubr.bf16.gmra.mxu0 %v15024_v21  ;;  %v5551_v63 = vshll.u32 %v15024_v21, 16  ;;  %v15036_v11 = vsel %vm17339_vm10, %v6070_v41, %v6071_v53  ;;  %vm17340_vm13 = vmmov %vm17337_vm4  ;;  %v15047_v38 = vsel %vm17337_vm4, %v6071_v53, %v6073_v40  ;;  %v11520_v53 = vld [vmem:[#allocation2 + $0x30] sm:$0xff]   ;;  %v6548_v51 = vrot.slane %v15039_v18, 1 }
 0x2cc   : > { %10734 = vmatmul.mubr.bf16.gmra.mxu1 %v5530_v49  ;;  %v15032_v48 = vld [vmem:[#allocation2 + $0x90] ss:$0 sps:$4 sm:$0x11]   ;;  %10865 = vmatprep.mubr.bf16.mxu0 %v6535_v7  ;;  %v5549_v49 = vor.u32 %v5547_v9, %v5545_v62  ;;  %v6537_v19 = vsel %vm17340_vm13, %v6534_v33, %v6536_v20  ;;  %vm17341_vm6 = vmmov %vm17337_vm4  ;;  %v6081_v30 = vrot.slane %v11520_v53, 1  ;;  %v5555_v61 = vshrl.u32 %v15024_v21, 16 }
 0x2cd   : > { %10737 = vmatprep.mubr.bf16.mxu1 %v5538_v35  ;;  %v5553_v35 = vrot.slane %v5551_v63, 1  ;;  %v6539_v60 = vsel %vm17341_vm6, %v6536_v20, %v6538_v0  ;;  %vm17342_vm8 = vmmov %vm17337_vm4  ;;  %v7319_v63 = vld [vmem:[#allocation2 + $0x8] sm:$0xc]  ;;  %v5559_v33 = vshll.u32 %v15032_v48, 16  ;;  %v11450_v53 = vld [vmem:[%s16535_s1 + $0x3b0] sm:$0xff]   ;;  %v16725_v17 = vrot.slane %v14832_v44, 1 }
 0x2ce   : > { %v15050_v7 = vsel %vm17342_vm8, %v6073_v40, %v6075_v52  ;;  %vm17343_vm10 = vmmov %vm17337_vm4 }
 0x2cf   : > { %v15053_v62 = vsel %vm17343_vm10, %v6538_v0, %v6540_v4  ;;  %vm17344_vm5 = vmmov %vm17337_vm4  ;;  %v5557_v36 = vor.u32 %v5555_v61, %v5553_v35  ;;  %v5561_v50 = vrot.slane %v5559_v33, 1  ;;  %v6101_v33 = vrot.slane %v14974_v1, 1 }
 0x2d0   : > { %v15056_v9 = vsel %vm17344_vm5, %v6540_v4, %v6542_v31  ;;  %vm17345_vm13 = vmmov %vm17337_vm4  ;;  %v6083_v4 = vrot.slane %v14641_v16, 1  ;;  %v15099_v16 = vld [vmem:[#allocation2 + $0x68] sm:$0xff]  }
 0x2d1   : > { %v15060_v41 = vsel %vm17345_vm13, %v6075_v52, %v6077_v2  ;;  %vm17346_vm6 = vmmov %vm17337_vm4  ;;  %vm17347_vm4 = vsmask.f32 7424  ;;  %v15075_v52 = vsel %vm17344_vm5, %v6544_v47, %v6546_v46  ;;  %v6978_v22 = vshrl.u32 %v15099_v16, 16 }
 0x2d2   : > { %v15063_v20 = vsel %vm17346_vm6, %v6077_v2, %v6079_v6  ;;  %v5554_v40 = vsel %vm17347_vm4, %v5549_v49, %v5553_v35  ;;  %vm17348_vm8 = vmmov %vm17344_vm5  ;;  %v6550_v2 = vrot.slane %v15044_v15, 1  ;;  %v9615_v49 = vcombine.low %v7319_v63, %v14990_v32 }
 0x2d3   : > { %v15069_v0 = vsel %vm17348_vm8, %v6542_v31, %v6544_v47  ;;  %v6085_v31 = vrot.slane %v14644_v26, 1  ;;  %v6093_v47 = vrot.slane %v14839_v14, 1  ;;  %10866 = vmatmul.mubr.bf16.vlgmr.msra.gmra.mxu0 %v6537_v19  ;;  %vm17349_vm10 = vmmov %vm17344_vm5  ;;  %v6095_v32 = vrot.slane %v14892_v55, 1  ;;  %v15101_v14 = vld [vmem:[#allocation2 + $0x70] sm:$0xff]  }
 0x2d4   : > { %10738 = vmatmul.mubr.bf16.gmra.mxu1 %v5546_v43  ;;  %v15089_v25 = vsel %vm17349_vm10, %v6079_v6, %v6081_v30  ;;  %10869 = vmatprep.mubr.bf16.mxu0 %v6539_v60  ;;  %vm17350_vm13 = vmmov %vm17344_vm5  ;;  %v6552_v63 = vrot.slane %v15065_v59, 1  ;;  %v6097_v6 = vrot.slane %v14894_v5, 1  ;;  %v17356_v19 = vrot.slane %v14735_v45, 1 }
 0x2d5   : > { %10741 = vmatprep.mubr.bf16.mxu1 %v5554_v40  ;;  %v15093_v26 = vsel %vm17350_vm13, %v6081_v30, %v6083_v4  ;;  %vm17351_vm6 = vmmov %vm17344_vm5  ;;  %10954 = vmatpush3.bf16.msra.mxu0 %v14669_v8  ;;  %v6099_v8 = vrot.slane %v14959_v54, 1  ;;  %v16726_v60 = vrot.slane %v15084_v28, 1  ;;  %v6103_v54 = vrot.slane %v15024_v21, 1 }
 0x2d6   : > { %v15096_v43 = vsel %vm17351_vm6, %v6546_v46, %v6548_v51  ;;  %vm17352_vm4 = vmmov %vm17344_vm5  ;;  %10955 = vmatprep.subr.bf16.mxu0 %v11450_v53  ;;  %v11452_v46 = vld [vmem:[%s16535_s1 + $0x3a8] sm:$0xff]   ;;  %vm17358_vm6 = vsmask.f32 7424  ;;  %v7340_v21 = vrot.slane %v9615_v49, 2 }
 0x2d7   : > { %v15107_v61 = vsel %vm17352_vm4, %v16725_v17, %v6093_v47  ;;  %vm17353_vm8 = vmmov %vm17352_vm4  ;;  %v5562_v40 = vsel %vm17358_vm6, %v5557_v36, %v5561_v50  ;;  %v11455_v50 = vld [vmem:[%s16535_s1 + $0x3a0] sm:$0xff]   ;;  %v6879_v17 = vshrl.u32 %v14995_v34, 16 }
 0x2d8   : > { %v15110_v55 = vsel %vm17353_vm8, %v6548_v51, %v6550_v2  ;;  %vm17354_vm5 = vmmov %vm17352_vm4 }
 0x2d9   : > { %v15113_v30 = vsel %vm17354_vm5, %v6093_v47, %v6095_v32  ;;  %vm17355_vm10 = vmmov %vm17352_vm4  ;;  %v15132_v47 = vsel %vm17352_vm4, %v6095_v32, %v6097_v6  ;;  %10956 = vmatpush3.bf16.msra.mxu0 %v11450_v53  ;;  %v6105_v32 = vrot.slane %v15032_v48, 1 }
 0x2da   : > { %v15121_v35 = vsel %vm17355_vm10, %v6083_v4, %v6085_v31  ;;  %vm17357_vm13 = vmmov %vm17352_vm4  ;;  %10957 = vmatprep.subr.bf16.mxu0 %v11452_v46 }
 0x2db   : > { %v15126_v51 = vsel %vm17357_vm13, %v6085_v31, %v17356_v19  ;;  %vm17359_vm8 = vmmov %vm17352_vm4  ;;  %10870 = vmatmul.mubr.bf16.gmra.mxu0 %v15053_v62  ;;  %v6881_v19 = vrot.slane %v6879_v17, 1  ;;  %v11457_v62 = vld [vmem:[%s16535_s1 + $0x398] sm:$0xff]   ;;  %v6897_v17 = vshrl.u32 %v15008_v56, 16 }
 0x2dc   : > { %v15135_v5 = vsel %vm17359_vm8, %v6097_v6, %v6099_v8  ;;  %vm17360_vm5 = vmmov %vm17352_vm4  ;;  %10742 = vmatmul.mubr.bf16.gmra.mxu1 %v5562_v40  ;;  %v6871_v6 = vshrl.u32 %v15002_v29, 16  ;;  %10873 = vmatprep.mubr.bf16.mxu0 %v15056_v9 }
 0x2dd   : > { %v15139_v4 = vsel %vm17360_vm5, %v6550_v2, %v6552_v63  ;;  %vm17361_vm10 = vmmov %vm17352_vm4  ;;  %v7341_v2 = vrot.slane %v14995_v34, 2  ;;  %10813 = vmatprep.mubr.bf16.mxu1 %v15036_v11  ;;  %10958 = vmatpush3.bf16.msra.mxu0 %v11452_v46  ;;  %v7345_v11 = vrot.slane %v15008_v56, 2  ;;  %v6899_v3 = vrot.slane %v6897_v17, 1 }
 0x2de   : > { %v15144_v1 = vsel %vm17361_vm10, %v6099_v8, %v6101_v33  ;;  %vm17362_vm13 = vmmov %vm17352_vm4  ;;  %v6874_v8 = vshll.u32 %v15002_v29, 16  ;;  %v6873_v29 = vrot.slane %v6871_v6, 1  ;;  %10959 = vmatprep.subr.bf16.mxu0 %v11455_v50  ;;  %v6900_v6 = vshll.u32 %v15008_v56, 16 }
 0x2df   : > { %v15150_v36 = vsel %vm17362_vm13, %v6101_v33, %v6103_v54  ;;  %vm17363_vm6 = vmmov %vm17352_vm4  ;;  %vm17364_vm4 = vcmask 1045504   ;;  %v6882_v33 = vshll.u32 %v14995_v34, 16  ;;  %v6888_v34 = vshrl.u32 %v15005_v12, 16 }
 0x2e0   : > { %v15157_v53 = vsel %vm17363_vm6, %v6552_v63, %v16726_v60  ;;  %v15165_v49 = vsel %vm17364_vm4, %v7340_v21, %v7341_v2  ;;  %vm17365_vm8 = vmmov %vm17360_vm5  ;;  %v7343_v63 = vrot.slane %v15005_v12, 2  ;;  %v6876_v40 = vrot.slane %v6874_v8, 2 }
 0x2e1   : > { %v15168_v48 = vsel %vm17365_vm8, %v6103_v54, %v6105_v32  ;;  %v6884_v21 = vrot.slane %v6882_v33, 2  ;;  %vm17366_vm5 = vmmov %vm17364_vm4  ;;  %v6891_v32 = vshll.u32 %v15005_v12, 16  ;;  %v6890_v60 = vrot.slane %v6888_v34, 1  ;;  %10960 = vmatpush3.bf16.msra.mxu0 %v11455_v50  ;;  %v11459_v50 = vld [vmem:[%s16535_s1 + $0x390] sm:$0xff]  }
 0x2e2   : > { %v15178_v54 = vsel %vm17366_vm5, %v7341_v2, %v7343_v63  ;;  %v6877_v9 = vor.u32 %v6876_v40, %v6873_v29  ;;  %vm17367_vm10 = vmmov %vm17364_vm4  ;;  %v7347_v33 = vrot.slane %v15010_v57, 2  ;;  %v11438_v2 = vld [vmem:[%s16535_s1 + $0x370] sm:$0xff]   ;;  %v6902_v12 = vrot.slane %v6900_v6, 2  ;;  %10961 = vmatprep.subr.bf16.mxu0 %v11457_v62 }
 0x2e3   : > { %v15183_v46 = vsel %vm17367_vm10, %v7343_v63, %v7345_v11  ;;  %v6885_v8 = vor.u32 %v6884_v21, %v6881_v19  ;;  %v6893_v31 = vrot.slane %v6891_v32, 2  ;;  %v7349_v29 = vrot.slane %v15014_v23, 2  ;;  %vm17369_vm6 = vmmov %vm17364_vm4  ;;  %10874 = vmatmul.mubr.bf16.gmra.mxu0 %v15069_v0 }
 0x2e4   : > { %v6906_v63 = vshrl.u32 %v15010_v57, 16  ;;  %vm17368_vm13 = vsmask.f32 6400  ;;  %v15197_v19 = vsel %vm17369_vm6, %v7345_v11, %v7347_v33  ;;  %v6909_v21 = vshll.u32 %v15010_v57, 16  ;;  %10814 = vmatmul.mubr.bf16.vlgmr.msra.gmra.mxu1 %v15047_v38  ;;  %10877 = vmatprep.mubr.bf16.mxu0 %v15075_v52  ;;  %vm17372_vm10 = vmmov %vm17364_vm4 }
 0x2e5   : > { %v15194_v40 = vsel %vm17368_vm13, %v6877_v9, %v6885_v8  ;;  %v6894_v56 = vor.u32 %v6893_v31, %v6890_v60  ;;  %v6903_v34 = vor.u32 %v6902_v12, %v6899_v3  ;;  %v15205_v32 = vsel %vm17364_vm4, %v7347_v33, %v7349_v29  ;;  %10817 = vmatprep.mubr.bf16.mxu1 %v15050_v7  ;;  %vm17370_vm8 = vmmov %vm17368_vm13  ;;  %v11442_v3 = vld [vmem:[%s16535_s1 + $0x368] sm:$0xff]  }
 0x2e6   : > { %v6908_v17 = vrot.slane %v6906_v63, 1  ;;  %v6915_v9 = vshrl.u32 %v15014_v23, 16  ;;  %10902 = vmatpush3.bf16.msra.mxu1 %v14809_v37  ;;  %v6911_v57 = vrot.slane %v6909_v21, 2  ;;  %v6918_v38 = vshll.u32 %v15014_v23, 16  ;;  %vm17371_vm5 = vmmov %vm17370_vm8  ;;  %10962 = vmatpush3.bf16.msra.mxu0 %v11457_v62  ;;  %v11462_v12 = vld [vmem:[%s16535_s1 + $0x388] sm:$0xff]  }
 0x2e7   : > { %v15211_v60 = vsel %vm17370_vm8, %v6885_v8, %v6894_v56  ;;  %v7351_v31 = vrot.slane %v15018_v27, 2  ;;  %10903 = vmatprep.subr.bf16.mxu1 %v11438_v2  ;;  %v15220_v11 = vsel %vm17371_vm5, %v6894_v56, %v6903_v34  ;;  %v7353_v37 = vrot.slane %v15022_v58, 2  ;;  %10963 = vmatprep.subr.bf16.mxu0 %v11459_v50  ;;  %vm17373_vm13 = vmmov %vm17364_vm4 }
 0x2e8   : > { %v6917_v7 = vrot.slane %v6915_v9, 1  ;;  %v6924_v6 = vshrl.u32 %v15018_v27, 16  ;;  %v6912_v23 = vor.u32 %v6911_v57, %v6908_v17  ;;  %v6920_v8 = vrot.slane %v6918_v38, 2  ;;  %vm17374_vm6 = vmmov %vm17371_vm5  ;;  %v11445_v9 = vld [vmem:[%s16535_s1 + $0x360] sm:$0xff]  }
 0x2e9   : > { %v15226_v0 = vsel %vm17372_vm10, %v7349_v29, %v7351_v31  ;;  %v6927_v33 = vshll.u32 %v15018_v27, 16  ;;  %v15233_v63 = vsel %vm17373_vm13, %v7351_v31, %v7353_v37  ;;  %v6933_v21 = vshrl.u32 %v15022_v58, 16  ;;  %vm17375_vm4 = vmmov %vm17371_vm5 }
 0x2ea   : > { %v6926_v56 = vrot.slane %v6924_v6, 1  ;;  %v6936_v52 = vshll.u32 %v15022_v58, 16  ;;  %10904 = vmatpush3.bf16.msra.mxu1 %v11438_v2  ;;  %v15238_v62 = vsel %vm17374_vm6, %v6903_v34, %v6912_v23  ;;  %v6921_v29 = vor.u32 %v6920_v8, %v6917_v7  ;;  %10964 = vmatpush3.bf16.msra.mxu0 %v11459_v50  ;;  %vm17376_vm8 = vmmov %vm17372_vm10  ;;  %v11464_v8 = vld [vmem:[%s16535_s1 + $0x380] sm:$0xff]  }
 0x2eb   : > { %v6929_v17 = vrot.slane %v6927_v33, 2  ;;  %v7355_v27 = vrot.slane %v15039_v18, 2  ;;  %10905 = vmatprep.subr.bf16.mxu1 %v11442_v3  ;;  %v6935_v57 = vrot.slane %v6933_v21, 1  ;;  %v7357_v31 = vrot.slane %v15044_v15, 2  ;;  %10965 = vmatprep.subr.bf16.mxu0 %v11462_v12  ;;  %vm17377_vm5 = vmmov %vm17376_vm8 }
 0x2ec   : > { %v6938_v38 = vrot.slane %v6936_v52, 2  ;;  %v6942_v6 = vshrl.u32 %v15039_v18, 16  ;;  %v15247_v58 = vsel %vm17375_vm4, %v6912_v23, %v6921_v29  ;;  %v6945_v7 = vshll.u32 %v15039_v18, 16  ;;  %10818 = vmatmul.mubr.bf16.gmra.mxu1 %v15060_v41  ;;  %vm17378_vm10 = vmmov %vm17375_vm4  ;;  %10878 = vmatmul.mubr.bf16.gmra.mxu0 %v15096_v43  ;;  %v11449_v52 = vld [vmem:[%s16535_s1 + $0x358] sm:$0xff]  }
 0x2ed   : > { %v6930_v2 = vor.u32 %v6929_v17, %v6926_v56  ;;  %v15250_v34 = vsel %vm17376_vm8, %v7353_v37, %v7355_v27  ;;  %v15258_v21 = vsel %vm17377_vm5, %v7355_v27, %v7357_v31  ;;  %v6951_v23 = vshrl.u32 %v15044_v15, 16  ;;  %10821 = vmatprep.mubr.bf16.mxu1 %v15063_v20  ;;  %vm17379_vm13 = vmmov %vm17375_vm4  ;;  %10881 = vmatprep.mubr.bf16.mxu0 %v15110_v55  ;;  %v15289_v55 = vld [vmem:[%s16535_s1 + $0x438] sm:$0xff]  }
 0x2ee   : > { %v6939_v33 = vor.u32 %v6938_v38, %v6935_v57  ;;  %v6944_v50 = vrot.slane %v6942_v6, 1  ;;  %10906 = vmatpush3.bf16.msra.mxu1 %v11442_v3  ;;  %v6947_v18 = vrot.slane %v6945_v7, 2  ;;  %v6954_v41 = vshll.u32 %v15044_v15, 16  ;;  %10966 = vmatpush3.bf16.msra.mxu0 %v11462_v12  ;;  %vm17380_vm6 = vmmov %vm17377_vm5  ;;  %v15291_v12 = vld [vmem:[#allocation2 + $0x78] sm:$0xff]  }
 0x2ef   : > { %v15263_v37 = vsel %vm17378_vm10, %v6921_v29, %v6930_v2  ;;  %v7359_v56 = vrot.slane %v15065_v59, 2  ;;  %10907 = vmatprep.subr.bf16.mxu1 %v11445_v9  ;;  %v6953_v20 = vrot.slane %v6951_v23, 1  ;;  %v7361_v3 = vrot.slane %v15084_v28, 2  ;;  %10967 = vmatprep.subr.bf16.mxu0 %v11464_v8  ;;  %vm17381_vm4 = vmmov %vm17377_vm5 }
 0x2f0   : > { %v15272_v17 = vsel %vm17379_vm13, %v6930_v2, %v6939_v33  ;;  %v6960_v29 = vshrl.u32 %v15065_v59, 16  ;;  %v6948_v15 = vor.u32 %v6947_v18, %v6944_v50  ;;  %v6956_v27 = vrot.slane %v6954_v41, 2  ;;  %vm17382_vm8 = vmmov %vm17378_vm10  ;;  %v15297_v18 = vld [vmem:[#allocation2 + $0x80] sm:$0xff]   ;;  %v11454_v41 = vld [vmem:[%s16535_s1 + $0x350] sm:$0xff]  }
 0x2f1   : > { %v15278_v43 = vsel %vm17380_vm6, %v7357_v31, %v7359_v56  ;;  %v6963_v57 = vshll.u32 %v15065_v59, 16  ;;  %v15282_v38 = vsel %vm17381_vm4, %v7359_v56, %v7361_v3  ;;  %v6969_v2 = vshrl.u32 %v15084_v28, 16  ;;  %vm17383_vm5 = vmmov %vm17382_vm8 }
 0x2f2   : > { %v6962_v6 = vrot.slane %v6960_v29, 1  ;;  %v6972_v7 = vshll.u32 %v15084_v28, 16  ;;  %10908 = vmatpush3.bf16.msra.mxu1 %v11445_v9  ;;  %v15294_v31 = vsel %vm17382_vm8, %v6939_v33, %v6948_v15  ;;  %v6957_v59 = vor.u32 %v6956_v27, %v6953_v20  ;;  %10968 = vmatpush3.bf16.msra.mxu0 %v11464_v8  ;;  %vm17384_vm10 = vmmov %vm17381_vm4 }
 0x2f3   : > { %v6965_v50 = vrot.slane %v6963_v57, 2  ;;  %v7363_v23 = vrot.slane %v15099_v16, 2  ;;  %10909 = vmatprep.subr.bf16.mxu1 %v11449_v52  ;;  %v6971_v56 = vrot.slane %v6969_v2, 1  ;;  %v7365_v9 = vrot.slane %v15101_v14, 2  ;;  %11057 = vmatprep.subr.bf16.mxu0 %v15289_v55  ;;  %vm17385_vm13 = vmmov %vm17381_vm4 }
 0x2f4   : > { %v6974_v29 = vrot.slane %v6972_v7, 2  ;;  %v15305_v33 = vsel %vm17383_vm5, %v6948_v15, %v6957_v59  ;;  %v6981_v57 = vshll.u32 %v15099_v16, 16  ;;  %10822 = vmatmul.mubr.bf16.gmra.mxu1 %v15089_v25  ;;  %v6980_v7 = vrot.slane %v6978_v22, 1  ;;  %v15318_v15 = vld [vmem:[#allocation2 + $0x88] sm:$0xff]   ;;  %vm17386_vm6 = vmmov %vm17383_vm5  ;;  %10882 = vmatmul.mubr.bf16.gmra.mxu0 %v15139_v4 }
 0x2f5   : > { %v6966_v20 = vor.u32 %v6965_v50, %v6962_v6  ;;  %v15308_v27 = vsel %vm17384_vm10, %v7361_v3, %v7363_v23  ;;  %v15314_v2 = vsel %vm17385_vm13, %v7363_v23, %v7365_v9  ;;  %v6987_v8 = vshrl.u32 %v15101_v14, 16  ;;  %10825 = vmatprep.mubr.bf16.mxu1 %v15093_v26  ;;  %v15326_v23 = vld [vmem:[#allocation2 + $0x90] sm:$0xff]   ;;  %v11460_v22 = vld [vmem:[%s16535_s1 + $0x348] sm:$0xff]   ;;  %vm17387_vm4 = vmmov %vm17383_vm5  ;;  %10885 = vmatprep.mubr.bf16.mxu0 %v15157_v53 }
 0x2f6   : > { %v6975_v13 = vor.u32 %v6974_v29, %v6971_v56  ;;  %10910 = vmatpush3.bf16.msra.mxu1 %v11449_v52  ;;  %v6983_v6 = vrot.slane %v6981_v57, 2  ;;  %v6990_v25 = vshll.u32 %v15101_v14, 16  ;;  %v7367_v50 = vrot.slane %v15291_v12, 2  ;;  %vm17388_vm8 = vmmov %vm17384_vm10 }
 0x2f7   : > { %v15321_v3 = vsel %vm17386_vm6, %v6957_v59, %v6966_v20  ;;  %10911 = vmatprep.subr.bf16.mxu1 %v11454_v41  ;;  %v6989_v52 = vrot.slane %v6987_v8, 1  ;;  %v7369_v59 = vrot.slane %v15297_v18, 2  ;;  %v6996_v56 = vshrl.u32 %v15291_v12, 16  ;;  %vm17389_vm5 = vmmov %vm17388_vm8 }
 0x2f8   : > { %v15332_v26 = vsel %vm17387_vm4, %v6966_v20, %v6975_v13  ;;  %v6984_v29 = vor.u32 %v6983_v6, %v6980_v7  ;;  %v6992_v57 = vrot.slane %v6990_v25, 2  ;;  %v15338_v4 = vsel %vm17388_vm8, %v7365_v9, %v7367_v50  ;;  %vm17391_vm10 = vmmov %vm17387_vm4  ;;  %v11465_v9 = vld [vmem:[%s16535_s1 + $0x340] sm:$0xff]  }
 0x2f9   : > { %v6999_v10 = vshll.u32 %v15291_v12, 16  ;;  %v15342_v39 = vsel %vm17389_vm5, %v7367_v50, %v7369_v59  ;;  %v6998_v24 = vrot.slane %v6996_v56, 1  ;;  %v7005_v20 = vshrl.u32 %v15297_v18, 16  ;;  %vm17393_vm13 = vmmov %vm17387_vm4 }
 0x2fa   : > { %17390 = vst [vmem:[#allocation66_spill] sm:$0xff] %v15342_v39  ;;  %v7008_v8 = vshll.u32 %v15297_v18, 16  ;;  %10912 = vmatpush3.bf16.msra.mxu1 %v11454_v41  ;;  %v15347_v42 = vsel %vm17391_vm10, %v6975_v13, %v6984_v29  ;;  %v6993_v53 = vor.u32 %v6992_v57, %v6989_v52  ;;  %v7371_v6 = vrot.slane %v15318_v15, 2  ;;  %vm17394_vm6 = vmmov %vm17389_vm5 }
 0x2fb   : > { %17392 = vst [vmem:[#allocation57_spill] sm:$0xff] %v15347_v42  ;;  %v7001_v7 = vrot.slane %v6999_v10, 2  ;;  %10913 = vmatprep.subr.bf16.mxu1 %v11460_v22  ;;  %v7007_v25 = vrot.slane %v7005_v20, 1  ;;  %v16734_v56 = vrot.slane %v15326_v23, 2  ;;  %v7014_v39 = vshrl.u32 %v15318_v15, 16  ;;  %vm17395_vm4 = vmmov %vm17389_vm5 }
 0x2fc   : > { %v7010_v50 = vrot.slane %v7008_v8, 2  ;;  %v15356_v41 = vsel %vm17393_vm13, %v6984_v29, %v6993_v53  ;;  %v15359_v52 = vsel %vm17394_vm6, %v7369_v59, %v7371_v6  ;;  %v7017_v10 = vshll.u32 %v15318_v15, 16  ;;  %10826 = vmatmul.mubr.bf16.gmra.mxu1 %v15121_v35  ;;  %vm17399_vm5 = vmmov %vm17391_vm10 }
 0x2fd   : > { %v7002_v13 = vor.u32 %v7001_v7, %v6998_v24  ;;  %v15366_v20 = vsel %vm17395_vm4, %v7371_v6, %v16734_v56  ;;  %v7016_v8 = vrot.slane %v7014_v39, 1  ;;  %v7023_v42 = vshrl.u32 %v15326_v23, 16  ;;  %10829 = vmatprep.mubr.bf16.mxu1 %v15126_v51  ;;  %vm17403_vm13 = vmmov %vm17399_vm5  ;;  %v15505_v56 = vld [vmem:[#allocation2 + $0x90] sm:$0xff]  }
 0x2fe   : > { %v7011_v57 = vor.u32 %v7010_v50, %v7007_v25  ;;  %v17396_v24 = vrot.slane %v15099_v16, 1  ;;  %v17397_v59 = vrot.slane %v15084_v28, 1  ;;  %vm17398_vm8 = vcmask 1046528   ;;  %10914 = vmatpush3.bf16.msra.mxu1 %v11460_v22  ;;  %v15387_v28 = vld [vmem:[%s16535_s1 + $0x3f8] sm:$0xff]   ;;  %v11521_v50 = vld [vmem:[#allocation2 + $0x50] sm:$0xff]   ;;  %vm17404_vm6 = vmmov %vm17399_vm5 }
 0x2ff   : > { %v15376_v35 = vsel %vm17399_vm5, %v6993_v53, %v7002_v13  ;;  %v7019_v7 = vrot.slane %v7017_v10, 2  ;;  %v7026_v25 = vshll.u32 %v15326_v23, 16  ;;  %v17400_v39 = vrot.slane %v15101_v14, 1  ;;  %vm17402_vm10 = vmmov %vm17398_vm8  ;;  %10915 = vmatprep.subr.bf16.mxu1 %v11465_v9 }
 0x300   : > { %v6557_v29 = vsel %vm17398_vm8, %v17397_v59, %v17396_v24  ;;  %v17401_v6 = vmov %v17396_v24  ;;  %v15390_v22 = vsel %vm17403_vm13, %v7002_v13, %v7011_v57  ;;  %v7025_v53 = vrot.slane %v7023_v42, 1  ;;  %vm17407_vm4 = vmmov %vm17398_vm8 }
 0x301   : > { %10886 = vmatmul.mubr.bf16.gmra.mxu0 %v6557_v29  ;;  %v6559_v51 = vsel %vm17402_vm10, %v17401_v6, %v17400_v39  ;;  %v6089_v10 = vrot.slane %v11521_v50, 1  ;;  %v7020_v24 = vor.u32 %v7019_v7, %v7016_v8  ;;  %v7028_v59 = vrot.slane %v7026_v25, 2  ;;  %vm17408_vm8 = vmmov %vm17399_vm5 }
 0x302   : > { %10889 = vmatprep.mubr.bf16.mxu0 %v6559_v51  ;;  %v6560_v29 = vrot.slane %v15291_v12, 1  ;;  %10916 = vmatpush3.bf16.msra.mxu1 %v11465_v9  ;;  %v6562_v6 = vrot.slane %v15297_v18, 1  ;;  %v17406_v13 = vrot.slane %v14735_v45, 1  ;;  %v17409_v12 = vrot.slane %v14832_v44, 1  ;;  %vm17410_vm5 = vmmov %vm17407_vm4 }
 0x303   : > { %v15394_v16 = vsel %vm17404_vm6, %v7011_v57, %v7020_v24  ;;  %v15396_v39 = vor.u32 %v7028_v59, %v7025_v53  ;;  %11005 = vmatprep.subr.bf16.mxu1 %v15387_v28  ;;  %v17411_v57 = vrot.slane %v15101_v14, 1  ;;  %vm17412_vm10 = vmmov %vm17407_vm4  ;;  %v6564_v45 = vrot.slane %v15318_v15, 1  ;;  %v11461_v14 = vld [vmem:[#allocation2 + $0x98] ss:$0 sps:$4 sm:$0x11]   ;;  %v15457_v59 = vld [vmem:[#allocation2 + $0x40] sm:$0xff]  }
 0x304   : > { %v6090_v42 = vsel %vm17407_vm4, %v17406_v13, %v6089_v10  ;;  %v6092_v9 = vsel %vm17410_vm5, %v6089_v10, %v17409_v12  ;;  %vm17413_vm13 = vmmov %vm17407_vm4  ;;  %v6566_v25 = vrot.slane %v15326_v23, 1  ;;  %v6568_v53 = vrot.slane %v11461_v14, 1  ;;  %v11475_v10 = vld [vmem:[%s16535_s1 + $0x420] sm:$0xff]  }
 0x305   : > { %17405 = vst [vmem:[#allocation12_spill] sm:$0xff] %v15396_v39  ;;  %v15405_v8 = vsel %vm17408_vm8, %v7020_v24, %v15396_v39  ;;  %10830 = vmatmul.mubr.bf16.gmra.mxu1 %v6090_v42  ;;  %v6561_v18 = vsel %vm17412_vm10, %v17411_v57, %v6560_v29  ;;  %v6563_v7 = vsel %vm17413_vm13, %v6560_v29, %v6562_v6  ;;  %vm17414_vm6 = vmmov %vm17407_vm4  ;;  %v15455_v24 = vld [vmem:[#allocation2 + $0x38] sm:$0xff]   ;;  %v15460_v29 = vld [vmem:[#allocation2 + $0x48] sm:$0xff]   ;;  %v8621_v14 = vrot.slane %v15457_v59, 3 }
 0x306   : > { %10833 = vmatprep.mubr.bf16.mxu1 %v6092_v9  ;;  %v6565_v44 = vsel %vm17414_vm6, %v6562_v6, %v6564_v45  ;;  %v6567_v51 = vsel %vm17407_vm4, %v6564_v45, %v6566_v25  ;;  %vm17415_vm8 = vmmov %vm17407_vm4  ;;  %17416 = vst [vmem:[#allocation6_spill] sm:$0xff] %v15460_v29  ;;  %v15467_v42 = vld [vmem:[#allocation2 + $0x58] sm:$0xff]   ;;  %v15470_v12 = vld [vmem:[#allocation2 + $0x60] sm:$0xff]   ;;  %vm17419_vm5 = vcmask 1044480  }
 0x307   : > { %v6569_v15 = vsel %vm17415_vm8, %v6566_v25, %v6568_v53  ;;  %v15472_v9 = vld [vmem:[#allocation2 + $0x68] sm:$0xff]   ;;  %v11476_v45 = vld [vmem:[%s16535_s1 + $0x418] sm:$0xff]   ;;  %v15485_v25 = vld [vmem:[#allocation2 + $0x80] sm:$0xff]  }
 0x308   : > { %17418 = vst [vmem:[#allocation7_spill] sm:$0xff] %v15485_v25  ;;  %v15490_v53 = vld [vmem:[#allocation2 + $0x88] sm:$0xff]   ;;  %vm17421_vm10 = vmmov %vm17419_vm5 }
 0x309   : > { %10890 = vmatmul.mubr.bf16.gmra.mxu0 %v6561_v18  ;;  %vm17423_vm13 = vmmov %vm17419_vm5 }
 0x30a   : > { %10893 = vmatprep.mubr.bf16.mxu0 %v6563_v7  ;;  %vm17425_vm6 = vmmov %vm17419_vm5 }
 0x30b   : > { %vm17427_vm4 = vmmov %vm17419_vm5 }
 0x30c   : > { %vm17429_vm8 = vmmov %vm17427_vm4 }
 0x30d   : > { %10834 = vmatmul.mubr.bf16.gmra.mxu1 %v15107_v61  ;;  %v11472_v61 = vld [vmem:[%s16535_s1 + $0x430] sm:$0xff]  }
 0x30e   : > { %10837 = vmatprep.mubr.bf16.mxu1 %v15113_v30  ;;  %v15432_v30 = vpop.f32.mrf.mxu0 }
 0x311   : > { %10894 = vmatmul.mubr.bf16.gmra.mxu0 %v6565_v44 }
 0x312   : > { %10897 = vmatprep.mubr.bf16.mxu0 %v6567_v51  ;;  %v8619_v51 = vrot.slane %v15455_v24, 3 }
 0x315   : > { %10838 = vmatmul.mubr.bf16.gmra.mxu1 %v15132_v47  ;;  %v11473_v47 = vld [vmem:[%s16535_s1 + $0x428] sm:$0xff]  }
 0x316   : > { %10841 = vmatprep.mubr.bf16.mxu1 %v15135_v5  ;;  %v15437_v5 = vpop.f32.mrf.mxu0 }
 0x318   : > { %v15450_v50 = vpop.f32.mrf.mxu0 }
 0x319   : > { %10898 = vmatmul.mubr.bf16.gmra.mxu0 %v6569_v15 }
 0x31a   : > { %10969 = vmatprep.mubr.bf16.mxu0 %v15165_v49  ;;  %v15441_v49 = vld [vmem:[#allocation2 + $0x14] sm:$0xf] }
 0x31d   : > { %10842 = vmatmul.mubr.bf16.gmra.mxu1 %v15144_v1  ;;  %v15439_v1 = vld [vmem:[#allocation2 + $0x18] sm:$0xff]  }
 0x31e   : > { %10845 = vmatprep.mubr.bf16.mxu1 %v15150_v36  ;;  %v8589_v36 = vld [vmem:[#allocation2 + $0x10] sm:$0x8]  ;;  %v8611_v13 = vrot.slane %v15439_v1, 3 }
 0x31f   : > { %v9708_v6 = vcombine.low %v8589_v36, %v15441_v49  ;;  %v8623_v36 = vrot.slane %v15460_v29, 3  ;;  %v8629_v29 = vrot.slane %v15470_v12, 3 }
 0x321   : > { %10970 = vmatmul.mubr.bf16.vlgmr.msra.gmra.mxu0 %v15178_v54  ;;  %v15443_v54 = vld [vmem:[#allocation2 + $0x20] sm:$0xff]   ;;  %v8610_v57 = vrot.slane %v9708_v6, 3  ;;  %v11467_v6 = vld [vmem:[%s16535_s1 + $0x3f0] sm:$0xff]  }
 0x322   : > { %10973 = vmatprep.mubr.bf16.mxu0 %v15183_v46  ;;  %11058 = vmatpush3.bf16.msra.mxu0 %v15289_v55  ;;  %v15445_v46 = vld [vmem:[#allocation2 + $0x28] sm:$0xff]   ;;  %v15447_v55 = vld [vmem:[#allocation2 + $0x30] sm:$0xff]   ;;  %v8613_v18 = vrot.slane %v15443_v54, 3 }
 0x323   : > { %11059 = vmatprep.subr.bf16.mxu0 %v11472_v61  ;;  %v8615_v7 = vrot.slane %v15445_v46, 3  ;;  %v8617_v44 = vrot.slane %v15447_v55, 3  ;;  %v15493_v15 = vsel %vm17419_vm5, %v8610_v57, %v8611_v13  ;;  %vm17431_vm5 = vmmov %vm17427_vm4 }
 0x324   : > { %17420 = vst [vmem:[#allocation15_spill] sm:$0xff] %v15493_v15  ;;  %v8627_v15 = vrot.slane %v15467_v42, 3 }
 0x325   : > { %10846 = vmatmul.mubr.bf16.gmra.mxu1 %v15168_v48  ;;  %v15465_v48 = vld [vmem:[#allocation2 + $0x50] sm:$0xff]   ;;  %v15510_v39 = vsel %vm17425_vm6, %v8615_v7, %v8617_v44  ;;  %v15513_v57 = vsel %vm17427_vm4, %v8617_v44, %v8619_v51  ;;  %v8631_v44 = vrot.slane %v15472_v9, 3  ;;  %vm17437_vm6 = vmmov %vm17427_vm4 }
 0x326   : > { %11060 = vmatpush3.bf16.msra.mxu0 %v11472_v61  ;;  %10917 = vmatprep.mubr.bf16.mxu1 %v15194_v40  ;;  %v15474_v40 = vld [vmem:[#allocation2 + $0x70] sm:$0xff]   ;;  %v15496_v61 = vsel %vm17421_vm10, %v8611_v13, %v8613_v18  ;;  %17426 = vst [vmem:[#allocation72_spill] sm:$0xff] %v15510_v39  ;;  %17428 = vst [vmem:[#allocation68_spill] sm:$0xff] %v15513_v57  ;;  %v15516_v13 = vsel %vm17429_vm8, %v8619_v51, %v8621_v14  ;;  %v8639_v39 = vrot.slane %v15490_v53, 3 }
 0x327   : > { %11061 = vmatprep.subr.bf16.mxu0 %v11473_v47  ;;  %17422 = vst [vmem:[#allocation5_spill] sm:$0xff] %v15496_v61  ;;  %17430 = vst [vmem:[#allocation9_spill] sm:$0xff] %v15516_v13  ;;  %v8625_v61 = vrot.slane %v15465_v48, 3  ;;  %v8633_v51 = vrot.slane %v15474_v40, 3  ;;  %v15545_v57 = vsel %vm17437_vm6, %v8627_v15, %v8629_v29 }
 0x328   : > { %vm17433_vm10 = vmmov %vm17427_vm4  ;;  %17438 = vst [vmem:[#allocation75_spill] sm:$0xff] %v15545_v57 }
 0x329   : > { %10974 = vmatmul.mubr.bf16.gmra.mxu0 %v15197_v19  ;;  %v15478_v19 = vpop.f32.mrf.mxu0  ;;  %vm17440_vm8 = vmmov %vm17427_vm4 }
 0x32a   : > { %10977 = vmatprep.mubr.bf16.mxu0 %v15205_v32  ;;  %11062 = vmatpush3.bf16.msra.mxu0 %v11473_v47  ;;  %17417 = vst [vmem:[#allocation67_spill] sm:$0xff] %v15478_v19  ;;  %v15483_v32 = vld [vmem:[#allocation2 + $0x78] sm:$0xff]   ;;  %v15499_v47 = vsel %vm17423_vm13, %v8613_v18, %v8615_v7  ;;  %v15507_v19 = vld [vmem:[#allocation2 + $0xa0] ss:$0 sps:$4 sm:$0x77]   ;;  %vm17435_vm13 = vmmov %vm17427_vm4 }
 0x32b   : > { %11063 = vmatprep.subr.bf16.mxu0 %v11475_v10  ;;  %17424 = vst [vmem:[#allocation73_spill] sm:$0xff] %v15499_v47  ;;  %v15518_v18 = vld [vmem:[#allocation2 + $0x98] sm:$0xff]   ;;  %v15521_v47 = vsel %vm17431_vm5, %v8621_v14, %v8623_v36  ;;  %v15527_v7 = vpop.f32.mrf.mxu0  ;;  %v8635_v14 = vrot.slane %v15483_v32, 3  ;;  %v15542_v13 = vsel %vm17435_vm13, %v8625_v61, %v8627_v15  ;;  %vm17442_vm5 = vmmov %vm17427_vm4 }
 0x32c   : > { %17432 = vst [vmem:[#allocation74_spill] sm:$0xff] %v15521_v47  ;;  %v8637_v47 = vrot.slane %v15485_v25, 3  ;;  %17436 = vst [vmem:[#allocation76_spill] sm:$0xff] %v15542_v13 }
 0x32d   : > { %10918 = vmatmul.mubr.bf16.vlgmr.msra.gmra.mxu1 %v15211_v60  ;;  %v15539_v60 = vsel %vm17433_vm10, %v8623_v36, %v8625_v61  ;;  %v15552_v25 = vpop.f32.mrf.mxu0  ;;  %v15558_v61 = vsel %vm17440_vm8, %v8631_v44, %v8633_v51  ;;  %v15561_v15 = vsel %vm17442_vm5, %v8633_v51, %v8635_v14  ;;  %v8641_v36 = vrot.slane %v15505_v56, 3  ;;  %vm17444_vm10 = vmmov %vm17427_vm4  ;;  %v11480_v51 = vld [vmem:[%s16535_s1 + $0x408] sm:$0xff]  }
 0x32e   : > { %11064 = vmatpush3.bf16.msra.mxu0 %v11475_v10  ;;  %v11477_v10 = vld [vmem:[%s16535_s1 + $0x410] sm:$0xff]   ;;  %10921 = vmatprep.mubr.bf16.mxu1 %v15220_v11  ;;  %17434 = vst [vmem:[#allocation69_spill] sm:$0xff] %v15539_v60  ;;  %v11468_v11 = vld [vmem:[%s16535_s1 + $0x3e8] sm:$0xff]   ;;  %17441 = vst [vmem:[#allocation33_spill] sm:$0xff] %v15558_v61  ;;  %vm17456_vm5 = vcmask 1045504  }
 0x32f   : > { %11065 = vmatprep.subr.bf16.mxu0 %v11476_v45  ;;  %11006 = vmatpush3.bf16.msra.mxu1 %v15387_v28  ;;  %v15555_v28 = vsel %vm17427_vm4, %v8629_v29, %v8631_v44  ;;  %17443 = vst [vmem:[#allocation77_spill] sm:$0xff] %v15561_v15  ;;  %vm17446_vm13 = vmmov %vm17427_vm4  ;;  %v8643_v29 = vrot.slane %v15518_v18, 3  ;;  %v15573_v44 = vpop.f32.mrf.mxu0 }
 0x330   : > { %11007 = vmatprep.subr.bf16.mxu1 %v11467_v6  ;;  %17439 = vst [vmem:[#allocation71_spill] sm:$0xff] %v15555_v28  ;;  %v15569_v57 = vsel %vm17446_vm13, %v8637_v47, %v8639_v39  ;;  %v8645_v28 = vrot.slane %v15507_v19, 3  ;;  %vm17448_vm6 = vmmov %vm17427_vm4 }
 0x331   : > { %10978 = vmatmul.mubr.bf16.gmra.mxu0 %v15226_v0  ;;  %v15566_v0 = vsel %vm17444_vm10, %v8635_v14, %v8637_v47  ;;  %17447 = vst [vmem:[#allocation83_spill] sm:$0xff] %v15569_v57  ;;  %vm17451_vm8 = vmmov %vm17427_vm4  ;;  %v11469_v14 = vld [vmem:[%s16535_s1 + $0x3e0] sm:$0xff]   ;;  %v15590_v57 = vpop.f32.mrf.mxu0  ;;  %vm17457_vm10 = vsmask.f32 5376 }
 0x332   : > { %10981 = vmatprep.mubr.bf16.mxu0 %v15233_v63  ;;  %11066 = vmatpush3.bf16.msra.mxu0 %v11476_v45  ;;  %17445 = vst [vmem:[#allocation82_spill] sm:$0xff] %v15566_v0  ;;  %v15579_v63 = vsel %vm17448_vm6, %v8639_v39, %v8641_v36  ;;  %v15582_v45 = vsel %vm17427_vm4, %v8641_v36, %v8643_v29  ;;  %v11483_v39 = vld [vmem:[%s16535_s1 + $0x400] sm:$0xff]   ;;  %vm17458_vm13 = vmmov %vm17457_vm10  ;;  %vm17462_vm4 = vsmask.f32 6400 }
 0x333   : > { %11067 = vmatprep.subr.bf16.mxu0 %v11477_v10  ;;  %17449 = vst [vmem:[#allocation79_spill] sm:$0xff] %v15579_v63  ;;  %11008 = vmatpush3.bf16.msra.mxu1 %v11467_v6  ;;  %17450 = vst [vmem:[#allocation85_spill] sm:$0xff] %v15582_v45  ;;  %v15585_v47 = vsel %vm17451_vm8, %v8643_v29, %v8645_v28  ;;  %v11471_v6 = vld [vmem:[%s16535_s1 + $0x3d8] sm:$0xff]   ;;  %v10711_v28 = vpop.f32.mrf.mxu1 }
 0x334   : > { %17452 = vst [vmem:[#allocation84_spill] sm:$0xff] %v15585_v47  ;;  %11009 = vmatprep.subr.bf16.mxu1 %v11468_v11  ;;  %v15621_v36 = vadd.f32 %v15432_v30, %v10711_v28  ;;  %vm17459_vm6 = vmmov %vm17457_vm10 }
 0x335   : > { %10922 = vmatmul.mubr.bf16.gmra.mxu1 %v15238_v62  ;;  %vm17463_vm8 = vmmov %vm17456_vm5 }
 0x336   : > { %11068 = vmatpush3.bf16.msra.mxu0 %v11477_v10  ;;  %10925 = vmatprep.mubr.bf16.mxu1 %v15247_v58  ;;  %v15602_v10 = vpop.f32.mrf.mxu0  ;;  %v11474_v58 = vld [vmem:[%s16535_s1 + $0x3d0] sm:$0xff]  }
 0x337   : > { %11069 = vmatprep.subr.bf16.mxu0 %v11480_v51  ;;  %11010 = vmatpush3.bf16.msra.mxu1 %v11468_v11 }
 0x338   : > { %11011 = vmatprep.subr.bf16.mxu1 %v11469_v14  ;;  %v15604_v62 = vpop.f32.mrf.mxu0 }
 0x339   : > { %10982 = vmatmul.mubr.bf16.gmra.mxu0 %v15250_v34 }
 0x33a   : > { %10985 = vmatprep.mubr.bf16.mxu0 %v15258_v21  ;;  %11070 = vmatpush3.bf16.msra.mxu0 %v11480_v51  ;;  %v15609_v34 = vpop.f32.mrf.mxu0  ;;  %v11478_v21 = vld [vmem:[%s16535_s1 + $0x3c8] sm:$0xff]  }
 0x33b   : > { %11071 = vmatprep.subr.bf16.mxu0 %v11483_v39  ;;  %11012 = vmatpush3.bf16.msra.mxu1 %v11469_v14  ;;  %v15642_v14 = vld [vmem:[%s16535_s1 + $0x478] sm:$0xff]  }
 0x33c   : > { %11013 = vmatprep.subr.bf16.mxu1 %v11471_v6  ;;  %v15617_v11 = vpop.f32.mrf.mxu0 }
 0x33d   : > { %10926 = vmatmul.mubr.bf16.gmra.mxu1 %v15263_v37  ;;  %v11484_v37 = vld [vmem:[%s16535_s1 + $0x3c0] sm:$0xff]  }
 0x33e   : > { %11072 = vmatpush3.bf16.msra.mxu0 %v11483_v39  ;;  %10929 = vmatprep.mubr.bf16.mxu1 %v15272_v17  ;;  %v15626_v17 = vpop.f32.mrf.mxu0 }
 0x33f   : > { %11014 = vmatpush3.bf16.msra.mxu1 %v11471_v6 }
 0x340   : > { %11015 = vmatprep.subr.bf16.mxu1 %v11474_v58  ;;  %v15632_v51 = vpop.f32.mrf.mxu0 }
 0x341   : > { %10986 = vmatmul.mubr.bf16.gmra.mxu0 %v15278_v43  ;;  %v5663_v43 = vpop.f32.mrf.mxu1 }
 0x342   : > { %10989 = vmatprep.mubr.bf16.mxu0 %v15282_v38  ;;  %v15630_v29 = vadd.f32 %v15437_v5, %v5663_v43  ;;  %v7656_v5 = vld [vmem:[#allocation2 + $0x10] sm:$0xc] }
 0x343   : > { %11016 = vmatpush3.bf16.msra.mxu1 %v11474_v58  ;;  %v10712_v38 = vpop.f32.mrf.mxu1 }
 0x344   : > { %11017 = vmatprep.subr.bf16.mxu1 %v11478_v21  ;;  %v15637_v30 = vadd.f32 %v15450_v50, %v10712_v38  ;;  %v17453_v50 = vld [vmem:[#allocation66_spill] sm:$0xff] }
 0x345   : > { %10930 = vmatmul.mubr.bf16.gmra.mxu1 %v15294_v31  ;;  %v15645_v31 = vpop.f32.mrf.mxu0 }
 0x346   : > { %10933 = vmatprep.mubr.bf16.mxu1 %v15305_v33 }
 0x347   : > { %11018 = vmatpush3.bf16.msra.mxu1 %v11478_v21  ;;  %v15649_v33 = vpop.f32.mrf.mxu0 }
 0x348   : > { %11019 = vmatprep.subr.bf16.mxu1 %v11484_v37 }
 0x349   : > { %10990 = vmatmul.mubr.bf16.gmra.mxu0 %v15308_v27  ;;  %v15652_v27 = vpop.f32.mrf.mxu1  ;;  %v15659_v39 = vpop.f32.mrf.mxu0 }
 0x34a   : > { %10993 = vmatprep.mubr.bf16.mxu0 %v15314_v2  ;;  %v15657_v2 = vcombine.low %v7656_v5, %v15441_v49 }
 0x34b   : > { %11020 = vmatpush3.bf16.msra.mxu1 %v11484_v37  ;;  %v10715_v6 = vpop.f32.mrf.mxu1  ;;  %v15666_v21 = vpop.f32.mrf.mxu0  ;;  %v17454_v37 = vld [vmem:[#allocation57_spill] sm:$0xff] }
 0x34c   : > { %11109 = vmatprep.subr.bf16.mxu1 %v15642_v14  ;;  %v15662_v58 = vadd.f32 %v15527_v7, %v10715_v6  ;;  %v8141_v49 = vshrl.u32 %v15657_v2, 16  ;;  %v8144_v43 = vshll.u32 %v15657_v2, 16 }
 0x34d   : > { %10934 = vmatmul.mubr.bf16.gmra.mxu1 %v15321_v3  ;;  %v8149_v3 = vshrl.u32 %v15439_v1, 16  ;;  %v5679_v28 = vpop.f32.mrf.mxu1  ;;  %v15679_v6 = vpop.f32.mrf.mxu0 }
 0x34e   : > { %10937 = vmatprep.mubr.bf16.mxu1 %v15332_v26  ;;  %v8152_v26 = vshll.u32 %v15439_v1, 16  ;;  %v8146_v47 = vrot.slane %v8144_v43, 3 }
 0x34f   : > { %v10716_v7 = vpop.f32.mrf.mxu1  ;;  %v8151_v38 = vrot.slane %v8149_v3, 2 }
 0x350   : > { %v8154_v5 = vrot.slane %v8152_v26, 3  ;;  %v8167_v26 = vshrl.u32 %v15445_v46, 16 }
 0x351   : > { %10994 = vmatmul.mubr.bf16.gmra.mxu0 %v15338_v4  ;;  %v15670_v4 = vadd.f32 %v15552_v25, %v5679_v28  ;;  %v11479_v25 = vld [vmem:[#allocation2 + $0x98] ss:$0 sps:$4 sm:$0x33]   ;;  %v5682_v28 = vpop.f32.mrf.mxu1 }
 0x352   : > { %10997 = vmatprep.mubr.bf16.mxu0 %v17453_v50  ;;  %v15677_v50 = vadd.f32 %v15573_v44, %v10716_v7  ;;  %v15683_v45 = vadd.f32 %v15590_v57, %v5682_v28  ;;  %v8155_v3 = vor.u32 %v8154_v5, %v8151_v38  ;;  %v8170_v44 = vshll.u32 %v15445_v46, 16  ;;  %v15689_v7 = vpop.f32.mrf.mxu0 }
 0x353   : > { %v7375_v63 = vrot.slane %v11479_v25, 2  ;;  %v17455_v57 = vrot.slane %v15326_v23, 2  ;;  %v8169_v5 = vrot.slane %v8167_v26, 2  ;;  %v7032_v61 = vshrl.u32 %v11479_v25, 16 }
 0x354   : > { %v8172_v0 = vrot.slane %v8170_v44, 3  ;;  %v7035_v13 = vshll.u32 %v11479_v25, 16 }
 0x355   : > { %10938 = vmatmul.mubr.bf16.gmra.mxu1 %v17454_v37  ;;  %v8143_v37 = vrot.slane %v8141_v49, 2  ;;  %v7376_v49 = vsel %vm17456_vm5, %v17455_v57, %v7375_v63  ;;  %v15697_v15 = vpop.f32.mrf.mxu0  ;;  %v7034_v44 = vrot.slane %v7032_v61, 1  ;;  %v7804_v61 = vrot.slane %v15439_v1, 2  ;;  %vm17464_vm5 = vmmov %vm17459_vm6 }
 0x356   : > { %10941 = vmatprep.mubr.bf16.mxu1 %v15356_v41  ;;  %v8158_v41 = vshrl.u32 %v15443_v54, 16  ;;  %v7037_v25 = vrot.slane %v7035_v13, 2 }
 0x357   : > { %v15701_v23 = vpop.f32.mrf.mxu0 }
 0x358   : > { %v8160_v43 = vrot.slane %v8158_v41, 2  ;;  %v8185_v41 = vshrl.u32 %v15455_v24, 16 }
 0x359   : > { %10998 = vmatmul.mubr.bf16.gmra.mxu0 %v15359_v52  ;;  %v8161_v52 = vshll.u32 %v15443_v54, 16 }
 0x35a   : > { %11001 = vmatprep.mubr.bf16.mxu0 %v15366_v20  ;;  %v8147_v20 = vor.u32 %v8146_v47, %v8143_v37  ;;  %v8176_v47 = vshrl.u32 %v15447_v55, 16  ;;  %v8173_v37 = vor.u32 %v8172_v0, %v8169_v5  ;;  %v8187_v5 = vrot.slane %v8185_v41, 2 }
 0x35b   : > { %v8163_v28 = vrot.slane %v8161_v52, 3  ;;  %v8188_v52 = vshll.u32 %v15455_v24, 16  ;;  %v7803_v41 = vrot.slane %v15657_v2, 2 }
 0x35c   : > { %v8156_v38 = vsel %vm17457_vm10, %v8147_v20, %v8155_v3  ;;  %v8178_v0 = vrot.slane %v8176_v47, 2  ;;  %vm17465_vm10 = vmmov %vm17464_vm5 }
 0x35d   : > { %10942 = vmatmul.mubr.bf16.gmra.mxu1 %v15376_v35  ;;  %v8164_v35 = vor.u32 %v8163_v28, %v8160_v43  ;;  %v15714_v28 = vpop.f32.mrf.mxu0 }
 0x35e   : > { %10945 = vmatprep.mubr.bf16.mxu1 %v15390_v22  ;;  %v8179_v22 = vshll.u32 %v15447_v55, 16 }
 0x35f   : > { %v10719_v63 = vpop.f32.mrf.mxu1  ;;  %v8165_v57 = vsel %vm17458_vm13, %v8155_v3, %v8164_v35  ;;  %vm17466_vm13 = vmmov %vm17463_vm8 }
 0x360   : > { %v15706_v26 = vadd.f32 %v15602_v10, %v10719_v63  ;;  %v8181_v43 = vrot.slane %v8179_v22, 3  ;;  %v8174_v10 = vsel %vm17459_vm6, %v8164_v35, %v8173_v37  ;;  %v8194_v22 = vshrl.u32 %v15457_v59, 16  ;;  %v15726_v35 = vpop.f32.mrf.mxu0  ;;  %vm17467_vm6 = vmmov %vm17463_vm8 }
 0x361   : > { %11002 = vmatmul.mubr.bf16.gmra.mxu0 %v7376_v49  ;;  %v5695_v20 = vpop.f32.mrf.mxu1  ;;  %v8197_v63 = vshll.u32 %v15457_v59, 16 }
 0x362   : > { %11073 = vmatprep.mubr.bf16.mxu0 %v8156_v38  ;;  %v15712_v49 = vadd.f32 %v15604_v62, %v5695_v20  ;;  %v8182_v47 = vor.u32 %v8181_v43, %v8178_v0  ;;  %v17460_v20 = vld [vmem:[#allocation6_spill] sm:$0xff]  ;;  %v8196_v0 = vrot.slane %v8194_v22, 2  ;;  %v8212_v22 = vshrl.u32 %v15465_v48, 16 }
 0x363   : > { %v10720_v38 = vpop.f32.mrf.mxu1  ;;  %v8199_v43 = vrot.slane %v8197_v63, 3  ;;  %v8215_v63 = vshll.u32 %v15465_v48, 16 }
 0x364   : > { %v15718_v13 = vadd.f32 %v15609_v34, %v10720_v38  ;;  %v8203_v34 = vshrl.u32 %v17460_v20, 16 }
 0x365   : > { %10946 = vmatmul.mubr.bf16.gmra.mxu1 %v15394_v16  ;;  %v8190_v16 = vrot.slane %v8188_v52, 3  ;;  %v5698_v3 = vpop.f32.mrf.mxu1 }
 0x366   : > { %10949 = vmatprep.mubr.bf16.mxu1 %v15405_v8  ;;  %v7038_v8 = vor.u32 %v7037_v25, %v7034_v44  ;;  %v15722_v62 = vadd.f32 %v15617_v11, %v5698_v3  ;;  %v8206_v44 = vshll.u32 %v17460_v20, 16  ;;  %v17461_v25 = vld [vmem:[#allocation12_spill] sm:$0xff]  ;;  %v7805_v11 = vsel %vm17463_vm8, %v7803_v41, %v7804_v61 }
 0x367   : > { %v8191_v52 = vor.u32 %v8190_v16, %v8187_v5  ;;  %v8205_v38 = vrot.slane %v8203_v34, 2  ;;  %v7806_v3 = vrot.slane %v15443_v54, 2  ;;  %v7808_v41 = vrot.slane %v15445_v46, 2  ;;  %v11491_v54 = vld [vmem:[%s16535_s1 + $0x470] sm:$0xff]  }
 0x368   : > { %v7039_v1 = vsel %vm17462_vm4, %v17461_v25, %v7038_v8  ;;  %v8208_v5 = vrot.slane %v8206_v44, 3  ;;  %v8224_v46 = vshll.u32 %v15467_v42, 16  ;;  %vm17468_vm4 = vmmov %vm17464_vm5 }
 0x369   : > { %11074 = vmatmul.mubr.bf16.vlgmr.msra.gmra.mxu0 %v8165_v57  ;;  %v8183_v57 = vsel %vm17464_vm5, %v8173_v37, %v8182_v47  ;;  %v8192_v2 = vsel %vm17465_vm10, %v8182_v47, %v8191_v52  ;;  %v8200_v37 = vor.u32 %v8199_v43, %v8196_v0  ;;  %v7807_v44 = vsel %vm17466_vm13, %v7804_v61, %v7806_v3  ;;  %vm17469_vm8 = vmmov %vm17468_vm4 }
 0x36a   : > { %11077 = vmatprep.mubr.bf16.mxu0 %v8174_v10  ;;  %v15735_v10 = vpop.f32.mrf.mxu0  ;;  %v8209_v34 = vor.u32 %v8208_v5, %v8205_v38  ;;  %v8217_v38 = vrot.slane %v8215_v63, 3  ;;  %vm17470_vm5 = vmmov %vm17467_vm6 }
 0x36b   : > { %v8201_v43 = vsel %vm17468_vm4, %v8191_v52, %v8200_v37  ;;  %v7812_v52 = vrot.slane %v15455_v24, 2  ;;  %vm17471_vm10 = vmmov %vm17470_vm5 }
 0x36c   : > { %v10723_v16 = vpop.f32.mrf.mxu1  ;;  %v8210_v61 = vsel %vm17469_vm8, %v8200_v37, %v8209_v34  ;;  %vm17472_vm13 = vmmov %vm17468_vm4 }
 0x36d   : > { %10950 = vmatmul.mubr.bf16.gmra.mxu1 %v7039_v1  ;;  %v15740_v8 = vadd.f32 %v15626_v17, %v10723_v16  ;;  %v15745_v1 = vpop.f32.mrf.mxu0  ;;  %v8221_v17 = vshrl.u32 %v15467_v42, 16 }
 0x36e   : > { %11021 = vmatprep.mubr.bf16.mxu1 %v7805_v11  ;;  %v5711_v25 = vpop.f32.mrf.mxu1 }
 0x36f   : > { %v15748_v47 = vadd.f32 %v15632_v51, %v5711_v25  ;;  %v15762_v5 = vpop.f32.mrf.mxu0  ;;  %v7810_v25 = vrot.slane %v15447_v55, 2  ;;  %v11498_v55 = vld [vmem:[%s16535_s1 + $0x460] sm:$0xff]  }
 0x370   : > { %v10724_v11 = vpop.f32.mrf.mxu1 }
 0x371   : > { %11078 = vmatmul.mubr.bf16.gmra.mxu0 %v8183_v57  ;;  %v7809_v57 = vsel %vm17467_vm6, %v7806_v3, %v7808_v41  ;;  %v15758_v0 = vadd.f32 %v15645_v31, %v10724_v11  ;;  %v8223_v3 = vrot.slane %v8221_v17, 2  ;;  %v8226_v31 = vrot.slane %v8224_v46, 3  ;;  %v15773_v63 = vpop.f32.mrf.mxu0  ;;  %vm17473_vm6 = vmmov %vm17468_vm4 }
 0x372   : > { %11081 = vmatprep.mubr.bf16.mxu0 %v8192_v2  ;;  %v5714_v51 = vpop.f32.mrf.mxu1  ;;  %v8214_v2 = vrot.slane %v8212_v22, 2  ;;  %v8239_v17 = vshrl.u32 %v15472_v9, 16  ;;  %v8242_v46 = vshll.u32 %v15472_v9, 16  ;;  %v7811_v24 = vsel %vm17470_vm5, %v7808_v41, %v7810_v25  ;;  %vm17474_vm4 = vmmov %vm17470_vm5 }
 0x373   : > { %v15765_v16 = vadd.f32 %v15649_v33, %v5714_v51  ;;  %v8230_v33 = vshrl.u32 %v15470_v12, 16  ;;  %v8227_v37 = vor.u32 %v8226_v31, %v8223_v3  ;;  %v7813_v11 = vsel %vm17471_vm10, %v7810_v25, %v7812_v52  ;;  %vm17475_vm8 = vmmov %vm17474_vm4 }
 0x374   : > { %v8218_v22 = vor.u32 %v8217_v38, %v8214_v2  ;;  %v8241_v41 = vrot.slane %v8239_v17, 2  ;;  %v8244_v31 = vrot.slane %v8242_v46, 3  ;;  %v8248_v46 = vshrl.u32 %v15474_v40, 16  ;;  %vm17476_vm5 = vmmov %vm17473_vm6 }
 0x375   : > { %11022 = vmatmul.mubr.bf16.vlgmr.msra.gmra.mxu1 %v7807_v44  ;;  %v8233_v44 = vshll.u32 %v15470_v12, 16  ;;  %v8232_v2 = vrot.slane %v8230_v33, 2  ;;  %v7816_v33 = vrot.slane %v17460_v20, 2  ;;  %vm17477_vm10 = vmmov %vm17476_vm5 }
 0x376   : > { %11025 = vmatprep.mubr.bf16.mxu1 %v7809_v57  ;;  %11110 = vmatpush3.bf16.msra.mxu1 %v15642_v14  ;;  %v11495_v14 = vld [vmem:[%s16535_s1 + $0x468] sm:$0xff]   ;;  %v8219_v51 = vsel %vm17472_vm13, %v8209_v34, %v8218_v22  ;;  %v8228_v3 = vsel %vm17473_vm6, %v8218_v22, %v8227_v37  ;;  %v7814_v34 = vrot.slane %v15457_v59, 2  ;;  %v8260_v59 = vshll.u32 %v15483_v32, 16  ;;  %vm17479_vm13 = vmmov %vm17474_vm4 }
 0x377   : > { %11111 = vmatprep.subr.bf16.mxu1 %v11491_v54  ;;  %v8235_v38 = vrot.slane %v8233_v44, 3  ;;  %vm17480_vm6 = vmmov %vm17474_vm4 }
 0x379   : > { %11082 = vmatmul.mubr.bf16.gmra.mxu0 %v8201_v43  ;;  %v15788_v43 = vpop.f32.mrf.mxu0  ;;  %v8236_v22 = vor.u32 %v8235_v38, %v8232_v2  ;;  %v7817_v2 = vsel %vm17475_vm8, %v7814_v34, %v7816_v33 }
 0x37a   : > { %11085 = vmatprep.mubr.bf16.mxu0 %v8210_v61  ;;  %11112 = vmatpush3.bf16.msra.mxu1 %v11491_v54 }
 0x37b   : > { %11113 = vmatprep.subr.bf16.mxu1 %v11495_v14  ;;  %v15802_v17 = vpop.f32.mrf.mxu0 }
 0x37c   : > { %v10727_v54 = vpop.f32.mrf.mxu1 }
 0x37d   : > { %11026 = vmatmul.mubr.bf16.gmra.mxu1 %v7811_v24  ;;  %v15785_v57 = vadd.f32 %v15659_v39, %v10727_v54  ;;  %v11501_v39 = vld [vmem:[%s16535_s1 + $0x458] sm:$0xff]   ;;  %v8251_v24 = vshll.u32 %v15474_v40, 16 }
 0x37e   : > { %11029 = vmatprep.mubr.bf16.mxu1 %v7813_v11  ;;  %11114 = vmatpush3.bf16.msra.mxu1 %v11495_v14  ;;  %v5727_v61 = vpop.f32.mrf.mxu1  ;;  %v8257_v11 = vshrl.u32 %v15483_v32, 16 }
 0x37f   : > { %11115 = vmatprep.subr.bf16.mxu1 %v11498_v55  ;;  %v15795_v25 = vadd.f32 %v15666_v21, %v5727_v61  ;;  %v8245_v21 = vor.u32 %v8244_v31, %v8241_v41  ;;  %v8237_v61 = vsel %vm17476_vm5, %v8227_v37, %v8236_v22  ;;  %v8250_v41 = vrot.slane %v8248_v46, 2 }
 0x380   : > { %v10728_v14 = vpop.f32.mrf.mxu1  ;;  %v8253_v31 = vrot.slane %v8251_v24, 3  ;;  %v7818_v37 = vrot.slane %v15465_v48, 2  ;;  %v8278_v48 = vshll.u32 %v15490_v53, 16 }
 0x381   : > { %11086 = vmatmul.mubr.bf16.gmra.mxu0 %v8219_v51  ;;  %v15800_v44 = vadd.f32 %v15679_v6, %v10728_v14  ;;  %v11504_v6 = vld [vmem:[%s16535_s1 + $0x450] sm:$0xff]  }
 0x382   : > { %11089 = vmatprep.mubr.bf16.mxu0 %v8228_v3  ;;  %11116 = vmatpush3.bf16.msra.mxu1 %v11498_v55  ;;  %v5730_v54 = vpop.f32.mrf.mxu1  ;;  %v7815_v55 = vsel %vm17474_vm4, %v7812_v52, %v7814_v34  ;;  %v15820_v3 = vpop.f32.mrf.mxu0  ;;  %v8259_v52 = vrot.slane %v8257_v11, 2  ;;  %v8254_v11 = vor.u32 %v8253_v31, %v8250_v41  ;;  %v7819_v41 = vsel %vm17479_vm13, %v7816_v33, %v7818_v37  ;;  %vm17481_vm4 = vmmov %vm17476_vm5 }
 0x383   : > { %11117 = vmatprep.subr.bf16.mxu1 %v11501_v39  ;;  %v15812_v20 = vadd.f32 %v15689_v7, %v5730_v54  ;;  %v8246_v7 = vsel %vm17477_vm10, %v8236_v22, %v8245_v21  ;;  %v8262_v54 = vrot.slane %v8260_v59, 3  ;;  %v17478_v59 = vld [vmem:[#allocation7_spill] sm:$0xff]  ;;  %vm17482_vm8 = vmmov %vm17481_vm4 }
 0x384   : > { %v10731_v51 = vpop.f32.mrf.mxu1  ;;  %v15834_v22 = vpop.f32.mrf.mxu0  ;;  %vm17483_vm5 = vmmov %vm17480_vm6 }
 0x385   : > { %11030 = vmatmul.mubr.bf16.gmra.mxu1 %v7815_v55  ;;  %v15817_v38 = vadd.f32 %v15697_v15, %v10731_v51  ;;  %v11507_v15 = vld [vmem:[%s16535_s1 + $0x448] sm:$0xff]   ;;  %v8266_v55 = vshrl.u32 %v17478_v59, 16  ;;  %v8269_v51 = vshll.u32 %v17478_v59, 16  ;;  %vm17484_vm10 = vmmov %vm17483_vm5 }
 0x386   : > { %11033 = vmatprep.mubr.bf16.mxu1 %v7817_v2  ;;  %11118 = vmatpush3.bf16.msra.mxu1 %v11501_v39  ;;  %v5743_v14 = vpop.f32.mrf.mxu1  ;;  %v7820_v39 = vrot.slane %v15467_v42, 2  ;;  %v11509_v42 = vld [vmem:[%s16535_s1 + $0x440] sm:$0xff]   ;;  %vm17485_vm13 = vmmov %vm17481_vm4 }
 0x387   : > { %11119 = vmatprep.subr.bf16.mxu1 %v11504_v6  ;;  %v15827_v34 = vadd.f32 %v15701_v23, %v5743_v14  ;;  %v8263_v23 = vor.u32 %v8262_v54, %v8259_v52  ;;  %v8255_v52 = vsel %vm17481_vm4, %v8245_v21, %v8254_v11  ;;  %v8268_v54 = vrot.slane %v8266_v55, 2 }
 0x388   : > { %v10732_v46 = vpop.f32.mrf.mxu1  ;;  %v7824_v21 = vrot.slane %v15472_v9, 2 }
 0x389   : > { %11090 = vmatmul.mubr.bf16.gmra.mxu0 %v8237_v61  ;;  %v15832_v24 = vadd.f32 %v15714_v28, %v10732_v46  ;;  %v8275_v61 = vshrl.u32 %v15490_v53, 16  ;;  %v8271_v46 = vrot.slane %v8269_v51, 3 }
 0x38a   : > { %11093 = vmatprep.mubr.bf16.mxu0 %v8246_v7  ;;  %11120 = vmatpush3.bf16.msra.mxu1 %v11504_v6  ;;  %v5746_v2 = vpop.f32.mrf.mxu1  ;;  %v7821_v6 = vsel %vm17480_vm6, %v7818_v37, %v7820_v39  ;;  %vm17486_vm6 = vmmov %vm17481_vm4 }
 0x38b   : > { %11121 = vmatprep.subr.bf16.mxu1 %v11507_v15  ;;  %v15844_v28 = vadd.f32 %v15726_v35, %v5746_v2  ;;  %v15851_v7 = vpop.f32.mrf.mxu0  ;;  %v8264_v35 = vsel %vm17482_vm8, %v8254_v11, %v8263_v23  ;;  %v8277_v33 = vrot.slane %v8275_v61, 2  ;;  %v8280_v2 = vrot.slane %v8278_v48, 3  ;;  %vm17488_vm4 = vmmov %vm17483_vm5 }
 0x38c   : > { %v10735_v31 = vpop.f32.mrf.mxu1  ;;  %v8272_v51 = vor.u32 %v8271_v46, %v8268_v54  ;;  %v8284_v11 = vshrl.u32 %v15505_v56, 16  ;;  %v8287_v61 = vshll.u32 %v15505_v56, 16  ;;  %v8296_v54 = vshll.u32 %v15518_v18, 16  ;;  %vm17489_vm8 = vmmov %vm17488_vm4 }
 0x38d   : > { %11034 = vmatmul.mubr.bf16.gmra.mxu1 %v7819_v41  ;;  %v15849_v14 = vadd.f32 %v15735_v10, %v10735_v31  ;;  %v7822_v10 = vrot.slane %v15470_v12, 2  ;;  %v6034_v41 = vpop.f32.mrf.mxu0 }
 0x38e   : > { %11037 = vmatprep.mubr.bf16.mxu1 %v7821_v6  ;;  %11122 = vmatpush3.bf16.msra.mxu1 %v11507_v15  ;;  %v5759_v60 = vpop.f32.mrf.mxu1 }
 0x38f   : > { %11123 = vmatprep.subr.bf16.mxu1 %v11509_v42  ;;  %v15856_v37 = vadd.f32 %v15745_v1, %v5759_v60  ;;  %v10796_v15 = vpop.f32.mrf.mxu0  ;;  %v8281_v60 = vor.u32 %v8280_v2, %v8277_v33  ;;  %v7823_v12 = vsel %vm17483_vm5, %v7820_v39, %v7822_v10  ;;  %v7825_v9 = vsel %vm17484_vm10, %v7822_v10, %v7824_v21  ;;  %vm17490_vm5 = vmmov %vm17486_vm6 }
 0x390   : > { %v10736_v31 = vpop.f32.mrf.mxu1  ;;  %v8289_v33 = vrot.slane %v8287_v61, 3  ;;  %v7826_v10 = vrot.slane %v15474_v40, 2  ;;  %vm17491_vm10 = vmmov %vm17490_vm5 }
 0x391   : > { %11094 = vmatmul.mubr.bf16.gmra.mxu0 %v8255_v52  ;;  %v15861_v55 = vadd.f32 %v15762_v5, %v10736_v31  ;;  %v6037_v6 = vpop.f32.mrf.mxu0  ;;  %v8293_v5 = vshrl.u32 %v15518_v18, 16  ;;  %v8282_v39 = vsel %vm17486_vm6, %v8272_v51, %v8281_v60  ;;  %vm17493_vm6 = vmmov %vm17488_vm4 }
 0x392   : > { %11097 = vmatprep.mubr.bf16.mxu0 %v8264_v35  ;;  %11124 = vmatpush3.bf16.msra.mxu1 %v11509_v42  ;;  %v5762_v48 = vpop.f32.mrf.mxu1  ;;  %v8273_v35 = vsel %vm17485_vm13, %v8263_v23, %v8272_v51  ;;  %v8305_v51 = vshll.u32 %v15507_v19, 16  ;;  %v7827_v40 = vsel %vm17488_vm4, %v7824_v21, %v7826_v10  ;;  %vm17492_vm13 = vmmov %vm17488_vm4 }
 0x393   : > { %v15866_v1 = vadd.f32 %v15773_v63, %v5762_v48  ;;  %v10867_v42 = vpop.f32.mrf.mxu0  ;;  %v8286_v63 = vrot.slane %v8284_v11, 2  ;;  %vm17494_vm4 = vmmov %vm17490_vm5 }
 0x394   : > { %v10739_v52 = vpop.f32.mrf.mxu1 }
 0x395   : > { %11038 = vmatmul.mubr.bf16.gmra.mxu1 %v7823_v12  ;;  %v15873_v46 = vadd.f32 %v15788_v43, %v10739_v52  ;;  %v6670_v48 = vpop.f32.mrf.mxu0  ;;  %v7828_v43 = vrot.slane %v15483_v32, 2  ;;  %v8295_v52 = vrot.slane %v8293_v5, 2  ;;  %v8290_v61 = vor.u32 %v8289_v33, %v8286_v63 }
 0x396   : > { %11041 = vmatprep.mubr.bf16.mxu1 %v7825_v9  ;;  %v5775_v2 = vpop.f32.mrf.mxu1  ;;  %v8298_v9 = vrot.slane %v8296_v54, 3  ;;  %v8307_v33 = vrot.slane %v8305_v51, 3 }
 0x397   : > { %v15878_v31 = vadd.f32 %v15802_v17, %v5775_v2  ;;  %v10868_v11 = vpop.f32.mrf.mxu0  ;;  %v7829_v32 = vsel %vm17489_vm8, %v7826_v10, %v7828_v43  ;;  %v8291_v63 = vsel %vm17490_vm5, %v8281_v60, %v8290_v61  ;;  %vm17496_vm8 = vmmov %vm17493_vm6 }
 0x398   : > { %v10740_v12 = vpop.f32.mrf.mxu1  ;;  %v8299_v5 = vor.u32 %v8298_v9, %v8295_v52  ;;  %vm17497_vm5 = vmmov %vm17493_vm6 }
 0x399   : > { %11098 = vmatmul.mubr.bf16.gmra.mxu0 %v8273_v35  ;;  %17487 = vst [vmem:[#allocation80_spill] sm:$0xff] %v15878_v31  ;;  %v15883_v23 = vadd.f32 %v15820_v3, %v10740_v12  ;;  %v8302_v35 = vshrl.u32 %v15507_v19, 16 }
 0x39a   : > { %11101 = vmatprep.mubr.bf16.mxu0 %v8282_v39  ;;  %v5778_v17 = vpop.f32.mrf.mxu1  ;;  %v6673_v39 = vpop.f32.mrf.mxu0 }
 0x39b   : > { %v15888_v2 = vadd.f32 %v15834_v22, %v5778_v17  ;;  %v8304_v19 = vrot.slane %v8302_v35, 2  ;;  %v8300_v22 = vsel %vm17491_vm10, %v8290_v61, %v8299_v5  ;;  %v7830_v17 = vrot.slane %v17478_v59, 2  ;;  %vm17498_vm10 = vmmov %vm17497_vm5 }
 0x39c   : > { %v10743_v31 = vpop.f32.mrf.mxu1  ;;  %v10871_v54 = vpop.f32.mrf.mxu0 }
 0x39d   : > { %11042 = vmatmul.mubr.bf16.gmra.mxu1 %v7827_v40  ;;  %v15893_v3 = vadd.f32 %v15851_v7, %v10743_v31  ;;  %v7832_v7 = vrot.slane %v15490_v53, 2  ;;  %v8308_v40 = vor.u32 %v8307_v33, %v8304_v19  ;;  %v7831_v51 = vsel %vm17492_vm13, %v7828_v43, %v7830_v17 }
 0x39e   : > { %11045 = vmatprep.mubr.bf16.mxu1 %v7829_v32  ;;  %v5791_v12 = vpop.f32.mrf.mxu1  ;;  %v6686_v10 = vpop.f32.mrf.mxu0 }
 0x39f   : > { %v15897_v21 = vadd.f32 %v6034_v41, %v5791_v12  ;;  %v7833_v41 = vsel %vm17493_vm6, %v7830_v17, %v7832_v7 }
 0x3a0   : > { %v10744_v52 = vpop.f32.mrf.mxu1  ;;  %v10872_v9 = vpop.f32.mrf.mxu0 }
 0x3a1   : > { %11102 = vmatmul.mubr.bf16.gmra.mxu0 %v8291_v63  ;;  %v15901_v31 = vadd.f32 %v10796_v15, %v10744_v52  ;;  %v8309_v63 = vsel %vm17494_vm4, %v8299_v5, %v8308_v40  ;;  %v7836_v5 = vrot.slane %v15518_v18, 2 }
 0x3a2   : > { %11105 = vmatprep.mubr.bf16.mxu0 %v8300_v22  ;;  %v5794_v60 = vpop.f32.mrf.mxu1  ;;  %v6689_v32 = vpop.f32.mrf.mxu0  ;;  %v17495_v22 = vld [vmem:[#allocation67_spill] sm:$0xff] }
 0x3a3   : > { %v15903_v35 = vadd.f32 %v6037_v6, %v5794_v60  ;;  %v7834_v6 = vrot.slane %v15505_v56, 2  ;;  %v5910_v52 = vadd.f32 %v17495_v22, %v15652_v27 }
 0x3a4   : > { %v10815_v61 = vpop.f32.mrf.mxu1  ;;  %v10875_v15 = vpop.f32.mrf.mxu0 }
 0x3a5   : > { %11046 = vmatmul.mubr.bf16.gmra.mxu1 %v7831_v51  ;;  %v6352_v59 = vadd.f32 %v10815_v61, %v15621_v36  ;;  %v11510_v61 = vld [vmem:[#allocation2 + $0xa0] ss:$0 sps:$4 sm:$0x33]  }
 0x3a6   : > { %11049 = vmatprep.mubr.bf16.mxu1 %v7833_v41  ;;  %v6207_v53 = vpop.f32.mrf.mxu1  ;;  %v6702_v12 = vpop.f32.mrf.mxu0  ;;  %v7837_v41 = vsel %vm17497_vm5, %v7834_v6, %v7836_v5 }
 0x3a7   : > { %v6350_v19 = vadd.f32 %v6207_v53, %v15630_v29  ;;  %v15911_v33 = vadd.f32 %v10867_v42, %v6352_v59  ;;  %v7835_v29 = vsel %vm17496_vm8, %v7832_v7, %v7834_v6  ;;  %v7838_v53 = vrot.slane %v11510_v61, 2 }
 0x3a8   : > { %v10816_v43 = vpop.f32.mrf.mxu1  ;;  %v10876_v40 = vpop.f32.mrf.mxu0 }
 0x3a9   : > { %11106 = vmatmul.mubr.bf16.gmra.mxu0 %v8309_v63  ;;  %v6353_v17 = vadd.f32 %v10816_v43, %v15637_v30  ;;  %v15916_v36 = vadd.f32 %v6670_v48, %v6350_v19 }
 0x3aa   : > { %v6210_v60 = vpop.f32.mrf.mxu1  ;;  %v6705_v59 = vpop.f32.mrf.mxu0 }
 0x3ab   : > { %v6351_v51 = vadd.f32 %v6210_v60, %v5910_v52  ;;  %v15920_v56 = vadd.f32 %v10868_v11, %v6353_v17 }
 0x3ac   : > { %v10819_v42 = vpop.f32.mrf.mxu1  ;;  %v10879_v63 = vpop.f32.mrf.mxu0 }
 0x3ad   : > { %11050 = vmatmul.mubr.bf16.gmra.mxu1 %v7835_v29  ;;  %v6356_v27 = vadd.f32 %v10819_v42, %v15662_v58  ;;  %v15924_v30 = vadd.f32 %v6673_v39, %v6351_v51  ;;  %v7839_v39 = vsel %vm17498_vm10, %v7836_v5, %v7838_v53  ;;  %v17499_v51 = vld [vmem:[#allocation15_spill] sm:$0xff]  ;;  %v17500_v53 = vld [vmem:[#allocation5_spill] sm:$0xff] }
 0x3ae   : > { %11053 = vmatprep.mubr.bf16.mxu1 %v7837_v41  ;;  %v6223_v48 = vpop.f32.mrf.mxu1  ;;  %v6718_v11 = vpop.f32.mrf.mxu0 }
 0x3af   : > { %v6354_v18 = vadd.f32 %v6223_v48, %v15670_v4  ;;  %v15927_v19 = vadd.f32 %v10871_v54, %v6356_v27 }
 0x3b0   : > { %v10820_v7 = vpop.f32.mrf.mxu1  ;;  %v10880_v52 = vpop.f32.mrf.mxu0 }
 0x3b1   : > { %v6357_v43 = vadd.f32 %v10820_v7, %v15677_v50  ;;  %v15930_v22 = vadd.f32 %v6686_v10, %v6354_v18 }
 0x3b2   : > { %v6226_v6 = vpop.f32.mrf.mxu1  ;;  %v6721_v4 = vpop.f32.mrf.mxu0 }
 0x3b3   : > { %v6355_v58 = vadd.f32 %v6226_v6, %v15683_v45  ;;  %v15934_v17 = vadd.f32 %v10872_v9, %v6357_v43 }
 0x3b4   : > { %v10823_v60 = vpop.f32.mrf.mxu1  ;;  %v10883_v10 = vpop.f32.mrf.mxu0 }
 0x3b5   : > { %11054 = vmatmul.mubr.bf16.gmra.mxu1 %v7839_v39  ;;  %v6360_v54 = vadd.f32 %v10823_v60, %v15706_v26  ;;  %v15938_v29 = vadd.f32 %v6689_v32, %v6355_v58 }
 0x3b6   : > { %11125 = vmatprep.mubr.bf16.mxu1 %v17499_v51  ;;  %v6239_v50 = vpop.f32.mrf.mxu1  ;;  %v6734_v41 = vpop.f32.mrf.mxu0 }
 0x3b7   : > { %v6358_v61 = vadd.f32 %v6239_v50, %v15712_v49  ;;  %v15941_v42 = vadd.f32 %v10875_v15, %v6360_v54  ;;  %v17501_v15 = vld [vmem:[#allocation73_spill] sm:$0xff] }
 0x3b8   : > { %v10824_v45 = vpop.f32.mrf.mxu1  ;;  %v10884_v48 = vpop.f32.mrf.mxu0 }
 0x3b9   : > { %v6361_v9 = vadd.f32 %v10824_v45, %v15718_v13  ;;  %v15944_v5 = vadd.f32 %v6702_v12, %v6358_v61  ;;  %v17502_v61 = vld [vmem:[#allocation72_spill] sm:$0xff] }
 0x3ba   : > { %v6242_v27 = vpop.f32.mrf.mxu1  ;;  %v6737_v7 = vpop.f32.mrf.mxu0 }
 0x3bb   : > { %v6359_v26 = vadd.f32 %v6242_v27, %v15722_v62  ;;  %v15947_v18 = vadd.f32 %v10876_v40, %v6361_v9 }
 0x3bc   : > { %v10827_v32 = vpop.f32.mrf.mxu1 }
 0x3bd   : > { %11126 = vmatmul.mubr.bf16.vlgmr.msra.gmra.mxu1 %v17500_v53  ;;  %v6364_v49 = vadd.f32 %v10827_v32, %v15740_v8  ;;  %v15952_v43 = vadd.f32 %v6705_v59, %v6359_v26 }
 0x3be   : > { %11129 = vmatprep.mubr.bf16.mxu1 %v17501_v15  ;;  %v6255_v6 = vpop.f32.mrf.mxu1 }
 0x3bf   : > { %v6362_v12 = vadd.f32 %v6255_v6, %v15748_v47  ;;  %v15955_v58 = vadd.f32 %v10879_v63, %v6364_v49  ;;  %v17503_v63 = vld [vmem:[#allocation68_spill] sm:$0xff] }
 0x3c0   : > { %v10828_v39 = vpop.f32.mrf.mxu1 }
 0x3c1   : > { %v10887_v13 = vpop.f32.mrf.mxu0  ;;  %v6365_v40 = vadd.f32 %v10828_v39, %v15758_v0  ;;  %v15958_v60 = vadd.f32 %v6718_v11, %v6362_v12  ;;  %v17504_v12 = vld [vmem:[#allocation9_spill] sm:$0xff] }
 0x3c2   : > { %v6258_v54 = vpop.f32.mrf.mxu1 }
 0x3c3   : > { %v6750_v62 = vpop.f32.mrf.mxu0  ;;  %v6363_v8 = vadd.f32 %v6258_v54, %v15765_v16  ;;  %v15961_v50 = vadd.f32 %v10880_v52, %v6365_v40 }
 0x3c5   : > { %v10888_v51 = vpop.f32.mrf.mxu0  ;;  %v10831_v59 = vpop.f32.mrf.mxu1  ;;  %11130 = vmatmul.mubr.bf16.gmra.mxu1 %v17502_v61  ;;  %v15966_v9 = vadd.f32 %v6721_v4, %v6363_v8 }
 0x3c6   : > { %v6368_v47 = vadd.f32 %v10831_v59, %v15785_v57  ;;  %11133 = vmatprep.mubr.bf16.mxu1 %v17503_v63 }
 0x3c7   : > { %v6753_v45 = vpop.f32.mrf.mxu0  ;;  %v6271_v27 = vpop.f32.mrf.mxu1 }
 0x3c8   : > { %v6366_v11 = vadd.f32 %v6271_v27, %v15795_v25  ;;  %v15969_v26 = vadd.f32 %v10883_v10, %v6368_v47  ;;  %v17505_v10 = vld [vmem:[#allocation74_spill] sm:$0xff] }
 0x3c9   : > { %v10891_v0 = vpop.f32.mrf.mxu0  ;;  %v10832_v32 = vpop.f32.mrf.mxu1 }
 0x3ca   : > { %v6369_v52 = vadd.f32 %v10832_v32, %v15800_v44  ;;  %v15972_v53 = vadd.f32 %v6734_v41, %v6366_v11  ;;  %v17506_v11 = vld [vmem:[#allocation69_spill] sm:$0xff] }
 0x3cb   : > { %v6766_v16 = vpop.f32.mrf.mxu0  ;;  %v6274_v49 = vpop.f32.mrf.mxu1 }
 0x3cc   : > { %v6367_v57 = vadd.f32 %v6274_v49, %v15812_v20  ;;  %v15975_v6 = vadd.f32 %v10884_v48, %v6369_v52 }
 0x3cd   : > { %v10892_v15 = vpop.f32.mrf.mxu0  ;;  %v10835_v4 = vpop.f32.mrf.mxu1  ;;  %11134 = vmatmul.mubr.bf16.gmra.mxu1 %v17504_v12 }
 0x3ce   : > { %v6372_v25 = vadd.f32 %v10835_v4, %v15817_v38  ;;  %11137 = vmatprep.mubr.bf16.mxu1 %v17505_v10  ;;  %v15980_v40 = vadd.f32 %v6737_v7, %v6367_v57 }
 0x3cf   : > { %v6769_v39 = vpop.f32.mrf.mxu0  ;;  %v6287_v54 = vpop.f32.mrf.mxu1 }
 0x3d0   : > { %v6370_v41 = vadd.f32 %v6287_v54, %v15827_v34  ;;  %v15983_v8 = vadd.f32 %v10887_v13, %v6372_v25  ;;  %v17507_v13 = vld [vmem:[#allocation76_spill] sm:$0xff] }
 0x3d1   : > { %v10895_v44 = vpop.f32.mrf.mxu0  ;;  %v10836_v59 = vpop.f32.mrf.mxu1 }
 0x3d2   : > { %v6373_v48 = vadd.f32 %v10836_v59, %v15832_v24  ;;  %v15986_v61 = vadd.f32 %v6750_v62, %v6370_v41  ;;  %v17508_v41 = vld [vmem:[#allocation75_spill] sm:$0xff] }
 0x3d3   : > { %v6782_v20 = vpop.f32.mrf.mxu0  ;;  %v6290_v47 = vpop.f32.mrf.mxu1 }
 0x3d4   : > { %v6371_v38 = vadd.f32 %v6290_v47, %v15844_v28  ;;  %v15989_v27 = vadd.f32 %v10888_v51, %v6373_v48 }
 0x3d5   : > { %v10896_v63 = vpop.f32.mrf.mxu0  ;;  %v10839_v7 = vpop.f32.mrf.mxu1  ;;  %11138 = vmatmul.mubr.bf16.gmra.mxu1 %v17506_v11 }
 0x3d6   : > { %v6376_v34 = vadd.f32 %v10839_v7, %v15849_v14  ;;  %11141 = vmatprep.mubr.bf16.mxu1 %v17507_v13  ;;  %v15994_v52 = vadd.f32 %v6753_v45, %v6371_v38 }
 0x3d7   : > { %v6785_v32 = vpop.f32.mrf.mxu0  ;;  %v6303_v49 = vpop.f32.mrf.mxu1 }
 0x3d8   : > { %v6374_v62 = vadd.f32 %v6303_v49, %v15856_v37  ;;  %v15997_v57 = vadd.f32 %v10891_v0, %v6376_v34  ;;  %v17509_v0 = vld [vmem:[#allocation71_spill] sm:$0xff] }
 0x3d9   : > { %v10899_v24 = vpop.f32.mrf.mxu0  ;;  %v10840_v4 = vpop.f32.mrf.mxu1 }
 0x3da   : > { %v6377_v51 = vadd.f32 %v10840_v4, %v15861_v55  ;;  %v16000_v12 = vadd.f32 %v6766_v16, %v6374_v62  ;;  %v17510_v16 = vld [vmem:[#allocation80_spill] sm:$0xff]  ;;  %v17511_v4 = vld [vmem:[#allocation33_spill] sm:$0xff] }
 0x3db   : > { %v6798_v28 = vpop.f32.mrf.mxu0  ;;  %v6306_v25 = vpop.f32.mrf.mxu1 }
 0x3dc   : > { %v6375_v14 = vadd.f32 %v6306_v25, %v15866_v1  ;;  %v16003_v54 = vadd.f32 %v10892_v15, %v6377_v51 }
 0x3dd   : > { %v10900_v10 = vpop.f32.mrf.mxu0  ;;  %v10843_v45 = vpop.f32.mrf.mxu1  ;;  %11142 = vmatmul.mubr.bf16.gmra.mxu1 %v17508_v41 }
 0x3de   : > { %v6380_v37 = vadd.f32 %v10843_v45, %v15873_v46  ;;  %11145 = vmatprep.mubr.bf16.mxu1 %v17509_v0  ;;  %v16008_v48 = vadd.f32 %v6769_v39, %v6375_v14 }
 0x3df   : > { %v6801_v59 = vpop.f32.mrf.mxu0  ;;  %v6319_v47 = vpop.f32.mrf.mxu1 }
 0x3e0   : > { %v6378_v38 = vadd.f32 %v6319_v47, %v17510_v16  ;;  %v16011_v7 = vadd.f32 %v10895_v44, %v6380_v37  ;;  %v17512_v44 = vld [vmem:[#allocation77_spill] sm:$0xff] }
 0x3e1   : > { %v10971_v55 = vpop.f32.mrf.mxu0  ;;  %v10844_v11 = vpop.f32.mrf.mxu1 }
 0x3e2   : > { %v6381_v15 = vadd.f32 %v10844_v11, %v15883_v23  ;;  %v16014_v34 = vadd.f32 %v6782_v20, %v6378_v38  ;;  %v17513_v11 = vld [vmem:[#allocation82_spill] sm:$0xff] }
 0x3e3   : > { %v7477_v1 = vpop.f32.mrf.mxu0  ;;  %v6322_v13 = vpop.f32.mrf.mxu1 }
 0x3e4   : > { %v6379_v46 = vadd.f32 %v6322_v13, %v15888_v2  ;;  %v16017_v62 = vadd.f32 %v10896_v63, %v6381_v15 }
 0x3e5   : > { %v10972_v49 = vpop.f32.mrf.mxu0  ;;  %v10847_v39 = vpop.f32.mrf.mxu1  ;;  %11146 = vmatmul.mubr.bf16.gmra.mxu1 %v17511_v4 }
 0x3e6   : > { %v6384_v25 = vadd.f32 %v10847_v39, %v15893_v3  ;;  %11149 = vmatprep.mubr.bf16.mxu1 %v17512_v44  ;;  %v16022_v14 = vadd.f32 %v6785_v32, %v6379_v46 }
 0x3e7   : > { %v7480_v51 = vpop.f32.mrf.mxu0  ;;  %v6335_v45 = vpop.f32.mrf.mxu1 }
 0x3e8   : > { %v6382_v20 = vadd.f32 %v6335_v45, %v15897_v21  ;;  %v16025_v41 = vadd.f32 %v10899_v24, %v6384_v25  ;;  %v17514_v24 = vld [vmem:[#allocation83_spill] sm:$0xff] }
 0x3e9   : > { %v10975_v23 = vpop.f32.mrf.mxu0  ;;  %v10848_v37 = vpop.f32.mrf.mxu1 }
 0x3ea   : > { %v6385_v63 = vadd.f32 %v10848_v37, %v15901_v31  ;;  %v16028_v0 = vadd.f32 %v6798_v28, %v6382_v20  ;;  %v17515_v37 = vld [vmem:[#allocation79_spill] sm:$0xff] }
 0x3eb   : > { %v7493_v2 = vpop.f32.mrf.mxu0  ;;  %v6338_v47 = vpop.f32.mrf.mxu1 }
 0x3ec   : > { %v6383_v3 = vadd.f32 %v6338_v47, %v15903_v35  ;;  %v16031_v38 = vadd.f32 %v10900_v10, %v6385_v63 }
 0x3ed   : > { %v10976_v16 = vpop.f32.mrf.mxu0  ;;  %v10919_v32 = vpop.f32.mrf.mxu1  ;;  %11150 = vmatmul.mubr.bf16.gmra.mxu1 %v17513_v11 }
 0x3ee   : > { %v7285_v21 = vadd.f32 %v10919_v32, %v15911_v33  ;;  %11153 = vmatprep.mubr.bf16.mxu1 %v17514_v24  ;;  %v16036_v13 = vadd.f32 %v6801_v59, %v6383_v3 }
 0x3ef   : > { %v7496_v15 = vpop.f32.mrf.mxu0  ;;  %v7140_v46 = vpop.f32.mrf.mxu1 }
 0x3f0   : > { %v7283_v28 = vadd.f32 %v7140_v46, %v15916_v36  ;;  %v16039_v39 = vadd.f32 %v10971_v55, %v7285_v21  ;;  %v17516_v55 = vld [vmem:[#allocation85_spill] sm:$0xff] }
 0x3f1   : > { %v10979_v31 = vpop.f32.mrf.mxu0  ;;  %v10920_v4 = vpop.f32.mrf.mxu1 }
 0x3f2   : > { %v7286_v10 = vadd.f32 %v10920_v4, %v15920_v56  ;;  %v16042_v25 = vadd.f32 %v7477_v1, %v7283_v28  ;;  %v17517_v4 = vld [vmem:[#allocation84_spill] sm:$0xff] }
 0x3f3   : > { %v7509_v35 = vpop.f32.mrf.mxu0  ;;  %v7143_v44 = vpop.f32.mrf.mxu1 }
 0x3f4   : > { %v7284_v33 = vadd.f32 %v7143_v44, %v15924_v30  ;;  %v16045_v20 = vadd.f32 %v10972_v49, %v7286_v10 }
 0x3f5   : > { %v10980_v45 = vpop.f32.mrf.mxu0  ;;  %v10923_v59 = vpop.f32.mrf.mxu1  ;;  %11154 = vmatmul.mubr.bf16.gmra.mxu1 %v17515_v37 }
 0x3f6   : > { %v7289_v36 = vadd.f32 %v10923_v59, %v15927_v19  ;;  %11157 = vmatprep.mubr.bf16.mxu1 %v17516_v55  ;;  %v16050_v47 = vadd.f32 %v7480_v51, %v7284_v33 }
 0x3f7   : > { %v7512_v63 = vpop.f32.mrf.mxu0  ;;  %v7156_v3 = vpop.f32.mrf.mxu1 }
 0x3f8   : > { %v7287_v1 = vadd.f32 %v7156_v3, %v15930_v22  ;;  %v16053_v32 = vadd.f32 %v10975_v23, %v7289_v36 }
 0x3f9   : > { %v10983_v56 = vpop.f32.mrf.mxu0  ;;  %v10924_v11 = vpop.f32.mrf.mxu1 }
 0x3fa   : > { %v7290_v49 = vadd.f32 %v10924_v11, %v15934_v17  ;;  %v16056_v21 = vadd.f32 %v7493_v2, %v7287_v1 }
 0x3fb   : > { %v7525_v30 = vpop.f32.mrf.mxu0  ;;  %v7159_v24 = vpop.f32.mrf.mxu1 }
 0x3fc   : > { %v7288_v19 = vadd.f32 %v7159_v24, %v15938_v29  ;;  %v16059_v28 = vadd.f32 %v10976_v16, %v7290_v49 }
 0x3fd   : > { %v10984_v46 = vpop.f32.mrf.mxu0  ;;  %v10927_v51 = vpop.f32.mrf.mxu1  ;;  %11158 = vmatmul.mubr.bf16.gmra.mxu1 %v17517_v4 }
 0x3fe   : > { %v7293_v22 = vadd.f32 %v10927_v51, %v15941_v42  ;;  %v16063_v23 = vadd.f32 %v7496_v15, %v7288_v19 }
 0x3ff   : > { %v7528_v10 = vpop.f32.mrf.mxu0  ;;  %v7172_v44 = vpop.f32.mrf.mxu1 }
 0x400   : > { %v7291_v17 = vadd.f32 %v7172_v44, %v15944_v5  ;;  %v16066_v2 = vadd.f32 %v10979_v31, %v7293_v22 }
 0x401   : > { %v10987_v33 = vpop.f32.mrf.mxu0  ;;  %v10928_v59 = vpop.f32.mrf.mxu1 }
 0x402   : > { %v7294_v29 = vadd.f32 %v10928_v59, %v15947_v18  ;;  %v16069_v16 = vadd.f32 %v7509_v35, %v7291_v17 }
 0x403   : > { %v7541_v37 = vpop.f32.mrf.mxu0  ;;  %v7175_v36 = vpop.f32.mrf.mxu1 }
 0x404   : > { %v7292_v3 = vadd.f32 %v7175_v36, %v15952_v43  ;;  %v16072_v1 = vadd.f32 %v10980_v45, %v7294_v29 }
 0x405   : > { %v10988_v55 = vpop.f32.mrf.mxu0  ;;  %v10931_v42 = vpop.f32.mrf.mxu1 }
 0x406   : > { %v7297_v11 = vadd.f32 %v10931_v42, %v15955_v58  ;;  %v16075_v49 = vadd.f32 %v7512_v63, %v7292_v3 }
 0x407   : > { %v7544_v15 = vpop.f32.mrf.mxu0  ;;  %v7188_v5 = vpop.f32.mrf.mxu1 }
 0x408   : > { %v7295_v24 = vadd.f32 %v7188_v5, %v15958_v60  ;;  %v16078_v19 = vadd.f32 %v10983_v56, %v7297_v11 }
 0x409   : > { %v10991_v31 = vpop.f32.mrf.mxu0  ;;  %v10932_v18 = vpop.f32.mrf.mxu1 }
 0x40a   : > { %v7298_v51 = vadd.f32 %v10932_v18, %v15961_v50  ;;  %v16081_v4 = vadd.f32 %v7525_v30, %v7295_v24 }
 0x40b   : > { %v7557_v35 = vpop.f32.mrf.mxu0  ;;  %v7191_v43 = vpop.f32.mrf.mxu1 }
 0x40c   : > { %v7296_v22 = vadd.f32 %v7191_v43, %v15966_v9  ;;  %v16084_v44 = vadd.f32 %v10984_v46, %v7298_v51 }
 0x40d   : > { %v10992_v45 = vpop.f32.mrf.mxu0  ;;  %v10935_v58 = vpop.f32.mrf.mxu1 }
 0x40e   : > { %v7301_v17 = vadd.f32 %v10935_v58, %v15969_v26  ;;  %v16087_v59 = vadd.f32 %v7528_v10, %v7296_v22 }
 0x40f   : > { %v7560_v63 = vpop.f32.mrf.mxu0  ;;  %v7204_v60 = vpop.f32.mrf.mxu1 }
 0x410   : > { %v7299_v29 = vadd.f32 %v7204_v60, %v15972_v53  ;;  %v16090_v36 = vadd.f32 %v10987_v33, %v7301_v17 }
 0x411   : > { %v10995_v56 = vpop.f32.mrf.mxu0  ;;  %v10936_v50 = vpop.f32.mrf.mxu1 }
 0x412   : > { %v7302_v3 = vadd.f32 %v10936_v50, %v15975_v6  ;;  %v16093_v42 = vadd.f32 %v7541_v37, %v7299_v29 }
 0x413   : > { %v7573_v30 = vpop.f32.mrf.mxu0  ;;  %v7207_v9 = vpop.f32.mrf.mxu1 }
 0x414   : > { %v7300_v11 = vadd.f32 %v7207_v9, %v15980_v40  ;;  %v16096_v5 = vadd.f32 %v10988_v55, %v7302_v3 }
 0x415   : > { %v10996_v46 = vpop.f32.mrf.mxu0  ;;  %v10939_v26 = vpop.f32.mrf.mxu1 }
 0x416   : > { %v7305_v24 = vadd.f32 %v10939_v26, %v15983_v8  ;;  %v16099_v18 = vadd.f32 %v7544_v15, %v7300_v11 }
 0x417   : > { %v7576_v10 = vpop.f32.mrf.mxu0  ;;  %v7220_v53 = vpop.f32.mrf.mxu1 }
 0x418   : > { %v7303_v51 = vadd.f32 %v7220_v53, %v15986_v61  ;;  %v16102_v43 = vadd.f32 %v10991_v31, %v7305_v24 }
 0x419   : > { %v10999_v33 = vpop.f32.mrf.mxu0  ;;  %v10940_v6 = vpop.f32.mrf.mxu1 }
 0x41a   : > { %v7306_v22 = vadd.f32 %v10940_v6, %v15989_v27  ;;  %v16105_v58 = vadd.f32 %v7557_v35, %v7303_v51 }
 0x41b   : > { %v7589_v37 = vpop.f32.mrf.mxu0  ;;  %v7223_v40 = vpop.f32.mrf.mxu1 }
 0x41c   : > { %v7304_v55 = vadd.f32 %v7223_v40, %v15994_v52  ;;  %v16108_v60 = vadd.f32 %v10992_v45, %v7306_v22 }
 0x41d   : > { %v11000_v17 = vpop.f32.mrf.mxu0  ;;  %v10943_v8 = vpop.f32.mrf.mxu1 }
 0x41e   : > { %v7309_v15 = vadd.f32 %v10943_v8, %v15997_v57  ;;  %v16111_v29 = vadd.f32 %v7560_v63, %v7304_v55 }
 0x41f   : > { %v7236_v61 = vpop.f32.mrf.mxu1  ;;  %v7592_v50 = vpop.f32.mrf.mxu0 }
 0x420   : > { %v7307_v31 = vadd.f32 %v7236_v61, %v16000_v12  ;;  %v16114_v3 = vadd.f32 %v10995_v56, %v7309_v15 }
 0x421   : > { %v10944_v27 = vpop.f32.mrf.mxu1  ;;  %v11003_v11 = vpop.f32.mrf.mxu0 }
 0x422   : > { %v7310_v35 = vadd.f32 %v10944_v27, %v16003_v54  ;;  %v16117_v9 = vadd.f32 %v7573_v30, %v7307_v31 }
 0x423   : > { %v7239_v52 = vpop.f32.mrf.mxu1  ;;  %v7605_v53 = vpop.f32.mrf.mxu0 }
 0x424   : > { %v7308_v45 = vadd.f32 %v7239_v52, %v16008_v48  ;;  %v16120_v26 = vadd.f32 %v10996_v46, %v7310_v35 }
 0x425   : > { %v10947_v57 = vpop.f32.mrf.mxu1  ;;  %v11004_v22 = vpop.f32.mrf.mxu0 }
 0x426   : > { %v7313_v63 = vadd.f32 %v10947_v57, %v16011_v7  ;;  %v16123_v24 = vadd.f32 %v7576_v10, %v7308_v45 }
 0x427   : > { %v7252_v12 = vpop.f32.mrf.mxu1  ;;  %v7608_v8 = vpop.f32.mrf.mxu0 }
 0x428   : > { %v7311_v56 = vadd.f32 %v7252_v12, %v16014_v34  ;;  %v16126_v51 = vadd.f32 %v10999_v33, %v7313_v63 }
 0x429   : > { %v10948_v54 = vpop.f32.mrf.mxu1 }
 0x42a   : > { %v7314_v30 = vadd.f32 %v10948_v54, %v16017_v62  ;;  %v16129_v6 = vadd.f32 %v7589_v37, %v7311_v56 }
 0x42b   : > { %v7255_v48 = vpop.f32.mrf.mxu1 }
 0x42c   : > { %v7312_v46 = vadd.f32 %v7255_v48, %v16022_v14  ;;  %v16132_v40 = vadd.f32 %v11000_v17, %v7314_v30  ;;  %v16143_v14 = vpop.f32.mrf.mxu0 }
 0x42d   : > { %v10951_v7 = vpop.f32.mrf.mxu1 }
 0x42e   : > { %v7317_v10 = vadd.f32 %v10951_v7, %v16025_v41  ;;  %v16135_v55 = vadd.f32 %v7592_v50, %v7312_v46  ;;  %v16153_v52 = vpop.f32.mrf.mxu0 }
 0x42f   : > { %v7268_v34 = vpop.f32.mrf.mxu1 }
 0x430   : > { %v7315_v33 = vadd.f32 %v7268_v34, %v16028_v0  ;;  %v16138_v15 = vadd.f32 %v11003_v11, %v7317_v10 }
 0x431   : > { %v10952_v62 = vpop.f32.mrf.mxu1 }
 0x432   : > { %v7318_v37 = vadd.f32 %v10952_v62, %v16031_v38  ;;  %v16141_v61 = vadd.f32 %v7605_v53, %v7315_v33 }
 0x433   : > { %v7271_v31 = vpop.f32.mrf.mxu1 }
 0x434   : > { %v7316_v17 = vadd.f32 %v7271_v31, %v16036_v13  ;;  %v16146_v27 = vadd.f32 %v11004_v22, %v7318_v37  ;;  %v16161_v13 = vpop.f32.mrf.mxu0 }
 0x435   : > { %v11023_v41 = vpop.f32.mrf.mxu1 }
 0x436   : > { %v16149_v50 = vadd.f32 %v11023_v41, %v16039_v39  ;;  %v16151_v35 = vadd.f32 %v7608_v8, %v7316_v17  ;;  %v16169_v53 = vpop.f32.mrf.mxu0 }
 0x437   : > { %v7940_v0 = vpop.f32.mrf.mxu1 }
 0x438   : > { %v16156_v38 = vadd.f32 %v7940_v0, %v16042_v25  ;;  %v16177_v48 = vpop.f32.mrf.mxu0 }
 0x439   : > { %v11024_v45 = vpop.f32.mrf.mxu1 }
 0x43a   : > { %v16159_v11 = vadd.f32 %v11024_v45, %v16045_v20  ;;  %v16185_v7 = vpop.f32.mrf.mxu0 }
 0x43b   : > { %v7943_v57 = vpop.f32.mrf.mxu1 }
 0x43c   : > { %v16164_v63 = vadd.f32 %v7943_v57, %v16050_v47  ;;  %v16193_v8 = vpop.f32.mrf.mxu0 }
 0x43d   : > { %v11027_v39 = vpop.f32.mrf.mxu1 }
 0x43e   : > { %v16167_v12 = vadd.f32 %v11027_v39, %v16053_v32  ;;  %v16201_v37 = vpop.f32.mrf.mxu0 }
 0x43f   : > { %v7956_v56 = vpop.f32.mrf.mxu1 }
 0x440   : > { %v16172_v25 = vadd.f32 %v7956_v56, %v16056_v21  ;;  %v16209_v41 = vpop.f32.mrf.mxu0 }
 0x441   : > { %v11028_v54 = vpop.f32.mrf.mxu1 }
 0x442   : > { %v16175_v20 = vadd.f32 %v11028_v54, %v16059_v28  ;;  %v16217_v57 = vpop.f32.mrf.mxu0 }
 0x443   : > { %v7959_v30 = vpop.f32.mrf.mxu1 }
 0x444   : > { %v16180_v47 = vadd.f32 %v7959_v30, %v16063_v23  ;;  %v16225_v54 = vpop.f32.mrf.mxu0 }
 0x445   : > { %v11031_v22 = vpop.f32.mrf.mxu1 }
 0x446   : > { %v16183_v32 = vadd.f32 %v11031_v22, %v16066_v2 }
 0x447   : > { %v7972_v46 = vpop.f32.mrf.mxu1 }
 0x448   : > { %v16188_v21 = vadd.f32 %v7972_v46, %v16069_v16  ;;  %v16233_v46 = vpop.f32.mrf.mxu0 }
 0x449   : > { %v11032_v10 = vpop.f32.mrf.mxu1 }
 0x44a   : > { %v16191_v28 = vadd.f32 %v11032_v10, %v16072_v1 }
 0x44b   : > { %v7975_v34 = vpop.f32.mrf.mxu1 }
 0x44c   : > { %v16196_v23 = vadd.f32 %v7975_v34, %v16075_v49 }
 0x44d   : > { %v11035_v33 = vpop.f32.mrf.mxu1 }
 0x44e   : > { %v16199_v2 = vadd.f32 %v11035_v33, %v16078_v19  ;;  %v16241_v33 = vpop.f32.mrf.mxu0 }
 0x44f   : > { %v7988_v62 = vpop.f32.mrf.mxu1 }
 0x450   : > { %v16204_v16 = vadd.f32 %v7988_v62, %v16081_v4 }
 0x451   : > { %v11036_v31 = vpop.f32.mrf.mxu1 }
 0x452   : > { %v16207_v1 = vadd.f32 %v11036_v31, %v16084_v44 }
 0x453   : > { %v7991_v17 = vpop.f32.mrf.mxu1 }
 0x454   : > { %v16212_v49 = vadd.f32 %v7991_v17, %v16087_v59  ;;  %v16249_v17 = vpop.f32.mrf.mxu0 }
 0x455   : > { %v11039_v0 = vpop.f32.mrf.mxu1 }
 0x456   : > { %v16215_v19 = vadd.f32 %v11039_v0, %v16090_v36 }
 0x457   : > { %v8004_v45 = vpop.f32.mrf.mxu1 }
 0x458   : > { %v16220_v4 = vadd.f32 %v8004_v45, %v16093_v42 }
 0x459   : > { %v11040_v39 = vpop.f32.mrf.mxu1 }
 0x45a   : > { %v16223_v44 = vadd.f32 %v11040_v39, %v16096_v5  ;;  %v16257_v39 = vpop.f32.mrf.mxu0 }
 0x45b   : > { %v8007_v56 = vpop.f32.mrf.mxu1 }
 0x45c   : > { %v16228_v59 = vadd.f32 %v8007_v56, %v16099_v18 }
 0x45d   : > { %v11043_v30 = vpop.f32.mrf.mxu1 }
 0x45e   : > { %v16231_v36 = vadd.f32 %v11043_v30, %v16102_v43 }
 0x45f   : > { %v8020_v22 = vpop.f32.mrf.mxu1 }
 0x460   : > { %v16236_v42 = vadd.f32 %v8020_v22, %v16105_v58  ;;  %v16265_v22 = vpop.f32.mrf.mxu0 }
 0x461   : > { %v11044_v10 = vpop.f32.mrf.mxu1 }
 0x462   : > { %v16239_v5 = vadd.f32 %v11044_v10, %v16108_v60 }
 0x463   : > { %v8023_v34 = vpop.f32.mrf.mxu1 }
 0x464   : > { %v16244_v18 = vadd.f32 %v8023_v34, %v16111_v29 }
 0x465   : > { %v11047_v62 = vpop.f32.mrf.mxu1 }
 0x466   : > { %v16247_v43 = vadd.f32 %v11047_v62, %v16114_v3  ;;  %v16273_v62 = vpop.f32.mrf.mxu0 }
 0x467   : > { %v8036_v31 = vpop.f32.mrf.mxu1 }
 0x468   : > { %v16252_v58 = vadd.f32 %v8036_v31, %v16117_v9 }
 0x469   : > { %v11048_v0 = vpop.f32.mrf.mxu1 }
 0x46a   : > { %v16255_v60 = vadd.f32 %v11048_v0, %v16120_v26 }
 0x46b   : > { %v8039_v45 = vpop.f32.mrf.mxu1 }
 0x46c   : > { %v16260_v29 = vadd.f32 %v8039_v45, %v16123_v24  ;;  %v16281_v45 = vpop.f32.mrf.mxu0 }
 0x46d   : > { %v11051_v56 = vpop.f32.mrf.mxu1 }
 0x46e   : > { %v16263_v3 = vadd.f32 %v11051_v56, %v16126_v51 }
 0x46f   : > { %v8052_v30 = vpop.f32.mrf.mxu1 }
 0x470   : > { %v16268_v9 = vadd.f32 %v8052_v30, %v16129_v6 }
 0x471   : > { %v11052_v10 = vpop.f32.mrf.mxu1 }
 0x472   : > { %v16271_v26 = vadd.f32 %v11052_v10, %v16132_v40  ;;  %v16289_v10 = vpop.f32.mrf.mxu0 }
 0x473   : > { %v8055_v34 = vpop.f32.mrf.mxu1 }
 0x474   : > { %v16276_v24 = vadd.f32 %v8055_v34, %v16135_v55 }
 0x475   : > { %v11055_v31 = vpop.f32.mrf.mxu1 }
 0x476   : > { %v16279_v51 = vadd.f32 %v11055_v31, %v16138_v15  ;;  %v8555_v15 = vadd.f32 %v16143_v14, %v16149_v50  ;;  %v16299_v31 = vld [vmem:[%s16536_s2 + $0x1] ss:$0 sm:$0xff]  ;;  %v8556_v14 = vadd.f32 %v16161_v13, %v16159_v11 }
 0x477   : > { %v8068_v0 = vpop.f32.mrf.mxu1 }
 0x478   : > { %v16284_v6 = vadd.f32 %v8068_v0, %v16141_v61 }
 0x479   : > { %v11056_v56 = vpop.f32.mrf.mxu1 }
 0x47a   : > { %v16287_v40 = vadd.f32 %v11056_v56, %v16146_v27  ;;  %v8553_v27 = vadd.f32 %v16153_v52, %v16156_v38  ;;  %v16304_v56 = vpop.f32.mrf.mxu0  ;;  %v8554_v38 = vadd.f32 %v16169_v53, %v16164_v63  ;;  %v8563_v63 = vadd.f32 %v16209_v41, %v16183_v32 }
 0x47b   : > { %v8071_v30 = vpop.f32.mrf.mxu1 }
 0x47c   : > { %17518 = vst [vmem:[#allocation49_spill] sm:$0xff] %v16287_v40  ;;  %v16292_v55 = vadd.f32 %v8071_v30, %v16151_v35  ;;  %v16319_v11 = vpop.f32.mrf.mxu0 }
 0x47d   : > { %v11127_v34 = vpop.f32.mrf.mxu1 }
 0x47e   : > { %17519 = vst [vmem:[#allocation86_spill] sm:$0xff] %v16292_v55  ;;  %v8892_v61 = vadd.f32 %v11127_v34, %v8555_v15 }
 0x47f   : > { %v8747_v0 = vpop.f32.mrf.mxu1 }
 0x480   : > { %v8936_v35 = vadd.f32 %v16299_v31, %v8892_v61  ;;  %v8890_v30 = vadd.f32 %v8747_v0, %v8553_v27  ;;  %v8559_v27 = vadd.f32 %v16177_v48, %v16167_v12 }
 0x481   : > { %v11128_v50 = vpop.f32.mrf.mxu1 }
 0x482   : > { %v8972_v15 = vmax.f32 %v8936_v35, 0.0  ;;  %v8934_v34 = vadd.f32 %v16299_v31, %v8890_v30  ;;  %v8893_v52 = vadd.f32 %v11128_v50, %v8556_v14  ;;  %v8557_v14 = vadd.f32 %v16185_v7, %v16172_v25 }
 0x483   : > { %v8750_v61 = vpop.f32.mrf.mxu1 }
 0x484   : > { %v9008_v0 = vsel %vm14094_vm2, %v8972_v15, 0.0  ;;  %v8970_v55 = vmax.f32 %v8934_v34, 0.0  ;;  %v8937_v40 = vadd.f32 %v16299_v31, %v8893_v52  ;;  %v8891_v35 = vadd.f32 %v8750_v61, %v8554_v38  ;;  %v16333_v52 = vpop.f32.mrf.mxu0 }
 0x485   : > { %9044 = vst [vmem:[%s16312_s21 + $0x10] sm:$0xff] %v9008_v0  ;;  %v11131_v30 = vpop.f32.mrf.mxu1  ;;  %v8560_v34 = vadd.f32 %v16193_v8, %v16175_v20 }
 0x486   : > { %v9006_v53 = vsel %vm14119_vm11, %v8970_v55, 0.0  ;;  %v8973_v50 = vmax.f32 %v8937_v40, 0.0  ;;  %v8935_v12 = vadd.f32 %v16299_v31, %v8891_v35  ;;  %v8896_v48 = vadd.f32 %v11131_v30, %v8559_v27  ;;  %v17523_v27 = vld [vmem:[#allocation39_spill] sm:$0xff] }
 0x487   : > { %9042 = vst [vmem:[%s16312_s21] sm:$0xff] %v9006_v53  ;;  %v8763_v15 = vpop.f32.mrf.mxu1  ;;  %v8558_v55 = vadd.f32 %v16201_v37, %v16180_v47  ;;  %vm17524_vm2 = vnez %v17523_v27  ;;  %v17525_v53 = vld [vmem:[#allocation24_spill] sm:$0xff] }
 0x488   : > { %v9009_v61 = vsel %vm14151_vm9, %v8973_v50, 0.0  ;;  %v8971_v13 = vmax.f32 %v8935_v12, 0.0  ;;  %v8940_v25 = vadd.f32 %v16299_v31, %v8896_v48  ;;  %v8894_v7 = vadd.f32 %v8763_v15, %v8557_v14  ;;  %v16347_v14 = vpop.f32.mrf.mxu0 }
 0x489   : > { %9045 = vst [vmem:[%s16312_s21 + $0x18] sm:$0xff] %v9009_v61  ;;  %v11132_v40 = vpop.f32.mrf.mxu1  ;;  %vm17526_vm11 = vnez %v17525_v53  ;;  %v8561_v15 = vadd.f32 %v16217_v57, %v16188_v21  ;;  %v8567_v53 = vadd.f32 %v16241_v33, %v16199_v2 }
 0x48a   : > { %v9007_v0 = vsel %vm17524_vm2, %v8971_v13, 0.0  ;;  %v8976_v35 = vmax.f32 %v8940_v25, 0.0  ;;  %v8938_v20 = vadd.f32 %v16299_v31, %v8894_v7  ;;  %v8897_v8 = vadd.f32 %v11132_v40, %v8560_v34  ;;  %v16361_v7 = vpop.f32.mrf.mxu0  ;;  %v17528_v40 = vld [vmem:[#allocation29_spill] sm:$0xff]  ;;  %v17534_v34 = vld [vmem:[#allocation31_spill] sm:$0xff] }
 0x48b   : > { %9043 = vst [vmem:[%s16312_s21 + $0x8] sm:$0xff] %v9007_v0  ;;  %v8766_v30 = vpop.f32.mrf.mxu1  ;;  %v8564_v25 = vadd.f32 %v16225_v54, %v16191_v28  ;;  %vm17529_vm9 = vnez %v17528_v40  ;;  %vm17535_vm6 = vnez %v17534_v34  ;;  %v17543_v34 = vld [vmem:[#allocation53_spill] sm:$0xff] }
 0x48c   : > { %v9012_v50 = vsel %vm17526_vm11, %v8976_v35, 0.0  ;;  %v8974_v12 = vmax.f32 %v8938_v20, 0.0  ;;  %v8941_v47 = vadd.f32 %v16299_v31, %v8897_v8  ;;  %v8895_v37 = vadd.f32 %v8766_v30, %v8558_v55  ;;  %v17530_v20 = vld [vmem:[#allocation44_spill] sm:$0xff] }
 0x48d   : > { %9048 = vst [vmem:[%s16312_s21 + $0x30] sm:$0xff] %v9012_v50  ;;  %v11135_v48 = vpop.f32.mrf.mxu1  ;;  %v8562_v35 = vadd.f32 %v16233_v46, %v16196_v23  ;;  %v16375_v50 = vpop.f32.mrf.mxu0  ;;  %vm17544_vm5 = vnez %v17543_v34 }
 0x48e   : > { %v9010_v38 = vsel %vm14251_vm0, %v8974_v12, 0.0  ;;  %v8977_v61 = vmax.f32 %v8941_v47, 0.0  ;;  %v8939_v32 = vadd.f32 %v16299_v31, %v8895_v37  ;;  %v8900_v41 = vadd.f32 %v11135_v48, %v8563_v63  ;;  %v17532_v12 = vld [vmem:[#allocation43_spill] sm:$0xff] }
 0x48f   : > { %9046 = vst [vmem:[%s16312_s21 + $0x20] sm:$0xff] %v9010_v38  ;;  %v8779_v13 = vpop.f32.mrf.mxu1  ;;  %vm17531_vm0 = vnez %v17530_v20  ;;  %vm17533_vm13 = vnez %v17532_v12  ;;  %v8569_v12 = vadd.f32 %v16281_v45, %v16220_v4 }
 0x490   : > { %v9013_v55 = vsel %vm17529_vm9, %v8977_v61, 0.0  ;;  %v8975_v27 = vmax.f32 %v8939_v32, 0.0  ;;  %v8944_v21 = vadd.f32 %v16299_v31, %v8900_v41  ;;  %v8898_v57 = vadd.f32 %v8779_v13, %v8561_v15  ;;  %v16389_v13 = vpop.f32.mrf.mxu0 }
 0x491   : > { %9049 = vst [vmem:[%s16312_s21 + $0x38] sm:$0xff] %v9013_v55  ;;  %v11136_v0 = vpop.f32.mrf.mxu1  ;;  %v8565_v15 = vadd.f32 %v16249_v17, %v16204_v16  ;;  %v8568_v41 = vadd.f32 %v16257_v39, %v16207_v1 }
 0x492   : > { %v9011_v8 = vsel %vm17531_vm0, %v8975_v27, 0.0  ;;  %v8980_v30 = vmax.f32 %v8944_v21, 0.0  ;;  %v8942_v28 = vadd.f32 %v16299_v31, %v8898_v57  ;;  %v8901_v54 = vadd.f32 %v11136_v0, %v8564_v25  ;;  %v17536_v25 = vld [vmem:[#allocation46_spill] sm:$0xff] }
 0x493   : > { %9047 = vst [vmem:[%s16312_s21 + $0x28] sm:$0xff] %v9011_v8  ;;  %v8782_v63 = vpop.f32.mrf.mxu1  ;;  %vm17537_vm4 = vnez %v17536_v25  ;;  %v8566_v21 = vadd.f32 %v16265_v22, %v16212_v49  ;;  %v8571_v8 = vadd.f32 %v16273_v62, %v16215_v19 }
 0x494   : > { %v9016_v47 = vsel %vm17533_vm13, %v8980_v30, 0.0  ;;  %v8978_v37 = vmax.f32 %v8942_v28, 0.0  ;;  %v8945_v23 = vadd.f32 %v16299_v31, %v8901_v54  ;;  %v8899_v46 = vadd.f32 %v8782_v63, %v8562_v35  ;;  %v16403_v30 = vpop.f32.mrf.mxu0  ;;  %v17539_v28 = vld [vmem:[#allocation35_spill] sm:$0xff] }
 0x495   : > { %9052 = vst [vmem:[%s16312_s21 + $0x50] sm:$0xff] %v9016_v47  ;;  %v11139_v48 = vpop.f32.mrf.mxu1  ;;  %vm17540_vm8 = vnez %v17539_v28  ;;  %v17541_v47 = vld [vmem:[#allocation58_spill] sm:$0xff] }
 0x496   : > { %v9014_v38 = vsel %vm17535_vm6, %v8978_v37, 0.0  ;;  %v8981_v61 = vmax.f32 %v8945_v23, 0.0  ;;  %v8943_v2 = vadd.f32 %v16299_v31, %v8899_v46  ;;  %v8904_v33 = vadd.f32 %v11139_v48, %v8567_v53 }
 0x497   : > { %9050 = vst [vmem:[%s16312_s21 + $0x40] sm:$0xff] %v9014_v38  ;;  %v8795_v32 = vpop.f32.mrf.mxu1  ;;  %v8572_v48 = vadd.f32 %v16289_v10, %v16223_v44 }
 0x498   : > { %v9017_v40 = vsel %vm17537_vm4, %v8981_v61, 0.0  ;;  %v8979_v55 = vmax.f32 %v8943_v2, 0.0  ;;  %v8948_v16 = vadd.f32 %v16299_v31, %v8904_v33  ;;  %v8902_v17 = vadd.f32 %v8795_v32, %v8565_v15  ;;  %v16417_v15 = vpop.f32.mrf.mxu0  ;;  %v17545_v32 = vld [vmem:[#allocation47_spill] sm:$0xff] }
 0x499   : > { %9053 = vst [vmem:[%s16312_s21 + $0x58] sm:$0xff] %v9017_v40  ;;  %v11140_v27 = vpop.f32.mrf.mxu1  ;;  %v8570_v33 = vadd.f32 %v16304_v56, %v16228_v59  ;;  %vm17546_vm10 = vnez %v17545_v32  ;;  %v8580_v32 = vadd.f32 %v16403_v30, %v16255_v60 }
 0x49a   : > { %v9015_v0 = vsel %vm14378_vm3, %v8979_v55, 0.0  ;;  %v8984_v35 = vmax.f32 %v8948_v16, 0.0  ;;  %v8946_v1 = vadd.f32 %v16299_v31, %v8902_v17  ;;  %v8905_v39 = vadd.f32 %v11140_v27, %v8568_v41  ;;  %v11103_v16 = vpop.f32.mrf.mxu0  ;;  %v17560_v17 = vld [vmem:[#allocation13_spill] sm:$0xff] }
 0x49b   : > { %9051 = vst [vmem:[%s16312_s21 + $0x48] sm:$0xff] %v9015_v0  ;;  %v8798_v20 = vpop.f32.mrf.mxu1  ;;  %vm17542_vm3 = vnez %v17541_v47  ;;  %v8575_v55 = vadd.f32 %v16319_v11, %v16231_v36  ;;  %v8573_v0 = vadd.f32 %v16333_v52, %v16236_v42  ;;  %vm17561_vm6 = vnez %v17560_v17 }
 0x49c   : > { %v9020_v54 = vsel %vm17540_vm8, %v8984_v35, 0.0  ;;  %v8982_v63 = vmax.f32 %v8946_v1, 0.0  ;;  %v8949_v49 = vadd.f32 %v16299_v31, %v8905_v39  ;;  %v8903_v22 = vadd.f32 %v8798_v20, %v8566_v21  ;;  %v17548_v35 = vld [vmem:[#allocation59_spill] sm:$0xff]  ;;  %v8522_v28 = vpop.f32.mrf.mxu0 }
 0x49d   : > { %9056 = vst [vmem:[%s16312_s21 + $0x70] sm:$0xff] %v9020_v54  ;;  %v11143_v53 = vpop.f32.mrf.mxu1  ;;  %vm17549_vm2 = vnez %v17548_v35  ;;  %v17550_v54 = vld [vmem:[#allocation54_spill] sm:$0xff] }
 0x49e   : > { %v9018_v37 = vsel %vm17542_vm3, %v8982_v63, 0.0  ;;  %v8985_v23 = vmax.f32 %v8949_v49, 0.0  ;;  %v8947_v19 = vadd.f32 %v16299_v31, %v8903_v22  ;;  %v8908_v62 = vadd.f32 %v11143_v53, %v8571_v8 }
 0x49f   : > { %9054 = vst [vmem:[%s16312_s21 + $0x60] sm:$0xff] %v9018_v37  ;;  %v8811_v46 = vpop.f32.mrf.mxu1  ;;  %v8576_v8 = vadd.f32 %v16347_v14, %v16239_v5  ;;  %v8574_v53 = vadd.f32 %v16361_v7, %v16244_v18 }
 0x4a0   : > { %v9021_v38 = vsel %vm17544_vm5, %v8985_v23, 0.0  ;;  %v8983_v61 = vmax.f32 %v8947_v19, 0.0  ;;  %v8952_v4 = vadd.f32 %v16299_v31, %v8908_v62  ;;  %v8906_v45 = vadd.f32 %v8811_v46, %v8569_v12  ;;  %v17552_v12 = vld [vmem:[#allocation50_spill] sm:$0xff]  ;;  %v11104_v62 = vpop.f32.mrf.mxu0  ;;  %v17554_v46 = vld [vmem:[#allocation8_spill] sm:$0xff] }
 0x4a1   : > { %9057 = vst [vmem:[%s16312_s21 + $0x78] sm:$0xff] %v9021_v38  ;;  %v11144_v2 = vpop.f32.mrf.mxu1  ;;  %vm17553_vm11 = vnez %v17552_v12  ;;  %v8579_v19 = vadd.f32 %v16375_v50, %v16247_v43  ;;  %vm17555_vm9 = vnez %v17554_v46  ;;  %v17569_v46 = vld [vmem:[#allocation4_spill] sm:$0xff] }
 0x4a2   : > { %v9019_v41 = vsel %vm17546_vm10, %v8983_v61, 0.0  ;;  %v8988_v25 = vmax.f32 %v8952_v4, 0.0  ;;  %v8950_v44 = vadd.f32 %v16299_v31, %v8906_v45  ;;  %v8909_v10 = vadd.f32 %v11144_v2, %v8572_v48  ;;  %v17556_v4 = vld [vmem:[#allocation60_spill] sm:$0xff] }
 0x4a3   : > { %9055 = vst [vmem:[%s16312_s21 + $0x68] sm:$0xff] %v9019_v41  ;;  %v8814_v40 = vpop.f32.mrf.mxu1  ;;  %v8577_v61 = vadd.f32 %v16389_v13, %v16252_v58  ;;  %vm17557_vm0 = vnez %v17556_v4  ;;  %v8525_v41 = vpop.f32.mrf.mxu0  ;;  %vm17570_vm3 = vnez %v17569_v46 }
 0x4a4   : > { %v9024_v27 = vsel %vm14470_vm14, %v8988_v25, 0.0  ;;  %v8986_v21 = vmax.f32 %v8950_v44, 0.0  ;;  %v8953_v59 = vadd.f32 %v16299_v31, %v8909_v10  ;;  %v8907_v56 = vadd.f32 %v8814_v40, %v8570_v33  ;;  %v17558_v25 = vld [vmem:[#allocation55_spill] sm:$0xff] }
 0x4a5   : > { %9060 = vst [vmem:[%s16312_s21 + $0x90] sm:$0xff] %v9024_v27  ;;  %v11147_v57 = vpop.f32.mrf.mxu1  ;;  %vm17551_vm14 = vnez %v17550_v54  ;;  %vm17559_vm13 = vnez %v17558_v25  ;;  %v8582_v12 = vadd.f32 %v8525_v41, %v16276_v24 }
 0x4a6   : > { %v9022_v1 = vsel %vm17549_vm2, %v8986_v21, 0.0  ;;  %v8989_v39 = vmax.f32 %v8953_v59, 0.0  ;;  %v8951_v36 = vadd.f32 %v16299_v31, %v8907_v56  ;;  %v8912_v11 = vadd.f32 %v11147_v57, %v8575_v55  ;;  %v11107_v57 = vpop.f32.mrf.mxu0 }
 0x4a7   : > { %9058 = vst [vmem:[%s16312_s21 + $0x80] sm:$0xff] %v9022_v1  ;;  %v8827_v20 = vpop.f32.mrf.mxu1  ;;  %v8578_v55 = vadd.f32 %v16417_v15, %v16260_v29  ;;  %v8583_v56 = vadd.f32 %v11103_v16, %v16263_v3 }
 0x4a8   : > { %v9025_v63 = vsel %vm17551_vm14, %v8989_v39, 0.0  ;;  %v8987_v49 = vmax.f32 %v8951_v36, 0.0  ;;  %v8956_v42 = vadd.f32 %v16299_v31, %v8912_v11  ;;  %v8910_v52 = vadd.f32 %v8827_v20, %v8573_v0  ;;  %v17563_v11 = vld [vmem:[#allocation81_spill] sm:$0xff] }
 0x4a9   : > { %9061 = vst [vmem:[%s16312_s21 + $0x98] sm:$0xff] %v9025_v63  ;;  %v11148_v22 = vpop.f32.mrf.mxu1  ;;  %v8581_v36 = vadd.f32 %v8522_v28, %v16268_v9  ;;  %vm17564_vm4 = vnez %v17563_v11  ;;  %v8584_v63 = vadd.f32 %v11104_v62, %v16271_v26 }
 0x4aa   : > { %v9023_v47 = vsel %vm17553_vm11, %v8987_v49, 0.0  ;;  %v8992_v37 = vmax.f32 %v8956_v42, 0.0  ;;  %v8954_v5 = vadd.f32 %v16299_v31, %v8910_v52  ;;  %v8913_v14 = vadd.f32 %v11148_v22, %v8576_v8  ;;  %v8538_v49 = vpop.f32.mrf.mxu0  ;;  %v17565_v42 = vld [vmem:[#allocation62_spill] sm:$0xff] }
 0x4ab   : > { %9059 = vst [vmem:[%s16312_s21 + $0x88] sm:$0xff] %v9023_v47  ;;  %v8830_v23 = vpop.f32.mrf.mxu1  ;;  %v17567_v47 = vld [vmem:[#allocation61_spill] sm:$0xff] }
 0x4ac   : > { %v9028_v48 = vsel %vm17555_vm9, %v8992_v37, 0.0  ;;  %v8990_v34 = vmax.f32 %v8954_v5, 0.0  ;;  %v8957_v18 = vadd.f32 %v16299_v31, %v8913_v14  ;;  %v8911_v7 = vadd.f32 %v8830_v23, %v8574_v53  ;;  %v11108_v62 = vpop.f32.mrf.mxu0 }
 0x4ad   : > { %9064 = vst [vmem:[%s16312_s21 + $0xb0] sm:$0xff] %v9028_v48  ;;  %v11151_v38 = vpop.f32.mrf.mxu1  ;;  %vm17568_vm8 = vnez %v17567_v47 }
 0x4ae   : > { %v9026_v45 = vsel %vm17557_vm0, %v8990_v34, 0.0  ;;  %v8993_v2 = vmax.f32 %v8957_v18, 0.0  ;;  %v8955_v43 = vadd.f32 %v16299_v31, %v8911_v7  ;;  %v8916_v50 = vadd.f32 %v11151_v38, %v8579_v19 }
 0x4af   : > { %9062 = vst [vmem:[%s16312_s21 + $0xa0] sm:$0xff] %v9026_v45  ;;  %v8843_v33 = vpop.f32.mrf.mxu1  ;;  %v8587_v19 = vadd.f32 %v11107_v57, %v16279_v51  ;;  %v8585_v38 = vadd.f32 %v8538_v49, %v16284_v6 }
 0x4b0   : > { %v9029_v44 = vsel %vm17559_vm13, %v8993_v2, 0.0  ;;  %v8991_v10 = vmax.f32 %v8955_v43, 0.0  ;;  %v8960_v58 = vadd.f32 %v16299_v31, %v8916_v50  ;;  %v8914_v13 = vadd.f32 %v8843_v33, %v8577_v61  ;;  %v17572_v50 = vld [vmem:[#allocation49_spill] sm:$0xff] }
 0x4b1   : > { %9065 = vst [vmem:[%s16312_s21 + $0xb8] sm:$0xff] %v9029_v44  ;;  %v11152_v40 = vpop.f32.mrf.mxu1  ;;  %v8588_v33 = vadd.f32 %v11108_v62, %v17572_v50 }
 0x4b2   : > { %v9027_v27 = vsel %vm17561_vm6, %v8991_v10, 0.0  ;;  %v8996_v21 = vmax.f32 %v8960_v58, 0.0  ;;  %v8958_v60 = vadd.f32 %v16299_v31, %v8914_v13  ;;  %v8917_v30 = vadd.f32 %v11152_v40, %v8580_v32  ;;  %v8541_v32 = vpop.f32.mrf.mxu0  ;;  %v17574_v13 = vld [vmem:[#allocation86_spill] sm:$0xff] }
 0x4b3   : > { %9063 = vst [vmem:[%s16312_s21 + $0xa8] sm:$0xff] %v9027_v27  ;;  %v8846_v59 = vpop.f32.mrf.mxu1  ;;  %v8586_v40 = vadd.f32 %v8541_v32, %v17574_v13 }
 0x4b4   : > { %v9032_v35 = vsel %vm14678_vm7, %v8996_v21, 0.0  ;;  %v8994_v1 = vmax.f32 %v8958_v60, 0.0  ;;  %v8961_v39 = vadd.f32 %v16299_v31, %v8917_v30  ;;  %v8915_v29 = vadd.f32 %v8846_v59, %v8578_v55  ;;  %v17575_v55 = vld [vmem:[#allocation56_spill] sm:$0xff]  ;;  %v17577_v59 = vld [vmem:[#allocation65_spill] sm:$0xff] }
 0x4b5   : > { %9068 = vst [vmem:[%s16312_s21 + $0xd0] sm:$0xff] %v9032_v35  ;;  %v11155_v15 = vpop.f32.mrf.mxu1  ;;  %vm17566_vm7 = vnez %v17565_v42 }
 0x4b6   : > { %v9030_v20 = vsel %vm17564_vm4, %v8994_v1, 0.0  ;;  %v8997_v8 = vmax.f32 %v8961_v39, 0.0  ;;  %v8959_v54 = vadd.f32 %v16299_v31, %v8915_v29  ;;  %v8920_v3 = vadd.f32 %v11155_v15, %v8583_v56  ;;  %v17579_v1 = vld [vmem:[#allocation64_spill] sm:$0xff] }
 0x4b7   : > { %9066 = vst [vmem:[%s16312_s21 + $0xc0] sm:$0xff] %v9030_v20  ;;  %v8859_v16 = vpop.f32.mrf.mxu1  ;;  %vm17580_vm5 = vnez %v17579_v1 }
 0x4b8   : > { %v9033_v52 = vsel %vm17566_vm7, %v8997_v8, 0.0  ;;  %v8995_v22 = vmax.f32 %v8959_v54, 0.0  ;;  %v8964_v53 = vadd.f32 %v16299_v31, %v8920_v3  ;;  %v8918_v9 = vadd.f32 %v8859_v16, %v8581_v36  ;;  %v17582_v8 = vld [vmem:[#allocation11_spill] sm:$0xff] }
 0x4b9   : > { %9069 = vst [vmem:[%s16312_s21 + $0xd8] sm:$0xff] %v9033_v52  ;;  %v11156_v28 = vpop.f32.mrf.mxu1  ;;  %vm17583_vm10 = vnez %v17582_v8 }
 0x4ba   : > { %v9031_v37 = vsel %vm17568_vm8, %v8995_v22, 0.0  ;;  %v9000_v5 = vmax.f32 %v8964_v53, 0.0  ;;  %v8962_v14 = vadd.f32 %v16299_v31, %v8918_v9  ;;  %v8921_v26 = vadd.f32 %v11156_v28, %v8584_v63 }
 0x4bb   : > { %9067 = vst [vmem:[%s16312_s21 + $0xc8] sm:$0xff] %v9031_v37  ;;  %v8862_v23 = vpop.f32.mrf.mxu1 }
 0x4bc   : > { %v9036_v48 = vsel %vm17570_vm3, %v9000_v5, 0.0  ;;  %v8998_v34 = vmax.f32 %v8962_v14, 0.0  ;;  %v8965_v18 = vadd.f32 %v16299_v31, %v8921_v26  ;;  %v8919_v24 = vadd.f32 %v8862_v23, %v8582_v12 }
 0x4bd   : > { %9072 = vst [vmem:[%s16312_s21 + $0xf0] sm:$0xff] %v9036_v48  ;;  %v11159_v7 = vpop.f32.mrf.mxu1 }
 0x4be   : > { %v9034_v4 = vsel %vm14802_vm1, %v8998_v34, 0.0  ;;  %v9001_v45 = vmax.f32 %v8965_v18, 0.0  ;;  %v8963_v2 = vadd.f32 %v16299_v31, %v8919_v24  ;;  %v8924_v51 = vadd.f32 %v11159_v7, %v8587_v19 }
 0x4bf   : > { %9070 = vst [vmem:[%s16312_s21 + $0xe0] sm:$0xff] %v9034_v4  ;;  %v8875_v43 = vpop.f32.mrf.mxu1  ;;  %vm17576_vm1 = vnez %v17575_v55 }
 0x4c0   : > { %v9037_v25 = vsel %vm14817_vm15, %v9001_v45, 0.0  ;;  %v8999_v44 = vmax.f32 %v8963_v2, 0.0  ;;  %v8968_v6 = vadd.f32 %v16299_v31, %v8924_v51  ;;  %v8922_v10 = vadd.f32 %v8875_v43, %v8585_v38 }
 0x4c1   : > { %9073 = vst [vmem:[%s16312_s21 + $0xf8] sm:$0xff] %v9037_v25  ;;  %v11160_v58 = vpop.f32.mrf.mxu1  ;;  %vm17578_vm15 = vnez %v17577_v59 }
 0x4c2   : > { %v9035_v17 = vsel %vm17576_vm1, %v8999_v44, 0.0  ;;  %v9004_v27 = vmax.f32 %v8968_v6, 0.0  ;;  %v8966_v21 = vadd.f32 %v16299_v31, %v8922_v10  ;;  %v8925_v60 = vadd.f32 %v11160_v58, %v8588_v33 }
 0x4c3   : > { %9071 = vst [vmem:[%s16312_s21 + $0xe8] sm:$0xff] %v9035_v17  ;;  %v8878_v30 = vpop.f32.mrf.mxu1 }
 0x4c4   : > { %v9040_v56 = vsel %vm17578_vm15, %v9004_v27, 0.0  ;;  %v9002_v57 = vmax.f32 %v8966_v21, 0.0  ;;  %v8969_v0 = vadd.f32 %v16299_v31, %v8925_v60  ;;  %v8923_v35 = vadd.f32 %v8878_v30, %v8586_v40 }
 0x4c5   : > { %9076 = vst [vmem:[%s16312_s21 + $0x110] sm:$0xff] %v9040_v56 }
 0x4c6   : > { %v9038_v39 = vsel %vm17580_vm5, %v9002_v57, 0.0  ;;  %v9005_v29 = vmax.f32 %v8969_v0, 0.0  ;;  %v8967_v15 = vadd.f32 %v16299_v31, %v8923_v35 }
 0x4c7   : > { %9074 = vst [vmem:[%s16312_s21 + $0x100] sm:$0xff] %v9038_v39 }
 0x4c8   : > { %v9041_v11 = vsel %vm14943_vm12, %v9005_v29, 0.0  ;;  %v9003_v20 = vmax.f32 %v8967_v15, 0.0 }
 0x4c9   : > { %9077 = vst [vmem:[%s16312_s21 + $0x118] sm:$0xff] %v9041_v11 }
 0x4ca   : > { %v9039_v54 = vsel %vm17583_vm10, %v9003_v20, 0.0 }
 0x4cb   : > { %9075 = vst [vmem:[%s16312_s21 + $0x108] sm:$0xff] %v9039_v54 }
 0x4cc PF: > { %s13_s12 = sadd.s32 1, %s11528_s12  }
 0x4cd   : > { %p10_p4 = scmp.ge.s32.totalorder %s13_s12, 4  }
 0x4cf   :  { %12 = sbr.rel (!%p10_p4) target bundleno = 1 (0x1), region = 80 }

</bundles_post_ra>
